<compile_context>
chip_gen: v7x
topology: tpu7x:2x2x1
jax: 0.10.0
libtpu: 0.0.40
codegen_flags: <defaults>
</compile_context>

<pallas_src>
import functools

import jax
import jax.numpy as jnp
from jax.experimental import pallas as pl
from jax.experimental.pallas import tpu as pltpu

LN_EPS = 1e-5  # nn.LayerNorm default


# ----------------------------------------------------------------------------
# Position-bias glue (matches Attention.compute_bias exactly)
# ----------------------------------------------------------------------------
def compute_position_bias(emb, shape_2d, num_buckets):
    """emb: (num_buckets**2, dim_head) embedding table -> (S, S, dim_head)."""
    H, W = shape_2d
    half = num_buckets // 2
    qv = jnp.repeat(jnp.arange(H), W)          # (S,) vertical coord
    qh = jnp.tile(jnp.arange(W), H)            # (S,) horizontal coord
    rel_v = qv[None, :] - qv[:, None]          # memory - context  (S, S)
    rel_h = qh[None, :] - qh[:, None]
    hamming = jnp.abs(rel_v) + jnp.abs(rel_h)
    is_small = hamming <= half
    buckets = (rel_v + half) * num_buckets + (rel_h + half)
    buckets = jnp.where(is_small, buckets, 0)
    return emb[buckets]                        # (S, S, dim_head)


# ----------------------------------------------------------------------------
# One-time parameter preparation (hoisted out of the per-call path)
# ----------------------------------------------------------------------------
def prepare_attention_block_params(gamma, beta, w_qkv, w_o, emb, shape_2d,
                                   n_heads, dim_head, num_buckets,
                                   scale_flag=True, weight_dtype=jnp.bfloat16):
    D = gamma.shape[0]
    inner = n_heads * dim_head
    scale = dim_head ** (-0.5) if scale_flag else 1.0

    # PyTorch qkv weight is (3*inner, D); forward does qkv(x).reshape(B, -1, 3),
    # so output channel 3*i + j belongs to stream j (0=q, 1=k, 2=v).
    # De-interleave, fold the softmax scale into the Q columns
    #   scale*(q k^T + q pb) == (scale*q) k^T + (scale*q) pb,
    # and fuse into a single (D, 3*inner) matrix.
    w3 = w_qkv.reshape(inner, 3, D)
    wq = jnp.transpose(w3[:, 0, :]) * scale    # (D, inner)
    wk = jnp.transpose(w3[:, 1, :])
    wv = jnp.transpose(w3[:, 2, :])
    wqkv = jnp.concatenate([wq, wk, wv], axis=1)               # (D, 3*inner)

    # Fold the LayerNorm affine:  (xhat*gamma + beta) @ wqkv
    #   = xhat @ (gamma[:, None] * wqkv) + (beta @ wqkv)
    bqkv = (beta @ wqkv).reshape(1, 3 * inner).astype(jnp.float32)
    wqkv = (gamma[:, None] * wqkv).astype(weight_dtype)        # (D, 3*inner) bf16

    wo = jnp.transpose(w_o).astype(weight_dtype)               # (inner, D) bf16

    pb = compute_position_bias(emb, shape_2d, num_buckets)     # (S, S, Dh) f32
    pbt = jnp.transpose(pb, (0, 2, 1)).astype(jnp.float32)     # (S, Dh, S)

    return {"wqkv": wqkv, "bqkv": bqkv, "wo": wo, "pbt": pbt, "pb": pb}


# ----------------------------------------------------------------------------
# Pallas kernel: AttentionBlock forward for batch_block batch elements
# ----------------------------------------------------------------------------
def attention_block_kernel(x_ref, wqkv_ref, bqkv_ref, wo_ref, pbt_ref, out_ref,
                           *, batch_block, seq_len, n_heads, dim_head):
    S = seq_len
    inner = n_heads * dim_head

    x = x_ref[...].astype(jnp.float32)                         # (batch_block*S, D)

    # --- LayerNorm (biased variance, eps=1e-5); gamma/beta folded into weights ---
    mean = jnp.mean(x, axis=-1, keepdims=True)
    var = jnp.mean((x - mean) ** 2, axis=-1, keepdims=True)
    xhat = (x - mean) * jax.lax.rsqrt(var + LN_EPS)

    # --- fused QKV projection: bf16 operands, f32 accumulation, folded LN bias ---
    qkv = jnp.dot(xhat.astype(wqkv_ref.dtype), wqkv_ref[...],
                  preferred_element_type=jnp.float32) + bqkv_ref[...]  # (R, 3*inner)
    q_all = qkv[:, :inner]                                     # pre-scaled by softmax scale
    k_all = qkv[:, inner:2 * inner]
    v_all = qkv[:, 2 * inner:]

    attn_rows = []
    for b in range(batch_block):                               # static unroll over batch
        r0 = b * S
        heads = []
        for h in range(n_heads):                               # static unroll over heads
            c0 = h * dim_head
            qh = q_all[r0:r0 + S, c0:c0 + dim_head]            # (S, Dh)
            kh = k_all[r0:r0 + S, c0:c0 + dim_head]
            vh = v_all[r0:r0 + S, c0:c0 + dim_head]

            # scores = q @ k.T (contraction on last dims; bf16 operands, f32 acc)
            s = jax.lax.dot_general(qh.astype(jnp.bfloat16), kh.astype(jnp.bfloat16),
                                    (((1,), (1,)), ((), ())),
                                    preferred_element_type=jnp.float32)   # (S, S)

            # contextual relative-position term on the VPU:
            #   ctx[q, k] = sum_d qh[q, d] * pb[q, k, d]   (pb pre-transposed to (S, Dh, S))
            ctx = jnp.sum(qh[:, :, None] * pbt_ref[...], axis=1)          # (S, S)
            s = s + ctx

            # softmax over keys (f32); divide moved to the EUP reciprocal slot
            s = s - jnp.max(s, axis=-1, keepdims=True)
            e = jnp.exp(s)
            p = e * pl.reciprocal(jnp.sum(e, axis=-1, keepdims=True), approx=True)

            heads.append(jnp.dot(p.astype(jnp.bfloat16), vh.astype(jnp.bfloat16),
                                 preferred_element_type=jnp.float32))     # (S, Dh)
        attn_rows.append(jnp.concatenate(heads, axis=-1))                 # (S, inner)

    attn = jnp.concatenate(attn_rows, axis=0)                             # (R, inner)
    o = jnp.dot(attn.astype(wo_ref.dtype), wo_ref[...],
                preferred_element_type=jnp.float32)                       # (R, D)

    # dropout(p=0.0) -> identity; residual uses the *un-normed* input
    out_ref[...] = (x + o).astype(out_ref.dtype)


# ----------------------------------------------------------------------------
# Wrapper (forward pass; params come from prepare_attention_block_params)
# ----------------------------------------------------------------------------
def attention_block(x, params, *, n_heads, dim_head, batch_block=None):
    B, S, D = x.shape

    if batch_block is None:
        # Fold enough batch elements into one grid step to fill the MXU M dim
        # (best for single-TC v5e/v6e).  On v7x, pass batch_block=B//2 (or keep
        # batch_block=1) so both TensorCores get grid steps.
        batch_block = max(1, min(B, max(1, 128 // S)))
        while B % batch_block:
            batch_block -= 1
    assert B % batch_block == 0
    rows = batch_block * S

    x2d = x.reshape(B * S, D)
    kernel = functools.partial(attention_block_kernel,
                               batch_block=batch_block, seq_len=S,
                               n_heads=n_heads, dim_head=dim_head)

    out2d = pl.pallas_call(
        kernel,
        out_shape=jax.ShapeDtypeStruct((B * S, D), x.dtype),
        grid_spec=pltpu.PrefetchScalarGridSpec(
            num_scalar_prefetch=0,
            grid=(B // batch_block,),
            in_specs=[
                pl.BlockSpec((rows, D), lambda i: (i, 0)),                 # x (flat rows)
                pl.BlockSpec(params["wqkv"].shape, lambda i: (0, 0)),      # gamma-folded Wqkv
                pl.BlockSpec(params["bqkv"].shape, lambda i: (0, 0)),      # beta @ Wqkv
                pl.BlockSpec(params["wo"].shape, lambda i: (0, 0)),        # Wo
                pl.BlockSpec(params["pbt"].shape, lambda i: (0, 0, 0)),    # pb^T (S, Dh, S)
            ],
            out_specs=pl.BlockSpec((rows, D), lambda i: (i, 0)),
        ),
        compiler_params=pltpu.CompilerParams(
            dimension_semantics=("parallel",)),
    )(x2d, params["wqkv"], params["bqkv"], params["wo"], params["pbt"])

    # AttentionBlock.forward returns (hidden_states, position_bias)
    return out2d.reshape(B, S, D), params["pb"]


# ----------------------------------------------------------------------------
# Pure-JAX reference (mirrors the PyTorch math) for verification
# ----------------------------------------------------------------------------
def reference_forward(x, gamma, beta, w_qkv, w_o, emb, shape_2d,
                      n_heads, dim_head, num_buckets):
    B, S, D = x.shape
    inner = n_heads * dim_head
    mean = jnp.mean(x, axis=-1, keepdims=True)
    var = jnp.mean((x - mean) ** 2, axis=-1, keepdims=True)
    normed = (x - mean) / jnp.sqrt(var + LN_EPS) * gamma + beta
    qkv = normed @ w_qkv.T                                  # (B, S, 3*inner)
    qkv = qkv.reshape(B, S, inner, 3)

    def shape_heads(t):                                     # (B,S,inner)->(B,n,S,Dh)
        return t.reshape(B, S, n_heads, dim_head).transpose(0, 2, 1, 3)

    q = shape_heads(qkv[..., 0])
    k = shape_heads(qkv[..., 1])
    v = shape_heads(qkv[..., 2])
    scores = jnp.einsum('bnqd,bnkd->bnqk', q, k)
    pb = compute_position_bias(emb, shape_2d, num_buckets)
    ctx = jnp.einsum('bnqd,qkd->bnqk', q, pb)
    scores = (scores + ctx) * (dim_head ** -0.5)
    attn = jax.nn.softmax(scores, axis=-1)
    out = jnp.einsum('bnqk,bnkd->bnqd', attn, v)
    out = out.transpose(0, 2, 1, 3).reshape(B, S, inner) @ w_o.T
    return x + out


if __name__ == "__main__":
    # config: dim=32, num_heads=2, dim_head=16, relative_attention_num_buckets=9,
    #         dropout_rate=0.0, scale=True; spatial shape_2d=(8, 8) -> S=64
    B, dim, n_heads, dim_head = 2, 32, 2, 16
    num_buckets = 9
    H = W = 8
    S = H * W
    inner = n_heads * dim_head

    key = jax.random.PRNGKey(0)
    ks = jax.random.split(key, 6)
    x = jax.random.normal(ks[0], (B, S, dim), jnp.float32)
    gamma = 1.0 + 0.05 * jax.random.normal(ks[1], (dim,), jnp.float32)
    beta = 0.05 * jax.random.normal(ks[2], (dim,), jnp.float32)
    w_qkv = 0.1 * jax.random.normal(ks[3], (3 * inner, dim), jnp.float32)
    w_o = 0.1 * jax.random.normal(ks[4], (dim, inner), jnp.float32)
    emb = 0.1 * jax.random.normal(ks[5], (num_buckets ** 2, dim_head), jnp.float32)

    # One-time preprocessing (would be cached at module init for inference).
    params = prepare_attention_block_params(gamma, beta, w_qkv, w_o, emb, (H, W),
                                            n_heads, dim_head, num_buckets)

    out, pos_bias = attention_block(x, params, n_heads=n_heads, dim_head=dim_head)
    out = jax.block_until_ready(out)

    ref = reference_forward(x, gamma, beta, w_qkv, w_o, emb, (H, W),
                            n_heads, dim_head, num_buckets)
    assert out.shape == (B, S, dim)
    assert pos_bias.shape == (S, S, dim_head)
    # tolerance covers bf16 MXU operands + the EUP approximate-reciprocal softmax
    assert jnp.allclose(out, ref, atol=2e-2, rtol=2e-2), "mismatch vs reference"

    print("KERNEL_OK")
</pallas_src>

<mosaic_0001>
module attributes {stable_mosaic.version = 11 : i64} {
  func.func @attention_block_kernel(%arg0: i32, %arg1: memref<128x32xf32, #tpu.memory_space<vmem>>, %arg2: memref<32x96xbf16, #tpu.memory_space<vmem>>, %arg3: memref<1x96xf32, #tpu.memory_space<vmem>>, %arg4: memref<32x32xbf16, #tpu.memory_space<vmem>>, %arg5: memref<64x16x64xf32, #tpu.memory_space<vmem>>, %arg6: memref<128x32xf32, #tpu.memory_space<vmem>>) attributes {dimension_semantics = [#tpu.dimension_semantics<parallel>], iteration_bounds = array<i64: 1>, scalar_prefetch = 0 : i64, scratch_operands = 0 : i64, tpu.core_type = #tpu.core_type<tc>, window_params = [{transform_indices = @transform_0, window_bounds = array<i64: 128, 32>}, {pipeline_mode = #tpu.pipeline_mode<synchronous>, transform_indices = @transform_1, window_bounds = array<i64: 32, 96>}, {pipeline_mode = #tpu.pipeline_mode<synchronous>, transform_indices = @transform_2, window_bounds = array<i64: 1, 96>}, {pipeline_mode = #tpu.pipeline_mode<synchronous>, transform_indices = @transform_3, window_bounds = array<i64: 32, 32>}, {pipeline_mode = #tpu.pipeline_mode<synchronous>, transform_indices = @transform_4, window_bounds = array<i64: 64, 16, 64>}, {transform_indices = @transform_5, window_bounds = array<i64: 128, 32>}]} {
    %c0 = arith.constant 0 : index
    %c0_0 = arith.constant 0 : index
    %0 = vector.load %arg1[%c0, %c0_0] : memref<128x32xf32, #tpu.memory_space<vmem>>, vector<128x32xf32>
    %cst = arith.constant dense<0.000000e+00> : vector<128xf32>
    %1 = vector.multi_reduction <add>, %0, %cst [1] : vector<128x32xf32> to vector<128xf32>
    %2 = vector.shape_cast %1 : vector<128xf32> to vector<128x1xf32>
    %cst_1 = arith.constant 3.200000e+01 : f32
    %3 = vector.broadcast %cst_1 : f32 to vector<128x1xf32>
    %4 = arith.divf %2, %3 : vector<128x1xf32>
    %5 = vector.broadcast %4 : vector<128x1xf32> to vector<128x32xf32>
    %6 = arith.subf %0, %5 : vector<128x32xf32>
    %7 = arith.mulf %6, %6 : vector<128x32xf32>
    %cst_2 = arith.constant dense<0.000000e+00> : vector<128xf32>
    %8 = vector.multi_reduction <add>, %7, %cst_2 [1] : vector<128x32xf32> to vector<128xf32>
    %9 = vector.shape_cast %8 : vector<128xf32> to vector<128x1xf32>
    %cst_3 = arith.constant 3.200000e+01 : f32
    %10 = vector.broadcast %cst_3 : f32 to vector<128x1xf32>
    %11 = arith.divf %9, %10 : vector<128x1xf32>
    %12 = vector.broadcast %4 : vector<128x1xf32> to vector<128x32xf32>
    %13 = arith.subf %0, %12 : vector<128x32xf32>
    %cst_4 = arith.constant 9.99999974E-6 : f32
    %14 = vector.broadcast %cst_4 : f32 to vector<128x1xf32>
    %15 = arith.addf %11, %14 : vector<128x1xf32>
    %16 = math.rsqrt %15 : vector<128x1xf32>
    %17 = vector.broadcast %16 : vector<128x1xf32> to vector<128x32xf32>
    %18 = arith.mulf %13, %17 : vector<128x32xf32>
    %19 = arith.truncf %18 : vector<128x32xf32> to vector<128x32xbf16>
    %c0_5 = arith.constant 0 : index
    %c0_6 = arith.constant 0 : index
    %20 = vector.load %arg2[%c0_5, %c0_6] : memref<32x96xbf16, #tpu.memory_space<vmem>>, vector<32x96xbf16>
    %cst_7 = arith.constant dense<0.000000e+00> : vector<128x96xf32>
    %21 = tpu.matmul %19, %20, %cst_7 {dimension_numbers = #tpu.dot_dimension_numbers<[1], [0], [0], [1], [0, 0, 1, 1], [], []>} : vector<128x32xbf16>, vector<32x96xbf16>, vector<128x96xf32> -> vector<128x96xf32>
    %c0_8 = arith.constant 0 : index
    %c0_9 = arith.constant 0 : index
    %22 = vector.load %arg3[%c0_8, %c0_9] : memref<1x96xf32, #tpu.memory_space<vmem>>, vector<1x96xf32>
    %23 = vector.broadcast %22 : vector<1x96xf32> to vector<128x96xf32>
    %24 = arith.addf %21, %23 : vector<128x96xf32>
    %25 = vector.extract_strided_slice %24 {offsets = [0, 0], sizes = [128, 32], strides = [1, 1]} : vector<128x96xf32> to vector<128x32xf32>
    %26 = vector.extract_strided_slice %24 {offsets = [0, 32], sizes = [128, 32], strides = [1, 1]} : vector<128x96xf32> to vector<128x32xf32>
    %27 = vector.extract_strided_slice %24 {offsets = [0, 64], sizes = [128, 32], strides = [1, 1]} : vector<128x96xf32> to vector<128x32xf32>
    %28 = vector.extract_strided_slice %25 {offsets = [0, 0], sizes = [64, 16], strides = [1, 1]} : vector<128x32xf32> to vector<64x16xf32>
    %29 = vector.extract_strided_slice %26 {offsets = [0, 0], sizes = [64, 16], strides = [1, 1]} : vector<128x32xf32> to vector<64x16xf32>
    %30 = vector.extract_strided_slice %27 {offsets = [0, 0], sizes = [64, 16], strides = [1, 1]} : vector<128x32xf32> to vector<64x16xf32>
    %31 = arith.truncf %28 : vector<64x16xf32> to vector<64x16xbf16>
    %32 = arith.truncf %29 : vector<64x16xf32> to vector<64x16xbf16>
    %cst_10 = arith.constant dense<0.000000e+00> : vector<64x64xf32>
    %33 = tpu.matmul %31, %32, %cst_10 {dimension_numbers = #tpu.dot_dimension_numbers<[1], [1], [0], [0], [0, 0, 1, 0], [], []>} : vector<64x16xbf16>, vector<64x16xbf16>, vector<64x64xf32> -> vector<64x64xf32>
    %34 = vector.shape_cast %28 : vector<64x16xf32> to vector<64x16x1xf32>
    %c0_11 = arith.constant 0 : index
    %c0_12 = arith.constant 0 : index
    %c0_13 = arith.constant 0 : index
    %35 = vector.load %arg5[%c0_11, %c0_12, %c0_13] : memref<64x16x64xf32, #tpu.memory_space<vmem>>, vector<64x16x64xf32>
    %36 = vector.broadcast %34 : vector<64x16x1xf32> to vector<64x16x64xf32>
    %37 = arith.mulf %36, %35 : vector<64x16x64xf32>
    %cst_14 = arith.constant dense<0.000000e+00> : vector<64x64xf32>
    %38 = vector.multi_reduction <add>, %37, %cst_14 [1] : vector<64x16x64xf32> to vector<64x64xf32>
    %39 = arith.addf %33, %38 : vector<64x64xf32>
    %cst_15 = arith.constant dense<0xFF800000> : vector<64xf32>
    %40 = vector.multi_reduction <maximumf>, %39, %cst_15 [1] : vector<64x64xf32> to vector<64xf32>
    %41 = vector.shape_cast %40 : vector<64xf32> to vector<64x1xf32>
    %42 = vector.broadcast %41 : vector<64x1xf32> to vector<64x64xf32>
    %43 = arith.subf %39, %42 : vector<64x64xf32>
    %44 = math.exp %43 : vector<64x64xf32>
    %cst_16 = arith.constant dense<0.000000e+00> : vector<64xf32>
    %45 = vector.multi_reduction <add>, %44, %cst_16 [1] : vector<64x64xf32> to vector<64xf32>
    %46 = vector.shape_cast %45 : vector<64xf32> to vector<64x1xf32>
    %47 = tpu.reciprocal %46 {approx = true} : vector<64x1xf32> -> vector<64x1xf32>
    %48 = vector.broadcast %47 : vector<64x1xf32> to vector<64x64xf32>
    %49 = arith.mulf %44, %48 : vector<64x64xf32>
    %50 = arith.truncf %49 : vector<64x64xf32> to vector<64x64xbf16>
    %51 = arith.truncf %30 : vector<64x16xf32> to vector<64x16xbf16>
    %cst_17 = arith.constant dense<0.000000e+00> : vector<64x16xf32>
    %52 = tpu.matmul %50, %51, %cst_17 {dimension_numbers = #tpu.dot_dimension_numbers<[1], [0], [0], [1], [0, 0, 1, 1], [], []>} : vector<64x64xbf16>, vector<64x16xbf16>, vector<64x16xf32> -> vector<64x16xf32>
    %53 = vector.extract_strided_slice %25 {offsets = [0, 16], sizes = [64, 16], strides = [1, 1]} : vector<128x32xf32> to vector<64x16xf32>
    %54 = vector.extract_strided_slice %26 {offsets = [0, 16], sizes = [64, 16], strides = [1, 1]} : vector<128x32xf32> to vector<64x16xf32>
    %55 = vector.extract_strided_slice %27 {offsets = [0, 16], sizes = [64, 16], strides = [1, 1]} : vector<128x32xf32> to vector<64x16xf32>
    %56 = arith.truncf %53 : vector<64x16xf32> to vector<64x16xbf16>
    %57 = arith.truncf %54 : vector<64x16xf32> to vector<64x16xbf16>
    %cst_18 = arith.constant dense<0.000000e+00> : vector<64x64xf32>
    %58 = tpu.matmul %56, %57, %cst_18 {dimension_numbers = #tpu.dot_dimension_numbers<[1], [1], [0], [0], [0, 0, 1, 0], [], []>} : vector<64x16xbf16>, vector<64x16xbf16>, vector<64x64xf32> -> vector<64x64xf32>
    %59 = vector.shape_cast %53 : vector<64x16xf32> to vector<64x16x1xf32>
    %c0_19 = arith.constant 0 : index
    %c0_20 = arith.constant 0 : index
    %c0_21 = arith.constant 0 : index
    %60 = vector.load %arg5[%c0_19, %c0_20, %c0_21] : memref<64x16x64xf32, #tpu.memory_space<vmem>>, vector<64x16x64xf32>
    %61 = vector.broadcast %59 : vector<64x16x1xf32> to vector<64x16x64xf32>
    %62 = arith.mulf %61, %60 : vector<64x16x64xf32>
    %cst_22 = arith.constant dense<0.000000e+00> : vector<64x64xf32>
    %63 = vector.multi_reduction <add>, %62, %cst_22 [1] : vector<64x16x64xf32> to vector<64x64xf32>
    %64 = arith.addf %58, %63 : vector<64x64xf32>
    %cst_23 = arith.constant dense<0xFF800000> : vector<64xf32>
    %65 = vector.multi_reduction <maximumf>, %64, %cst_23 [1] : vector<64x64xf32> to vector<64xf32>
    %66 = vector.shape_cast %65 : vector<64xf32> to vector<64x1xf32>
    %67 = vector.broadcast %66 : vector<64x1xf32> to vector<64x64xf32>
    %68 = arith.subf %64, %67 : vector<64x64xf32>
    %69 = math.exp %68 : vector<64x64xf32>
    %cst_24 = arith.constant dense<0.000000e+00> : vector<64xf32>
    %70 = vector.multi_reduction <add>, %69, %cst_24 [1] : vector<64x64xf32> to vector<64xf32>
    %71 = vector.shape_cast %70 : vector<64xf32> to vector<64x1xf32>
    %72 = tpu.reciprocal %71 {approx = true} : vector<64x1xf32> -> vector<64x1xf32>
    %73 = vector.broadcast %72 : vector<64x1xf32> to vector<64x64xf32>
    %74 = arith.mulf %69, %73 : vector<64x64xf32>
    %75 = arith.truncf %74 : vector<64x64xf32> to vector<64x64xbf16>
    %76 = arith.truncf %55 : vector<64x16xf32> to vector<64x16xbf16>
    %cst_25 = arith.constant dense<0.000000e+00> : vector<64x16xf32>
    %77 = tpu.matmul %75, %76, %cst_25 {dimension_numbers = #tpu.dot_dimension_numbers<[1], [0], [0], [1], [0, 0, 1, 1], [], []>} : vector<64x64xbf16>, vector<64x16xbf16>, vector<64x16xf32> -> vector<64x16xf32>
    %78 = tpu.concatenate %52, %77 in 1 : vector<64x16xf32>, vector<64x16xf32> -> vector<64x32xf32>
    %79 = vector.extract_strided_slice %25 {offsets = [64, 0], sizes = [64, 16], strides = [1, 1]} : vector<128x32xf32> to vector<64x16xf32>
    %80 = vector.extract_strided_slice %26 {offsets = [64, 0], sizes = [64, 16], strides = [1, 1]} : vector<128x32xf32> to vector<64x16xf32>
    %81 = vector.extract_strided_slice %27 {offsets = [64, 0], sizes = [64, 16], strides = [1, 1]} : vector<128x32xf32> to vector<64x16xf32>
    %82 = arith.truncf %79 : vector<64x16xf32> to vector<64x16xbf16>
    %83 = arith.truncf %80 : vector<64x16xf32> to vector<64x16xbf16>
    %cst_26 = arith.constant dense<0.000000e+00> : vector<64x64xf32>
    %84 = tpu.matmul %82, %83, %cst_26 {dimension_numbers = #tpu.dot_dimension_numbers<[1], [1], [0], [0], [0, 0, 1, 0], [], []>} : vector<64x16xbf16>, vector<64x16xbf16>, vector<64x64xf32> -> vector<64x64xf32>
    %85 = vector.shape_cast %79 : vector<64x16xf32> to vector<64x16x1xf32>
    %c0_27 = arith.constant 0 : index
    %c0_28 = arith.constant 0 : index
    %c0_29 = arith.constant 0 : index
    %86 = vector.load %arg5[%c0_27, %c0_28, %c0_29] : memref<64x16x64xf32, #tpu.memory_space<vmem>>, vector<64x16x64xf32>
    %87 = vector.broadcast %85 : vector<64x16x1xf32> to vector<64x16x64xf32>
    %88 = arith.mulf %87, %86 : vector<64x16x64xf32>
    %cst_30 = arith.constant dense<0.000000e+00> : vector<64x64xf32>
    %89 = vector.multi_reduction <add>, %88, %cst_30 [1] : vector<64x16x64xf32> to vector<64x64xf32>
    %90 = arith.addf %84, %89 : vector<64x64xf32>
    %cst_31 = arith.constant dense<0xFF800000> : vector<64xf32>
    %91 = vector.multi_reduction <maximumf>, %90, %cst_31 [1] : vector<64x64xf32> to vector<64xf32>
    %92 = vector.shape_cast %91 : vector<64xf32> to vector<64x1xf32>
    %93 = vector.broadcast %92 : vector<64x1xf32> to vector<64x64xf32>
    %94 = arith.subf %90, %93 : vector<64x64xf32>
    %95 = math.exp %94 : vector<64x64xf32>
    %cst_32 = arith.constant dense<0.000000e+00> : vector<64xf32>
    %96 = vector.multi_reduction <add>, %95, %cst_32 [1] : vector<64x64xf32> to vector<64xf32>
    %97 = vector.shape_cast %96 : vector<64xf32> to vector<64x1xf32>
    %98 = tpu.reciprocal %97 {approx = true} : vector<64x1xf32> -> vector<64x1xf32>
    %99 = vector.broadcast %98 : vector<64x1xf32> to vector<64x64xf32>
    %100 = arith.mulf %95, %99 : vector<64x64xf32>
    %101 = arith.truncf %100 : vector<64x64xf32> to vector<64x64xbf16>
    %102 = arith.truncf %81 : vector<64x16xf32> to vector<64x16xbf16>
    %cst_33 = arith.constant dense<0.000000e+00> : vector<64x16xf32>
    %103 = tpu.matmul %101, %102, %cst_33 {dimension_numbers = #tpu.dot_dimension_numbers<[1], [0], [0], [1], [0, 0, 1, 1], [], []>} : vector<64x64xbf16>, vector<64x16xbf16>, vector<64x16xf32> -> vector<64x16xf32>
    %104 = vector.extract_strided_slice %25 {offsets = [64, 16], sizes = [64, 16], strides = [1, 1]} : vector<128x32xf32> to vector<64x16xf32>
    %105 = vector.extract_strided_slice %26 {offsets = [64, 16], sizes = [64, 16], strides = [1, 1]} : vector<128x32xf32> to vector<64x16xf32>
    %106 = vector.extract_strided_slice %27 {offsets = [64, 16], sizes = [64, 16], strides = [1, 1]} : vector<128x32xf32> to vector<64x16xf32>
    %107 = arith.truncf %104 : vector<64x16xf32> to vector<64x16xbf16>
    %108 = arith.truncf %105 : vector<64x16xf32> to vector<64x16xbf16>
    %cst_34 = arith.constant dense<0.000000e+00> : vector<64x64xf32>
    %109 = tpu.matmul %107, %108, %cst_34 {dimension_numbers = #tpu.dot_dimension_numbers<[1], [1], [0], [0], [0, 0, 1, 0], [], []>} : vector<64x16xbf16>, vector<64x16xbf16>, vector<64x64xf32> -> vector<64x64xf32>
    %110 = vector.shape_cast %104 : vector<64x16xf32> to vector<64x16x1xf32>
    %c0_35 = arith.constant 0 : index
    %c0_36 = arith.constant 0 : index
    %c0_37 = arith.constant 0 : index
    %111 = vector.load %arg5[%c0_35, %c0_36, %c0_37] : memref<64x16x64xf32, #tpu.memory_space<vmem>>, vector<64x16x64xf32>
    %112 = vector.broadcast %110 : vector<64x16x1xf32> to vector<64x16x64xf32>
    %113 = arith.mulf %112, %111 : vector<64x16x64xf32>
    %cst_38 = arith.constant dense<0.000000e+00> : vector<64x64xf32>
    %114 = vector.multi_reduction <add>, %113, %cst_38 [1] : vector<64x16x64xf32> to vector<64x64xf32>
    %115 = arith.addf %109, %114 : vector<64x64xf32>
    %cst_39 = arith.constant dense<0xFF800000> : vector<64xf32>
    %116 = vector.multi_reduction <maximumf>, %115, %cst_39 [1] : vector<64x64xf32> to vector<64xf32>
    %117 = vector.shape_cast %116 : vector<64xf32> to vector<64x1xf32>
    %118 = vector.broadcast %117 : vector<64x1xf32> to vector<64x64xf32>
    %119 = arith.subf %115, %118 : vector<64x64xf32>
    %120 = math.exp %119 : vector<64x64xf32>
    %cst_40 = arith.constant dense<0.000000e+00> : vector<64xf32>
    %121 = vector.multi_reduction <add>, %120, %cst_40 [1] : vector<64x64xf32> to vector<64xf32>
    %122 = vector.shape_cast %121 : vector<64xf32> to vector<64x1xf32>
    %123 = tpu.reciprocal %122 {approx = true} : vector<64x1xf32> -> vector<64x1xf32>
    %124 = vector.broadcast %123 : vector<64x1xf32> to vector<64x64xf32>
    %125 = arith.mulf %120, %124 : vector<64x64xf32>
    %126 = arith.truncf %125 : vector<64x64xf32> to vector<64x64xbf16>
    %127 = arith.truncf %106 : vector<64x16xf32> to vector<64x16xbf16>
    %cst_41 = arith.constant dense<0.000000e+00> : vector<64x16xf32>
    %128 = tpu.matmul %126, %127, %cst_41 {dimension_numbers = #tpu.dot_dimension_numbers<[1], [0], [0], [1], [0, 0, 1, 1], [], []>} : vector<64x64xbf16>, vector<64x16xbf16>, vector<64x16xf32> -> vector<64x16xf32>
    %129 = tpu.concatenate %103, %128 in 1 : vector<64x16xf32>, vector<64x16xf32> -> vector<64x32xf32>
    %130 = tpu.concatenate %78, %129 in 0 : vector<64x32xf32>, vector<64x32xf32> -> vector<128x32xf32>
    %131 = arith.truncf %130 : vector<128x32xf32> to vector<128x32xbf16>
    %c0_42 = arith.constant 0 : index
    %c0_43 = arith.constant 0 : index
    %132 = vector.load %arg4[%c0_42, %c0_43] : memref<32x32xbf16, #tpu.memory_space<vmem>>, vector<32x32xbf16>
    %cst_44 = arith.constant dense<0.000000e+00> : vector<128x32xf32>
    %133 = tpu.matmul %131, %132, %cst_44 {dimension_numbers = #tpu.dot_dimension_numbers<[1], [0], [0], [1], [0, 0, 1, 1], [], []>} : vector<128x32xbf16>, vector<32x32xbf16>, vector<128x32xf32> -> vector<128x32xf32>
    %134 = arith.addf %0, %133 : vector<128x32xf32>
    %c0_45 = arith.constant 0 : index
    %c0_46 = arith.constant 0 : index
    %135 = vector.load %arg6[%c0_45, %c0_46] : memref<128x32xf32, #tpu.memory_space<vmem>>, vector<128x32xf32>
    tpu.vector_store %arg6[%c0_45, %c0_46], %134 {strides = array<i32>} : memref<128x32xf32, #tpu.memory_space<vmem>>, vector<128x32xf32>,
    return
  }
  func.func @transform_0(%arg0: i32) -> (i32, i32) {
    %c0_i32 = arith.constant 0 : i32
    %c0_i32_0 = arith.constant 0 : i32
    return %arg0, %c0_i32 : i32, i32
  }
  func.func @transform_1(%arg0: i32) -> (i32, i32) {
    %c0_i32 = arith.constant 0 : i32
    %c0_i32_0 = arith.constant 0 : i32
    %c0_i32_1 = arith.constant 0 : i32
    return %c0_i32, %c0_i32_0 : i32, i32
  }
  func.func @transform_2(%arg0: i32) -> (i32, i32) {
    %c0_i32 = arith.constant 0 : i32
    %c0_i32_0 = arith.constant 0 : i32
    %c0_i32_1 = arith.constant 0 : i32
    return %c0_i32, %c0_i32_0 : i32, i32
  }
  func.func @transform_3(%arg0: i32) -> (i32, i32) {
    %c0_i32 = arith.constant 0 : i32
    %c0_i32_0 = arith.constant 0 : i32
    %c0_i32_1 = arith.constant 0 : i32
    return %c0_i32, %c0_i32_0 : i32, i32
  }
  func.func @transform_4(%arg0: i32) -> (i32, i32, i32) {
    %c0_i32 = arith.constant 0 : i32
    %c0_i32_0 = arith.constant 0 : i32
    %c0_i32_1 = arith.constant 0 : i32
    %c0_i32_2 = arith.constant 0 : i32
    return %c0_i32, %c0_i32_0, %c0_i32_1 : i32, i32, i32
  }
  func.func @transform_5(%arg0: i32) -> (i32, i32) {
    %c0_i32 = arith.constant 0 : i32
    %c0_i32_0 = arith.constant 0 : i32
    return %arg0, %c0_i32 : i32, i32
  }
}

</mosaic_0001>

<bundles_post_ra>
// kernel: tpu_custom_call.1
= control target key start
LH: loop header
LB: loop body
LE: loop exit
PB: predicated region body
PF: predicated region fallthrough
CT: control target
= control target key end

     0   :  { %10 = vsyncpa [#allocation3], 0  ;;  %s8561_s18 = smov [#allocation2]   ;;  %s13808_s0 = inlined_call_operand.vmem [shape: f32[128,32], index: 0, kind: input, shape index: {}]   ;;  %s13809_s1 = inlined_call_operand.vmem [shape: bf16[32,96], index: 1, kind: input, shape index: {}]   ;;  %s13810_s2 = inlined_call_operand.vmem [shape: f32[1,96], index: 2, kind: input, shape index: {}]   ;;  %s13811_s3 = inlined_call_operand.vmem [shape: bf16[32,32], index: 3, kind: input, shape index: {}]   ;;  %s13812_s4 = inlined_call_operand.hbm [shape: f32[64,16,64], index: 4, kind: input, shape index: {}]   ;;  %s13813_s5 = inlined_call_operand.vmem [shape: f32[128,32], index: 5, kind: output, shape index: {}]  }
   0x1   :  { %s24_s19 = sshll.u32 %s8561_s18, 4  ;;  %s8537_s22 = scalar_lea.hbm %s13812_s4, 16384  ;;  %s25_s19 = int_to_ptr.vmem [resolvable:$true] %s24_s19 }
   0x2   :  { %p8538_p0 = scmp.ne.s32.totalorder %s13812_s4, %s8537_s22  ;;  %p8541_p1 = scmp.lt.u32.totalorder %s8537_s22, %s13812_s4 }
   0x4   :  { %p8543_p2 = pnand %p8541_p1, %p8538_p0 }
   0x6   :  { %8546 = shalt.err (!%p8543_p2)
}
   0x7   :  { %s8547_s27 = scalar_lea.vmem %s25_s19, 16384  ;;  %p8552_p4 = scmp.lt.s32.totalorder %s25_s19, %s25_s19 }
   0x8   :  { %p8548_p3 = scmp.ne.s32.totalorder %s25_s19, %s8547_s27  ;;  %p8553_p5 = scmp.lt.s32.totalorder %s8547_s27, %s8547_s27 }
   0xa   :  { %p8554_p6 = por %p8553_p5, %p8552_p4 }
   0xc   :  { %p8555_p7 = pnand %p8554_p6, %p8548_p3 }
   0xe   :  { %8558 = shalt.err (!%p8555_p7)
}
   0xf   :  { %s8562_s28 = smov 128   ;;  %s8563_s29 = smov 8  }
  0x10   :  { %30 = dma.hbm_to_vmem [thread:$0]  %s13812_s4, 16384, %s25_s19, [#allocation3], %s8562_s28, %s8562_s28, %s8563_s29  }
  0x11   :  { %8559 = dma.done.wait [#allocation3], 16384  }
  0x12   :  { %8560 = vsyncadd [#allocation3], 4294950912  ;;  %vm51_vm0 = vcmask 261120   ;;  %v35_v0 = vld [vmem:[%s13808_s0] sm:$0xff]  ;;  %v37_v1 = vld [vmem:[%s13808_s0 + $0x10] sm:$0xff]  ;;  %vm2101_vm1 = vcmask 130048  }
  0x13   :  { %v36_v2 = vld [vmem:[%s13808_s0 + $0x8] sm:$0xff]  ;;  %v52_v3 = vsel %vm51_vm0, %v35_v0, 0.0  ;;  %v58_v4 = vsel %vm51_vm0, %v37_v1, 0.0  ;;  %v38_v5 = vld [vmem:[%s13808_s0 + $0x18] sm:$0xff]  ;;  %v8629_v6 = vld [vmem:[%s13808_s0 + $0x20] sm:$0xff]  ;;  %s8565_s17 = smov 80  }
  0x14   :  { %53 = vadd.xlane.f32.xlu0 %v52_v3  ;;  %59 = vadd.xlane.f32.xlu1 %v58_v4  ;;  %v55_v7 = vsel %vm51_vm0, %v36_v2, 0.0  ;;  %v61_v8 = vsel %vm51_vm0, %v38_v5, 0.0  ;;  %v40_v9 = vld [vmem:[%s13808_s0 + $0x28] sm:$0xff]  ;;  %v64_v10 = vsel %vm51_vm0, %v8629_v6, 0.0  ;;  %v8642_v12 = vld [vmem:[%s13808_s0 + $0x30] sm:$0xff]  ;;  %v8647_v13 = vld [vmem:[%s13808_s0 + $0x38] sm:$0xff] }
  0x15   :  { %v67_v11 = vsel %vm51_vm0, %v40_v9, 0.0  ;;  %v70_v14 = vsel %vm51_vm0, %v8642_v12, 0.0  ;;  %v73_v15 = vsel %vm51_vm0, %v8647_v13, 0.0  ;;  %v8656_v16 = vld [vmem:[%s13808_s0 + $0x40] sm:$0xff]  ;;  %v8661_v17 = vld [vmem:[%s13808_s0 + $0x48] sm:$0xff]  ;;  %v8670_v20 = vld [vmem:[%s13808_s0 + $0x50] sm:$0xff] }
  0x16   :  { %v76_v18 = vsel %vm51_vm0, %v8656_v16, 0.0  ;;  %v79_v19 = vsel %vm51_vm0, %v8661_v17, 0.0  ;;  %v8675_v21 = vld [vmem:[%s13808_s0 + $0x58] sm:$0xff]  ;;  %v82_v22 = vsel %vm51_vm0, %v8670_v20, 0.0  ;;  %v8684_v24 = vld [vmem:[%s13808_s0 + $0x60] sm:$0xff]  ;;  %v8689_v25 = vld [vmem:[%s13808_s0 + $0x68] sm:$0xff] }
  0x17   :  { %v85_v23 = vsel %vm51_vm0, %v8675_v21, 0.0  ;;  %v88_v26 = vsel %vm51_vm0, %v8684_v24, 0.0  ;;  %v91_v27 = vsel %vm51_vm0, %v8689_v25, 0.0  ;;  %v8698_v28 = vld [vmem:[%s13808_s0 + $0x70] sm:$0xff]  ;;  %v8703_v29 = vld [vmem:[%s13808_s0 + $0x78] sm:$0xff]  ;;  %s8566_s18 = smov 112  }
  0x18   :  { %56 = vadd.xlane.f32.xlu0 %v55_v7  ;;  %62 = vadd.xlane.f32.xlu1 %v61_v8  ;;  %v94_v30 = vsel %vm51_vm0, %v8698_v28, 0.0  ;;  %v97_v31 = vsel %vm51_vm0, %v8703_v29, 0.0  ;;  %vm1377_vm2 = vcmask 523264   ;;  %vm2030_vm3 = vcmask 1041409   ;;  %s8567_s19 = smov 64   ;;  %s8568_s20 = smov 48  }
  0x19   :  { %vm2032_vm4 = vcmask 1042434   ;;  %vm2034_vm5 = vcmask 1043459   ;;  %vm2036_vm6 = vcmask 1044484   ;;  %vm2038_vm7 = vcmask 1045509   ;;  %s8569_s21 = smov 16  }
  0x1a   :  { %vm2040_vm8 = vcmask 1046534   ;;  %vm2042_vm9 = vcmask 1047559  }
  0x1c   :  { %65 = vadd.xlane.f32.xlu0 %v64_v10  ;;  %68 = vadd.xlane.f32.xlu1 %v67_v11 }
  0x20   :  { %71 = vadd.xlane.f32.xlu0 %v70_v14  ;;  %74 = vadd.xlane.f32.xlu1 %v73_v15 }
  0x24   :  { %77 = vadd.xlane.f32.xlu0 %v76_v18  ;;  %80 = vadd.xlane.f32.xlu1 %v79_v19 }
  0x28   :  { %83 = vadd.xlane.f32.xlu0 %v82_v22  ;;  %86 = vadd.xlane.f32.xlu1 %v85_v23 }
  0x2c   :  { %89 = vadd.xlane.f32.xlu0 %v88_v26  ;;  %92 = vadd.xlane.f32.xlu1 %v91_v27 }
  0x30   :  { %95 = vadd.xlane.f32.xlu0 %v94_v30  ;;  %98 = vadd.xlane.f32.xlu1 %v97_v31 }
  0xa1   :  { %v54_v32 = vpop.xlane.xlu0 %53  ;;  %v60_v33 = vpop.xlane.xlu1 %59 }
  0xa2   :  { %v101_v34 = vmul.f32 0.03125, %v54_v32  ;;  %v103_v35 = vmul.f32 0.03125, %v60_v33 }
  0xa4   :  { %v8709_v36 = vsub.f32 %v35_v0, %v101_v34  ;;  %v8711_v37 = vsub.f32 %v37_v1, %v103_v35 }
  0xa5   :  { %v57_v38 = vpop.xlane.xlu0 %56  ;;  %v63_v39 = vpop.xlane.xlu1 %62 }
  0xa6   :  { %v102_v40 = vmul.f32 0.03125, %v57_v38  ;;  %v104_v41 = vmul.f32 0.03125, %v63_v39  ;;  %v133_v42 = vmul.f32 %v8709_v36, %v8709_v36  ;;  %v135_v43 = vmul.f32 %v8711_v37, %v8711_v37 }
  0xa8   :  { %v8717_v44 = vsub.f32 %v36_v2, %v102_v40  ;;  %v8719_v45 = vsub.f32 %v38_v5, %v104_v41  ;;  %v149_v46 = vsel %vm51_vm0, %v133_v42, 0.0  ;;  %v155_v49 = vsel %vm51_vm0, %v135_v43, 0.0 }
  0xa9   :  { %150 = vadd.xlane.f32.xlu0 %v149_v46  ;;  %v66_v47 = vpop.xlane.xlu0 %65  ;;  %v69_v48 = vpop.xlane.xlu1 %68 }
  0xaa   :  { %v105_v50 = vmul.f32 0.03125, %v66_v47  ;;  %v106_v51 = vmul.f32 0.03125, %v69_v48  ;;  %v134_v52 = vmul.f32 %v8717_v44, %v8717_v44  ;;  %v136_v53 = vmul.f32 %v8719_v45, %v8719_v45 }
  0xac   :  { %v8728_v54 = vsub.f32 %v8629_v6, %v105_v50  ;;  %v8730_v55 = vsub.f32 %v40_v9, %v106_v51  ;;  %v152_v56 = vsel %vm51_vm0, %v134_v52, 0.0  ;;  %v158_v59 = vsel %vm51_vm0, %v136_v53, 0.0  ;;  %v8087_v53 = vld [vmem:[%s13809_s1 + $0x8] sm:$0xff]  }
  0xad   :  { %156 = vadd.xlane.f32.xlu0 %v155_v49  ;;  %153 = vadd.xlane.f32.xlu1 %v152_v56  ;;  %v72_v57 = vpop.xlane.xlu0 %71  ;;  %v75_v58 = vpop.xlane.xlu1 %74 }
  0xae   :  { %v107_v60 = vmul.f32 0.03125, %v72_v57  ;;  %v108_v61 = vmul.f32 0.03125, %v75_v58  ;;  %v137_v62 = vmul.f32 %v8728_v54, %v8728_v54  ;;  %v138_v63 = vmul.f32 %v8730_v55, %v8730_v55 }
  0xb0   :  { %v8739_v0 = vsub.f32 %v8642_v12, %v107_v60  ;;  %v8742_v1 = vsub.f32 %v8647_v13, %v108_v61  ;;  %v161_v2 = vsel %vm51_vm0, %v137_v62, 0.0  ;;  %v164_v5 = vsel %vm51_vm0, %v138_v63, 0.0 }
  0xb1   :  { %159 = vadd.xlane.f32.xlu1 %v158_v59  ;;  %162 = vadd.xlane.f32.xlu0 %v161_v2  ;;  %v78_v3 = vpop.xlane.xlu0 %77  ;;  %v81_v4 = vpop.xlane.xlu1 %80 }
  0xb2   :  { %v109_v6 = vmul.f32 0.03125, %v78_v3  ;;  %v110_v7 = vmul.f32 0.03125, %v81_v4  ;;  %v139_v8 = vmul.f32 %v8739_v0, %v8739_v0  ;;  %v140_v9 = vmul.f32 %v8742_v1, %v8742_v1 }
  0xb4   :  { %v8751_v10 = vsub.f32 %v8656_v16, %v109_v6  ;;  %v8754_v11 = vsub.f32 %v8661_v17, %v110_v7  ;;  %v167_v12 = vsel %vm51_vm0, %v139_v8, 0.0  ;;  %v170_v15 = vsel %vm51_vm0, %v140_v9, 0.0 }
  0xb5   :  { %165 = vadd.xlane.f32.xlu1 %v164_v5  ;;  %168 = vadd.xlane.f32.xlu0 %v167_v12  ;;  %v84_v13 = vpop.xlane.xlu0 %83  ;;  %v87_v14 = vpop.xlane.xlu1 %86 }
  0xb6   :  { %v111_v18 = vmul.f32 0.03125, %v84_v13  ;;  %v112_v19 = vmul.f32 0.03125, %v87_v14  ;;  %v141_v22 = vmul.f32 %v8751_v10, %v8751_v10  ;;  %v142_v16 = vmul.f32 %v8754_v11, %v8754_v11 }
  0xb8   :  { %v8763_v23 = vsub.f32 %v8670_v20, %v111_v18  ;;  %v8766_v17 = vsub.f32 %v8675_v21, %v112_v19  ;;  %v173_v26 = vsel %vm51_vm0, %v141_v22, 0.0  ;;  %v176_v31 = vsel %vm51_vm0, %v142_v16, 0.0 }
  0xb9   :  { %171 = vadd.xlane.f32.xlu1 %v170_v15  ;;  %174 = vadd.xlane.f32.xlu0 %v173_v26  ;;  %v90_v27 = vpop.xlane.xlu0 %89  ;;  %v93_v30 = vpop.xlane.xlu1 %92 }
  0xba   :  { %v113_v32 = vmul.f32 0.03125, %v90_v27  ;;  %v114_v33 = vmul.f32 0.03125, %v93_v30  ;;  %v143_v34 = vmul.f32 %v8763_v23, %v8763_v23  ;;  %v144_v20 = vmul.f32 %v8766_v17, %v8766_v17 }
  0xbc   :  { %v8775_v35 = vsub.f32 %v8684_v24, %v113_v32  ;;  %v8778_v21 = vsub.f32 %v8689_v25, %v114_v33  ;;  %v179_v38 = vsel %vm51_vm0, %v143_v34, 0.0  ;;  %v182_v41 = vsel %vm51_vm0, %v144_v20, 0.0 }
  0xbd   :  { %177 = vadd.xlane.f32.xlu1 %v176_v31  ;;  %180 = vadd.xlane.f32.xlu0 %v179_v38  ;;  %v96_v39 = vpop.xlane.xlu0 %95  ;;  %v99_v40 = vpop.xlane.xlu1 %98 }
  0xbe   :  { %v115_v42 = vmul.f32 0.03125, %v96_v39  ;;  %v116_v43 = vmul.f32 0.03125, %v99_v40  ;;  %v145_v46 = vmul.f32 %v8775_v35, %v8775_v35  ;;  %v146_v24 = vmul.f32 %v8778_v21, %v8778_v21 }
  0xc0   :  { %v8787_v47 = vsub.f32 %v8698_v28, %v115_v42  ;;  %v8790_v25 = vsub.f32 %v8703_v29, %v116_v43  ;;  %v185_v48 = vsel %vm51_vm0, %v145_v46, 0.0  ;;  %v188_v49 = vsel %vm51_vm0, %v146_v24, 0.0  ;;  %v8086_v29 = vld [vmem:[%s13809_s1] sm:$0xff]  }
  0xc1   :  { %183 = vadd.xlane.f32.xlu1 %v182_v41  ;;  %186 = vadd.xlane.f32.xlu0 %v185_v48 }
  0xc2   :  { %v147_v50 = vmul.f32 %v8787_v47, %v8787_v47  ;;  %v148_v51 = vmul.f32 %v8790_v25, %v8790_v25  ;;  %7853 = vmatprep.subr.bf16.mxu1 %v8086_v29 }
  0xc3   :  { %7854 = vmatpush3.bf16.msra.mxu1 %v8086_v29 }
  0xc4   :  { %v191_v52 = vsel %vm51_vm0, %v147_v50, 0.0  ;;  %v194_v28 = vsel %vm51_vm0, %v148_v51, 0.0  ;;  %7855 = vmatprep.subr.bf16.mxu1 %v8087_v53 }
  0xc5   :  { %189 = vadd.xlane.f32.xlu1 %v188_v49  ;;  %192 = vadd.xlane.f32.xlu0 %v191_v52 }
  0xc7   :  { %7856 = vmatpush3.bf16.msra.mxu1 %v8087_v53 }
  0xc9   :  { %195 = vadd.xlane.f32.xlu1 %v194_v28 }
 0x136   :  { %v151_v56 = vpop.xlane.xlu0 %150 }
 0x137   :  { %v197_v57 = vmul.f32 0.03125, %v151_v56 }
 0x139   :  { %v213_v58 = vadd.f32 1e-05, %v197_v57 }
 0x13a   :  { %v154_v59 = vpop.xlane.xlu1 %153  ;;  %v157_v60 = vpop.xlane.xlu0 %156 }
 0x13b   :  { %v198_v61 = vmul.f32 0.03125, %v154_v59  ;;  %v199_v62 = vmul.f32 0.03125, %v157_v60  ;;  %8090 = vrsqrt.f32 %v213_v58 }
 0x13d   :  { %v214_v63 = vadd.f32 1e-05, %v198_v61  ;;  %v215_v2 = vadd.f32 1e-05, %v199_v62 }
 0x13e   :  { %v160_v3 = vpop.xlane.xlu1 %159  ;;  %v163_v4 = vpop.xlane.xlu0 %162 }
 0x13f   :  { %8092 = vrsqrt.f32 %v214_v63  ;;  %v200_v5 = vmul.f32 0.03125, %v160_v3  ;;  %v201_v6 = vmul.f32 0.03125, %v163_v4 }
 0x140   :  { %8094 = vrsqrt.f32 %v215_v2 }
 0x141   :  { %v216_v7 = vadd.f32 1e-05, %v200_v5  ;;  %v217_v8 = vadd.f32 1e-05, %v201_v6 }
 0x142   :  { %v166_v9 = vpop.xlane.xlu1 %165  ;;  %v169_v12 = vpop.xlane.xlu0 %168 }
 0x143   :  { %8096 = vrsqrt.f32 %v216_v7  ;;  %v202_v13 = vmul.f32 0.03125, %v166_v9  ;;  %v203_v14 = vmul.f32 0.03125, %v169_v12 }
 0x144   :  { %8098 = vrsqrt.f32 %v217_v8 }
 0x145   :  { %v218_v15 = vadd.f32 1e-05, %v202_v13  ;;  %v219_v18 = vadd.f32 1e-05, %v203_v14  ;;  %v8091_v16 = vpop.eup %8090 }
 0x146   :  { %v172_v19 = vpop.xlane.xlu1 %171  ;;  %v175_v22 = vpop.xlane.xlu0 %174  ;;  %v245_v20 = vmul.f32 %v8091_v16, %v8709_v36 }
 0x147   :  { %8100 = vrsqrt.f32 %v218_v15  ;;  %v204_v26 = vmul.f32 0.03125, %v172_v19  ;;  %v205_v27 = vmul.f32 0.03125, %v175_v22 }
 0x148   :  { %8102 = vrsqrt.f32 %v219_v18 }
 0x149   :  { %v8093_v30 = vpop.eup %8092  ;;  %v220_v31 = vadd.f32 1e-05, %v204_v26  ;;  %v221_v32 = vadd.f32 1e-05, %v205_v27 }
 0x14a   :  { %v178_v33 = vpop.xlane.xlu1 %177  ;;  %v181_v34 = vpop.xlane.xlu0 %180  ;;  %v246_v38 = vmul.f32 %v8093_v30, %v8717_v44 }
 0x14b   :  { %v8095_v39 = vpop.eup %8094  ;;  %8104 = vrsqrt.f32 %v220_v31  ;;  %v206_v40 = vmul.f32 0.03125, %v178_v33  ;;  %v207_v41 = vmul.f32 0.03125, %v181_v34 }
 0x14c   :  { %v261_v42 = vpack.c.bf16 %v246_v38, %v245_v20  ;;  %8106 = vrsqrt.f32 %v221_v32  ;;  %v247_v50 = vmul.f32 %v8095_v39, %v8711_v37 }
 0x14d   :  { %v8097_v43 = vpop.eup %8096  ;;  %v222_v46 = vadd.f32 1e-05, %v206_v40  ;;  %v223_v24 = vadd.f32 1e-05, %v207_v41 }
 0x14e   :  { %v184_v48 = vpop.xlane.xlu1 %183  ;;  %7857 = vmatprep.mubr.msk.bf16.mxu1 %vm51_vm0, %v261_v42  ;;  %v187_v49 = vpop.xlane.xlu0 %186  ;;  %v248_v51 = vmul.f32 %v8097_v43, %v8719_v45 }
 0x14f   :  { %v8099_v36 = vpop.eup %8098  ;;  %8108 = vrsqrt.f32 %v222_v46  ;;  %v208_v44 = vmul.f32 0.03125, %v184_v48  ;;  %v209_v52 = vmul.f32 0.03125, %v187_v49 }
 0x150   :  { %v262_v28 = vpack.c.bf16 %v248_v51, %v247_v50  ;;  %8110 = vrsqrt.f32 %v223_v24  ;;  %v249_v59 = vmul.f32 %v8099_v36, %v8728_v54 }
 0x151   :  { %v8101_v29 = vpop.eup %8100  ;;  %v224_v53 = vadd.f32 1e-05, %v208_v44  ;;  %v225_v56 = vadd.f32 1e-05, %v209_v52 }
 0x152   :  { %v190_v57 = vpop.xlane.xlu1 %189  ;;  %7858 = vmatmul.mubr.msk.bf16.vlgmr.msra.gmra.mrb[0].mxu1 %vm51_vm0, %v262_v28  ;;  %v193_v58 = vpop.xlane.xlu0 %192  ;;  %v250_v60 = vmul.f32 %v8101_v29, %v8730_v55 }
 0x153   :  { %v8103_v37 = vpop.eup %8102  ;;  %8112 = vrsqrt.f32 %v224_v53  ;;  %v210_v45 = vmul.f32 0.03125, %v190_v57  ;;  %v211_v61 = vmul.f32 0.03125, %v193_v58 }
 0x154   :  { %v263_v62 = vpack.c.bf16 %v250_v60, %v249_v59  ;;  %8114 = vrsqrt.f32 %v225_v56  ;;  %v251_v5 = vmul.f32 %v8103_v37, %v8739_v0 }
 0x155   :  { %v8105_v63 = vpop.eup %8104  ;;  %v226_v2 = vadd.f32 1e-05, %v210_v45  ;;  %v227_v3 = vadd.f32 1e-05, %v211_v61 }
 0x156   :  { %v196_v4 = vpop.xlane.xlu1 %195  ;;  %7861 = vmatprep.mubr.msk.bf16.mxu1 %vm51_vm0, %v263_v62  ;;  %v252_v6 = vmul.f32 %v8105_v63, %v8742_v1  ;;  %v8107_v7 = vpop.eup %8106 }
 0x157   :  { %8116 = vrsqrt.f32 %v226_v2  ;;  %v212_v54 = vmul.f32 0.03125, %v196_v4  ;;  %v253_v12 = vmul.f32 %v8107_v7, %v8751_v10 }
 0x158   :  { %v264_v55 = vpack.c.bf16 %v252_v6, %v251_v5  ;;  %8118 = vrsqrt.f32 %v227_v3 }
 0x159   :  { %v8109_v8 = vpop.eup %8108  ;;  %v228_v9 = vadd.f32 1e-05, %v212_v54 }
 0x15a   :  { %7862 = vmatmul.mubr.msk.bf16.gmra.mrb[4].mxu1 %vm51_vm0, %v264_v55  ;;  %v254_v13 = vmul.f32 %v8109_v8, %v8754_v11  ;;  %v8111_v14 = vpop.eup %8110 }
 0x15b   :  { %8120 = vrsqrt.f32 %v228_v9  ;;  %v255_v0 = vmul.f32 %v8111_v14, %v8763_v23 }
 0x15c   :  { %v265_v15 = vpack.c.bf16 %v254_v13, %v253_v12 }
 0x15d   :  { %v8113_v18 = vpop.eup %8112 }
 0x15e   :  { %7865 = vmatprep.mubr.msk.bf16.mxu1 %vm51_vm0, %v265_v15  ;;  %v256_v1 = vmul.f32 %v8113_v18, %v8766_v17  ;;  %v8115_v19 = vpop.eup %8114  ;;  %v417_v17 = vlaneseq }
 0x15f   :  { %v257_v26 = vmul.f32 %v8115_v19, %v8775_v35  ;;  %v8833_v35 = vld [vmem:[%s13810_s2] ss:$0 sm:$0xff]  ;;  %s8564_s2 = smov 96  }
 0x160   :  { %v266_v22 = vpack.c.bf16 %v256_v1, %v255_v0  ;;  %v418_v33 = vshrl.u32 %v417_v17, 7 }
 0x161   :  { %v8117_v16 = vpop.eup %8116 }
 0x162   :  { %7866 = vmatmul.mubr.msk.bf16.gmra.mrb[8].mxu1 %vm51_vm0, %v266_v22  ;;  %v258_v10 = vmul.f32 %v8117_v16, %v8778_v21  ;;  %v8119_v11 = vpop.eup %8118  ;;  %v8835_v21 = vsub.s32 0, %v418_v33  ;;  %v8837_v34 = vsub.s32 1, %v418_v33  ;;  %v8839_v20 = vsub.s32 2, %v418_v33 }
 0x163   :  { %v259_v31 = vmul.f32 %v8119_v11, %v8787_v47  ;;  %v8841_v47 = vsub.s32 3, %v418_v33  ;;  %v8845_v39 = vsub.s32 5, %v418_v33  ;;  %v8848_v42 = vsub.s32 6, %v418_v33 }
 0x164   :  { %v267_v27 = vpack.c.bf16 %v258_v10, %v257_v26  ;;  %v8850_v43 = vsub.s32 7, %v418_v33 }
 0x165   :  { %v8121_v30 = vpop.eup %8120 }
 0x166   :  { %7869 = vmatprep.mubr.msk.bf16.mxu1 %vm51_vm0, %v267_v27  ;;  %v260_v23 = vmul.f32 %v8121_v30, %v8790_v25  ;;  %v8843_v25 = vsub.s32 4, %v418_v33 }
 0x168   :  { %v268_v32 = vpack.c.bf16 %v260_v23, %v259_v31 }
 0x16a   :  { %7870 = vmatmul.mubr.msk.bf16.gmra.mrb[12].mxu1 %vm51_vm0, %v268_v32 }
 0x225   :  { %v7859_v38 = vpop.f32.mrb[0].mxu1 }
 0x226   :  { %v359_v40 = vadd.f32 %v7859_v38, %v8833_v35  ;;  %v350_v41 = vpop.f32.mrb[1].mxu1 }
 0x227   :  { %v351_v46 = vadd.f32 %v8833_v35, %v350_v41  ;;  %v7860_v24 = vpop.f32.mrb[2].mxu1 }
 0x228   :  { %v362_v48 = vadd.f32 %v7860_v24, %v8833_v35  ;;  %v353_v49 = vpop.f32.mrb[3].mxu1  ;;  %v8855_v50 = vrot.slane %v359_v40, %v8835_v21  ;;  %v8858_v51 = vrot.slane %v359_v40, %v8837_v34  ;;  %v8861_v36 = vrot.slane %v359_v40, %v8839_v20 }
 0x229   :  { %v354_v44 = vadd.f32 %v8833_v35, %v353_v49  ;;  %v8865_v52 = vrot.slane %v359_v40, %v8841_v47  ;;  %v8868_v28 = vrot.slane %v359_v40, %v8843_v25  ;;  %v8871_v29 = vrot.slane %v359_v40, %v8845_v39 }
 0x22a   :  { %602 = vbcast.lane.b32.xlu1 %v8855_v50, 264  ;;  %598 = vbcast.lane.b32.xlu0 %v8855_v50, 256  ;;  %v8876_v53 = vrot.slane %v359_v40, %v8848_v42  ;;  %v8879_v56 = vrot.slane %v359_v40, %v8850_v43  ;;  %v8882_v57 = vrot.slane %v351_v46, %v8835_v21 }
 0x22b   :  { %v8884_v58 = vpack.c.bf16 %v354_v44, %v351_v46  ;;  %v8887_v59 = vrot.slane %v351_v46, %v8837_v34  ;;  %v8890_v60 = vrot.slane %v351_v46, %v8839_v20  ;;  %v8893_v37 = vrot.slane %v351_v46, %v8841_v47 }
 0x22c   :  { %v8896_v45 = vrot.slane %v351_v46, %v8843_v25  ;;  %v8899_v61 = vrot.slane %v351_v46, %v8845_v39  ;;  %v8902_v62 = vrot.slane %v351_v46, %v8848_v42  ;;  %v8905_v63 = vrot.slane %v351_v46, %v8850_v43 }
 0x22d   :  { %14041 = vst [vmem:[#allocation5_spill] sm:$0xff] %v8884_v58  ;;  %v7863_v2 = vpop.f32.mrb[4].mxu1  ;;  %7881 = vmatprep.mubr.msk.bf16.mxu1 %vm2101_vm1, %v8884_v58  ;;  %v8909_v3 = vpack.c.bf16 %v362_v48, %v359_v40  ;;  %v8912_v4 = vrot.slane %v362_v48, %v8835_v21  ;;  %v8915_v5 = vrot.slane %v362_v48, %v8837_v34 }
 0x22e   :  { %v8918_v6 = vrot.slane %v362_v48, %v8839_v20  ;;  %v375_v7 = vadd.f32 %v7863_v2, %v8833_v35  ;;  %613 = vbcast.lane.b32.xlu1 %v8858_v51, 264  ;;  %609 = vbcast.lane.b32.xlu0 %v8858_v51, 256  ;;  %v366_v54 = vpop.f32.mrb[5].mxu1  ;;  %v8924_v55 = vrot.slane %v362_v48, %v8841_v47 }
 0x22f   :  { %14042 = vst [vmem:[#allocation6_spill] sm:$0xff] %v8909_v3  ;;  %v8927_v8 = vrot.slane %v362_v48, %v8843_v25  ;;  %v367_v9 = vadd.f32 %v8833_v35, %v366_v54  ;;  %v7864_v12 = vpop.f32.mrb[6].mxu1  ;;  %v8931_v13 = vrot.slane %v362_v48, %v8845_v39  ;;  %v8934_v14 = vrot.slane %v362_v48, %v8848_v42 }
 0x230   :  { %v8937_v15 = vrot.slane %v362_v48, %v8850_v43  ;;  %v378_v18 = vadd.f32 %v7864_v12, %v8833_v35  ;;  %v369_v0 = vpop.f32.mrb[7].mxu1  ;;  %v8941_v1 = vrot.slane %v354_v44, %v8835_v21  ;;  %v8944_v19 = vrot.slane %v354_v44, %v8837_v34 }
 0x231   :  { %v8947_v22 = vrot.slane %v354_v44, %v8839_v20  ;;  %v370_v16 = vadd.f32 %v8833_v35, %v369_v0  ;;  %v8951_v26 = vrot.slane %v354_v44, %v8841_v47  ;;  %v8954_v10 = vrot.slane %v354_v44, %v8843_v25 }
 0x232   :  { %v8957_v11 = vrot.slane %v354_v44, %v8845_v39  ;;  %624 = vbcast.lane.b32.xlu1 %v8861_v36, 264  ;;  %620 = vbcast.lane.b32.xlu0 %v8861_v36, 256  ;;  %v8962_v27 = vrot.slane %v354_v44, %v8848_v42  ;;  %v8965_v30 = vrot.slane %v354_v44, %v8850_v43 }
 0x233   :  { %v8968_v31 = vrot.slane %v375_v7, %v8835_v21  ;;  %v8971_v23 = vrot.slane %v375_v7, %v8837_v34  ;;  %v8974_v32 = vrot.slane %v375_v7, %v8839_v20  ;;  %v8977_v17 = vrot.slane %v375_v7, %v8841_v47 }
 0x234   :  { %v8980_v33 = vrot.slane %v375_v7, %v8843_v25  ;;  %v8983_v38 = vrot.slane %v375_v7, %v8845_v39  ;;  %v8986_v40 = vrot.slane %v375_v7, %v8848_v42  ;;  %v8989_v41 = vrot.slane %v375_v7, %v8850_v43 }
 0x235   :  { %v8992_v46 = vrot.slane %v367_v9, %v8835_v21  ;;  %v7867_v24 = vpop.f32.mrb[8].mxu1  ;;  %v8995_v48 = vrot.slane %v367_v9, %v8837_v34  ;;  %v8998_v49 = vrot.slane %v367_v9, %v8839_v20  ;;  %v9001_v44 = vrot.slane %v367_v9, %v8841_v47 }
 0x236   :  { %14043 = vst [vmem:[#allocation7_spill] sm:$0xff] %v8980_v33  ;;  %14044 = vst [vmem:[#allocation8_spill] sm:$0xff] %v8983_v38  ;;  %v9004_v2 = vrot.slane %v367_v9, %v8843_v25  ;;  %v9007_v54 = vadd.f32 %v7867_v24, %v8833_v35  ;;  %635 = vbcast.lane.b32.xlu1 %v8865_v52, 264  ;;  %631 = vbcast.lane.b32.xlu0 %v8865_v52, 256  ;;  %v382_v12 = vpop.f32.mrb[9].mxu1 }
 0x237   :  { %14045 = vst [vmem:[#allocation9_spill] sm:$0xff] %v8986_v40  ;;  %14046 = vst [vmem:[#allocation10_spill] sm:$0xff] %v8989_v41  ;;  %v9012_v0 = vrot.slane %v367_v9, %v8845_v39  ;;  %v9023_v24 = vpack.c.bf16 %v378_v18, %v375_v7  ;;  %v9042_v7 = vrot.slane %v378_v18, %v8843_v25 }
 0x238   :  { %14047 = vst [vmem:[#allocation11_spill] sm:$0xff] %v8992_v46  ;;  %14048 = vst [vmem:[#allocation12_spill] sm:$0xff] %v8995_v48  ;;  %v9015_v48 = vrot.slane %v367_v9, %v8848_v42  ;;  %v9026_v46 = vrot.slane %v378_v18, %v8835_v21 }
 0x239   :  { %14049 = vst [vmem:[#allocation13_spill] sm:$0xff] %v8998_v49  ;;  %14050 = vst [vmem:[#allocation14_spill] sm:$0xff] %v9001_v44  ;;  %v9018_v49 = vadd.f32 %v8833_v35, %v382_v12  ;;  %v7868_v44 = vpop.f32.mrb[10].mxu1  ;;  %v9038_v12 = vrot.slane %v378_v18, %v8841_v47 }
 0x23a   :  { %14051 = vst [vmem:[#allocation15_spill] sm:$0xff] %v9004_v2  ;;  %14052 = vst [vmem:[#allocation16_spill] sm:$0xff] %v9012_v0  ;;  %v9021_v2 = vrot.slane %v367_v9, %v8850_v43  ;;  %v9029_v41 = vadd.f32 %v7868_v44, %v8833_v35  ;;  %v385_v40 = vpop.f32.mrb[11].mxu1  ;;  %v9032_v0 = vrot.slane %v378_v18, %v8837_v34  ;;  %646 = vbcast.lane.b32.xlu1 %v8868_v28, 264 }
 0x23b   :  { %14053 = vst [vmem:[#allocation17_spill] sm:$0xff] %v9015_v48  ;;  %14055 = vst [vmem:[#allocation19_spill] sm:$0xff] %v9023_v24  ;;  %v9035_v48 = vrot.slane %v378_v18, %v8839_v20  ;;  %v9048_v44 = vrot.slane %v378_v18, %v8848_v42  ;;  %642 = vbcast.lane.b32.xlu0 %v8868_v28, 256 }
 0x23c   :  { %14054 = vst [vmem:[#allocation18_spill] sm:$0xff] %v9021_v2  ;;  %14056 = vst [vmem:[#allocation20_spill] sm:$0xff] %v9026_v46  ;;  %v386_v2 = vadd.f32 %v8833_v35, %v385_v40  ;;  %v9045_v46 = vrot.slane %v378_v18, %v8845_v39  ;;  %v9058_v40 = vrot.slane %v370_v16, %v8835_v21 }
 0x23d   :  { %14057 = vst [vmem:[#allocation21_spill] sm:$0xff] %v9032_v0  ;;  %14058 = vst [vmem:[#allocation22_spill] sm:$0xff] %v9035_v48  ;;  %v9053_v48 = vrot.slane %v378_v18, %v8850_v43  ;;  %v9055_v0 = vpack.c.bf16 %v370_v16, %v367_v9  ;;  %v9073_v18 = vrot.slane %v370_v16, %v8845_v39 }
 0x23e   :  { %14059 = vst [vmem:[#allocation23_spill] sm:$0xff] %v9038_v12  ;;  %14060 = vst [vmem:[#allocation24_spill] sm:$0xff] %v9042_v7  ;;  %v9061_v7 = vrot.slane %v370_v16, %v8837_v34  ;;  %v9070_v12 = vrot.slane %v370_v16, %v8843_v25  ;;  %v9076_v9 = vrot.slane %v370_v16, %v8848_v42  ;;  %657 = vbcast.lane.b32.xlu1 %v8871_v29, 264 }
 0x23f   :  { %14061 = vst [vmem:[#allocation25_spill] sm:$0xff] %v9045_v46  ;;  %14062 = vst [vmem:[#allocation26_spill] sm:$0xff] %v9048_v44  ;;  %v9064_v46 = vrot.slane %v370_v16, %v8839_v20  ;;  %v9067_v44 = vrot.slane %v370_v16, %v8841_v47  ;;  %653 = vbcast.lane.b32.xlu0 %v8871_v29, 256 }
 0x240   :  { %14063 = vst [vmem:[#allocation27_spill] sm:$0xff] %v9053_v48  ;;  %14064 = vst [vmem:[#allocation28_spill] sm:$0xff] %v9055_v0  ;;  %v7871_v0 = vpop.f32.mrb[12].mxu1 }
 0x241   :  { %14065 = vst [vmem:[#allocation29_spill] sm:$0xff] %v9058_v40  ;;  %14066 = vst [vmem:[#allocation30_spill] sm:$0xff] %v9061_v7  ;;  %v9079_v40 = vrot.slane %v370_v16, %v8850_v43  ;;  %v9082_v7 = vpack.c.bf16 %v386_v2, %v9018_v49  ;;  %v9100_v16 = vadd.f32 %v7871_v0, %v8833_v35 }
 0x242   :  { %14067 = vst [vmem:[#allocation31_spill] sm:$0xff] %v9064_v46  ;;  %14068 = vst [vmem:[#allocation32_spill] sm:$0xff] %v9067_v44  ;;  %v9086_v46 = vrot.slane %v9018_v49, %v8835_v21  ;;  %v9119_v0 = vrot.slane %v9007_v54, %v8835_v21  ;;  %v9123_v44 = vrot.slane %v9007_v54, %v8837_v34  ;;  %668 = vbcast.lane.b32.xlu1 %v8876_v53, 264 }
 0x243   :  { %14069 = vst [vmem:[#allocation33_spill] sm:$0xff] %v9070_v12  ;;  %14070 = vst [vmem:[#allocation34_spill] sm:$0xff] %v9073_v18  ;;  %v9090_v12 = vrot.slane %v9018_v49, %v8837_v34  ;;  %v9093_v18 = vrot.slane %v386_v2, %v8835_v21  ;;  %664 = vbcast.lane.b32.xlu0 %v8876_v53, 256 }
 0x244   :  { %14071 = vst [vmem:[#allocation35_spill] sm:$0xff] %v9076_v9  ;;  %14072 = vst [vmem:[#allocation36_spill] sm:$0xff] %v9079_v40  ;;  %v9097_v9 = vpack.c.bf16 %v9029_v41, %v9007_v54 }
 0x245   :  { %14073 = vst [vmem:[#allocation37_spill] sm:$0xff] %v9082_v7  ;;  %14074 = vst [vmem:[#allocation38_spill] sm:$0xff] %v9086_v46  ;;  %v398_v7 = vpop.f32.mrb[13].mxu1  ;;  %v9105_v46 = vrot.slane %v386_v2, %v8837_v34 }
 0x246   :  { %14075 = vst [vmem:[#allocation39_spill] sm:$0xff] %v9090_v12  ;;  %14076 = vst [vmem:[#allocation40_spill] sm:$0xff] %v9093_v18  ;;  %v9109_v12 = vrot.slane %v9018_v49, %v8839_v20  ;;  %v9112_v18 = vadd.f32 %v8833_v35, %v398_v7  ;;  %v7872_v40 = vpop.f32.mrb[14].mxu1  ;;  %v9130_v7 = vrot.slane %v9029_v41, %v8835_v21  ;;  %679 = vbcast.lane.b32.xlu1 %v8879_v56, 264 }
 0x247   :  { %14077 = vst [vmem:[#allocation41_spill] sm:$0xff] %v9097_v9  ;;  %14078 = vst [vmem:[#allocation42_spill] sm:$0xff] %v9105_v46  ;;  %v9115_v9 = vrot.slane %v386_v2, %v8839_v20  ;;  %v9126_v46 = vadd.f32 %v7872_v40, %v8833_v35  ;;  %v401_v48 = vpop.f32.mrb[15].mxu1  ;;  %v9146_v40 = vrot.slane %v9007_v54, %v8839_v20  ;;  %675 = vbcast.lane.b32.xlu0 %v8879_v56, 256 }
 0x248   :  { %14079 = vst [vmem:[#allocation43_spill] sm:$0xff] %v9109_v12  ;;  %14081 = vst [vmem:[#allocation45_spill] sm:$0xff] %v9119_v0  ;;  %v9134_v12 = vrot.slane %v9029_v41, %v8837_v34  ;;  %v402_v0 = vadd.f32 %v8833_v35, %v401_v48  ;;  %v9160_v35 = vrot.slane %v9018_v49, %v8843_v25 }
 0x249   :  { %14080 = vst [vmem:[#allocation44_spill] sm:$0xff] %v9115_v9  ;;  %14082 = vst [vmem:[#allocation46_spill] sm:$0xff] %v9123_v44  ;;  %v9138_v9 = vrot.slane %v9018_v49, %v8841_v47  ;;  %v9142_v44 = vrot.slane %v386_v2, %v8841_v47  ;;  %v9163_v48 = vrot.slane %v386_v2, %v8843_v25 }
 0x24a   :  { %14083 = vst [vmem:[#allocation47_spill] sm:$0xff] %v9130_v7  ;;  %14084 = vst [vmem:[#allocation48_spill] sm:$0xff] %v9134_v12  ;;  %v9150_v7 = vrot.slane %v9029_v41, %v8839_v20  ;;  %v9178_v12 = vrot.slane %v9018_v49, %v8845_v39  ;;  %2506 = vbcast.lane.b32.xlu1 %v8855_v50, 280 }
 0x24b   :  { %14085 = vst [vmem:[#allocation49_spill] sm:$0xff] %v9138_v9  ;;  %14086 = vst [vmem:[#allocation50_spill] sm:$0xff] %v9142_v44  ;;  %v9156_v9 = vpack.c.bf16 %v9126_v46, %v9100_v16  ;;  %v9174_v44 = vrot.slane %v9029_v41, %v8841_v47  ;;  %2502 = vbcast.lane.b32.xlu0 %v8855_v50, 272  ;;  %v9290_v50 = vrot.slane %v402_v0, %v8843_v25 }
 0x24c   :  { %14087 = vst [vmem:[#allocation51_spill] sm:$0xff] %v9146_v40  ;;  %14088 = vst [vmem:[#allocation52_spill] sm:$0xff] %v9150_v7  ;;  %v9166_v40 = vpack.c.bf16 %v402_v0, %v9112_v18  ;;  %v9170_v7 = vrot.slane %v9007_v54, %v8841_v47 }
 0x24d   :  { %14089 = vst [vmem:[#allocation53_spill] sm:$0xff] %v9156_v9  ;;  %14090 = vst [vmem:[#allocation54_spill] sm:$0xff] %v9160_v35  ;;  %v9181_v35 = vrot.slane %v386_v2, %v8845_v39  ;;  %v9189_v9 = vrot.slane %v9029_v41, %v8843_v25 }
 0x24e   :  { %14091 = vst [vmem:[#allocation55_spill] sm:$0xff] %v9163_v48  ;;  %14092 = vst [vmem:[#allocation56_spill] sm:$0xff] %v9166_v40  ;;  %v9185_v48 = vrot.slane %v9007_v54, %v8843_v25  ;;  %2514 = vbcast.lane.b32.xlu1 %v8858_v51, 280 }
 0x24f   :  { %14093 = vst [vmem:[#allocation57_spill] sm:$0xff] %v9170_v7  ;;  %14094 = vst [vmem:[#allocation58_spill] sm:$0xff] %v9174_v44  ;;  %v9193_v7 = vrot.slane %v9018_v49, %v8848_v42  ;;  %v9196_v44 = vrot.slane %v386_v2, %v8848_v42  ;;  %2510 = vbcast.lane.b32.xlu0 %v8858_v51, 272  ;;  %v9349_v51 = vrot.slane %v9100_v16, %v8850_v43 }
 0x250   :  { %14095 = vst [vmem:[#allocation59_spill] sm:$0xff] %v9178_v12  ;;  %14096 = vst [vmem:[#allocation60_spill] sm:$0xff] %v9181_v35  ;;  %v9200_v12 = vrot.slane %v9007_v54, %v8845_v39  ;;  %v9204_v35 = vrot.slane %v9029_v41, %v8845_v39 }
 0x251   :  { %14097 = vst [vmem:[#allocation61_spill] sm:$0xff] %v9185_v48  ;;  %14098 = vst [vmem:[#allocation62_spill] sm:$0xff] %v9189_v9  ;;  %v9208_v48 = vrot.slane %v9018_v49, %v8850_v43  ;;  %v9229_v49 = vrot.slane %v9029_v41, %v8850_v43 }
 0x252   :  { %14099 = vst [vmem:[#allocation63_spill] sm:$0xff] %v9193_v7  ;;  %14100 = vst [vmem:[#allocation64_spill] sm:$0xff] %v9196_v44  ;;  %v9213_v7 = vrot.slane %v386_v2, %v8850_v43  ;;  %v9217_v44 = vrot.slane %v9007_v54, %v8848_v42  ;;  %v9233_v2 = vrot.slane %v9112_v18, %v8835_v21  ;;  %2522 = vbcast.lane.b32.xlu1 %v8861_v36, 280 }
 0x253   :  { %14101 = vst [vmem:[#allocation65_spill] sm:$0xff] %v9200_v12  ;;  %14102 = vst [vmem:[#allocation66_spill] sm:$0xff] %v9204_v35  ;;  %v9221_v12 = vrot.slane %v9029_v41, %v8848_v42  ;;  %v9225_v35 = vrot.slane %v9007_v54, %v8850_v43  ;;  %v9247_v54 = vrot.slane %v9112_v18, %v8839_v20  ;;  %2518 = vbcast.lane.b32.xlu0 %v8861_v36, 272 }
 0x254   :  { %14103 = vst [vmem:[#allocation67_spill] sm:$0xff] %v9208_v48  ;;  %14104 = vst [vmem:[#allocation68_spill] sm:$0xff] %v9213_v7  ;;  %v9237_v7 = vrot.slane %v9112_v18, %v8837_v34  ;;  %v9250_v41 = vrot.slane %v402_v0, %v8839_v20 }
 0x255   :  { %14105 = vst [vmem:[#allocation69_spill] sm:$0xff] %v9217_v44  ;;  %14106 = vst [vmem:[#allocation70_spill] sm:$0xff] %v9221_v12  ;;  %v9240_v44 = vrot.slane %v402_v0, %v8835_v21  ;;  %v9243_v12 = vrot.slane %v402_v0, %v8837_v34 }
 0x256   :  { %14107 = vst [vmem:[#allocation71_spill] sm:$0xff] %v9225_v35  ;;  %14108 = vst [vmem:[#allocation72_spill] sm:$0xff] %v9229_v49  ;;  %2530 = vbcast.lane.b32.xlu1 %v8865_v52, 280 }
 0x257   :  { %14109 = vst [vmem:[#allocation73_spill] sm:$0xff] %v9233_v2  ;;  %14110 = vst [vmem:[#allocation74_spill] sm:$0xff] %v9237_v7  ;;  %v9254_v2 = vrot.slane %v9100_v16, %v8835_v21  ;;  %v9258_v7 = vrot.slane %v9100_v16, %v8837_v34  ;;  %2526 = vbcast.lane.b32.xlu0 %v8865_v52, 272 }
 0x258   :  { %14111 = vst [vmem:[#allocation75_spill] sm:$0xff] %v9240_v44  ;;  %14112 = vst [vmem:[#allocation76_spill] sm:$0xff] %v9243_v12  ;;  %v9262_v44 = vrot.slane %v9126_v46, %v8835_v21  ;;  %v9266_v12 = vrot.slane %v9126_v46, %v8837_v34  ;;  %v9283_v21 = vrot.slane %v9126_v46, %v8839_v20 }
 0x259   :  { %14113 = vst [vmem:[#allocation77_spill] sm:$0xff] %v9247_v54  ;;  %14114 = vst [vmem:[#allocation78_spill] sm:$0xff] %v9250_v41  ;;  %v9272_v41 = vrot.slane %v9112_v18, %v8841_v47  ;;  %v9287_v34 = vrot.slane %v9112_v18, %v8843_v25 }
 0x25a   :  { %14115 = vst [vmem:[#allocation79_spill] sm:$0xff] %v9254_v2  ;;  %14116 = vst [vmem:[#allocation80_spill] sm:$0xff] %v9258_v7  ;;  %v9275_v2 = vrot.slane %v402_v0, %v8841_v47  ;;  %v9279_v7 = vrot.slane %v9100_v16, %v8839_v20  ;;  %v9305_v20 = vrot.slane %v402_v0, %v8845_v39  ;;  %2538 = vbcast.lane.b32.xlu1 %v8868_v28, 280 }
 0x25b   :  { %14117 = vst [vmem:[#allocation81_spill] sm:$0xff] %v9262_v44  ;;  %14118 = vst [vmem:[#allocation82_spill] sm:$0xff] %v9266_v12  ;;  %2534 = vbcast.lane.b32.xlu0 %v8868_v28, 272 }
 0x25c   :  { %14119 = vst [vmem:[#allocation83_spill] sm:$0xff] %v9272_v41  ;;  %14120 = vst [vmem:[#allocation84_spill] sm:$0xff] %v9275_v2  ;;  %v9294_v41 = vrot.slane %v9100_v16, %v8841_v47  ;;  %v9298_v2 = vrot.slane %v9126_v46, %v8841_v47  ;;  %v9320_v47 = vrot.slane %v402_v0, %v8848_v42 }
 0x25d   :  { %14121 = vst [vmem:[#allocation85_spill] sm:$0xff] %v9279_v7  ;;  %14122 = vst [vmem:[#allocation86_spill] sm:$0xff] %v9283_v21  ;;  %v9302_v7 = vrot.slane %v9112_v18, %v8845_v39 }
 0x25e   :  { %14123 = vst [vmem:[#allocation87_spill] sm:$0xff] %v9287_v34  ;;  %14124 = vst [vmem:[#allocation88_spill] sm:$0xff] %v9290_v50  ;;  %v9309_v34 = vrot.slane %v9100_v16, %v8843_v25  ;;  %v9313_v50 = vrot.slane %v9126_v46, %v8843_v25  ;;  %v9334_v25 = vrot.slane %v9112_v18, %v8850_v43  ;;  %2546 = vbcast.lane.b32.xlu1 %v8871_v29, 280 }
 0x25f   :  { %14125 = vst [vmem:[#allocation89_spill] sm:$0xff] %v9294_v41  ;;  %14126 = vst [vmem:[#allocation90_spill] sm:$0xff] %v9298_v2  ;;  %v9317_v41 = vrot.slane %v9112_v18, %v8848_v42  ;;  %2542 = vbcast.lane.b32.xlu0 %v8871_v29, 272 }
 0x260   :  { %14127 = vst [vmem:[#allocation91_spill] sm:$0xff] %v9302_v7  ;;  %14128 = vst [vmem:[#allocation92_spill] sm:$0xff] %v9305_v20  ;;  %v9324_v7 = vrot.slane %v9100_v16, %v8845_v39 }
 0x261   :  { %14129 = vst [vmem:[#allocation93_spill] sm:$0xff] %v9309_v34  ;;  %14130 = vst [vmem:[#allocation94_spill] sm:$0xff] %v9313_v50  ;;  %v9330_v34 = vrot.slane %v9126_v46, %v8845_v39  ;;  %v9353_v39 = vrot.slane %v9126_v46, %v8850_v43 }
 0x262   :  { %14131 = vst [vmem:[#allocation95_spill] sm:$0xff] %v9317_v41  ;;  %14132 = vst [vmem:[#allocation96_spill] sm:$0xff] %v9320_v47  ;;  %v9337_v41 = vrot.slane %v402_v0, %v8850_v43  ;;  %v9341_v47 = vrot.slane %v9100_v16, %v8848_v42  ;;  %2554 = vbcast.lane.b32.xlu1 %v8876_v53, 280 }
 0x263   :  { %14133 = vst [vmem:[#allocation97_spill] sm:$0xff] %v9324_v7  ;;  %14134 = vst [vmem:[#allocation98_spill] sm:$0xff] %v9330_v34  ;;  %v9345_v7 = vrot.slane %v9126_v46, %v8848_v42  ;;  %2550 = vbcast.lane.b32.xlu0 %v8876_v53, 272 }
 0x264   :  { %14135 = vst [vmem:[#allocation99_spill] sm:$0xff] %v9334_v25  ;;  %14136 = vst [vmem:[#allocation100_spill] sm:$0xff] %v9337_v41 }
 0x265   :  { %14137 = vst [vmem:[#allocation101_spill] sm:$0xff] %v9341_v47  ;;  %14138 = vst [vmem:[#allocation102_spill] sm:$0xff] %v9345_v7 }
 0x266   :  { %14139 = vst [vmem:[#allocation103_spill] sm:$0xff] %v9349_v51  ;;  %14140 = vst [vmem:[#allocation104_spill] sm:$0xff] %v9353_v39  ;;  %2562 = vbcast.lane.b32.xlu1 %v8879_v56, 280 }
 0x267   :  { %2558 = vbcast.lane.b32.xlu0 %v8879_v56, 272 }
 0x26a   :  { %426 = vbcast.lane.b32.xlu1 %v8882_v57, 264 }
 0x26b   :  { %422 = vbcast.lane.b32.xlu0 %v8882_v57, 256 }
 0x26e   :  { %437 = vbcast.lane.b32.xlu1 %v8887_v59, 264 }
 0x26f   :  { %433 = vbcast.lane.b32.xlu0 %v8887_v59, 256 }
 0x272   :  { %448 = vbcast.lane.b32.xlu1 %v8890_v60, 264 }
 0x273   :  { %444 = vbcast.lane.b32.xlu0 %v8890_v60, 256 }
 0x276   :  { %459 = vbcast.lane.b32.xlu1 %v8893_v37, 264 }
 0x277   :  { %455 = vbcast.lane.b32.xlu0 %v8893_v37, 256 }
 0x27a   :  { %470 = vbcast.lane.b32.xlu1 %v8896_v45, 264 }
 0x27b   :  { %466 = vbcast.lane.b32.xlu0 %v8896_v45, 256 }
 0x27e   :  { %481 = vbcast.lane.b32.xlu1 %v8899_v61, 264 }
 0x27f   :  { %477 = vbcast.lane.b32.xlu0 %v8899_v61, 256 }
 0x282   :  { %492 = vbcast.lane.b32.xlu1 %v8902_v62, 264 }
 0x283   :  { %488 = vbcast.lane.b32.xlu0 %v8902_v62, 256 }
 0x286   :  { %503 = vbcast.lane.b32.xlu1 %v8905_v63, 264 }
 0x287   :  { %499 = vbcast.lane.b32.xlu0 %v8905_v63, 256 }
 0x28a   :  { %2378 = vbcast.lane.b32.xlu1 %v8882_v57, 280 }
 0x28b   :  { %2374 = vbcast.lane.b32.xlu0 %v8882_v57, 272 }
 0x28e   :  { %2386 = vbcast.lane.b32.xlu1 %v8887_v59, 280 }
 0x28f   :  { %2382 = vbcast.lane.b32.xlu0 %v8887_v59, 272 }
 0x292   :  { %2394 = vbcast.lane.b32.xlu1 %v8890_v60, 280 }
 0x293   :  { %2390 = vbcast.lane.b32.xlu0 %v8890_v60, 272 }
 0x296   :  { %2402 = vbcast.lane.b32.xlu1 %v8893_v37, 280 }
 0x297   :  { %2398 = vbcast.lane.b32.xlu0 %v8893_v37, 272 }
 0x29a   :  { %2410 = vbcast.lane.b32.xlu1 %v8896_v45, 280 }
 0x29b   :  { %2406 = vbcast.lane.b32.xlu0 %v8896_v45, 272 }
 0x29c   :  { %v9393_v42 = vpop.permute.xlu1 %602  ;;  %v9395_v43 = vpop.permute.xlu0 %598 }
 0x29e   :  { %2418 = vbcast.lane.b32.xlu1 %v8899_v61, 280 }
 0x29f   :  { %2414 = vbcast.lane.b32.xlu0 %v8899_v61, 272 }
 0x2a0   :  { %v9399_v36 = vpop.permute.xlu1 %613  ;;  %v9401_v52 = vpop.permute.xlu0 %609 }
 0x2a2   :  { %2426 = vbcast.lane.b32.xlu1 %v8902_v62, 280 }
 0x2a3   :  { %2422 = vbcast.lane.b32.xlu0 %v8902_v62, 272 }
 0x2a4   :  { %v9405_v28 = vpop.permute.xlu1 %624  ;;  %v9407_v29 = vpop.permute.xlu0 %620 }
 0x2a6   :  { %2434 = vbcast.lane.b32.xlu1 %v8905_v63, 280 }
 0x2a7   :  { %2430 = vbcast.lane.b32.xlu0 %v8905_v63, 272 }
 0x2a8   :  { %v9411_v53 = vpop.permute.xlu1 %635  ;;  %v9413_v56 = vpop.permute.xlu0 %631 }
 0x2aa   :  { %1960 = vrot.lane.b32.xlu1 %v8909_v3, %s8564_s2 }
 0x2ab   :  { %686 = vbcast.lane.b32.xlu0 %v8912_v4, 256 }
 0x2ac   :  { %v9418_v57 = vpop.permute.xlu1 %646 }
 0x2ad   :  { %v9420_v59 = vpop.permute.xlu0 %642 }
 0x2ae   :  { %3598 = vrot.lane.b32.xlu1 %v8909_v3, %s8565_s17 }
 0x2af   :  { %697 = vbcast.lane.b32.xlu0 %v8915_v5, 256 }
 0x2b0   :  { %v9425_v60 = vpop.permute.xlu1 %657 }
 0x2b1   :  { %v9427_v37 = vpop.permute.xlu0 %653 }
 0x2b2   :  { %3590 = vrot.lane.b32.xlu1 %v8909_v3, %s8566_s18 }
 0x2b3   :  { %708 = vbcast.lane.b32.xlu0 %v8918_v6, 256 }
 0x2b4   :  { %v9432_v45 = vpop.permute.xlu1 %668 }
 0x2b5   :  { %v9434_v61 = vpop.permute.xlu0 %664 }
 0x2b6   :  { %690 = vbcast.lane.b32.xlu1 %v8912_v4, 264 }
 0x2b7   :  { %719 = vbcast.lane.b32.xlu0 %v8924_v55, 256 }
 0x2b8   :  { %v9438_v62 = vpop.permute.xlu1 %679 }
 0x2b9   :  { %v9440_v63 = vpop.permute.xlu0 %675 }
 0x2ba   :  { %701 = vbcast.lane.b32.xlu1 %v8915_v5, 264 }
 0x2bb   :  { %730 = vbcast.lane.b32.xlu0 %v8927_v8, 256 }
 0x2bc   :  { %v9444_v46 = vpop.permute.xlu1 %2506 }
 0x2bd   :  { %v9446_v18 = vpop.permute.xlu0 %2502 }
 0x2be   :  { %712 = vbcast.lane.b32.xlu1 %v8918_v6, 264 }
 0x2bf   :  { %741 = vbcast.lane.b32.xlu0 %v8931_v13, 256 }
 0x2c0   :  { %v9450_v16 = vpop.permute.xlu1 %2514 }
 0x2c1   :  { %v9452_v0 = vpop.permute.xlu0 %2510 }
 0x2c2   :  { %723 = vbcast.lane.b32.xlu1 %v8924_v55, 264 }
 0x2c3   :  { %752 = vbcast.lane.b32.xlu0 %v8934_v14, 256 }
 0x2c4   :  { %v9456_v39 = vpop.permute.xlu1 %2522 }
 0x2c5   :  { %v9458_v51 = vpop.permute.xlu0 %2518 }
 0x2c6   :  { %734 = vbcast.lane.b32.xlu1 %v8927_v8, 264 }
 0x2c7   :  { %763 = vbcast.lane.b32.xlu0 %v8937_v15, 256 }
 0x2c8   :  { %v9462_v7 = vpop.permute.xlu1 %2530 }
 0x2c9   :  { %v9464_v47 = vpop.permute.xlu0 %2526 }
 0x2ca   :  { %745 = vbcast.lane.b32.xlu1 %v8931_v13, 264 }
 0x2cb   :  { %2566 = vbcast.lane.b32.xlu0 %v8912_v4, 272 }
 0x2cc   :  { %v9468_v41 = vpop.permute.xlu1 %2538 }
 0x2cd   :  { %v9470_v25 = vpop.permute.xlu0 %2534 }
 0x2ce   :  { %756 = vbcast.lane.b32.xlu1 %v8934_v14, 264 }
 0x2cf   :  { %2574 = vbcast.lane.b32.xlu0 %v8915_v5, 272 }
 0x2d0   :  { %v9474_v34 = vpop.permute.xlu1 %2546 }
 0x2d1   :  { %v9476_v50 = vpop.permute.xlu0 %2542 }
 0x2d2   :  { %767 = vbcast.lane.b32.xlu1 %v8937_v15, 264 }
 0x2d3   :  { %2582 = vbcast.lane.b32.xlu0 %v8918_v6, 272 }
 0x2d4   :  { %v9480_v20 = vpop.permute.xlu1 %2554 }
 0x2d5   :  { %v9482_v2 = vpop.permute.xlu0 %2550 }
 0x2d6   :  { %2570 = vbcast.lane.b32.xlu1 %v8912_v4, 280 }
 0x2d7   :  { %2590 = vbcast.lane.b32.xlu0 %v8924_v55, 272 }
 0x2d8   :  { %v9486_v21 = vpop.permute.xlu1 %2562 }
 0x2d9   :  { %v9488_v12 = vpop.permute.xlu0 %2558 }
 0x2da   :  { %2578 = vbcast.lane.b32.xlu1 %v8915_v5, 280 }
 0x2db   :  { %2598 = vbcast.lane.b32.xlu0 %v8927_v8, 272 }
 0x2dc   :  { %v9492_v44 = vpop.permute.xlu1 %426 }
 0x2dd   :  { %14141 = vst [vmem:[#allocation105_spill] sm:$0xff] %v9492_v44  ;;  %v9494_v54 = vpop.permute.xlu0 %422 }
 0x2de   :  { %14142 = vst [vmem:[#allocation106_spill] sm:$0xff] %v9494_v54  ;;  %2586 = vbcast.lane.b32.xlu1 %v8918_v6, 280 }
 0x2df   :  { %2606 = vbcast.lane.b32.xlu0 %v8931_v13, 272 }
 0x2e0   :  { %v9498_v49 = vpop.permute.xlu1 %437 }
 0x2e1   :  { %14143 = vst [vmem:[#allocation107_spill] sm:$0xff] %v9498_v49  ;;  %v9500_v4 = vpop.permute.xlu0 %433 }
 0x2e2   :  { %14144 = vst [vmem:[#allocation108_spill] sm:$0xff] %v9500_v4  ;;  %2594 = vbcast.lane.b32.xlu1 %v8924_v55, 280 }
 0x2e3   :  { %2614 = vbcast.lane.b32.xlu0 %v8934_v14, 272 }
 0x2e4   :  { %v9504_v35 = vpop.permute.xlu1 %448 }
 0x2e5   :  { %14145 = vst [vmem:[#allocation109_spill] sm:$0xff] %v9504_v35  ;;  %v9506_v5 = vpop.permute.xlu0 %444 }
 0x2e6   :  { %14146 = vst [vmem:[#allocation110_spill] sm:$0xff] %v9506_v5  ;;  %2602 = vbcast.lane.b32.xlu1 %v8927_v8, 280 }
 0x2e7   :  { %2622 = vbcast.lane.b32.xlu0 %v8937_v15, 272 }
 0x2e8   :  { %v9510_v48 = vpop.permute.xlu1 %459 }
 0x2e9   :  { %14147 = vst [vmem:[#allocation111_spill] sm:$0xff] %v9510_v48  ;;  %v9512_v6 = vpop.permute.xlu0 %455 }
 0x2ea   :  { %14148 = vst [vmem:[#allocation112_spill] sm:$0xff] %v9512_v6  ;;  %2610 = vbcast.lane.b32.xlu1 %v8931_v13, 280 }
 0x2eb   :  { %1958 = vrot.lane.b32.xlu0 %v8884_v58, %s8564_s2 }
 0x2ec   :  { %v9517_v55 = vpop.permute.xlu1 %470 }
 0x2ed   :  { %14149 = vst [vmem:[#allocation113_spill] sm:$0xff] %v9517_v55  ;;  %v9519_v9 = vpop.permute.xlu0 %466 }
 0x2ee   :  { %14150 = vst [vmem:[#allocation114_spill] sm:$0xff] %v9519_v9  ;;  %2618 = vbcast.lane.b32.xlu1 %v8934_v14, 280 }
 0x2ef   :  { %3596 = vrot.lane.b32.xlu0 %v8884_v58, %s8565_s17 }
 0x2f0   :  { %v9524_v8 = vpop.permute.xlu1 %481 }
 0x2f1   :  { %14151 = vst [vmem:[#allocation115_spill] sm:$0xff] %v9524_v8  ;;  %v9526_v40 = vpop.permute.xlu0 %477  ;;  %v9915_v8 = vld [vmem:[#allocation2 + $0x148] sm:$0xff] }
 0x2f2   :  { %14152 = vst [vmem:[#allocation116_spill] sm:$0xff] %v9526_v40  ;;  %2626 = vbcast.lane.b32.xlu1 %v8937_v15, 280 }
 0x2f3   :  { %3588 = vrot.lane.b32.xlu0 %v8884_v58, %s8566_s18 }
 0x2f4   :  { %v9531_v13 = vpop.permute.xlu1 %492 }
 0x2f5   :  { %14153 = vst [vmem:[#allocation117_spill] sm:$0xff] %v9531_v13  ;;  %v9533_v3 = vpop.permute.xlu0 %488 }
 0x2f6   :  { %14154 = vst [vmem:[#allocation118_spill] sm:$0xff] %v9533_v3  ;;  %514 = vbcast.lane.b32.xlu1 %v8941_v1, 264 }
 0x2f7   :  { %510 = vbcast.lane.b32.xlu0 %v8941_v1, 256 }
 0x2f8   :  { %v9537_v14 = vpop.permute.xlu1 %503 }
 0x2f9   :  { %14155 = vst [vmem:[#allocation119_spill] sm:$0xff] %v9537_v14  ;;  %v9539_v9 = vpop.permute.xlu0 %499 }
 0x2fa   :  { %14156 = vst [vmem:[#allocation120_spill] sm:$0xff] %v9539_v9  ;;  %525 = vbcast.lane.b32.xlu1 %v8944_v19, 264 }
 0x2fb   :  { %521 = vbcast.lane.b32.xlu0 %v8944_v19, 256 }
 0x2fc   :  { %v9543_v15 = vpop.permute.xlu1 %2378 }
 0x2fd   :  { %14157 = vst [vmem:[#allocation121_spill] sm:$0xff] %v9543_v15  ;;  %v9545_v40 = vpop.permute.xlu0 %2374 }
 0x2fe   :  { %14158 = vst [vmem:[#allocation122_spill] sm:$0xff] %v9545_v40  ;;  %536 = vbcast.lane.b32.xlu1 %v8947_v22, 264 }
 0x2ff   :  { %532 = vbcast.lane.b32.xlu0 %v8947_v22, 256 }
 0x300   :  { %v9549_v58 = vpop.permute.xlu1 %2386 }
 0x301   :  { %14159 = vst [vmem:[#allocation123_spill] sm:$0xff] %v9549_v58  ;;  %v9551_v3 = vpop.permute.xlu0 %2382 }
 0x302   :  { %14160 = vst [vmem:[#allocation124_spill] sm:$0xff] %v9551_v3  ;;  %547 = vbcast.lane.b32.xlu1 %v8951_v26, 264 }
 0x303   :  { %543 = vbcast.lane.b32.xlu0 %v8951_v26, 256 }
 0x304   :  { %v9555_v9 = vpop.permute.xlu1 %2394 }
 0x305   :  { %14161 = vst [vmem:[#allocation125_spill] sm:$0xff] %v9555_v9  ;;  %v9557_v14 = vpop.permute.xlu0 %2390 }
 0x306   :  { %14162 = vst [vmem:[#allocation126_spill] sm:$0xff] %v9557_v14  ;;  %558 = vbcast.lane.b32.xlu1 %v8954_v10, 264 }
 0x307   :  { %554 = vbcast.lane.b32.xlu0 %v8954_v10, 256 }
 0x308   :  { %v9561_v40 = vpop.permute.xlu1 %2402 }
 0x309   :  { %14163 = vst [vmem:[#allocation127_spill] sm:$0xff] %v9561_v40  ;;  %v9563_v15 = vpop.permute.xlu0 %2398 }
 0x30a   :  { %14164 = vst [vmem:[#allocation128_spill] sm:$0xff] %v9563_v15  ;;  %569 = vbcast.lane.b32.xlu1 %v8957_v11, 264 }
 0x30b   :  { %565 = vbcast.lane.b32.xlu0 %v8957_v11, 256 }
 0x30c   :  { %v9567_v3 = vpop.permute.xlu1 %2410 }
 0x30d   :  { %14165 = vst [vmem:[#allocation129_spill] sm:$0xff] %v9567_v3  ;;  %v9569_v58 = vpop.permute.xlu0 %2406 }
 0x30e   :  { %14166 = vst [vmem:[#allocation130_spill] sm:$0xff] %v9569_v58  ;;  %580 = vbcast.lane.b32.xlu1 %v8962_v27, 264 }
 0x30f   :  { %576 = vbcast.lane.b32.xlu0 %v8962_v27, 256 }
 0x310   :  { %v9573_v14 = vpop.permute.xlu1 %2418 }
 0x311   :  { %14167 = vst [vmem:[#allocation131_spill] sm:$0xff] %v9573_v14  ;;  %v9575_v9 = vpop.permute.xlu0 %2414 }
 0x312   :  { %14168 = vst [vmem:[#allocation132_spill] sm:$0xff] %v9575_v9  ;;  %591 = vbcast.lane.b32.xlu1 %v8965_v30, 264 }
 0x313   :  { %587 = vbcast.lane.b32.xlu0 %v8965_v30, 256 }
 0x314   :  { %v9579_v15 = vpop.permute.xlu1 %2426 }
 0x315   :  { %14169 = vst [vmem:[#allocation133_spill] sm:$0xff] %v9579_v15  ;;  %v9581_v40 = vpop.permute.xlu0 %2422 }
 0x316   :  { %14170 = vst [vmem:[#allocation134_spill] sm:$0xff] %v9581_v40  ;;  %2442 = vbcast.lane.b32.xlu1 %v8941_v1, 280 }
 0x317   :  { %2438 = vbcast.lane.b32.xlu0 %v8941_v1, 272 }
 0x318   :  { %v9585_v58 = vpop.permute.xlu1 %2434 }
 0x319   :  { %14171 = vst [vmem:[#allocation135_spill] sm:$0xff] %v9585_v58  ;;  %v9587_v3 = vpop.permute.xlu0 %2430 }
 0x31a   :  { %14172 = vst [vmem:[#allocation136_spill] sm:$0xff] %v9587_v3  ;;  %2450 = vbcast.lane.b32.xlu1 %v8944_v19, 280 }
 0x31b   :  { %2446 = vbcast.lane.b32.xlu0 %v8944_v19, 272 }
 0x31c   :  { %v9591_v9 = vpop.permute.xlu1 %1960 }
 0x31d   :  { %v9593_v14 = vpop.permute.xlu0 %686 }
 0x31e   :  { %14173 = vst [vmem:[#allocation137_spill] sm:$0xff] %v9593_v14  ;;  %2458 = vbcast.lane.b32.xlu1 %v8947_v22, 280  ;;  %v14226_v14 = vld [vmem:[#allocation18_spill] sm:$0xff] }
 0x31f   :  { %2454 = vbcast.lane.b32.xlu0 %v8947_v22, 272 }
 0x320   :  { %v9597_v40 = vpop.permute.xlu1 %3598 }
 0x321   :  { %14174 = vst [vmem:[#allocation138_spill] sm:$0xff] %v9597_v40  ;;  %v9599_v15 = vpop.permute.xlu0 %697 }
 0x322   :  { %14175 = vst [vmem:[#allocation139_spill] sm:$0xff] %v9599_v15  ;;  %2466 = vbcast.lane.b32.xlu1 %v8951_v26, 280 }
 0x323   :  { %2462 = vbcast.lane.b32.xlu0 %v8951_v26, 272 }
 0x324   :  { %v9603_v1 = vpop.permute.xlu1 %3590 }
 0x325   :  { %14176 = vst [vmem:[#allocation140_spill] sm:$0xff] %v9603_v1  ;;  %v9605_v3 = vpop.permute.xlu0 %708 }
 0x326   :  { %14177 = vst [vmem:[#allocation141_spill] sm:$0xff] %v9605_v3  ;;  %2474 = vbcast.lane.b32.xlu1 %v8954_v10, 280  ;;  %v14198_v3 = vld [vmem:[#allocation9_spill] sm:$0xff] }
 0x327   :  { %2470 = vbcast.lane.b32.xlu0 %v8954_v10, 272 }
 0x328   :  { %v9609_v19 = vpop.permute.xlu1 %690 }
 0x329   :  { %14178 = vst [vmem:[#allocation142_spill] sm:$0xff] %v9609_v19  ;;  %v9611_v58 = vpop.permute.xlu0 %719 }
 0x32a   :  { %14179 = vst [vmem:[#allocation143_spill] sm:$0xff] %v9611_v58  ;;  %2482 = vbcast.lane.b32.xlu1 %v8957_v11, 280 }
 0x32b   :  { %2478 = vbcast.lane.b32.xlu0 %v8957_v11, 272 }
 0x32c   :  { %v9615_v22 = vpop.permute.xlu1 %701 }
 0x32d   :  { %14180 = vst [vmem:[#allocation144_spill] sm:$0xff] %v9615_v22  ;;  %v9617_v40 = vpop.permute.xlu0 %730  ;;  %v14217_v22 = vld [vmem:[#allocation15_spill] sm:$0xff] }
 0x32e   :  { %14181 = vst [vmem:[#allocation145_spill] sm:$0xff] %v9617_v40  ;;  %2490 = vbcast.lane.b32.xlu1 %v8962_v27, 280 }
 0x32f   :  { %2486 = vbcast.lane.b32.xlu0 %v8962_v27, 272 }
 0x330   :  { %v9621_v26 = vpop.permute.xlu1 %712 }
 0x331   :  { %14182 = vst [vmem:[#allocation146_spill] sm:$0xff] %v9621_v26  ;;  %v9623_v1 = vpop.permute.xlu0 %741  ;;  %v14206_v26 = vld [vmem:[#allocation11_spill] sm:$0xff] }
 0x332   :  { %14183 = vst [vmem:[#allocation147_spill] sm:$0xff] %v9623_v1  ;;  %2498 = vbcast.lane.b32.xlu1 %v8965_v30, 280 }
 0x333   :  { %2494 = vbcast.lane.b32.xlu0 %v8965_v30, 272 }
 0x334   :  { %v9627_v10 = vpop.permute.xlu1 %723 }
 0x335   :  { %14184 = vst [vmem:[#allocation148_spill] sm:$0xff] %v9627_v10  ;;  %v9629_v58 = vpop.permute.xlu0 %752  ;;  %v14201_v10 = vld [vmem:[#allocation10_spill] sm:$0xff] }
 0x336   :  { %14185 = vst [vmem:[#allocation149_spill] sm:$0xff] %v9629_v58  ;;  %954 = vbcast.lane.b32.xlu1 %v8968_v31, 264 }
 0x337   :  { %950 = vbcast.lane.b32.xlu0 %v8968_v31, 256 }
 0x338   :  { %v9633_v11 = vpop.permute.xlu1 %734 }
 0x339   :  { %14186 = vst [vmem:[#allocation150_spill] sm:$0xff] %v9633_v11  ;;  %v9635_v40 = vpop.permute.xlu0 %763 }
 0x33a   :  { %14187 = vst [vmem:[#allocation151_spill] sm:$0xff] %v9635_v40  ;;  %965 = vbcast.lane.b32.xlu1 %v8971_v23, 264 }
 0x33b   :  { %961 = vbcast.lane.b32.xlu0 %v8971_v23, 256 }
 0x33c   :  { %v9639_v27 = vpop.permute.xlu1 %745 }
 0x33d   :  { %14188 = vst [vmem:[#allocation152_spill] sm:$0xff] %v9639_v27  ;;  %v9641_v1 = vpop.permute.xlu0 %2566 }
 0x33e   :  { %14189 = vst [vmem:[#allocation153_spill] sm:$0xff] %v9641_v1  ;;  %976 = vbcast.lane.b32.xlu1 %v8974_v32, 264 }
 0x33f   :  { %972 = vbcast.lane.b32.xlu0 %v8974_v32, 256 }
 0x340   :  { %v9645_v30 = vpop.permute.xlu1 %756 }
 0x341   :  { %14190 = vst [vmem:[#allocation154_spill] sm:$0xff] %v9645_v30  ;;  %v9647_v58 = vpop.permute.xlu0 %2574 }
 0x342   :  { %14191 = vst [vmem:[#allocation155_spill] sm:$0xff] %v9647_v58  ;;  %987 = vbcast.lane.b32.xlu1 %v8977_v17, 264 }
 0x343   :  { %983 = vbcast.lane.b32.xlu0 %v8977_v17, 256 }
 0x344   :  { %v9651_v40 = vpop.permute.xlu1 %767 }
 0x345   :  { %14192 = vst [vmem:[#allocation156_spill] sm:$0xff] %v9651_v40  ;;  %v9653_v11 = vpop.permute.xlu0 %2582 }
 0x346   :  { %14193 = vst [vmem:[#allocation157_spill] sm:$0xff] %v9653_v11  ;;  %998 = vbcast.lane.b32.xlu1 %v8980_v33, 264 }
 0x347   :  { %994 = vbcast.lane.b32.xlu0 %v8980_v33, 256 }
 0x348   :  { %v9657_v1 = vpop.permute.xlu1 %2570 }
 0x349   :  { %14194 = vst [vmem:[#allocation158_spill] sm:$0xff] %v9657_v1  ;;  %v9659_v27 = vpop.permute.xlu0 %2590 }
 0x34a   :  { %14195 = vst [vmem:[#allocation159_spill] sm:$0xff] %v9659_v27  ;;  %1009 = vbcast.lane.b32.xlu1 %v8983_v38, 264 }
 0x34b   :  { %1005 = vbcast.lane.b32.xlu0 %v8983_v38, 256 }
 0x34c   :  { %v9663_v58 = vpop.permute.xlu1 %2578 }
 0x34d   :  { %14196 = vst [vmem:[#allocation160_spill] sm:$0xff] %v9663_v58  ;;  %v9665_v30 = vpop.permute.xlu0 %2598 }
 0x34e   :  { %14197 = vst [vmem:[#allocation161_spill] sm:$0xff] %v9665_v30  ;;  %1020 = vbcast.lane.b32.xlu1 %v14198_v3, 264 }
 0x34f   :  { %1016 = vbcast.lane.b32.xlu0 %v14198_v3, 256 }
 0x350   :  { %v9669_v11 = vpop.permute.xlu1 %2586 }
 0x351   :  { %14199 = vst [vmem:[#allocation162_spill] sm:$0xff] %v9669_v11  ;;  %v9671_v40 = vpop.permute.xlu0 %2606 }
 0x352   :  { %14200 = vst [vmem:[#allocation163_spill] sm:$0xff] %v9671_v40  ;;  %1031 = vbcast.lane.b32.xlu1 %v14201_v10, 264 }
 0x353   :  { %1027 = vbcast.lane.b32.xlu0 %v14201_v10, 256 }
 0x354   :  { %v9675_v27 = vpop.permute.xlu1 %2594 }
 0x355   :  { %14202 = vst [vmem:[#allocation164_spill] sm:$0xff] %v9675_v27  ;;  %v9677_v1 = vpop.permute.xlu0 %2614 }
 0x356   :  { %14203 = vst [vmem:[#allocation165_spill] sm:$0xff] %v9677_v1  ;;  %2762 = vbcast.lane.b32.xlu1 %v8968_v31, 280  ;;  %v14208_v1 = vld [vmem:[#allocation12_spill] sm:$0xff] }
 0x357   :  { %2758 = vbcast.lane.b32.xlu0 %v8968_v31, 272 }
 0x358   :  { %v9681_v30 = vpop.permute.xlu1 %2602 }
 0x359   :  { %14204 = vst [vmem:[#allocation166_spill] sm:$0xff] %v9681_v30  ;;  %v9683_v58 = vpop.permute.xlu0 %2622  ;;  %v14211_v30 = vld [vmem:[#allocation13_spill] sm:$0xff] }
 0x35a   :  { %14205 = vst [vmem:[#allocation167_spill] sm:$0xff] %v9683_v58  ;;  %778 = vbcast.lane.b32.xlu1 %v14206_v26, 264 }
 0x35b   :  { %774 = vbcast.lane.b32.xlu0 %v14206_v26, 256 }
 0x35c   :  { %v9687_v40 = vpop.permute.xlu1 %2610 }
 0x35d   :  { %14207 = vst [vmem:[#allocation11_spill] sm:$0xff] %v9687_v40  ;;  %v1959_v11 = vpop.permute.xlu0 %1958 }
 0x35e   :  { %8021 = vmatprep.subr.msk.bf16.mxu1 %vm2101_vm1, %v1959_v11  ;;  %v2115_v27 = vsel %vm2101_vm1, %v1959_v11, 0  ;;  %789 = vbcast.lane.b32.xlu1 %v14208_v1, 264  ;;  %v14214_v11 = vld [vmem:[#allocation14_spill] sm:$0xff] }
 0x35f   :  { %785 = vbcast.lane.b32.xlu0 %v14208_v1, 256  ;;  %7874 = vmatpush3.bf16.xpose.msra.mxu1 %v2115_v27  ;;  %v2118_v27 = vsel %vm2101_vm1, %v9591_v9, 0 }
 0x360   :  { %8022 = vmatprep.subr.msk.bf16.mxu1 %vm2101_vm1, %v9591_v9  ;;  %v9695_v31 = vpop.permute.xlu1 %2618 }
 0x361   :  { %14209 = vst [vmem:[#allocation12_spill] sm:$0xff] %v9695_v31  ;;  %v9697_v58 = vpop.permute.xlu0 %3596 }
 0x362   :  { %14210 = vst [vmem:[#allocation168_spill] sm:$0xff] %v9697_v58  ;;  %800 = vbcast.lane.b32.xlu1 %v14211_v30, 264 }
 0x363   :  { %796 = vbcast.lane.b32.xlu0 %v14211_v30, 256 }
 0x364   :  { %v9701_v40 = vpop.permute.xlu1 %2626 }
 0x365   :  { %14212 = vst [vmem:[#allocation13_spill] sm:$0xff] %v9701_v40  ;;  %v9703_v10 = vpop.permute.xlu0 %3588 }
 0x366   :  { %14213 = vst [vmem:[#allocation169_spill] sm:$0xff] %v9703_v10  ;;  %811 = vbcast.lane.b32.xlu1 %v14214_v11, 264  ;;  %v14220_v10 = vld [vmem:[#allocation16_spill] sm:$0xff] }
 0x367   :  { %807 = vbcast.lane.b32.xlu0 %v14214_v11, 256  ;;  %7876 = vmatpush3.bf16.xpose.msra.mxu1 %v2118_v27  ;;  %v14223_v27 = vld [vmem:[#allocation17_spill] sm:$0xff] }
 0x368   :  { %v9709_v15 = vpop.permute.xlu1 %514 }
 0x369   :  { %14215 = vst [vmem:[#allocation14_spill] sm:$0xff] %v9709_v15  ;;  %v9711_v31 = vpop.permute.xlu0 %510 }
 0x36a   :  { %14216 = vst [vmem:[#allocation170_spill] sm:$0xff] %v9711_v31  ;;  %822 = vbcast.lane.b32.xlu1 %v14217_v22, 264 }
 0x36b   :  { %818 = vbcast.lane.b32.xlu0 %v14217_v22, 256 }
 0x36c   :  { %v9715_v58 = vpop.permute.xlu1 %525 }
 0x36d   :  { %14218 = vst [vmem:[#allocation15_spill] sm:$0xff] %v9715_v58  ;;  %v9717_v40 = vpop.permute.xlu0 %521 }
 0x36e   :  { %14219 = vst [vmem:[#allocation171_spill] sm:$0xff] %v9717_v40  ;;  %833 = vbcast.lane.b32.xlu1 %v14220_v10, 264 }
 0x36f   :  { %829 = vbcast.lane.b32.xlu0 %v14220_v10, 256  ;;  %v1290_v10 = vmul.f32 %v9915_v8, %v9418_v57 }
 0x370   :  { %v9721_v3 = vpop.permute.xlu1 %536 }
 0x371   :  { %14221 = vst [vmem:[#allocation172_spill] sm:$0xff] %v9721_v3  ;;  %v9723_v9 = vpop.permute.xlu0 %532  ;;  %v1559_v57 = vsel %vm1377_vm2, %v1290_v10, 0.0 }
 0x372   :  { %14222 = vst [vmem:[#allocation173_spill] sm:$0xff] %v9723_v9  ;;  %844 = vbcast.lane.b32.xlu1 %v14223_v27, 264 }
 0x373   :  { %840 = vbcast.lane.b32.xlu0 %v14223_v27, 256 }
 0x374   :  { %v9727_v31 = vpop.permute.xlu1 %547 }
 0x375   :  { %14224 = vst [vmem:[#allocation174_spill] sm:$0xff] %v9727_v31  ;;  %v9729_v15 = vpop.permute.xlu0 %543 }
 0x376   :  { %14225 = vst [vmem:[#allocation175_spill] sm:$0xff] %v9729_v15  ;;  %855 = vbcast.lane.b32.xlu1 %v14226_v14, 264 }
 0x377   :  { %851 = vbcast.lane.b32.xlu0 %v14226_v14, 256 }
 0x378   :  { %v9733_v40 = vpop.permute.xlu1 %558 }
 0x379   :  { %14227 = vst [vmem:[#allocation176_spill] sm:$0xff] %v9733_v40  ;;  %v9735_v58 = vpop.permute.xlu0 %554 }
 0x37a   :  { %14228 = vst [vmem:[#allocation177_spill] sm:$0xff] %v9735_v58  ;;  %2634 = vbcast.lane.b32.xlu1 %v14206_v26, 280 }
 0x37b   :  { %2630 = vbcast.lane.b32.xlu0 %v14206_v26, 272  ;;  %v14235_v26 = vld [vmem:[#allocation20_spill] sm:$0xff] }
 0x37c   :  { %v9739_v9 = vpop.permute.xlu1 %569 }
 0x37d   :  { %14229 = vst [vmem:[#allocation178_spill] sm:$0xff] %v9739_v9  ;;  %v9741_v3 = vpop.permute.xlu0 %565 }
 0x37e   :  { %14230 = vst [vmem:[#allocation179_spill] sm:$0xff] %v9741_v3  ;;  %2642 = vbcast.lane.b32.xlu1 %v14208_v1, 280 }
 0x37f   :  { %2638 = vbcast.lane.b32.xlu0 %v14208_v1, 272 }
 0x380   :  { %v9745_v15 = vpop.permute.xlu1 %580 }
 0x381   :  { %14231 = vst [vmem:[#allocation180_spill] sm:$0xff] %v9745_v15  ;;  %v9747_v31 = vpop.permute.xlu0 %576 }
 0x382   :  { %14232 = vst [vmem:[#allocation181_spill] sm:$0xff] %v9747_v31  ;;  %2650 = vbcast.lane.b32.xlu1 %v14211_v30, 280  ;;  %v14238_v31 = vld [vmem:[#allocation21_spill] sm:$0xff] }
 0x383   :  { %2646 = vbcast.lane.b32.xlu0 %v14211_v30, 272 }
 0x384   :  { %v9751_v58 = vpop.permute.xlu1 %591 }
 0x385   :  { %14233 = vst [vmem:[#allocation182_spill] sm:$0xff] %v9751_v58  ;;  %v9753_v40 = vpop.permute.xlu0 %587 }
 0x386   :  { %14234 = vst [vmem:[#allocation183_spill] sm:$0xff] %v9753_v40  ;;  %1964 = vrot.lane.b32.xlu1 %v9023_v24, %s8564_s2  ;;  %v14241_v40 = vld [vmem:[#allocation22_spill] sm:$0xff] }
 0x387   :  { %1038 = vbcast.lane.b32.xlu0 %v14235_v26, 256 }
 0x388   :  { %v9758_v3 = vpop.permute.xlu1 %2442 }
 0x389   :  { %14236 = vst [vmem:[#allocation20_spill] sm:$0xff] %v9758_v3  ;;  %v9760_v1 = vpop.permute.xlu0 %2438 }
 0x38a   :  { %14237 = vst [vmem:[#allocation184_spill] sm:$0xff] %v9760_v1  ;;  %3602 = vrot.lane.b32.xlu1 %v9023_v24, %s8565_s17  ;;  %v14244_v1 = vld [vmem:[#allocation23_spill] sm:$0xff] }
 0x38b   :  { %1049 = vbcast.lane.b32.xlu0 %v14238_v31, 256 }
 0x38c   :  { %v9765_v15 = vpop.permute.xlu1 %2450 }
 0x38d   :  { %14239 = vst [vmem:[#allocation21_spill] sm:$0xff] %v9765_v15  ;;  %v9767_v30 = vpop.permute.xlu0 %2446 }
 0x38e   :  { %14240 = vst [vmem:[#allocation185_spill] sm:$0xff] %v9767_v30  ;;  %3594 = vrot.lane.b32.xlu1 %v9023_v24, %s8566_s18  ;;  %v14247_v30 = vld [vmem:[#allocation24_spill] sm:$0xff] }
 0x38f   :  { %1060 = vbcast.lane.b32.xlu0 %v14241_v40, 256 }
 0x390   :  { %v9772_v58 = vpop.permute.xlu1 %2458 }
 0x391   :  { %14242 = vst [vmem:[#allocation22_spill] sm:$0xff] %v9772_v58  ;;  %v9774_v9 = vpop.permute.xlu0 %2454  ;;  %v14250_v58 = vld [vmem:[#allocation25_spill] sm:$0xff] }
 0x392   :  { %14243 = vst [vmem:[#allocation186_spill] sm:$0xff] %v9774_v9  ;;  %1042 = vbcast.lane.b32.xlu1 %v14235_v26, 264 }
 0x393   :  { %1071 = vbcast.lane.b32.xlu0 %v14244_v1, 256 }
 0x394   :  { %v9778_v3 = vpop.permute.xlu1 %2466 }
 0x395   :  { %14245 = vst [vmem:[#allocation187_spill] sm:$0xff] %v9778_v3  ;;  %v9780_v19 = vpop.permute.xlu0 %2462  ;;  %v14253_v3 = vld [vmem:[#allocation26_spill] sm:$0xff] }
 0x396   :  { %14246 = vst [vmem:[#allocation188_spill] sm:$0xff] %v9780_v19  ;;  %1053 = vbcast.lane.b32.xlu1 %v14238_v31, 264 }
 0x397   :  { %1082 = vbcast.lane.b32.xlu0 %v14247_v30, 256 }
 0x398   :  { %v9784_v15 = vpop.permute.xlu1 %2474 }
 0x399   :  { %14248 = vst [vmem:[#allocation189_spill] sm:$0xff] %v9784_v15  ;;  %v9786_v24 = vpop.permute.xlu0 %2470  ;;  %v14256_v15 = vld [vmem:[#allocation27_spill] sm:$0xff] }
 0x39a   :  { %14249 = vst [vmem:[#allocation190_spill] sm:$0xff] %v9786_v24  ;;  %1064 = vbcast.lane.b32.xlu1 %v14241_v40, 264 }
 0x39b   :  { %1093 = vbcast.lane.b32.xlu0 %v14250_v58, 256 }
 0x39c   :  { %v9790_v9 = vpop.permute.xlu1 %2482 }
 0x39d   :  { %14251 = vst [vmem:[#allocation191_spill] sm:$0xff] %v9790_v9  ;;  %v9792_v14 = vpop.permute.xlu0 %2478 }
 0x39e   :  { %14252 = vst [vmem:[#allocation192_spill] sm:$0xff] %v9792_v14  ;;  %1075 = vbcast.lane.b32.xlu1 %v14244_v1, 264  ;;  %v14259_v14 = vld [vmem:[#allocation28_spill] sm:$0xff] }
 0x39f   :  { %1104 = vbcast.lane.b32.xlu0 %v14253_v3, 256 }
 0x3a0   :  { %v9796_v19 = vpop.permute.xlu1 %2490 }
 0x3a1   :  { %14254 = vst [vmem:[#allocation193_spill] sm:$0xff] %v9796_v19  ;;  %v9798_v38 = vpop.permute.xlu0 %2486 }
 0x3a2   :  { %14255 = vst [vmem:[#allocation194_spill] sm:$0xff] %v9798_v38  ;;  %1086 = vbcast.lane.b32.xlu1 %v14247_v30, 264 }
 0x3a3   :  { %1115 = vbcast.lane.b32.xlu0 %v14256_v15, 256 }
 0x3a4   :  { %v9802_v24 = vpop.permute.xlu1 %2498 }
 0x3a5   :  { %14257 = vst [vmem:[#allocation195_spill] sm:$0xff] %v9802_v24  ;;  %v9804_v27 = vpop.permute.xlu0 %2494 }
 0x3a6   :  { %14258 = vst [vmem:[#allocation196_spill] sm:$0xff] %v9804_v27  ;;  %1097 = vbcast.lane.b32.xlu1 %v14250_v58, 264 }
 0x3a7   :  { %3600 = vrot.lane.b32.xlu0 %v14259_v14, %s8565_s17 }
 0x3a8   :  { %v9809_v9 = vpop.permute.xlu1 %954 }
 0x3a9   :  { %14260 = vst [vmem:[#allocation197_spill] sm:$0xff] %v9809_v9  ;;  %v9811_v13 = vpop.permute.xlu0 %950 }
 0x3aa   :  { %14261 = vst [vmem:[#allocation198_spill] sm:$0xff] %v9811_v13  ;;  %1108 = vbcast.lane.b32.xlu1 %v14253_v3, 264 }
 0x3ab   :  { %2766 = vbcast.lane.b32.xlu0 %v8971_v23, 272 }
 0x3ac   :  { %v9815_v38 = vpop.permute.xlu1 %965 }
 0x3ad   :  { %14262 = vst [vmem:[#allocation199_spill] sm:$0xff] %v9815_v38  ;;  %v9817_v19 = vpop.permute.xlu0 %961 }
 0x3ae   :  { %14263 = vst [vmem:[#allocation200_spill] sm:$0xff] %v9817_v19  ;;  %1119 = vbcast.lane.b32.xlu1 %v14256_v15, 264  ;;  %v9893_v15 = vld [vmem:[#allocation2 + $0x130] sm:$0xff] }
 0x3af   :  { %2822 = vbcast.lane.b32.xlu0 %v14235_v26, 272 }
 0x3b0   :  { %v9821_v27 = vpop.permute.xlu1 %976 }
 0x3b1   :  { %14264 = vst [vmem:[#allocation201_spill] sm:$0xff] %v9821_v27  ;;  %v9823_v24 = vpop.permute.xlu0 %972 }
 0x3b2   :  { %14265 = vst [vmem:[#allocation202_spill] sm:$0xff] %v9823_v24  ;;  %1962 = vrot.lane.b32.xlu1 %v14259_v14, %s8564_s2 }
 0x3b3   :  { %2830 = vbcast.lane.b32.xlu0 %v14238_v31, 272 }
 0x3b4   :  { %v9828_v13 = vpop.permute.xlu1 %987 }
 0x3b5   :  { %14266 = vst [vmem:[#allocation203_spill] sm:$0xff] %v9828_v13  ;;  %v9830_v9 = vpop.permute.xlu0 %983  ;;  %v9885_v13 = vld [vmem:[#allocation2 + $0x120] sm:$0xff] }
 0x3b6   :  { %14267 = vst [vmem:[#allocation204_spill] sm:$0xff] %v9830_v9  ;;  %2770 = vbcast.lane.b32.xlu1 %v8971_v23, 280  ;;  %v1285_v58 = vmul.f32 %v9885_v13, %v9407_v29 }
 0x3b7   :  { %2654 = vbcast.lane.b32.xlu0 %v14214_v11, 272 }
 0x3b8   :  { %v9834_v19 = vpop.permute.xlu1 %998 }
 0x3b9   :  { %14268 = vst [vmem:[#allocation205_spill] sm:$0xff] %v9834_v19  ;;  %v9836_v38 = vpop.permute.xlu0 %994  ;;  %v9883_v19 = vld [vmem:[#allocation2 + $0x128] sm:$0xff] }
 0x3ba   :  { %14269 = vst [vmem:[#allocation206_spill] sm:$0xff] %v9836_v38  ;;  %2826 = vbcast.lane.b32.xlu1 %v14235_v26, 280 }
 0x3bb   :  { %2774 = vbcast.lane.b32.xlu0 %v8974_v32, 272 }
 0x3bc   :  { %v9840_v24 = vpop.permute.xlu1 %1009 }
 0x3bd   :  { %14270 = vst [vmem:[#allocation207_spill] sm:$0xff] %v9840_v24  ;;  %v9842_v27 = vpop.permute.xlu0 %1005  ;;  %v9875_v24 = vld [vmem:[#allocation2 + $0x108] sm:$0xff] }
 0x3be   :  { %14271 = vst [vmem:[#allocation208_spill] sm:$0xff] %v9842_v27  ;;  %2834 = vbcast.lane.b32.xlu1 %v14238_v31, 280 }
 0x3bf   :  { %2838 = vbcast.lane.b32.xlu0 %v14241_v40, 272 }
 0x3c0   :  { %v9846_v9 = vpop.permute.xlu1 %1020 }
 0x3c1   :  { %14272 = vst [vmem:[#allocation209_spill] sm:$0xff] %v9846_v9  ;;  %v9848_v23 = vpop.permute.xlu0 %1016  ;;  %v9867_v9 = vld [vmem:[#allocation2 + $0x110] sm:$0xff] }
 0x3c2   :  { %14273 = vst [vmem:[#allocation210_spill] sm:$0xff] %v9848_v23  ;;  %2658 = vbcast.lane.b32.xlu1 %v14214_v11, 280  ;;  %v14278_v23 = vld [vmem:[#allocation29_spill] sm:$0xff]  ;;  %v9865_v11 = vld [vmem:[#allocation2 + $0x118] sm:$0xff] }
 0x3c3   :  { %2662 = vbcast.lane.b32.xlu0 %v14217_v22, 272 }
 0x3c4   :  { %v9852_v38 = vpop.permute.xlu1 %1031 }
 0x3c5   :  { %14274 = vst [vmem:[#allocation211_spill] sm:$0xff] %v9852_v38  ;;  %v9854_v26 = vpop.permute.xlu0 %1027 }
 0x3c6   :  { %14275 = vst [vmem:[#allocation212_spill] sm:$0xff] %v9854_v26  ;;  %2778 = vbcast.lane.b32.xlu1 %v8974_v32, 280  ;;  %v14281_v32 = vld [vmem:[#allocation30_spill] sm:$0xff] }
 0x3c7   :  { %3592 = vrot.lane.b32.xlu0 %v14259_v14, %s8566_s18  ;;  %v1282_v14 = vmul.f32 %v9875_v24, %v9393_v42 }
 0x3c8   :  { %v9859_v31 = vpop.permute.xlu1 %2762 }
 0x3c9   :  { %14276 = vst [vmem:[#allocation213_spill] sm:$0xff] %v9859_v31  ;;  %v9861_v27 = vpop.permute.xlu0 %2758  ;;  %v9877_v31 = vld [vmem:[#allocation2 + $0x100] sm:$0xff]  ;;  %v1523_v29 = vsel %vm1377_vm2, %v1282_v14, 0.0  ;;  %v9935_v14 = vld [vmem:[#allocation2 + $0x158] sm:$0xff] }
 0x3ca   :  { %14277 = vst [vmem:[#allocation214_spill] sm:$0xff] %v9861_v27  ;;  %2842 = vbcast.lane.b32.xlu1 %v14241_v40, 280  ;;  %v1284_v40 = vmul.f32 %v9865_v11, %v9399_v36  ;;  %v1283_v27 = vmul.f32 %v9867_v9, %v9401_v52  ;;  %v1281_v36 = vmul.f32 %v9877_v31, %v9395_v43  ;;  %v14284_v52 = vld [vmem:[#allocation31_spill] sm:$0xff] }
 0x3cb   :  { %862 = vbcast.lane.b32.xlu0 %v14278_v23, 256  ;;  %v1287_v43 = vmul.f32 %v9893_v15, %v9413_v56  ;;  %v1540_v56 = vsel %vm1377_vm2, %v1285_v58, 0.0 }
 0x3cc   :  { %v9869_v38 = vpop.permute.xlu1 %778  ;;  %v1532_v3 = vsel %vm1377_vm2, %v1284_v40, 0.0  ;;  %v9917_v40 = vld [vmem:[#allocation2 + $0x140] sm:$0xff] }
 0x3cd   :  { %14279 = vst [vmem:[#allocation29_spill] sm:$0xff] %v9869_v38  ;;  %v9871_v26 = vpop.permute.xlu0 %774 }
 0x3ce   :  { %14280 = vst [vmem:[#allocation215_spill] sm:$0xff] %v9871_v26  ;;  %2666 = vbcast.lane.b32.xlu1 %v14217_v22, 280  ;;  %v9891_v22 = vld [vmem:[#allocation2 + $0x138] sm:$0xff] }
 0x3cf   :  { %873 = vbcast.lane.b32.xlu0 %v14281_v32, 256  ;;  %v1288_v42 = vmul.f32 %v9891_v22, %v9411_v53  ;;  %v1522_v53 = vsel %vm1377_vm2, %v1281_v36, 0.0  ;;  %v9937_v36 = vld [vmem:[#allocation2 + $0x150] sm:$0xff] }
 0x3d0   :  { %v9887_v38 = vpop.permute.xlu1 %789 }
 0x3d1   :  { %14282 = vst [vmem:[#allocation30_spill] sm:$0xff] %v9887_v38  ;;  %v9889_v26 = vpop.permute.xlu0 %785  ;;  %v1531_v38 = vsel %vm1377_vm2, %v1283_v27, 0.0 }
 0x3d2   :  { %14283 = vst [vmem:[#allocation216_spill] sm:$0xff] %v9889_v26  ;;  %866 = vbcast.lane.b32.xlu1 %v14278_v23, 264  ;;  %v1286_v26 = vmul.f32 %v9883_v19, %v9405_v28  ;;  %v1533_v27 = vadd.f32 %v1532_v3, %v1531_v38  ;;  %v14287_v28 = vld [vmem:[#allocation32_spill] sm:$0xff]  ;;  %v1289_v3 = vmul.f32 %v9917_v40, %v9420_v59 }
 0x3d3   :  { %884 = vbcast.lane.b32.xlu0 %v14284_v52, 256 }
 0x3d4   :  { %v9911_v30 = vpop.permute.xlu1 %800  ;;  %v1541_v55 = vsel %vm1377_vm2, %v1286_v26, 0.0  ;;  %v1524_v26 = vadd.f32 %v1523_v29, %v1522_v53  ;;  %v1534_v58 = vrot.slane %v1533_v27, 4  ;;  %v1558_v59 = vsel %vm1377_vm2, %v1289_v3, 0.0  ;;  %v9955_v3 = vld [vmem:[#allocation2 + $0x168] sm:$0xff] }
 0x3d5   :  { %14285 = vst [vmem:[#allocation31_spill] sm:$0xff] %v9911_v30  ;;  %v9913_v33 = vpop.permute.xlu0 %796  ;;  %v1550_v30 = vsel %vm1377_vm2, %v1288_v42, 0.0  ;;  %v14290_v42 = vld [vmem:[#allocation33_spill] sm:$0xff] }
 0x3d6   :  { %14286 = vst [vmem:[#allocation217_spill] sm:$0xff] %v9913_v33  ;;  %877 = vbcast.lane.b32.xlu1 %v14281_v32, 264  ;;  %v1549_v33 = vsel %vm1377_vm2, %v1287_v43, 0.0  ;;  %v1542_v43 = vadd.f32 %v1541_v55, %v1540_v56  ;;  %v1525_v53 = vrot.slane %v1524_v26, 4  ;;  %v1535_v35 = vadd.f32 %v1534_v58, %v1533_v27  ;;  %v14293_v55 = vld [vmem:[#allocation34_spill] sm:$0xff]  ;;  %v9963_v27 = vld [vmem:[#allocation2 + $0x178] sm:$0xff] }
 0x3d7   :  { %895 = vbcast.lane.b32.xlu0 %v14287_v28, 256  ;;  %v1551_v48 = vadd.f32 %v1550_v30, %v1549_v33  ;;  %v1560_v30 = vadd.f32 %v1559_v57, %v1558_v59  ;;  %v9965_v58 = vld [vmem:[#allocation2 + $0x170] sm:$0xff]  ;;  %v1296_v54 = vmul.f32 %v9963_v27, %v9438_v62 }
 0x3d8   :  { %v9931_v38 = vpop.permute.xlu1 %811  ;;  %v1543_v33 = vrot.slane %v1542_v43, 4  ;;  %v1526_v1 = vadd.f32 %v1525_v53, %v1524_v26  ;;  %v1536_v4 = vrot.slane %v1535_v35, 2  ;;  %v14296_v57 = vld [vmem:[#allocation35_spill] sm:$0xff]  ;;  %v1295_v26 = vmul.f32 %v9965_v58, %v9440_v63 }
 0x3d9   :  { %14288 = vst [vmem:[#allocation32_spill] sm:$0xff] %v9931_v38  ;;  %v9933_v6 = vpop.permute.xlu0 %807  ;;  %v1292_v38 = vmul.f32 %v9935_v14, %v9425_v60  ;;  %v1552_v10 = vrot.slane %v1551_v48, 4  ;;  %v1561_v59 = vrot.slane %v1560_v30, 4  ;;  %v2921_v63 = vmul.f32 %v9456_v39, %v9883_v19 }
 0x3da   :  { %14289 = vst [vmem:[#allocation218_spill] sm:$0xff] %v9933_v6  ;;  %888 = vbcast.lane.b32.xlu1 %v14284_v52, 264  ;;  %v1291_v6 = vmul.f32 %v9937_v36, %v9427_v37  ;;  %v1527_v62 = vrot.slane %v1526_v1, 2 }
 0x3db   :  { %906 = vbcast.lane.b32.xlu0 %v14290_v42, 256  ;;  %v1568_v56 = vsel %vm1377_vm2, %v1292_v38, 0.0  ;;  %v1544_v38 = vadd.f32 %v1543_v33, %v1542_v43  ;;  %v2916_v43 = vmul.f32 %v9446_v18, %v9877_v31  ;;  %v1537_v33 = vadd.f32 %v1536_v4, %v1535_v35 }
 0x3dc   :  { %v9947_v5 = vpop.permute.xlu1 %822  ;;  %v1567_v60 = vsel %vm1377_vm2, %v1291_v6, 0.0  ;;  %v1553_v6 = vadd.f32 %v1552_v10, %v1551_v48  ;;  %v2917_v48 = vmul.f32 %v9444_v46, %v9875_v24  ;;  %v2920_v10 = vmul.f32 %v9458_v51, %v9885_v13  ;;  %v14297_v24 = vld [vmem:[#allocation36_spill] sm:$0xff] }
 0x3dd   :  { %14291 = vst [vmem:[#allocation33_spill] sm:$0xff] %v9947_v5  ;;  %v9949_v29 = vpop.permute.xlu0 %818  ;;  %v1569_v49 = vadd.f32 %v1568_v56, %v1567_v60  ;;  %v1545_v46 = vrot.slane %v1544_v38, 2  ;;  %v1562_v31 = vadd.f32 %v1561_v59, %v1560_v30  ;;  %v1586_v35 = vsel %vm1377_vm2, %v1296_v54, 0.0 }
 0x3de   :  { %14292 = vst [vmem:[#allocation219_spill] sm:$0xff] %v9949_v29  ;;  %899 = vbcast.lane.b32.xlu1 %v14287_v28, 264  ;;  %v9961_v29 = vld [vmem:[#allocation2 + $0x160] sm:$0xff]  ;;  %v1554_v18 = vrot.slane %v1553_v6, 2  ;;  %v1585_v4 = vsel %vm1377_vm2, %v1295_v26, 0.0  ;;  %v3157_v51 = vsel %vm1377_vm2, %v2917_v48, 0.0  ;;  %v2923_v54 = vmul.f32 %v9462_v7, %v9891_v22 }
 0x3df   :  { %917 = vbcast.lane.b32.xlu0 %v14293_v55, 256  ;;  %v1570_v56 = vrot.slane %v1569_v49, 4  ;;  %v3156_v13 = vsel %vm1377_vm2, %v2916_v43, 0.0  ;;  %v3175_v30 = vsel %vm1377_vm2, %v2921_v63, 0.0  ;;  %v2922_v60 = vmul.f32 %v9464_v47, %v9893_v15 }
 0x3e0   :  { %v9957_v37 = vpop.permute.xlu1 %833  ;;  %v1538_v59 = vrot.slane %v1537_v33, 1  ;;  %v1546_v26 = vadd.f32 %v1545_v46, %v1544_v38  ;;  %v1563_v48 = vrot.slane %v1562_v31, 2  ;;  %v3158_v63 = vadd.f32 %v3157_v51, %v3156_v13 }
 0x3e1   :  { %14294 = vst [vmem:[#allocation34_spill] sm:$0xff] %v9957_v37  ;;  %v9959_v5 = vpop.permute.xlu0 %829  ;;  %v1294_v37 = vmul.f32 %v9955_v3, %v9432_v45  ;;  %v2919_v45 = vmul.f32 %v9450_v16, %v9865_v11  ;;  %v1571_v43 = vadd.f32 %v1570_v56, %v1569_v49  ;;  %v1555_v7 = vadd.f32 %v1554_v18, %v1553_v6 }
 0x3e2   :  { %14295 = vst [vmem:[#allocation220_spill] sm:$0xff] %v9959_v5  ;;  %910 = vbcast.lane.b32.xlu1 %v14290_v42, 264  ;;  %v1293_v5 = vmul.f32 %v9961_v29, %v9434_v61  ;;  %v2918_v61 = vmul.f32 %v9452_v0, %v9867_v9  ;;  %v3184_v15 = vsel %vm1377_vm2, %v2923_v54, 0.0  ;;  %v2924_v49 = vmul.f32 %v9470_v25, %v9917_v40 }
 0x3e3   :  { %928 = vbcast.lane.b32.xlu0 %v14296_v57, 256  ;;  %v1577_v16 = vsel %vm1377_vm2, %v1294_v37, 0.0  ;;  %v3166_v9 = vsel %vm1377_vm2, %v2919_v45, 0.0  ;;  %v1528_v37 = vadd.f32 %v1527_v62, %v1526_v1  ;;  %v2925_v1 = vmul.f32 %v9468_v41, %v9915_v8 }
 0x3e4   :  { %v9977_v53 = vpop.permute.xlu1 %844  ;;  %v1576_v0 = vsel %vm1377_vm2, %v1293_v5, 0.0  ;;  %v3165_v11 = vsel %vm1377_vm2, %v2918_v61, 0.0  ;;  %v3174_v5 = vsel %vm1377_vm2, %v2920_v10, 0.0  ;;  %v1587_v61 = vadd.f32 %v1586_v35, %v1585_v4 }
 0x3e5   :  { %v9979_v44 = vpop.permute.xlu0 %840  ;;  %v1578_v45 = vadd.f32 %v1577_v16, %v1576_v0  ;;  %v3167_v22 = vadd.f32 %v3166_v9, %v3165_v11  ;;  %v3176_v47 = vadd.f32 %v3175_v30, %v3174_v5  ;;  %v1529_v38 = vrot.slane %v1528_v37, 1 }
 0x3e6   :  { %921 = vbcast.lane.b32.xlu1 %v14293_v55, 264  ;;  %v1539_v62 = vadd.f32 %v1538_v59, %v1537_v33  ;;  %v1547_v6 = vrot.slane %v1546_v26, 1  ;;  %v1564_v46 = vadd.f32 %v1563_v48, %v1562_v31  ;;  %v1572_v18 = vrot.slane %v1571_v43, 2 }
 0x3e7   :  { %939 = vbcast.lane.b32.xlu0 %v14297_v24, 256  ;;  %v1579_v56 = vrot.slane %v1578_v45, 4  ;;  %v1588_v16 = vrot.slane %v1587_v61, 4  ;;  %v3159_v0 = vrot.slane %v3158_v63, 4  ;;  %v1556_v41 = vrot.slane %v1555_v7, 1 }
 0x3e8   :  { %v9999_v39 = vpop.permute.xlu1 %855  ;;  %v3168_v8 = vrot.slane %v3167_v22, 4  ;;  %v3177_v25 = vrot.slane %v3176_v47, 4  ;;  %v3193_v51 = vsel %vm1377_vm2, %v2925_v1, 0.0  ;;  %v3192_v13 = vsel %vm1377_vm2, %v2924_v49, 0.0 }
 0x3e9   :  { %14298 = vst [vmem:[#allocation35_spill] sm:$0xff] %v9999_v39  ;;  %v10001_v19 = vpop.permute.xlu0 %851  ;;  %v3183_v39 = vsel %vm1377_vm2, %v2922_v60, 0.0  ;;  %v2927_v33 = vmul.f32 %v9474_v34, %v9935_v14  ;;  %v2926_v31 = vmul.f32 %v9476_v50, %v9937_v36  ;;  %v1530_v9 = vadd.f32 %v1529_v38, %v1528_v37 }
 0x3ea   :  { %14299 = vst [vmem:[#allocation36_spill] sm:$0xff] %v10001_v19  ;;  %932 = vbcast.lane.b32.xlu1 %v14296_v57, 264  ;;  %v3185_v40 = vadd.f32 %v3184_v15, %v3183_v39  ;;  %v1548_v11 = vadd.f32 %v1547_v6, %v1546_v26  ;;  %v1565_v30 = vrot.slane %v1564_v46, 1  ;;  %v1573_v5 = vadd.f32 %v1572_v18, %v1571_v43 }
 0x3eb   :  { %2694 = vbcast.lane.b32.xlu0 %v14278_v23, 272  ;;  %v1580_v39 = vadd.f32 %v1579_v56, %v1578_v45  ;;  %v1589_v54 = vadd.f32 %v1588_v16, %v1587_v61  ;;  %v3160_v60 = vadd.f32 %v3159_v0, %v3158_v63  ;;  %v3169_v34 = vadd.f32 %v3168_v8, %v3167_v22  ;;  %v10066_v16 = vld [vmem:[#allocation2 + $0x8] sm:$0xff] }
 0x3ec   :  { %v10015_v10 = vpop.permute.xlu1 %2634  ;;  %v3186_v14 = vrot.slane %v3185_v40, 4  ;;  %v3194_v15 = vadd.f32 %v3193_v51, %v3192_v13  ;;  %v2051_v50 = vsel %vm2030_vm3, %v1539_v62, %v1530_v9  ;;  %v3178_v36 = vadd.f32 %v3177_v25, %v3176_v47 }
 0x3ed   :  { %v10017_v19 = vpop.permute.xlu0 %2630  ;;  %v3202_v37 = vsel %vm1377_vm2, %v2927_v33, 0.0  ;;  %v3201_v26 = vsel %vm1377_vm2, %v2926_v31, 0.0  ;;  %v1566_v43 = vadd.f32 %v1565_v30, %v1564_v46  ;;  %v2929_v45 = vmul.f32 %v9480_v20, %v9955_v3 }
 0x3ee   :  { %943 = vbcast.lane.b32.xlu1 %v14297_v24, 264  ;;  %v2928_v61 = vmul.f32 %v9482_v2, %v9961_v29  ;;  %v2052_v63 = vsel %vm2032_vm4, %v1548_v11, %v2051_v50  ;;  %v1574_v22 = vrot.slane %v1573_v5, 1  ;;  %v1590_v47 = vrot.slane %v1589_v54, 2  ;;  %v14307_v50 = vld [vmem:[#allocation106_spill] sm:$0xff] }
 0x3ef   :  { %2702 = vbcast.lane.b32.xlu0 %v14281_v32, 272  ;;  %v3161_v1 = vrot.slane %v3160_v60, 2  ;;  %v3187_v62 = vadd.f32 %v3186_v14, %v3185_v40  ;;  %v3195_v6 = vrot.slane %v3194_v15, 4  ;;  %v3203_v46 = vadd.f32 %v3202_v37, %v3201_v26 }
 0x3f0   :  { %v10027_v35 = vpop.permute.xlu1 %2642  ;;  %v3179_v18 = vrot.slane %v3178_v36, 2  ;;  %v2931_v20 = vmul.f32 %v9486_v21, %v9963_v27  ;;  %v2930_v2 = vmul.f32 %v9488_v12, %v9965_v58  ;;  %v3211_v3 = vsel %vm1377_vm2, %v2929_v45, 0.0  ;;  %v10073_v12 = vld [vmem:[#allocation2] sm:$0xff]  ;;  %v10077_v27 = vld [vmem:[#allocation2 + $0x10] sm:$0xff] }
 0x3f1   :  { %14300 = vst [vmem:[#allocation221_spill] sm:$0xff] %v10027_v35  ;;  %v10029_v4 = vpop.permute.xlu0 %2638  ;;  %v3210_v56 = vsel %vm1377_vm2, %v2928_v61, 0.0  ;;  %v10071_v21 = vadd.f32 %v3161_v1, %v3160_v60  ;;  %v1575_v25 = vadd.f32 %v1574_v22, %v1573_v5  ;;  %v1591_v40 = vadd.f32 %v1590_v47, %v1589_v54  ;;  %v14306_v60 = vld [vmem:[#allocation105_spill] sm:$0xff]  ;;  %v14308_v54 = vld [vmem:[#allocation107_spill] sm:$0xff]  ;;  %v10107_v1 = vld [vmem:[#allocation2 + $0x38] sm:$0xff] }
 0x3f2   :  { %14301 = vst [vmem:[#allocation222_spill] sm:$0xff] %v10029_v4  ;;  %2698 = vbcast.lane.b32.xlu1 %v14278_v23, 280  ;;  %v1557_v23 = vadd.f32 %v1556_v41, %v1555_v7  ;;  %v1581_v7 = vrot.slane %v1580_v39, 2  ;;  %v3188_v13 = vrot.slane %v3187_v62, 2  ;;  %v3196_v33 = vadd.f32 %v3195_v6, %v3194_v15  ;;  %v14309_v15 = vld [vmem:[#allocation108_spill] sm:$0xff]  ;;  %v10105_v47 = vld [vmem:[#allocation2 + $0x20] sm:$0xff] }
 0x3f3   :  { %2710 = vbcast.lane.b32.xlu0 %v14284_v52, 272  ;;  %v3204_v31 = vrot.slane %v3203_v46, 4  ;;  %v3180_v9 = vadd.f32 %v3179_v18, %v3178_v36  ;;  %v3212_v11 = vadd.f32 %v3211_v3, %v3210_v56  ;;  %v3220_v30 = vsel %vm1377_vm2, %v2931_v20, 0.0  ;;  %v10095_v36 = vld [vmem:[#allocation2 + $0x28] sm:$0xff] }
 0x3f4   :  { %v10039_v59 = vpop.permute.xlu1 %2650  ;;  %v2053_v29 = vsel %vm2034_vm5, %v1557_v23, %v2052_v63  ;;  %v10069_v41 = vadd.f32 %v1581_v7, %v1580_v39  ;;  %v3219_v39 = vsel %vm1377_vm2, %v2930_v2, 0.0  ;;  %v1250_v14 = vmul.f32 %v10066_v16, %v14306_v60 }
 0x3f5   :  { %14302 = vst [vmem:[#allocation223_spill] sm:$0xff] %v10039_v59  ;;  %v10041_v48 = vpop.permute.xlu0 %2646  ;;  %v2054_v0 = vsel %vm2036_vm6, %v1566_v43, %v2053_v29  ;;  %v1249_v5 = vmul.f32 %v10073_v12, %v14307_v50  ;;  %v1251_v23 = vmul.f32 %v10077_v27, %v14309_v15  ;;  %v1592_v43 = vrot.slane %v1591_v40, 1  ;;  %v14311_v29 = vld [vmem:[#allocation23_spill] sm:$0xff] }
 0x3f6   :  { %14303 = vst [vmem:[#allocation224_spill] sm:$0xff] %v10041_v48  ;;  %2706 = vbcast.lane.b32.xlu1 %v14281_v32, 280  ;;  %v3170_v32 = vrot.slane %v3169_v34, 2  ;;  %v10103_v45 = vsel %vm2038_vm7, %v1575_v25, %v2054_v0  ;;  %v3189_v63 = vadd.f32 %v3188_v13, %v3187_v62  ;;  %v3197_v22 = vrot.slane %v3196_v33, 2  ;;  %v14312_v0 = vld [vmem:[#allocation109_spill] sm:$0xff]  ;;  %v14313_v13 = vld [vmem:[#allocation110_spill] sm:$0xff] }
 0x3f7   :  { %2718 = vbcast.lane.b32.xlu0 %v14287_v28, 272  ;;  %v3205_v7 = vadd.f32 %v3204_v31, %v3203_v46  ;;  %v3163_v6 = vrot.slane %v10071_v21, 1  ;;  %v3181_v18 = vrot.slane %v3180_v9, 1  ;;  %v3213_v20 = vrot.slane %v3212_v11, 4 }
 0x3f8   :  { %v10053_v49 = vpop.permute.xlu1 %1964  ;;  %v3171_v51 = vadd.f32 %v3170_v32, %v3169_v34  ;;  %v10109_v32 = vld [vmem:[#allocation2 + $0x30] sm:$0xff]  ;;  %v3221_v2 = vadd.f32 %v3220_v30, %v3219_v39  ;;  %v1379_v62 = vsel %vm1377_vm2, %v1250_v14, 0.0  ;;  %v1378_v46 = vsel %vm1377_vm2, %v1249_v5, 0.0  ;;  %v14315_v39 = vld [vmem:[#allocation112_spill] sm:$0xff] }
 0x3f9   :  { %v10055_v38 = vpop.permute.xlu0 %1038  ;;  %v1387_v56 = vsel %vm1377_vm2, %v1251_v23, 0.0  ;;  %v1254_v25 = vmul.f32 %v10095_v36, %v14312_v0  ;;  %v1253_v31 = vmul.f32 %v10105_v47, %v14313_v13  ;;  %v14314_v30 = vld [vmem:[#allocation111_spill] sm:$0xff]  ;;  %v1255_v60 = vmul.f32 %v10109_v32, %v14315_v39  ;;  %v14317_v13 = vld [vmem:[#allocation16_spill] sm:$0xff] }
 0x3fa   :  { %14304 = vst [vmem:[#allocation225_spill] sm:$0xff] %v10055_v38  ;;  %2714 = vbcast.lane.b32.xlu1 %v14284_v52, 280  ;;  %v10075_v52 = vld [vmem:[#allocation2 + $0x18] sm:$0xff]  ;;  %v3172_v61 = vrot.slane %v3171_v51, 1  ;;  %v3206_v15 = vrot.slane %v3205_v7, 2  ;;  %v3214_v23 = vadd.f32 %v3213_v20, %v3212_v11  ;;  %v3222_v48 = vrot.slane %v3221_v2, 4 }
 0x3fb   :  { %2726 = vbcast.lane.b32.xlu0 %v14290_v42, 272  ;;  %v1252_v34 = vmul.f32 %v10075_v52, %v14308_v54  ;;  %v3190_v54 = vrot.slane %v3189_v63, 1  ;;  %v1380_v0 = vadd.f32 %v1379_v62, %v1378_v46  ;;  %v1593_v4 = vadd.f32 %v1592_v43, %v1591_v40  ;;  %v10146_v40 = vld [vmem:[#allocation2 + $0x58] sm:$0xff] }
 0x3fc   :  { %v10079_v58 = vpop.permute.xlu1 %3602  ;;  %v3173_v5 = vadd.f32 %v3172_v61, %v3171_v51  ;;  %v1396_v51 = vsel %vm1377_vm2, %v1253_v31, 0.0  ;;  %v1405_v11 = vsel %vm1377_vm2, %v1255_v60, 0.0  ;;  %v10138_v61 = vld [vmem:[#allocation2 + $0x48] sm:$0xff] }
 0x3fd   :  { %v10081_v8 = vpop.permute.xlu0 %1049  ;;  %v1388_v3 = vsel %vm1377_vm2, %v1252_v34, 0.0  ;;  %v3198_v34 = vadd.f32 %v3197_v22, %v3196_v33  ;;  %v10140_v22 = vld [vmem:[#allocation2 + $0x40] sm:$0xff]  ;;  %v1381_v62 = vrot.slane %v1380_v0, 4 }
 0x3fe   :  { %14305 = vst [vmem:[#allocation226_spill] sm:$0xff] %v10081_v8  ;;  %2722 = vbcast.lane.b32.xlu1 %v14287_v28, 280  ;;  %v1583_v28 = vrot.slane %v10069_v41, 1  ;;  %v1389_v59 = vadd.f32 %v1388_v3, %v1387_v56 }
 0x3ff   :  { %2782 = vbcast.lane.b32.xlu0 %v8977_v17, 272 }
 0x400   :  { %v10097_v37 = vpop.permute.xlu1 %3594  ;;  %v1584_v39 = vadd.f32 %v1583_v28, %v10069_v41  ;;  %v3207_v41 = vadd.f32 %v3206_v15, %v3205_v7  ;;  %v10148_v28 = vld [vmem:[#allocation2 + $0x50] sm:$0xff]  ;;  %v1390_v46 = vrot.slane %v1389_v59, 4  ;;  %v14320_v7 = vld [vmem:[#allocation114_spill] sm:$0xff] }
 0x401   :  { %v10099_v26 = vpop.permute.xlu0 %1060  ;;  %v1257_v31 = vmul.f32 %v10140_v22, %v14320_v7 }
 0x402   :  { %14310 = vst [vmem:[#allocation105_spill] sm:$0xff] %v10099_v26  ;;  %2730 = vbcast.lane.b32.xlu1 %v14290_v42, 280  ;;  %v1256_v42 = vmul.f32 %v10107_v1, %v14314_v30  ;;  %v3164_v30 = vadd.f32 %v3163_v6, %v10071_v21  ;;  %v3182_v26 = vadd.f32 %v3181_v18, %v3180_v9  ;;  %v3199_v9 = vrot.slane %v3198_v34, 1 }
 0x403   :  { %2846 = vbcast.lane.b32.xlu0 %v14311_v29, 272  ;;  %v3191_v21 = vadd.f32 %v3190_v54, %v3189_v63  ;;  %v3215_v6 = vrot.slane %v3214_v23, 2  ;;  %v3223_v18 = vadd.f32 %v3222_v48, %v3221_v2 }
 0x404   :  { %v10126_v50 = vpop.permute.xlu1 %1042  ;;  %v1406_v33 = vsel %vm1377_vm2, %v1256_v42, 0.0  ;;  %v3682_v43 = vsel %vm2030_vm3, %v3173_v5, %v3164_v30  ;;  %v14321_v42 = vld [vmem:[#allocation115_spill] sm:$0xff]  ;;  %v14322_v5 = vld [vmem:[#allocation116_spill] sm:$0xff]  ;;  %v3200_v15 = vadd.f32 %v3199_v9, %v3198_v34  ;;  %v3208_v30 = vrot.slane %v3207_v41, 1 }
 0x405   :  { %v10128_v14 = vpop.permute.xlu0 %1071  ;;  %v1407_v56 = vadd.f32 %v1406_v33, %v1405_v11  ;;  %v1260_v60 = vmul.f32 %v10146_v40, %v14321_v42  ;;  %v1259_v48 = vmul.f32 %v10148_v28, %v14322_v5  ;;  %v10170_v33 = vld [vmem:[#allocation2 + $0x60] sm:$0xff]  ;;  %v10176_v7 = vadd.f32 %v3215_v6, %v3214_v23 }
 0x406   :  { %14316 = vst [vmem:[#allocation106_spill] sm:$0xff] %v10128_v14  ;;  %2786 = vbcast.lane.b32.xlu1 %v8977_v17, 280  ;;  %v1397_v14 = vsel %vm1377_vm2, %v1254_v25, 0.0  ;;  %v14319_v25 = vld [vmem:[#allocation113_spill] sm:$0xff]  ;;  %v3224_v42 = vrot.slane %v3223_v18, 2  ;;  %v1382_v5 = vadd.f32 %v1381_v62, %v1380_v0  ;;  %v1414_v9 = vsel %vm1377_vm2, %v1257_v31, 0.0 }
 0x407   :  { %2670 = vbcast.lane.b32.xlu0 %v14317_v13, 272  ;;  %v1398_v3 = vadd.f32 %v1397_v14, %v1396_v51  ;;  %v1258_v63 = vmul.f32 %v10138_v61, %v14319_v25  ;;  %v3683_v14 = vsel %vm2032_vm4, %v3182_v26, %v3682_v43  ;;  %v10168_v51 = vld [vmem:[#allocation2 + $0x68] sm:$0xff]  ;;  %v14326_v26 = vld [vmem:[#allocation7_spill] sm:$0xff]  ;;  %v1424_v23 = vsel %vm1377_vm2, %v1260_v60, 0.0  ;;  %v14327_v0 = vld [vmem:[#allocation117_spill] sm:$0xff] }
 0x408   :  { %v10142_v17 = vpop.permute.xlu1 %1053  ;;  %v3684_v25 = vsel %vm2034_vm5, %v3191_v21, %v3683_v14  ;;  %v1423_v21 = vsel %vm1377_vm2, %v1259_v48, 0.0  ;;  %v14328_v43 = vld [vmem:[#allocation118_spill] sm:$0xff]  ;;  %v3209_v14 = vadd.f32 %v3208_v30, %v3207_v41  ;;  %v1383_v48 = vrot.slane %v1382_v5, 2  ;;  %v14334_v41 = vld [vmem:[#allocation121_spill] sm:$0xff] }
 0x409   :  { %v10144_v20 = vpop.permute.xlu0 %1082  ;;  %v1399_v34 = vrot.slane %v1398_v3, 4  ;;  %v1261_v6 = vmul.f32 %v10170_v33, %v14328_v43  ;;  %v3685_v60 = vsel %vm2036_vm6, %v3200_v15, %v3684_v25  ;;  %v3217_v43 = vrot.slane %v10176_v7, 1  ;;  %v14335_v30 = vld [vmem:[#allocation122_spill] sm:$0xff] }
 0x40a   :  { %14318 = vst [vmem:[#allocation107_spill] sm:$0xff] %v10144_v20  ;;  %2850 = vbcast.lane.b32.xlu1 %v14311_v29, 280  ;;  %v2056_v29 = vsel %vm2040_vm8, %v1584_v39, %v10103_v45  ;;  %v10178_v20 = vld [vmem:[#allocation2 + $0x78] sm:$0xff]  ;;  %v10180_v45 = vld [vmem:[#allocation2 + $0x70] sm:$0xff]  ;;  %v1408_v39 = vrot.slane %v1407_v56, 4  ;;  %v1425_v35 = vadd.f32 %v1424_v23, %v1423_v21  ;;  %v2885_v15 = vmul.f32 %v14334_v41, %v10066_v16  ;;  %v14339_v16 = vld [vmem:[#allocation17_spill] sm:$0xff] }
 0x40b   :  { %2734 = vbcast.lane.b32.xlu0 %v14293_v55, 272  ;;  %v10173_v11 = vsel %vm2042_vm9, %v1593_v4, %v2056_v29  ;;  %v1415_v4 = vsel %vm1377_vm2, %v1258_v63, 0.0  ;;  %v14332_v63 = vld [vmem:[#allocation120_spill] sm:$0xff]  ;;  %v2884_v25 = vmul.f32 %v14335_v30, %v10073_v12  ;;  %v10223_v23 = vsel %vm2038_vm7, %v3209_v14, %v3685_v60  ;;  %v14340_v14 = vld [vmem:[#allocation125_spill] sm:$0xff] }
 0x40c   :  { %v10161_v2 = vpop.permute.xlu1 %1064  ;;  %14325 = vst [vmem:[#allocation109_spill] sm:$0xff] %v10173_v11  ;;  %v1263_v31 = vmul.f32 %v10180_v45, %v14332_v63  ;;  %v1416_v8 = vadd.f32 %v1415_v4, %v1414_v9  ;;  %v1432_v63 = vsel %vm1377_vm2, %v1261_v6, 0.0  ;;  %v1384_v4 = vadd.f32 %v1383_v48, %v1382_v5  ;;  %v14341_v48 = vld [vmem:[#allocation126_spill] sm:$0xff] }
 0x40d   :  { %14323 = vst [vmem:[#allocation108_spill] sm:$0xff] %v10161_v2  ;;  %v10163_v54 = vpop.permute.xlu0 %1093  ;;  %v1400_v2 = vadd.f32 %v1399_v34, %v1398_v3  ;;  %v14338_v34 = vld [vmem:[#allocation124_spill] sm:$0xff]  ;;  %v2889_v60 = vmul.f32 %v14340_v14, %v10095_v36  ;;  %v2888_v30 = vmul.f32 %v14341_v48, %v10105_v47 }
 0x40e   :  { %14324 = vst [vmem:[#allocation23_spill] sm:$0xff] %v10163_v54  ;;  %v1391_v54 = vadd.f32 %v1390_v46, %v1389_v59  ;;  %2674 = vbcast.lane.b32.xlu1 %v14317_v13, 280  ;;  %v1262_v59 = vmul.f32 %v10168_v51, %v14327_v0  ;;  %v14331_v46 = vld [vmem:[#allocation119_spill] sm:$0xff]  ;;  %v14333_v0 = vld [vmem:[#allocation24_spill] sm:$0xff]  ;;  %v1441_v3 = vsel %vm1377_vm2, %v1263_v31, 0.0  ;;  %v1417_v6 = vrot.slane %v1416_v8, 4 }
 0x40f   :  { %2790 = vbcast.lane.b32.xlu0 %v14326_v26, 272  ;;  %v1264_v29 = vmul.f32 %v10178_v20, %v14331_v46  ;;  %v1401_v21 = vrot.slane %v1400_v2, 2 }
 0x410   :  { %v10192_v62 = vpop.permute.xlu1 %1075  ;;  %v1392_v11 = vrot.slane %v1391_v54, 2  ;;  %v1433_v46 = vsel %vm1377_vm2, %v1262_v59, 0.0 }
 0x411   :  { %14329 = vst [vmem:[#allocation110_spill] sm:$0xff] %v10192_v62  ;;  %v10194_v13 = vpop.permute.xlu0 %1104  ;;  %v3225_v62 = vadd.f32 %v3224_v42, %v3223_v18  ;;  %v1442_v18 = vsel %vm1377_vm2, %v1264_v29, 0.0  ;;  %v1426_v29 = vrot.slane %v1425_v35, 4  ;;  %v1434_v31 = vadd.f32 %v1433_v46, %v1432_v63 }
 0x412   :  { %14330 = vst [vmem:[#allocation111_spill] sm:$0xff] %v10194_v13  ;;  %2738 = vbcast.lane.b32.xlu1 %v14293_v55, 280  ;;  %v1409_v13 = vadd.f32 %v1408_v39, %v1407_v56  ;;  %v14337_v56 = vld [vmem:[#allocation123_spill] sm:$0xff]  ;;  %v2886_v39 = vmul.f32 %v14338_v34, %v10077_v27  ;;  %v1393_v9 = vadd.f32 %v1392_v11, %v1391_v54  ;;  %v3012_v27 = vsel %vm1377_vm2, %v2884_v25, 0.0 }
 0x413   :  { %2854 = vbcast.lane.b32.xlu0 %v14333_v0, 272  ;;  %v2887_v42 = vmul.f32 %v14337_v56, %v10075_v52  ;;  %v3226_v12 = vrot.slane %v3225_v62, 1  ;;  %v1443_v41 = vadd.f32 %v1442_v18, %v1441_v3  ;;  %v3013_v52 = vsel %vm1377_vm2, %v2885_v15, 0.0 }
 0x414   :  { %v10210_v55 = vpop.permute.xlu1 %1086  ;;  %v1410_v59 = vrot.slane %v1409_v13, 2  ;;  %v1385_v46 = vrot.slane %v1384_v4, 1  ;;  %v1394_v63 = vrot.slane %v1393_v9, 1  ;;  %v10240_v15 = vadd.f32 %v3217_v43, %v10176_v7  ;;  %v14344_v7 = vld [vmem:[#allocation127_spill] sm:$0xff] }
 0x415   :  { %v10212_v38 = vpop.permute.xlu0 %1115  ;;  %v3022_v11 = vsel %vm1377_vm2, %v2887_v42, 0.0  ;;  %v10242_v25 = vadd.f32 %v3226_v12, %v3225_v62  ;;  %v1402_v18 = vadd.f32 %v1401_v21, %v1400_v2  ;;  %v1418_v56 = vadd.f32 %v1417_v6, %v1416_v8  ;;  %v14345_v2 = vld [vmem:[#allocation128_spill] sm:$0xff]  ;;  %v14347_v12 = vld [vmem:[#allocation130_spill] sm:$0xff] }
 0x416   :  { %14336 = vst [vmem:[#allocation112_spill] sm:$0xff] %v10212_v38  ;;  %2794 = vbcast.lane.b32.xlu1 %v14326_v26, 280  ;;  %v3021_v26 = vsel %vm1377_vm2, %v2886_v39, 0.0  ;;  %v1411_v3 = vadd.f32 %v1410_v59, %v1409_v13  ;;  %v3014_v42 = vadd.f32 %v3013_v52, %v3012_v27  ;;  %v1427_v34 = vadd.f32 %v1426_v29, %v1425_v35  ;;  %v14346_v35 = vld [vmem:[#allocation129_spill] sm:$0xff]  ;;  %v14348_v59 = vld [vmem:[#allocation8_spill] sm:$0xff] }
 0x417   :  { %2678 = vbcast.lane.b32.xlu0 %v14339_v16, 272  ;;  %v1435_v36 = vrot.slane %v1434_v31, 4  ;;  %v1444_v39 = vrot.slane %v1443_v41, 4  ;;  %v3023_v14 = vadd.f32 %v3022_v11, %v3021_v26  ;;  %v3030_v38 = vsel %vm1377_vm2, %v2888_v30, 0.0 }
 0x418   :  { %v10227_v5 = vpop.permute.xlu1 %1097  ;;  %v2891_v62 = vmul.f32 %v14344_v7, %v10107_v1  ;;  %v2890_v13 = vmul.f32 %v14345_v2, %v10109_v32  ;;  %v10254_v8 = vadd.f32 %v1385_v46, %v1384_v4  ;;  %v2893_v43 = vmul.f32 %v14346_v35, %v10138_v61  ;;  %v14352_v2 = vld [vmem:[#allocation132_spill] sm:$0xff] }
 0x419   :  { %v10229_v54 = vpop.permute.xlu0 %3600  ;;  %v2892_v21 = vmul.f32 %v14347_v12, %v10140_v22  ;;  %v1395_v6 = vadd.f32 %v1394_v63, %v1393_v9  ;;  %v1403_v29 = vrot.slane %v1402_v18, 1  ;;  %v1419_v52 = vrot.slane %v1418_v56, 2  ;;  %v14351_v63 = vld [vmem:[#allocation131_spill] sm:$0xff] }
 0x41a   :  { %2858 = vbcast.lane.b32.xlu1 %v14333_v0, 280  ;;  %v3031_v0 = vsel %vm1377_vm2, %v2889_v60, 0.0  ;;  %v3015_v27 = vrot.slane %v3014_v42, 4  ;;  %v1412_v1 = vrot.slane %v1411_v3, 1  ;;  %v1428_v11 = vrot.slane %v1427_v34, 2 }
 0x41b   :  { %2742 = vbcast.lane.b32.xlu0 %v14296_v57, 272  ;;  %v3024_v26 = vrot.slane %v3023_v14, 4  ;;  %v3032_v32 = vadd.f32 %v3031_v0, %v3030_v38  ;;  %v1436_v61 = vadd.f32 %v1435_v36, %v1434_v31  ;;  %v1445_v30 = vadd.f32 %v1444_v39, %v1443_v41  ;;  %v14353_v0 = vld [vmem:[#allocation25_spill] sm:$0xff] }
 0x41c   :  { %v10244_v47 = vpop.permute.xlu1 %1108  ;;  %v3040_v22 = vsel %vm1377_vm2, %v2891_v62, 0.0  ;;  %v3049_v46 = vsel %vm1377_vm2, %v2893_v43, 0.0  ;;  %v3048_v9 = vsel %vm1377_vm2, %v2892_v21, 0.0  ;;  %v2895_v7 = vmul.f32 %v14351_v63, %v10146_v40  ;;  %v14354_v36 = vld [vmem:[#allocation133_spill] sm:$0xff]  ;;  %v14355_v62 = vld [vmem:[#allocation134_spill] sm:$0xff] }
 0x41d   :  { %14342 = vst [vmem:[#allocation16_spill] sm:$0xff] %v10244_v47  ;;  %v10246_v48 = vpop.permute.xlu0 %2766  ;;  %v2894_v38 = vmul.f32 %v14352_v2, %v10148_v28  ;;  %v1420_v31 = vadd.f32 %v1419_v52, %v1418_v56  ;;  %v3016_v41 = vadd.f32 %v3015_v27, %v3014_v42  ;;  %v2897_v39 = vmul.f32 %v14354_v36, %v10168_v51  ;;  %v10425_v47 = vld [vmem:[#allocation2 + $0x1e8] sm:$0xff] }
 0x41e   :  { %14343 = vst [vmem:[#allocation113_spill] sm:$0xff] %v10246_v48  ;;  %2682 = vbcast.lane.b32.xlu1 %v14339_v16, 280  ;;  %v3039_v16 = vsel %vm1377_vm2, %v2890_v13, 0.0  ;;  %v2896_v13 = vmul.f32 %v14355_v62, %v10170_v33  ;;  %v1404_v35 = vadd.f32 %v1403_v29, %v1402_v18  ;;  %v3025_v43 = vadd.f32 %v3024_v26, %v3023_v14 }
 0x41f   :  { %2798 = vbcast.lane.b32.xlu0 %v14348_v59, 272  ;;  %v3033_v12 = vrot.slane %v3032_v32, 4  ;;  %v3041_v21 = vadd.f32 %v3040_v22, %v3039_v16  ;;  %v1413_v28 = vadd.f32 %v1412_v1, %v1411_v3  ;;  %v1429_v2 = vadd.f32 %v1428_v11, %v1427_v34  ;;  %v14357_v34 = vld [vmem:[#allocation18_spill] sm:$0xff] }
 0x420   :  { %v10262_v4 = vpop.permute.xlu1 %1119  ;;  %v1437_v42 = vrot.slane %v1436_v61, 2  ;;  %v1446_v52 = vrot.slane %v1445_v30, 2  ;;  %v3058_v51 = vsel %vm1377_vm2, %v2895_v7, 0.0  ;;  %v3057_v33 = vsel %vm1377_vm2, %v2894_v38, 0.0  ;;  %v10299_v7 = vld [vmem:[#allocation2 + $0x188] sm:$0xff] }
 0x421   :  { %14349 = vst [vmem:[#allocation114_spill] sm:$0xff] %v10262_v4  ;;  %v10264_v60 = vpop.permute.xlu0 %2822  ;;  %v1421_v18 = vrot.slane %v1420_v31, 1  ;;  %v3017_v14 = vrot.slane %v3016_v41, 2  ;;  %v3067_v29 = vsel %vm1377_vm2, %v2897_v39, 0.0  ;;  %v3066_v3 = vsel %vm1377_vm2, %v2896_v13, 0.0 }
 0x422   :  { %14350 = vst [vmem:[#allocation115_spill] sm:$0xff] %v10264_v60  ;;  %2746 = vbcast.lane.b32.xlu1 %v14296_v57, 280  ;;  %v3050_v57 = vadd.f32 %v3049_v46, %v3048_v9  ;;  %v3026_v27 = vrot.slane %v3025_v43, 2  ;;  %v3034_v1 = vadd.f32 %v3033_v12, %v3032_v32  ;;  %v3042_v11 = vrot.slane %v3041_v21, 4 }
 0x423   :  { %2862 = vbcast.lane.b32.xlu0 %v14353_v0, 272  ;;  %v1430_v16 = vrot.slane %v1429_v2, 1  ;;  %v3059_v9 = vadd.f32 %v3058_v51, %v3057_v33  ;;  %v2031_v38 = vsel %vm2030_vm3, %v1395_v6, %v10254_v8  ;;  %v1438_v36 = vadd.f32 %v1437_v42, %v1436_v61  ;;  %v14364_v51 = vld [vmem:[#allocation137_spill] sm:$0xff] }
 0x424   :  { %v1963_v40 = vpop.permute.xlu1 %1962  ;;  %v3051_v46 = vrot.slane %v3050_v57, 4  ;;  %v3068_v39 = vadd.f32 %v3067_v29, %v3066_v3  ;;  %v1447_v32 = vadd.f32 %v1446_v52, %v1445_v30  ;;  %v2033_v62 = vsel %vm2032_vm4, %v1404_v35, %v2031_v38  ;;  %v14366_v29 = vld [vmem:[#allocation136_spill] sm:$0xff] }
 0x425   :  { %v10280_v63 = vpop.permute.xlu0 %2830  ;;  %8023 = vmatprep.subr.msk.bf16.mxu1 %vm2101_vm1, %v1963_v40  ;;  %v2121_v56 = vsel %vm2101_vm1, %v1963_v40, 0  ;;  %v1422_v13 = vadd.f32 %v1421_v18, %v1420_v31  ;;  %v3018_v12 = vadd.f32 %v3017_v14, %v3016_v41  ;;  %v10305_v40 = vld [vmem:[#allocation2 + $0x180] sm:$0xff]  ;;  %v3027_v8 = vadd.f32 %v3026_v27, %v3025_v43  ;;  %v10323_v43 = vld [vmem:[#allocation2 + $0x198] sm:$0xff]  ;;  %v14365_v14 = vld [vmem:[#allocation135_spill] sm:$0xff] }
 0x426   :  { %14356 = vst [vmem:[#allocation116_spill] sm:$0xff] %v10280_v63  ;;  %2802 = vbcast.lane.b32.xlu1 %v14348_v59, 280  ;;  %7878 = vmatpush3.bf16.xpose.msra.mxu1 %v2121_v56  ;;  %v3687_v59 = vsel %vm2040_vm8, %v10240_v15, %v10223_v23  ;;  %v2035_v23 = vsel %vm2034_vm5, %v1413_v28, %v2033_v62  ;;  %v3035_v6 = vrot.slane %v3034_v1, 2  ;;  %v14361_v56 = vld [vmem:[#allocation142_spill] sm:$0xff]  ;;  %v3060_v35 = vrot.slane %v3059_v9, 4 }
 0x427   :  { %2686 = vbcast.lane.b32.xlu0 %v14357_v34, 272  ;;  %8024 = vmatprep.subr.msk.bf16.mxu1 %vm2101_vm1, %v10053_v49  ;;  %v10311_v15 = vsel %vm2042_vm9, %v10242_v25, %v3687_v59  ;;  %v3043_v61 = vadd.f32 %v3042_v11, %v3041_v21  ;;  %v1298_v30 = vmul.f32 %v10299_v7, %v14361_v56  ;;  %v2124_v42 = vsel %vm2101_vm1, %v10053_v49, 0  ;;  %v14367_v49 = vld [vmem:[#allocation9_spill] sm:$0xff]  ;;  %v14371_v56 = vld [vmem:[#allocation144_spill] sm:$0xff] }
 0x428   :  { %v10292_v26 = vpop.permute.xlu1 %2770  ;;  %14360 = vst [vmem:[#allocation118_spill] sm:$0xff] %v10311_v15  ;;  %v3052_v41 = vadd.f32 %v3051_v46, %v3050_v57  ;;  %v1431_v28 = vadd.f32 %v1430_v16, %v1429_v2  ;;  %v3069_v52 = vrot.slane %v3068_v39, 4  ;;  %v1297_v25 = vmul.f32 %v10305_v40, %v14364_v51  ;;  %v14368_v2 = vld [vmem:[#allocation168_spill] sm:$0xff]  ;;  %v10334_v16 = vld [vmem:[#allocation2 + $0x190] sm:$0xff] }
 0x429   :  { %14358 = vst [vmem:[#allocation7_spill] sm:$0xff] %v10292_v26  ;;  %v10294_v22 = vpop.permute.xlu0 %2654  ;;  %v1439_v21 = vrot.slane %v1438_v36, 1  ;;  %v1448_v33 = vrot.slane %v1447_v32, 1  ;;  %v3019_v18 = vrot.slane %v3018_v12, 1  ;;  %v2899_v57 = vmul.f32 %v14365_v14, %v10178_v20 }
 0x42a   :  { %14359 = vst [vmem:[#allocation117_spill] sm:$0xff] %v10294_v22  ;;  %2866 = vbcast.lane.b32.xlu1 %v14353_v0, 280  ;;  %v2898_v3 = vmul.f32 %v14366_v29, %v10180_v45  ;;  %v2037_v27 = vsel %vm2036_vm6, %v1422_v13, %v2035_v23  ;;  %v3028_v11 = vrot.slane %v3027_v8, 1  ;;  %v3036_v59 = vadd.f32 %v3035_v6, %v3034_v1  ;;  %v10347_v23 = vld [vmem:[#allocation2 + $0x1a8] sm:$0xff]  ;;  %v10405_v22 = vld [vmem:[#allocation2 + $0x1d0] sm:$0xff] }
 0x42b   :  { %2750 = vbcast.lane.b32.xlu0 %v14297_v24, 272  ;;  %v1595_v46 = vsel %vm1377_vm2, %v1298_v30, 0.0  ;;  %v3053_v62 = vrot.slane %v3052_v41, 2  ;;  %v3061_v45 = vadd.f32 %v3060_v35, %v3059_v9  ;;  %v10344_v51 = vsel %vm2038_vm7, %v1431_v28, %v2037_v27  ;;  %v14372_v35 = vld [vmem:[#allocation139_spill] sm:$0xff]  ;;  %v10358_v27 = vld [vmem:[#allocation2 + $0x1b8] sm:$0xff] }
 0x42c   :  { %v10315_v0 = vpop.permute.xlu1 %2826  ;;  %v3070_v13 = vadd.f32 %v3069_v52, %v3068_v39  ;;  %v1594_v1 = vsel %vm1377_vm2, %v1297_v25, 0.0  ;;  %v10350_v6 = vadd.f32 %v1439_v21, %v1438_v36  ;;  %v10352_v30 = vadd.f32 %v1448_v33, %v1447_v32  ;;  %v14373_v39 = vld [vmem:[#allocation26_spill] sm:$0xff]  ;;  %v10361_v36 = vld [vmem:[#allocation2 + $0x1a0] sm:$0xff] }
 0x42d   :  { %14362 = vst [vmem:[#allocation119_spill] sm:$0xff] %v10315_v0  ;;  %v10317_v31 = vpop.permute.xlu0 %2774  ;;  %v3076_v14 = vsel %vm1377_vm2, %v2899_v57, 0.0  ;;  %v3075_v9 = vsel %vm1377_vm2, %v2898_v3, 0.0  ;;  %v1299_v29 = vmul.f32 %v10334_v16, %v14372_v35  ;;  %v1596_v28 = vadd.f32 %v1595_v46, %v1594_v1  ;;  %v10363_v32 = vld [vmem:[#allocation2 + $0x1c8] sm:$0xff]  ;;  %v10369_v35 = vld [vmem:[#allocation2 + $0x1b0] sm:$0xff] }
 0x42e   :  { %14363 = vst [vmem:[#allocation120_spill] sm:$0xff] %v10317_v31  ;;  %2690 = vbcast.lane.b32.xlu1 %v14357_v34, 280  ;;  %7880 = vmatpush3.bf16.xpose.msra.mxu1 %v2124_v42  ;;  %v3044_v34 = vrot.slane %v3043_v61, 2  ;;  %v1300_v42 = vmul.f32 %v10323_v43, %v14371_v56  ;;  %v3020_v52 = vadd.f32 %v3019_v18, %v3018_v12  ;;  %v3037_v56 = vrot.slane %v3036_v59, 1  ;;  %v14376_v1 = vld [vmem:[#allocation146_spill] sm:$0xff]  ;;  %v14386_v31 = vld [vmem:[#allocation145_spill] sm:$0xff] }
 0x42f   :  { %2806 = vbcast.lane.b32.xlu0 %v14367_v49, 272  ;;  %8025 = vmatprep.subr.msk.bf16.mxu1 %vm2101_vm1, %v14368_v2  ;;  %v3029_v25 = vadd.f32 %v3028_v11, %v3027_v8  ;;  %v3054_v57 = vadd.f32 %v3053_v62, %v3052_v41  ;;  %v3062_v3 = vrot.slane %v3061_v45, 2  ;;  %v1302_v12 = vmul.f32 %v10347_v23, %v14376_v1  ;;  %v14377_v8 = vld [vmem:[#allocation6_spill] sm:$0xff]  ;;  %v10376_v11 = vld [vmem:[#allocation2 + $0x1c0] sm:$0xff]  ;;  %v14379_v41 = vld [vmem:[#allocation28_spill] sm:$0xff] }
 0x430   :  { %v10337_v38 = vpop.permute.xlu1 %2834  ;;  %v1604_v46 = vsel %vm1377_vm2, %v1300_v42, 0.0  ;;  %v3077_v18 = vadd.f32 %v3076_v14, %v3075_v9  ;;  %v3745_v62 = vsel %vm2101_vm1, %v14368_v2, 0  ;;  %v1603_v42 = vsel %vm1377_vm2, %v1299_v29, 0.0  ;;  %v14380_v1 = vld [vmem:[#allocation141_spill] sm:$0xff]  ;;  %v14381_v14 = vld [vmem:[#allocation150_spill] sm:$0xff] }
 0x431   :  { %14369 = vst [vmem:[#allocation24_spill] sm:$0xff] %v10337_v38  ;;  %v10339_v20 = vpop.permute.xlu0 %2838  ;;  %v1597_v38 = vrot.slane %v1596_v28, 4  ;;  %v1306_v9 = vmul.f32 %v10363_v32, %v14381_v14  ;;  %v14382_v0 = vld [vmem:[#allocation10_spill] sm:$0xff]  ;;  %v1605_v60 = vadd.f32 %v1604_v46, %v1603_v42 }
 0x432   :  { %14370 = vst [vmem:[#allocation121_spill] sm:$0xff] %v10339_v20  ;;  %2754 = vbcast.lane.b32.xlu1 %v14297_v24, 280  ;;  %v3045_v24 = vadd.f32 %v3044_v34, %v3043_v61  ;;  %v3071_v61 = vrot.slane %v3070_v13, 2  ;;  %v14378_v34 = vld [vmem:[#allocation148_spill] sm:$0xff]  ;;  %v1301_v20 = vmul.f32 %v10361_v36, %v14380_v1  ;;  %v14384_v2 = vld [vmem:[#allocation138_spill] sm:$0xff]  ;;  %v3078_v42 = vrot.slane %v3077_v18, 4 }
 0x433   :  { %2870 = vbcast.lane.b32.xlu0 %v14373_v39, 272  ;;  %v1304_v15 = vmul.f32 %v10358_v27, %v14378_v34  ;;  %v3038_v34 = vadd.f32 %v3037_v56, %v3036_v59  ;;  %v1305_v59 = vmul.f32 %v10376_v11, %v14386_v31  ;;  %v1613_v56 = vsel %vm1377_vm2, %v1302_v12, 0.0  ;;  %v14388_v31 = vld [vmem:[#allocation27_spill] sm:$0xff] }
 0x434   :  { %v10365_v21 = vpop.permute.xlu1 %2658  ;;  %v3046_v14 = vrot.slane %v3045_v24, 1  ;;  %v3072_v46 = vadd.f32 %v3071_v61, %v3070_v13  ;;  %v1598_v26 = vadd.f32 %v1597_v38, %v1596_v28  ;;  %v1606_v13 = vrot.slane %v1605_v60, 4 }
 0x435   :  { %14374 = vst [vmem:[#allocation122_spill] sm:$0xff] %v10365_v21  ;;  %v10367_v33 = vpop.permute.xlu0 %2662  ;;  %7882 = vmatmul.mubr.msk.bf16.vlgmr.msra.gmra.mrb[16].mxu1 %vm2101_vm1, %v14377_v8  ;;  %v3668_v21 = vsel %vm2030_vm3, %v3029_v25, %v3020_v52  ;;  %v1622_v48 = vsel %vm1377_vm2, %v1304_v15, 0.0  ;;  %v1631_v52 = vsel %vm1377_vm2, %v1306_v9, 0.0  ;;  %v14387_v25 = vld [vmem:[#allocation152_spill] sm:$0xff]  ;;  %v1630_v38 = vsel %vm1377_vm2, %v1305_v59, 0.0  ;;  %v14394_v59 = vld [vmem:[#allocation5_spill] sm:$0xff] }
 0x436   :  { %14375 = vst [vmem:[#allocation123_spill] sm:$0xff] %v10367_v33  ;;  %2810 = vbcast.lane.b32.xlu1 %v14367_v49, 280  ;;  %7885 = vmatprep.mubr.msk.bf16.mxu1 %vm2101_vm1, %v14379_v41  ;;  %v14383_v49 = vld [vmem:[#allocation143_spill] sm:$0xff]  ;;  %v10393_v33 = vld [vmem:[#allocation2 + $0x1d8] sm:$0xff]  ;;  %v3669_v15 = vsel %vm2032_vm4, %v3038_v34, %v3668_v21  ;;  %v14393_v21 = vld [vmem:[#allocation169_spill] sm:$0xff]  ;;  %v10434_v34 = vadd.f32 %v3078_v42, %v3077_v18 }
 0x437   :  { %7906 = vmatpush3.bf16.xpose.msra.mxu1 %v3745_v62  ;;  %2814 = vbcast.lane.b32.xlu0 %v14382_v0, 272  ;;  %v1303_v63 = vmul.f32 %v10369_v35, %v14383_v49  ;;  %v3055_v62 = vrot.slane %v3054_v57, 1  ;;  %v3063_v49 = vadd.f32 %v3062_v3, %v3061_v45  ;;  %v1308_v4 = vmul.f32 %v10393_v33, %v14387_v25  ;;  %v10423_v25 = vld [vmem:[#allocation2 + $0x1e0] sm:$0xff] }
 0x438   :  { %8026 = vmatprep.subr.msk.bf16.mxu1 %vm2101_vm1, %v14384_v2  ;;  %v10397_v29 = vpop.permute.xlu1 %2778 }
 0x439   :  { %14385 = vst [vmem:[#allocation124_spill] sm:$0xff] %v10397_v29  ;;  %v10399_v1 = vpop.permute.xlu0 %3592  ;;  %v1612_v29 = vsel %vm1377_vm2, %v1301_v20, 0.0  ;;  %v1621_v45 = vsel %vm1377_vm2, %v1303_v63, 0.0  ;;  %v14391_v20 = vld [vmem:[#allocation147_spill] sm:$0xff] }
 0x43a   :  { %2874 = vbcast.lane.b32.xlu1 %v14373_v39, 280  ;;  %v1614_v3 = vadd.f32 %v1613_v56, %v1612_v29  ;;  %v3047_v39 = vadd.f32 %v3046_v14, %v3045_v24  ;;  %v1307_v28 = vmul.f32 %v10405_v22, %v14391_v20  ;;  %v1623_v9 = vadd.f32 %v1622_v48, %v1621_v45  ;;  %v14392_v63 = vld [vmem:[#allocation19_spill] sm:$0xff] }
 0x43b   :  { %2878 = vbcast.lane.b32.xlu0 %v14388_v31, 272  ;;  %v3056_v29 = vadd.f32 %v3055_v62, %v3054_v57  ;;  %v3064_v56 = vrot.slane %v3063_v49, 1  ;;  %v3748_v24 = vsel %vm2101_vm1, %v14384_v2, 0  ;;  %v1599_v48 = vrot.slane %v1598_v26, 2  ;;  %v14396_v2 = vld [vmem:[#allocation154_spill] sm:$0xff] }
 0x43c   :  { %v10415_v12 = vpop.permute.xlu1 %2842  ;;  %v1640_v14 = vsel %vm1377_vm2, %v1308_v4, 0.0  ;;  %v3073_v57 = vrot.slane %v3072_v46, 1  ;;  %v1607_v62 = vadd.f32 %v1606_v13, %v1605_v60  ;;  %v1639_v42 = vsel %vm1377_vm2, %v1307_v28, 0.0 }
 0x43d   :  { %14389 = vst [vmem:[#allocation17_spill] sm:$0xff] %v10415_v12  ;;  %v10417_v61 = vpop.permute.xlu0 %862  ;;  %7886 = vmatmul.mubr.msk.bf16.gmra.mrb[20].mxu1 %vm2101_vm1, %v14392_v63  ;;  %v1632_v12 = vadd.f32 %v1631_v52, %v1630_v38  ;;  %v1615_v52 = vrot.slane %v1614_v3, 4  ;;  %v1310_v38 = vmul.f32 %v10425_v47, %v14396_v2  ;;  %v1624_v20 = vrot.slane %v1623_v9, 4 }
 0x43e   :  { %14390 = vst [vmem:[#allocation125_spill] sm:$0xff] %v10417_v61  ;;  %2818 = vbcast.lane.b32.xlu1 %v14382_v0, 280  ;;  %7913 = vmatprep.mubr.msk.bf16.mxu1 %vm2101_vm1, %v14393_v21  ;;  %v14395_v0 = vld [vmem:[#allocation149_spill] sm:$0xff]  ;;  %v2041_v60 = vsel %vm2040_vm8, %v10350_v6, %v10344_v51  ;;  %v3670_v13 = vsel %vm2034_vm5, %v3047_v39, %v3669_v15  ;;  %v1608_v15 = vrot.slane %v1607_v62, 2 }
 0x43f   :  { %7908 = vmatpush3.bf16.xpose.msra.mxu1 %v3748_v24  ;;  %2283 = vrot.lane.b32.xlu0 %v14394_v59, %s8567_s19  ;;  %v1309_v45 = vmul.f32 %v10423_v25, %v14395_v0  ;;  %v1633_v24 = vrot.slane %v1632_v12, 4  ;;  %v1641_v21 = vadd.f32 %v1640_v14, %v1639_v42  ;;  %v10457_v0 = vsel %vm2042_vm9, %v10352_v30, %v2041_v60  ;;  %v10473_v14 = vld [vmem:[#allocation2 + $0x1f8] sm:$0xff]  ;;  %v14405_v60 = vld [vmem:[#allocation162_spill] sm:$0xff] }
 0x440   :  { %8027 = vmatprep.subr.msk.bf16.mxu1 %vm2101_vm1, %v10229_v54  ;;  %v10445_v18 = vpop.permute.xlu1 %2666  ;;  %14399 = vst [vmem:[#allocation128_spill] sm:$0xff] %v10457_v0  ;;  %v10460_v2 = vsel %vm2036_vm6, %v3056_v29, %v3670_v13  ;;  %v10467_v51 = vadd.f32 %v3064_v56, %v3063_v49  ;;  %v10469_v6 = vadd.f32 %v3073_v57, %v3072_v46  ;;  %v1649_v30 = vsel %vm1377_vm2, %v1310_v38, 0.0  ;;  %v14402_v49 = vld [vmem:[#allocation153_spill] sm:$0xff]  ;;  %v14403_v46 = vld [vmem:[#allocation158_spill] sm:$0xff] }
 0x441   :  { %14397 = vst [vmem:[#allocation126_spill] sm:$0xff] %v10445_v18  ;;  %v10447_v4 = vpop.permute.xlu0 %873  ;;  %v10463_v18 = vadd.f32 %v1599_v48, %v1598_v26  ;;  %v1648_v39 = vsel %vm1377_vm2, %v1309_v45, 0.0  ;;  %v1625_v26 = vadd.f32 %v1624_v20, %v1623_v9  ;;  %v10479_v48 = vld [vmem:[#allocation2 + $0x1f0] sm:$0xff]  ;;  %v2932_v56 = vmul.f32 %v14402_v49, %v10305_v40 }
 0x442   :  { %14398 = vst [vmem:[#allocation127_spill] sm:$0xff] %v10447_v4  ;;  %2882 = vbcast.lane.b32.xlu1 %v14388_v31, 280  ;;  %v1616_v31 = vadd.f32 %v1615_v52, %v1614_v3  ;;  %v2933_v57 = vmul.f32 %v14403_v46, %v10299_v7  ;;  %v14404_v3 = vld [vmem:[#allocation160_spill] sm:$0xff]  ;;  %v1634_v45 = vadd.f32 %v1633_v24, %v1632_v12  ;;  %v1642_v38 = vrot.slane %v1641_v21, 4  ;;  %v14406_v49 = vld [vmem:[#allocation155_spill] sm:$0xff] }
 0x443   :  { %2287 = vrot.lane.b32.xlu0 %v14379_v41, %s8567_s19  ;;  %v2935_v52 = vmul.f32 %v14404_v3, %v10323_v43  ;;  %v2937_v13 = vmul.f32 %v14405_v60, %v10347_v23  ;;  %v3751_v9 = vsel %vm2101_vm1, %v10229_v54, 0  ;;  %v1650_v40 = vadd.f32 %v1649_v30, %v1648_v39  ;;  %v14407_v46 = vld [vmem:[#allocation156_spill] sm:$0xff]  ;;  %v14408_v24 = vld [vmem:[#allocation151_spill] sm:$0xff]  ;;  %v14409_v54 = vld [vmem:[#allocation157_spill] sm:$0xff] }
 0x444   :  { %v10475_v29 = vpop.permute.xlu1 %866  ;;  %v2934_v7 = vmul.f32 %v14406_v49, %v10334_v16  ;;  %v1312_v43 = vmul.f32 %v10473_v14, %v14407_v46  ;;  %v1609_v23 = vadd.f32 %v1608_v15, %v1607_v62  ;;  %v1617_v12 = vrot.slane %v1616_v31, 2 }
 0x445   :  { %14400 = vst [vmem:[#allocation129_spill] sm:$0xff] %v10475_v29  ;;  %v10477_v42 = vpop.permute.xlu0 %884  ;;  %v1311_v3 = vmul.f32 %v10479_v48, %v14408_v24  ;;  %v2936_v60 = vmul.f32 %v14409_v54, %v10361_v36  ;;  %v1626_v30 = vrot.slane %v1625_v26, 2  ;;  %v3228_v49 = vsel %vm1377_vm2, %v2932_v56, 0.0  ;;  %v14412_v36 = vld [vmem:[#allocation164_spill] sm:$0xff]  ;;  %v14413_v56 = vld [vmem:[#allocation166_spill] sm:$0xff] }
 0x446   :  { %14401 = vst [vmem:[#allocation130_spill] sm:$0xff] %v10477_v42  ;;  %2285 = vrot.lane.b32.xlu1 %v14377_v8, %s8567_s19  ;;  %v3238_v62 = vsel %vm1377_vm2, %v2935_v52, 0.0  ;;  %v1635_v15 = vrot.slane %v1634_v45, 2  ;;  %v3247_v46 = vsel %vm1377_vm2, %v2937_v13, 0.0  ;;  %v2939_v24 = vmul.f32 %v14412_v36, %v10358_v27  ;;  %v14414_v52 = vld [vmem:[#allocation37_spill] sm:$0xff]  ;;  %v14415_v13 = vld [vmem:[#allocation159_spill] sm:$0xff] }
 0x447   :  { %3913 = vrot.lane.b32.xlu0 %v14394_v59, %s8568_s20  ;;  %7910 = vmatpush3.bf16.xpose.msra.mxu1 %v3751_v9  ;;  %v3229_v59 = vsel %vm1377_vm2, %v2933_v57, 0.0  ;;  %v1643_v9 = vadd.f32 %v1642_v38, %v1641_v21  ;;  %v1651_v54 = vrot.slane %v1650_v40, 4  ;;  %v3237_v20 = vsel %vm1377_vm2, %v2934_v7, 0.0  ;;  %v14418_v42 = vld [vmem:[#allocation161_spill] sm:$0xff] }
 0x448   :  { %8028 = vmatprep.subr.msk.bf16.mxu1 %vm2101_vm1, %v10079_v58  ;;  %v10506_v16 = vpop.permute.xlu1 %877  ;;  %v1658_v28 = vsel %vm1377_vm2, %v1312_v43, 0.0  ;;  %v2941_v57 = vmul.f32 %v14413_v56, %v10363_v32  ;;  %v3246_v21 = vsel %vm1377_vm2, %v2936_v60, 0.0  ;;  %v3230_v38 = vadd.f32 %v3229_v59, %v3228_v49 }
 0x449   :  { %14410 = vst [vmem:[#allocation8_spill] sm:$0xff] %v10506_v16  ;;  %v10508_v39 = vpop.permute.xlu0 %895  ;;  %v2938_v27 = vmul.f32 %v14415_v13, %v10369_v35  ;;  %v3239_v36 = vadd.f32 %v3238_v62, %v3237_v20  ;;  %v1618_v7 = vadd.f32 %v1617_v12, %v1616_v31  ;;  %v1657_v43 = vsel %vm1377_vm2, %v1311_v3, 0.0  ;;  %v14419_v12 = vld [vmem:[#allocation38_spill] sm:$0xff] }
 0x44a   :  { %14411 = vst [vmem:[#allocation131_spill] sm:$0xff] %v10508_v39  ;;  %2289 = vrot.lane.b32.xlu1 %v14392_v63, %s8567_s19  ;;  %v2940_v32 = vmul.f32 %v14418_v42, %v10376_v11  ;;  %v3248_v56 = vadd.f32 %v3247_v46, %v3246_v21  ;;  %v1644_v29 = vrot.slane %v1643_v9, 2  ;;  %v3256_v60 = vsel %vm1377_vm2, %v2939_v24, 0.0 }
 0x44b   :  { %5458 = vrot.lane.b32.xlu0 %v14414_v52, %s8564_s2  ;;  %v1659_v52 = vadd.f32 %v1658_v28, %v1657_v43  ;;  %v3754_v35 = vsel %vm2101_vm1, %v10079_v58, 0  ;;  %v1610_v20 = vrot.slane %v1609_v23, 1  ;;  %v1627_v49 = vadd.f32 %v1626_v30, %v1625_v26 }
 0x44c   :  { %v10527_v0 = vpop.permute.xlu1 %888  ;;  %v1652_v59 = vadd.f32 %v1651_v54, %v1650_v40  ;;  %v3265_v31 = vsel %vm1377_vm2, %v2941_v57, 0.0  ;;  %v1636_v11 = vadd.f32 %v1635_v15, %v1634_v45  ;;  %v3231_v42 = vrot.slane %v3230_v38, 4  ;;  %v14422_v57 = vld [vmem:[#allocation11_spill] sm:$0xff] }
 0x44d   :  { %14416 = vst [vmem:[#allocation132_spill] sm:$0xff] %v10527_v0  ;;  %v10529_v39 = vpop.permute.xlu0 %906  ;;  %v3255_v28 = vsel %vm1377_vm2, %v2938_v27, 0.0  ;;  %v3240_v3 = vrot.slane %v3239_v36, 4  ;;  %v3264_v58 = vsel %vm1377_vm2, %v2940_v32, 0.0  ;;  %v3249_v24 = vrot.slane %v3248_v56, 4  ;;  %v14423_v27 = vld [vmem:[#allocation39_spill] sm:$0xff] }
 0x44e   :  { %14417 = vst [vmem:[#allocation25_spill] sm:$0xff] %v10529_v39  ;;  %3915 = vrot.lane.b32.xlu1 %v14377_v8, %s8568_s20  ;;  %v1619_v8 = vrot.slane %v1618_v7, 1  ;;  %v3257_v26 = vadd.f32 %v3256_v60, %v3255_v28  ;;  %v1645_v40 = vadd.f32 %v1644_v29, %v1643_v9  ;;  %v1660_v30 = vrot.slane %v1659_v52, 4  ;;  %v14425_v9 = vld [vmem:[#allocation163_spill] sm:$0xff] }
 0x44f   :  { %4051 = vbcast.lane.b32.xlu0 %v14419_v12, 256  ;;  %7912 = vmatpush3.bf16.xpose.msra.mxu1 %v3754_v35  ;;  %v3266_v54 = vadd.f32 %v3265_v31, %v3264_v58  ;;  %v2943_v21 = vmul.f32 %v14422_v57, %v10393_v33  ;;  %v1611_v45 = vadd.f32 %v1610_v20, %v1609_v23  ;;  %v1628_v15 = vrot.slane %v1627_v49, 1 }
 0x450   :  { %v10542_v62 = vpop.permute.xlu1 %899  ;;  %v1653_v13 = vrot.slane %v1652_v59, 2  ;;  %v14424_v43 = vrot.slane %v10434_v34, 2  ;;  %v1637_v35 = vrot.slane %v1636_v11, 1  ;;  %v3232_v60 = vadd.f32 %v3231_v42, %v3230_v38 }
 0x451   :  { %14420 = vst [vmem:[#allocation133_spill] sm:$0xff] %v10542_v62  ;;  %v10544_v46 = vpop.permute.xlu0 %917  ;;  %v3241_v29 = vadd.f32 %v3240_v3, %v3239_v36  ;;  %v2942_v31 = vmul.f32 %v14425_v9, %v10405_v22  ;;  %v1620_v20 = vadd.f32 %v1619_v8, %v1618_v7  ;;  %v3250_v58 = vadd.f32 %v3249_v24, %v3248_v56  ;;  %v14429_v36 = vld [vmem:[#allocation140_spill] sm:$0xff]  ;;  %v14435_v9 = vld [vmem:[#allocation165_spill] sm:$0xff] }
 0x452   :  { %14421 = vst [vmem:[#allocation134_spill] sm:$0xff] %v10544_v46  ;;  %3917 = vrot.lane.b32.xlu1 %v14379_v41, %s8568_s20  ;;  %v3081_v32 = vadd.f32 %v14424_v43, %v10434_v34  ;;  %v14428_v41 = vrot.slane %v10463_v18, 1  ;;  %v3258_v57 = vrot.slane %v3257_v26, 4  ;;  %v1646_v46 = vrot.slane %v1645_v40, 1  ;;  %v14430_v3 = vld [vmem:[#allocation40_spill] sm:$0xff] }
 0x453   :  { %4062 = vbcast.lane.b32.xlu0 %v14423_v27, 256  ;;  %v1661_v39 = vadd.f32 %v1660_v30, %v1659_v52  ;;  %v3267_v34 = vrot.slane %v3266_v54, 4  ;;  %v3274_v38 = vsel %vm1377_vm2, %v2943_v21, 0.0  ;;  %v1629_v22 = vadd.f32 %v1628_v15, %v1627_v49  ;;  %v14433_v15 = vld [vmem:[#allocation12_spill] sm:$0xff] }
 0x454   :  { %v10557_v28 = vpop.permute.xlu1 %910  ;;  %v1602_v23 = vadd.f32 %v14428_v41, %v10463_v18  ;;  %v1654_v42 = vadd.f32 %v1653_v13, %v1652_v59  ;;  %v3082_v7 = vrot.slane %v3081_v32, 1  ;;  %v1638_v52 = vadd.f32 %v1637_v35, %v1636_v11  ;;  %v14436_v41 = vld [vmem:[#allocation42_spill] sm:$0xff] }
 0x455   :  { %14426 = vst [vmem:[#allocation18_spill] sm:$0xff] %v10557_v28  ;;  %v10559_v33 = vpop.permute.xlu0 %928  ;;  %v3233_v56 = vrot.slane %v3232_v60, 2  ;;  %v3242_v8 = vrot.slane %v3241_v29, 2  ;;  %v3273_v24 = vsel %vm1377_vm2, %v2942_v31, 0.0  ;;  %v3259_v49 = vadd.f32 %v3258_v57, %v3257_v26  ;;  %v14457_v28 = vld [vmem:[#allocation45_spill] sm:$0xff] }
 0x456   :  { %14427 = vst [vmem:[#allocation142_spill] sm:$0xff] %v10559_v33  ;;  %7914 = vmatmul.mubr.msk.bf16.vlgmr.msra.gmra.mrb[24].mxu1 %vm2101_vm1, %v14429_v36  ;;  %3919 = vrot.lane.b32.xlu1 %v14392_v63, %s8568_s20  ;;  %v2058_v18 = vsel %vm2030_vm3, %v1611_v45, %v1602_v23  ;;  %v3251_v63 = vrot.slane %v3250_v58, 2  ;;  %v3275_v59 = vadd.f32 %v3274_v38, %v3273_v24  ;;  %v1662_v43 = vrot.slane %v1661_v39, 2  ;;  %v14434_v45 = vld [vmem:[#allocation41_spill] sm:$0xff]  ;;  %v14441_v24 = vld [vmem:[#allocation170_spill] sm:$0xff] }
 0x457   :  { %4139 = vbcast.lane.b32.xlu0 %v14430_v3, 256  ;;  %7917 = vmatprep.mubr.msk.bf16.mxu1 %vm2101_vm1, %v10399_v1  ;;  %v2945_v13 = vmul.f32 %v14433_v15, %v10425_v47  ;;  %v3268_v1 = vadd.f32 %v3267_v34, %v3266_v54  ;;  %v1647_v11 = vadd.f32 %v1646_v46, %v1645_v40  ;;  %v1655_v23 = vrot.slane %v1654_v42, 1  ;;  %v10590_v34 = vld [vmem:[#allocation2 + $0x88] sm:$0xff]  ;;  %v10592_v38 = vld [vmem:[#allocation2 + $0x80] sm:$0xff]  ;;  %v10620_v15 = vld [vmem:[#allocation2 + $0x98] sm:$0xff] }
 0x458   :  { %v10574_v30 = vpop.permute.xlu1 %921  ;;  %v2059_v35 = vsel %vm2032_vm4, %v1620_v20, %v2058_v18  ;;  %v2944_v31 = vmul.f32 %v14435_v9, %v10423_v25  ;;  %v3672_v47 = vsel %vm2038_vm7, %v10467_v51, %v10460_v2  ;;  %v3234_v57 = vadd.f32 %v3233_v56, %v3232_v60  ;;  %v14439_v60 = vld [vmem:[#allocation56_spill] sm:$0xff]  ;;  %v10627_v9 = vld [vmem:[#allocation2 + $0xa8] sm:$0xff] }
 0x459   :  { %14431 = vst [vmem:[#allocation137_spill] sm:$0xff] %v10574_v30  ;;  %v10576_v21 = vpop.permute.xlu0 %939  ;;  %v2060_v26 = vsel %vm2034_vm5, %v1629_v22, %v2059_v35  ;;  %v3243_v54 = vadd.f32 %v3242_v8, %v3241_v29  ;;  %v10601_v20 = vsel %vm2040_vm8, %v10469_v6, %v3672_v47  ;;  %v3252_v36 = vadd.f32 %v3251_v63, %v3250_v58  ;;  %v14440_v58 = vld [vmem:[#allocation14_spill] sm:$0xff] }
 0x45a   :  { %14432 = vst [vmem:[#allocation135_spill] sm:$0xff] %v10576_v21  ;;  %5460 = vrot.lane.b32.xlu1 %v14434_v45, %s8564_s2  ;;  %v2061_v25 = vsel %vm2036_vm6, %v1638_v52, %v2060_v26  ;;  %v3260_v22 = vrot.slane %v3259_v49, 2  ;;  %v3276_v18 = vrot.slane %v3275_v59, 4  ;;  %v3283_v2 = vsel %vm1377_vm2, %v2945_v13, 0.0  ;;  %v14442_v13 = vld [vmem:[#allocation43_spill] sm:$0xff] }
 0x45b   :  { %4150 = vbcast.lane.b32.xlu0 %v14436_v41, 256  ;;  %v3269_v51 = vrot.slane %v3268_v1, 2  ;;  %v10608_v29 = vadd.f32 %v1662_v43, %v1661_v39  ;;  %v10611_v52 = vsel %vm2038_vm7, %v1647_v11, %v2061_v25  ;;  %v10613_v56 = vadd.f32 %v3082_v7, %v3081_v32  ;;  %v14443_v32 = vld [vmem:[#allocation167_spill] sm:$0xff] }
 0x45c   :  { %v10594_v46 = vpop.permute.xlu1 %932  ;;  %v3282_v6 = vsel %vm1377_vm2, %v2944_v31, 0.0  ;;  %v1266_v8 = vmul.f32 %v10590_v34, %v14440_v58  ;;  %v1265_v63 = vmul.f32 %v10592_v38, %v14441_v24  ;;  %v1656_v39 = vadd.f32 %v1655_v23, %v1654_v42  ;;  %v10629_v31 = vld [vmem:[#allocation2 + $0xa0] sm:$0xff]  ;;  %v14447_v45 = vld [vmem:[#allocation15_spill] sm:$0xff] }
 0x45d   :  { %14437 = vst [vmem:[#allocation136_spill] sm:$0xff] %v10594_v46  ;;  %v10596_v40 = vpop.permute.xlu0 %2694  ;;  %v3235_v43 = vrot.slane %v3234_v57, 1  ;;  %v3244_v11 = vrot.slane %v3243_v54, 1  ;;  %v2946_v7 = vmul.f32 %v14443_v32, %v10479_v48  ;;  %v3284_v35 = vadd.f32 %v3283_v2, %v3282_v6  ;;  %v14448_v48 = vld [vmem:[#allocation171_spill] sm:$0xff]  ;;  %v14449_v6 = vld [vmem:[#allocation53_spill] sm:$0xff]  ;;  %v10661_v46 = vld [vmem:[#allocation2 + $0xc8] sm:$0xff] }
 0x45e   :  { %14438 = vst [vmem:[#allocation9_spill] sm:$0xff] %v10596_v40  ;;  %7918 = vmatmul.mubr.msk.bf16.gmra.mrb[28].mxu1 %vm2101_vm1, %v10097_v37  ;;  %5462 = vrot.lane.b32.xlu1 %v14439_v60, %s8564_s2  ;;  %v10622_v37 = vld [vmem:[#allocation2 + $0x90] sm:$0xff]  ;;  %v3253_v25 = vrot.slane %v3252_v36, 1  ;;  %v3261_v58 = vadd.f32 %v3260_v22, %v3259_v49  ;;  %v3277_v24 = vadd.f32 %v3276_v18, %v3275_v59  ;;  %v14446_v60 = vld [vmem:[#allocation13_spill] sm:$0xff]  ;;  %v1664_v32 = vrot.slane %v10608_v29, 1  ;;  %v14450_v59 = vld [vmem:[#allocation172_spill] sm:$0xff] }
 0x45f   :  { %4073 = vbcast.lane.b32.xlu0 %v14442_v13, 256  ;;  %v2947_v42 = vmul.f32 %v14446_v60, %v10473_v14  ;;  %v3270_v23 = vadd.f32 %v3269_v51, %v3268_v1  ;;  %v1268_v40 = vmul.f32 %v10620_v15, %v14447_v45  ;;  %v1267_v2 = vmul.f32 %v10622_v37, %v14448_v48  ;;  %v14451_v14 = vld [vmem:[#allocation173_spill] sm:$0xff]  ;;  %v14452_v18 = vld [vmem:[#allocation44_spill] sm:$0xff]  ;;  %v10654_v21 = vld [vmem:[#allocation2 + $0xb0] sm:$0xff] }
 0x460   :  { %v10631_v26 = vpop.permute.xlu1 %943  ;;  %v1450_v49 = vsel %vm1377_vm2, %v1265_v63, 0.0  ;;  %v1270_v22 = vmul.f32 %v10627_v9, %v14450_v59  ;;  %v1269_v1 = vmul.f32 %v10629_v31, %v14451_v14  ;;  %v3236_v45 = vadd.f32 %v3235_v43, %v3234_v57  ;;  %v10663_v57 = vld [vmem:[#allocation2 + $0xc0] sm:$0xff] }
 0x461   :  { %14444 = vst [vmem:[#allocation168_spill] sm:$0xff] %v10631_v26  ;;  %v10633_v47 = vpop.permute.xlu0 %2702  ;;  %v3245_v51 = vadd.f32 %v3244_v11, %v3243_v54  ;;  %v3291_v60 = vsel %vm1377_vm2, %v2946_v7, 0.0  ;;  %v3285_v48 = vrot.slane %v3284_v35, 4  ;;  %v3254_v33 = vadd.f32 %v3253_v25, %v3252_v36  ;;  %v14455_v25 = vld [vmem:[#allocation174_spill] sm:$0xff] }
 0x462   :  { %14445 = vst [vmem:[#allocation144_spill] sm:$0xff] %v10633_v47  ;;  %5464 = vrot.lane.b32.xlu1 %v14449_v6, %s8564_s2  ;;  %v1451_v47 = vsel %vm1377_vm2, %v1266_v8, 0.0  ;;  %v10652_v6 = vld [vmem:[#allocation2 + $0xb8] sm:$0xff]  ;;  %v3262_v59 = vrot.slane %v3261_v58, 1  ;;  %v3278_v26 = vrot.slane %v3277_v24, 2  ;;  %v3292_v14 = vsel %vm1377_vm2, %v2947_v42, 0.0 }
 0x463   :  { %4161 = vbcast.lane.b32.xlu0 %v14452_v18, 256  ;;  %v3271_v54 = vrot.slane %v3270_v23, 1  ;;  %v1452_v43 = vadd.f32 %v1451_v47, %v1450_v49  ;;  %v1460_v11 = vsel %vm1377_vm2, %v1268_v40, 0.0  ;;  %v1459_v7 = vsel %vm1377_vm2, %v1267_v2, 0.0  ;;  %v14456_v42 = vld [vmem:[#allocation175_spill] sm:$0xff]  ;;  %v14458_v49 = vld [vmem:[#allocation176_spill] sm:$0xff] }
 0x464   :  { %v10656_v8 = vpop.permute.xlu1 %2698  ;;  %v1468_v36 = vsel %vm1377_vm2, %v1269_v1, 0.0  ;;  %v1271_v30 = vmul.f32 %v10654_v21, %v14456_v42  ;;  %v3286_v62 = vadd.f32 %v3285_v48, %v3284_v35  ;;  %v3293_v47 = vadd.f32 %v3292_v14, %v3291_v60  ;;  %v14459_v2 = vld [vmem:[#allocation177_spill] sm:$0xff] }
 0x465   :  { %14453 = vst [vmem:[#allocation139_spill] sm:$0xff] %v10656_v8  ;;  %v10658_v63 = vpop.permute.xlu0 %2710  ;;  %v1469_v8 = vsel %vm1377_vm2, %v1270_v22, 0.0  ;;  %v1274_v40 = vmul.f32 %v10661_v46, %v14458_v49  ;;  %v3263_v1 = vadd.f32 %v3262_v59, %v3261_v58  ;;  %v10683_v4 = vadd.f32 %v3278_v26, %v3277_v24  ;;  %v14462_v58 = vld [vmem:[#allocation46_spill] sm:$0xff] }
 0x466   :  { %14454 = vst [vmem:[#allocation26_spill] sm:$0xff] %v10658_v63  ;;  %4055 = vbcast.lane.b32.xlu1 %v14419_v12, 264  ;;  %v1272_v63 = vmul.f32 %v10652_v6, %v14455_v25  ;;  %v1273_v12 = vmul.f32 %v10663_v57, %v14459_v2  ;;  %v1665_v25 = vadd.f32 %v1664_v32, %v10608_v29  ;;  %v1453_v35 = vrot.slane %v1452_v43, 4  ;;  %v10696_v32 = vld [vmem:[#allocation2 + $0xd8] sm:$0xff] }
 0x467   :  { %4227 = vbcast.lane.b32.xlu0 %v14457_v28, 256  ;;  %v2063_v42 = vsel %vm2040_vm8, %v1656_v39, %v10611_v52  ;;  %v1461_v60 = vadd.f32 %v1460_v11, %v1459_v7  ;;  %v1470_v48 = vadd.f32 %v1469_v8, %v1468_v36  ;;  %v3689_v14 = vsel %vm2030_vm3, %v3245_v51, %v3236_v45  ;;  %v10698_v8 = vld [vmem:[#allocation2 + $0xd0] sm:$0xff]  ;;  %v14467_v36 = vld [vmem:[#allocation178_spill] sm:$0xff] }
 0x468   :  { %v10679_v0 = vpop.permute.xlu1 %2706  ;;  %v3272_v49 = vadd.f32 %v3271_v54, %v3270_v23  ;;  %v1478_v2 = vsel %vm1377_vm2, %v1272_v63, 0.0  ;;  %v3690_v26 = vsel %vm2032_vm4, %v3254_v33, %v3689_v14  ;;  %v3287_v29 = vrot.slane %v3286_v62, 2  ;;  %v14468_v14 = vld [vmem:[#allocation179_spill] sm:$0xff] }
 0x469   :  { %14460 = vst [vmem:[#allocation146_spill] sm:$0xff] %v10679_v0  ;;  %v10681_v22 = vpop.permute.xlu0 %2718  ;;  %v3294_v24 = vrot.slane %v3293_v47, 4  ;;  %v1487_v52 = vsel %vm1377_vm2, %v1274_v40, 0.0  ;;  %v1486_v39 = vsel %vm1377_vm2, %v1273_v12, 0.0  ;;  %v10706_v51 = vsel %vm2042_vm9, %v1665_v25, %v2063_v42  ;;  %v14469_v42 = vld [vmem:[#allocation47_spill] sm:$0xff] }
 0x46a   :  { %14461 = vst [vmem:[#allocation6_spill] sm:$0xff] %v10681_v22  ;;  %4066 = vbcast.lane.b32.xlu1 %v14423_v27, 264  ;;  %v1477_v22 = vsel %vm1377_vm2, %v1271_v30, 0.0  ;;  %v3280_v30 = vrot.slane %v10683_v4, 1  ;;  %14465 = vst [vmem:[#allocation141_spill] sm:$0xff] %v10706_v51  ;;  %v10711_v33 = vsel %vm2042_vm9, %v10613_v56, %v10601_v20  ;;  %v3691_v12 = vsel %vm2034_vm5, %v3263_v1, %v3690_v26 }
 0x46b   :  { %4238 = vbcast.lane.b32.xlu0 %v14462_v58, 256  ;;  %14466 = vst [vmem:[#allocation150_spill] sm:$0xff] %v10711_v33  ;;  %v1454_v63 = vadd.f32 %v1453_v35, %v1452_v43  ;;  %v1462_v59 = vrot.slane %v1461_v60, 4  ;;  %v1471_v54 = vrot.slane %v1470_v48, 4  ;;  %v1479_v11 = vadd.f32 %v1478_v2, %v1477_v22  ;;  %v10725_v43 = vld [vmem:[#allocation2 + $0xe8] sm:$0xff]  ;;  %v14470_v22 = vld [vmem:[#allocation20_spill] sm:$0xff] }
 0x46c   :  { %v10700_v45 = vpop.permute.xlu1 %2714  ;;  %v1488_v7 = vadd.f32 %v1487_v52, %v1486_v39  ;;  %v1276_v40 = vmul.f32 %v10696_v32, %v14467_v36  ;;  %v1275_v25 = vmul.f32 %v10698_v8, %v14468_v14  ;;  %v10721_v20 = vsel %vm2036_vm6, %v3272_v49, %v3691_v12  ;;  %v14471_v2 = vld [vmem:[#allocation184_spill] sm:$0xff]  ;;  %v10735_v36 = vld [vmem:[#allocation2 + $0xe0] sm:$0xff] }
 0x46d   :  { %14463 = vst [vmem:[#allocation148_spill] sm:$0xff] %v10700_v45  ;;  %v10702_v23 = vpop.permute.xlu0 %2726  ;;  %v3288_v56 = vadd.f32 %v3287_v29, %v3286_v62  ;;  %v10723_v1 = vadd.f32 %v3294_v24, %v3293_v47  ;;  %v2901_v35 = vmul.f32 %v14470_v22, %v10590_v34  ;;  %v2900_v26 = vmul.f32 %v14471_v2, %v10592_v38  ;;  %v14474_v49 = vld [vmem:[#allocation21_spill] sm:$0xff]  ;;  %v14476_v29 = vld [vmem:[#allocation22_spill] sm:$0xff] }
 0x46e   :  { %14464 = vst [vmem:[#allocation28_spill] sm:$0xff] %v10702_v23  ;;  %4143 = vbcast.lane.b32.xlu1 %v14430_v3, 264  ;;  %v2903_v12 = vmul.f32 %v14474_v49, %v10620_v15  ;;  %v14475_v62 = vld [vmem:[#allocation185_spill] sm:$0xff]  ;;  %v2905_v24 = vmul.f32 %v14476_v29, %v10627_v9  ;;  %v14477_v34 = vld [vmem:[#allocation186_spill] sm:$0xff]  ;;  %v1455_v22 = vrot.slane %v1454_v63, 2  ;;  %v1463_v38 = vadd.f32 %v1462_v59, %v1461_v60  ;;  %v14478_v49 = vld [vmem:[#allocation180_spill] sm:$0xff] }
 0x46f   :  { %4315 = vbcast.lane.b32.xlu0 %v14469_v42, 256  ;;  %v2902_v47 = vmul.f32 %v14475_v62, %v10622_v37  ;;  %v2904_v14 = vmul.f32 %v14477_v34, %v10629_v31  ;;  %v1472_v2 = vadd.f32 %v1471_v54, %v1470_v48  ;;  %v1480_v3 = vrot.slane %v1479_v11, 4  ;;  %v14479_v62 = vld [vmem:[#allocation48_spill] sm:$0xff]  ;;  %v14480_v9 = vld [vmem:[#allocation181_spill] sm:$0xff] }
 0x470   :  { %v10731_v52 = vpop.permute.xlu1 %2722  ;;  %v1489_v27 = vrot.slane %v1488_v7, 4  ;;  %v1495_v15 = vsel %vm1377_vm2, %v1275_v25, 0.0  ;;  %v1278_v37 = vmul.f32 %v10725_v43, %v14478_v49  ;;  %v1277_v29 = vmul.f32 %v10735_v36, %v14480_v9 }
 0x471   :  { %14472 = vst [vmem:[#allocation10_spill] sm:$0xff] %v10731_v52  ;;  %v10733_v39 = vpop.permute.xlu0 %2782  ;;  %v1496_v52 = vsel %vm1377_vm2, %v1276_v40, 0.0  ;;  %v3085_v31 = vsel %vm1377_vm2, %v2901_v35, 0.0  ;;  %v3084_v60 = vsel %vm1377_vm2, %v2900_v26, 0.0  ;;  %v3289_v54 = vrot.slane %v3288_v56, 1 }
 0x472   :  { %14473 = vst [vmem:[#allocation143_spill] sm:$0xff] %v10733_v39  ;;  %4154 = vbcast.lane.b32.xlu1 %v14436_v41, 264  ;;  %v3094_v40 = vsel %vm1377_vm2, %v2903_v12, 0.0  ;;  %v3093_v25 = vsel %vm1377_vm2, %v2902_v47, 0.0  ;;  %v3103_v34 = vsel %vm1377_vm2, %v2905_v24, 0.0  ;;  %v3102_v49 = vsel %vm1377_vm2, %v2904_v14, 0.0 }
 0x473   :  { %4326 = vbcast.lane.b32.xlu0 %v14479_v62, 256  ;;  %v1464_v41 = vrot.slane %v1463_v38, 2  ;;  %v1473_v23 = vrot.slane %v1472_v2, 2  ;;  %v1481_v9 = vadd.f32 %v1480_v3, %v1479_v11  ;;  %v1497_v45 = vadd.f32 %v1496_v52, %v1495_v15  ;;  %v10772_v24 = vld [vmem:[#allocation2 + $0xf8] sm:$0xff]  ;;  %v10774_v14 = vld [vmem:[#allocation2 + $0xf0] sm:$0xff] }
 0x474   :  { %v10755_v48 = vpop.permute.xlu1 %2730  ;;  %v10764_v35 = vadd.f32 %v1455_v22, %v1454_v63  ;;  %v1490_v26 = vadd.f32 %v1489_v27, %v1488_v7  ;;  %v10769_v12 = vadd.f32 %v3280_v30, %v10683_v4  ;;  %v1504_v47 = vsel %vm1377_vm2, %v1277_v29, 0.0  ;;  %v14486_v7 = vld [vmem:[#allocation187_spill] sm:$0xff]  ;;  %v14487_v4 = vld [vmem:[#allocation188_spill] sm:$0xff] }
 0x475   :  { %14481 = vst [vmem:[#allocation138_spill] sm:$0xff] %v10755_v48  ;;  %v10757_v59 = vpop.permute.xlu0 %2846  ;;  %v1505_v48 = vsel %vm1377_vm2, %v1278_v37, 0.0  ;;  %v3086_v3 = vadd.f32 %v3085_v31, %v3084_v60  ;;  %v3095_v11 = vadd.f32 %v3094_v40, %v3093_v25  ;;  %v3104_v52 = vadd.f32 %v3103_v34, %v3102_v49  ;;  %v14488_v25 = vld [vmem:[#allocation182_spill] sm:$0xff]  ;;  %v14489_v49 = vld [vmem:[#allocation183_spill] sm:$0xff] }
 0x476   :  { %14482 = vst [vmem:[#allocation145_spill] sm:$0xff] %v10757_v59  ;;  %4077 = vbcast.lane.b32.xlu1 %v14442_v13, 264  ;;  %v14483_v59 = vld [vmem:[#allocation49_spill] sm:$0xff]  ;;  %v3296_v27 = vrot.slane %v10723_v1, 2  ;;  %v2907_v22 = vmul.f32 %v14486_v7, %v10652_v6  ;;  %v2906_v30 = vmul.f32 %v14487_v4, %v10654_v21  ;;  %v10785_v37 = vadd.f32 %v3289_v54, %v3288_v56  ;;  %v14490_v6 = vld [vmem:[#allocation50_spill] sm:$0xff] }
 0x477   :  { %4084 = vbcast.lane.b32.xlu0 %v14483_v59, 256  ;;  %v1465_v29 = vadd.f32 %v1464_v41, %v1463_v38  ;;  %v1474_v13 = vadd.f32 %v1473_v23, %v1472_v2  ;;  %v1482_v0 = vrot.slane %v1481_v9, 2  ;;  %v1498_v31 = vrot.slane %v1497_v45, 4  ;;  %v14494_v4 = vld [vmem:[#allocation190_spill] sm:$0xff] }
 0x478   :  { %v10776_v15 = vpop.permute.xlu1 %2786  ;;  %v1491_v60 = vrot.slane %v1490_v26, 2  ;;  %v1506_v40 = vadd.f32 %v1505_v48, %v1504_v47  ;;  %v1280_v34 = vmul.f32 %v10772_v24, %v14488_v25  ;;  %v1279_v33 = vmul.f32 %v10774_v14, %v14489_v49  ;;  %v14493_v47 = vld [vmem:[#allocation189_spill] sm:$0xff] }
 0x479   :  { %14484 = vst [vmem:[#allocation152_spill] sm:$0xff] %v10776_v15  ;;  %v10778_v63 = vpop.permute.xlu0 %2670  ;;  %v1457_v21 = vrot.slane %v10764_v35, 1  ;;  %v3087_v56 = vrot.slane %v3086_v3, 4  ;;  %v3096_v54 = vrot.slane %v3095_v11, 4  ;;  %v3105_v41 = vrot.slane %v3104_v52, 4  ;;  %v14495_v15 = vld [vmem:[#allocation51_spill] sm:$0xff] }
 0x47a   :  { %14485 = vst [vmem:[#allocation27_spill] sm:$0xff] %v10778_v63  ;;  %4165 = vbcast.lane.b32.xlu1 %v14452_v18, 264  ;;  %v3112_v2 = vsel %vm1377_vm2, %v2907_v22, 0.0  ;;  %v3111_v48 = vsel %vm1377_vm2, %v2906_v30, 0.0  ;;  %v2909_v7 = vmul.f32 %v14493_v47, %v10661_v46  ;;  %v2908_v25 = vmul.f32 %v14494_v4, %v10663_v57 }
 0x47b   :  { %4172 = vbcast.lane.b32.xlu0 %v14490_v6, 256  ;;  %v1466_v49 = vrot.slane %v1465_v29, 1  ;;  %v1475_v18 = vrot.slane %v1474_v13, 1  ;;  %v1483_v51 = vadd.f32 %v1482_v0, %v1481_v9  ;;  %v1499_v63 = vadd.f32 %v1498_v31, %v1497_v45  ;;  %v14498_v9 = vld [vmem:[#allocation191_spill] sm:$0xff]  ;;  %v14499_v31 = vld [vmem:[#allocation192_spill] sm:$0xff] }
 0x47c   :  { %v10794_v23 = vpop.permute.xlu1 %2850  ;;  %v1492_v39 = vadd.f32 %v1491_v60, %v1490_v26  ;;  %v1513_v22 = vsel %vm1377_vm2, %v1279_v33, 0.0  ;;  %v3088_v30 = vadd.f32 %v3087_v56, %v3086_v3  ;;  %v3097_v16 = vadd.f32 %v3096_v54, %v3095_v11 }
 0x47d   :  { %14491 = vst [vmem:[#allocation147_spill] sm:$0xff] %v10794_v23  ;;  %v10796_v38 = vpop.permute.xlu0 %2734  ;;  %v1507_v23 = vrot.slane %v1506_v40, 4  ;;  %v3106_v46 = vadd.f32 %v3105_v41, %v3104_v52  ;;  %v3113_v47 = vadd.f32 %v3112_v2, %v3111_v48  ;;  %v3121_v0 = vsel %vm1377_vm2, %v2909_v7, 0.0 }
 0x47e   :  { %14492 = vst [vmem:[#allocation19_spill] sm:$0xff] %v10796_v38  ;;  %4231 = vbcast.lane.b32.xlu1 %v14457_v28, 264  ;;  %v1514_v38 = vsel %vm1377_vm2, %v1280_v34, 0.0  ;;  %v3120_v45 = vsel %vm1377_vm2, %v2908_v25, 0.0  ;;  %v2911_v26 = vmul.f32 %v14498_v9, %v10696_v32  ;;  %v2910_v33 = vmul.f32 %v14499_v31, %v10698_v8 }
 0x47f   :  { %4249 = vbcast.lane.b32.xlu0 %v14495_v15, 256  ;;  %v1467_v60 = vadd.f32 %v1466_v49, %v1465_v29  ;;  %v1484_v34 = vrot.slane %v1483_v51, 1  ;;  %v1500_v3 = vrot.slane %v1499_v63, 2  ;;  %v1515_v11 = vadd.f32 %v1514_v38, %v1513_v22 }
 0x480   :  { %v10808_v61 = vpop.permute.xlu1 %2674  ;;  %v1476_v52 = vadd.f32 %v1475_v18, %v1474_v13  ;;  %v1493_v56 = vrot.slane %v1492_v39, 1  ;;  %v1508_v54 = vadd.f32 %v1507_v23, %v1506_v40  ;;  %v3297_v41 = vadd.f32 %v3296_v27, %v10723_v1 }
 0x481   :  { %14496 = vst [vmem:[#allocation169_spill] sm:$0xff] %v10808_v61  ;;  %v10810_v57 = vpop.permute.xlu0 %2790  ;;  %v1458_v2 = vadd.f32 %v1457_v21, %v10764_v35  ;;  %v3089_v48 = vrot.slane %v3088_v30, 2  ;;  %v3114_v7 = vrot.slane %v3113_v47, 4  ;;  %v3122_v4 = vadd.f32 %v3121_v0, %v3120_v45 }
 0x482   :  { %14497 = vst [vmem:[#allocation5_spill] sm:$0xff] %v10810_v57  ;;  %4242 = vbcast.lane.b32.xlu1 %v14462_v58, 264  ;;  %v3098_v8 = vrot.slane %v3097_v16, 2  ;;  %v3107_v29 = vrot.slane %v3106_v46, 2  ;;  %v3130_v38 = vsel %vm1377_vm2, %v2911_v26, 0.0  ;;  %v3129_v49 = vsel %vm1377_vm2, %v2910_v33, 0.0 }
 0x483   :  { %v1485_v13 = vadd.f32 %v1484_v34, %v1483_v51  ;;  %v1501_v18 = vadd.f32 %v1500_v3, %v1499_v63  ;;  %v1516_v40 = vrot.slane %v1515_v11, 4  ;;  %v2044_v1 = vsel %vm2030_vm3, %v1467_v60, %v1458_v2  ;;  %v14503_v33 = vld [vmem:[#allocation193_spill] sm:$0xff]  ;;  %v14504_v60 = vld [vmem:[#allocation194_spill] sm:$0xff] }
 0x484   :  { %v10821_v32 = vpop.permute.xlu1 %2738  ;;  %v1494_v35 = vadd.f32 %v1493_v56, %v1492_v39  ;;  %v1509_v27 = vrot.slane %v1508_v54, 2  ;;  %v2045_v21 = vsel %vm2032_vm4, %v1476_v52, %v2044_v1  ;;  %v3298_v23 = vrot.slane %v3297_v41, 1 }
 0x485   :  { %14500 = vst [vmem:[#allocation149_spill] sm:$0xff] %v10821_v32  ;;  %v10823_v25 = vpop.permute.xlu0 %2854  ;;  %v3090_v22 = vadd.f32 %v3089_v48, %v3088_v30  ;;  %v3115_v0 = vadd.f32 %v3114_v7, %v3113_v47  ;;  %v3123_v45 = vrot.slane %v3122_v4, 4  ;;  %v3131_v9 = vadd.f32 %v3130_v38, %v3129_v49  ;;  %v1219_v38 = vld [vmem:[#allocation2 + $0x310] sm:$0xff] }
 0x486   :  { %14501 = vst [vmem:[#allocation154_spill] sm:$0xff] %v10823_v25  ;;  %4319 = vbcast.lane.b32.xlu1 %v14469_v42, 264  ;;  %v3099_v51 = vadd.f32 %v3098_v8, %v3097_v16  ;;  %v3108_v63 = vadd.f32 %v3107_v29, %v3106_v46  ;;  %v2913_v34 = vmul.f32 %v14503_v33, %v10725_v43  ;;  %v1502_v3 = vrot.slane %v1501_v18, 1  ;;  %v10845_v16 = vld [vmem:[#allocation2 + $0x308] sm:$0xff]  ;;  %v10847_v46 = vld [vmem:[#allocation2 + $0x300] sm:$0xff]  ;;  %v1220_v43 = vld [vmem:[#allocation2 + $0x318] sm:$0xff] }
 0x487   :  { %v2912_v39 = vmul.f32 %v14504_v60, %v10735_v36  ;;  %v10838_v56 = vadd.f32 %v1516_v40, %v1515_v11  ;;  %v2046_v30 = vsel %vm2034_vm5, %v1485_v13, %v2045_v21  ;;  %v3693_v47 = vsel %vm2038_vm7, %v10769_v12, %v10721_v20  ;;  %v1222_v20 = vld [vmem:[#allocation2 + $0x328] sm:$0xff]  ;;  %v1221_v12 = vld [vmem:[#allocation2 + $0x320] sm:$0xff]  ;;  %v14510_v60 = vld [vmem:[#allocation200_spill] sm:$0xff] }
 0x488   :  { %v10830_v31 = vpop.permute.xlu1 %2794  ;;  %v1510_v52 = vadd.f32 %v1509_v27, %v1508_v54  ;;  %v2047_v2 = vsel %vm2036_vm6, %v1494_v35, %v2046_v30  ;;  %v10850_v36 = vadd.f32 %v3298_v23, %v3297_v41  ;;  %v10854_v11 = vsel %vm2040_vm8, %v10785_v37, %v3693_v47  ;;  %v14507_v35 = vld [vmem:[#allocation197_spill] sm:$0xff] }
 0x489   :  { %v10832_v26 = vpop.permute.xlu0 %2678  ;;  %v3091_v48 = vrot.slane %v3090_v22, 1  ;;  %v3116_v7 = vrot.slane %v3115_v0, 2  ;;  %v3124_v8 = vadd.f32 %v3123_v45, %v3122_v4  ;;  %v3132_v29 = vrot.slane %v3131_v9, 4  ;;  %v14508_v4 = vld [vmem:[#allocation198_spill] sm:$0xff]  ;;  %v14509_v45 = vld [vmem:[#allocation199_spill] sm:$0xff]  ;;  %v14511_v47 = vld [vmem:[#allocation201_spill] sm:$0xff] }
 0x48a   :  { %14502 = vst [vmem:[#allocation153_spill] sm:$0xff] %v10832_v26  ;;  %4330 = vbcast.lane.b32.xlu1 %v14479_v62, 264  ;;  %v3100_v13 = vrot.slane %v3099_v51, 1  ;;  %v3109_v40 = vrot.slane %v3108_v63, 1  ;;  %v3139_v41 = vsel %vm1377_vm2, %v2913_v34, 0.0  ;;  %v3138_v1 = vsel %vm1377_vm2, %v2912_v39, 0.0 }
 0x48b   :  { %v1518_v37 = vrot.slane %v10838_v56, 2  ;;  %v1346_v27 = vmul.f32 %v10845_v16, %v14507_v35  ;;  %v1345_v21 = vmul.f32 %v10847_v46, %v14508_v4  ;;  %v1503_v23 = vadd.f32 %v1502_v3, %v1501_v18  ;;  %v14512_v34 = vld [vmem:[#allocation202_spill] sm:$0xff]  ;;  %v14515_v3 = vld [vmem:[#allocation195_spill] sm:$0xff] }
 0x48c   :  { %v10856_v54 = vpop.permute.xlu1 %2858  ;;  %v1348_v33 = vmul.f32 %v1220_v43, %v14509_v45  ;;  %v1347_v30 = vmul.f32 %v1219_v38, %v14510_v60  ;;  %v1350_v62 = vmul.f32 %v1222_v20, %v14511_v47  ;;  %v1349_v42 = vmul.f32 %v1221_v12, %v14512_v34  ;;  %v14516_v38 = vld [vmem:[#allocation196_spill] sm:$0xff]  ;;  %v1226_v47 = vld [vmem:[#allocation2 + $0x348] sm:$0xff] }
 0x48d   :  { %14505 = vst [vmem:[#allocation158_spill] sm:$0xff] %v10856_v54  ;;  %v10858_v49 = vpop.permute.xlu0 %2742  ;;  %v3117_v39 = vadd.f32 %v3116_v7, %v3115_v0  ;;  %v3125_v58 = vrot.slane %v3124_v8, 2  ;;  %v3133_v28 = vadd.f32 %v3132_v29, %v3131_v9  ;;  %v3092_v4 = vadd.f32 %v3091_v48, %v3090_v22  ;;  %v1224_v9 = vld [vmem:[#allocation2 + $0x338] sm:$0xff]  ;;  %v1223_v7 = vld [vmem:[#allocation2 + $0x330] sm:$0xff] }
 0x48e   :  { %14506 = vst [vmem:[#allocation160_spill] sm:$0xff] %v10858_v49  ;;  %4088 = vbcast.lane.b32.xlu1 %v14483_v59, 264  ;;  %v3140_v49 = vadd.f32 %v3139_v41, %v3138_v1  ;;  %v3101_v25 = vadd.f32 %v3100_v13, %v3099_v51  ;;  %v3110_v59 = vadd.f32 %v3109_v40, %v3108_v63  ;;  %v1511_v18 = vrot.slane %v1510_v52, 1  ;;  %v14519_v1 = vld [vmem:[#allocation203_spill] sm:$0xff] }
 0x48f   :  { %v2915_v43 = vmul.f32 %v14515_v3, %v10772_v24  ;;  %v2914_v20 = vmul.f32 %v14516_v38, %v10774_v14  ;;  %v1811_v12 = vsel %vm1377_vm2, %v1346_v27, 0.0  ;;  %v1810_v0 = vsel %vm1377_vm2, %v1345_v21, 0.0  ;;  %v14520_v21 = vld [vmem:[#allocation204_spill] sm:$0xff] }
 0x490   :  { %v10872_v32 = vpop.permute.xlu1 %2682  ;;  %v1820_v29 = vsel %vm1377_vm2, %v1348_v33, 0.0  ;;  %v1819_v22 = vsel %vm1377_vm2, %v1347_v30, 0.0  ;;  %v1829_v51 = vsel %vm1377_vm2, %v1350_v62, 0.0  ;;  %v1828_v63 = vsel %vm1377_vm2, %v1349_v42, 0.0  ;;  %v1228_v38 = vld [vmem:[#allocation2 + $0x358] sm:$0xff] }
 0x491   :  { %14513 = vst [vmem:[#allocation162_spill] sm:$0xff] %v10872_v32  ;;  %v10874_v35 = vpop.permute.xlu0 %2798  ;;  %v3118_v24 = vrot.slane %v3117_v39, 1  ;;  %v3126_v48 = vadd.f32 %v3125_v58, %v3124_v8  ;;  %v3134_v13 = vrot.slane %v3133_v28, 2  ;;  %v3141_v14 = vrot.slane %v3140_v49, 4  ;;  %v1225_v58 = vld [vmem:[#allocation2 + $0x340] sm:$0xff] }
 0x492   :  { %14514 = vst [vmem:[#allocation155_spill] sm:$0xff] %v10874_v35  ;;  %4176 = vbcast.lane.b32.xlu1 %v14490_v6, 264  ;;  %v1352_v27 = vmul.f32 %v1224_v9, %v14519_v1  ;;  %v1351_v45 = vmul.f32 %v1223_v7, %v14520_v21  ;;  %v10893_v60 = vadd.f32 %v1511_v18, %v1510_v52  ;;  %v3148_v34 = vsel %vm1377_vm2, %v2915_v43, 0.0  ;;  %v1227_v9 = vld [vmem:[#allocation2 + $0x350] sm:$0xff]  ;;  %v1230_v7 = vld [vmem:[#allocation2 + $0x368] sm:$0xff]  ;;  %v14522_v43 = vld [vmem:[#allocation205_spill] sm:$0xff] }
 0x493   :  { %v10896_v33 = vsel %vm2038_vm7, %v1503_v23, %v2047_v2  ;;  %v1812_v62 = vadd.f32 %v1811_v12, %v1810_v0  ;;  %v1821_v30 = vadd.f32 %v1820_v29, %v1819_v22  ;;  %v1830_v42 = vadd.f32 %v1829_v51, %v1828_v63  ;;  %v1229_v29 = vld [vmem:[#allocation2 + $0x360] sm:$0xff]  ;;  %v14523_v51 = vld [vmem:[#allocation206_spill] sm:$0xff] }
 0x494   :  { %v10887_v40 = vpop.permute.xlu1 %2746  ;;  %v3675_v8 = vsel %vm2030_vm3, %v3101_v25, %v3092_v4  ;;  %v3147_v3 = vsel %vm1377_vm2, %v2914_v20, 0.0  ;;  %v1519_v52 = vadd.f32 %v1518_v37, %v10838_v56  ;;  %v3119_v2 = vadd.f32 %v3118_v24, %v3117_v39  ;;  %v14527_v1 = vld [vmem:[#allocation209_spill] sm:$0xff] }
 0x495   :  { %14517 = vst [vmem:[#allocation156_spill] sm:$0xff] %v10887_v40  ;;  %v10889_v41 = vpop.permute.xlu0 %2862  ;;  %v3676_v18 = vsel %vm2032_vm4, %v3110_v59, %v3675_v8  ;;  %v3127_v23 = vrot.slane %v3126_v48, 1  ;;  %v3135_v12 = vadd.f32 %v3134_v13, %v3133_v28  ;;  %v3142_v0 = vadd.f32 %v3141_v14, %v3140_v49  ;;  %v14525_v49 = vld [vmem:[#allocation207_spill] sm:$0xff]  ;;  %v14526_v13 = vld [vmem:[#allocation208_spill] sm:$0xff]  ;;  %v14528_v8 = vld [vmem:[#allocation210_spill] sm:$0xff] }
 0x496   :  { %14518 = vst [vmem:[#allocation151_spill] sm:$0xff] %v10889_v41  ;;  %4253 = vbcast.lane.b32.xlu1 %v14495_v15, 264  ;;  %v1838_v25 = vsel %vm1377_vm2, %v1352_v27, 0.0  ;;  %v1837_v4 = vsel %vm1377_vm2, %v1351_v45, 0.0  ;;  %v1354_v20 = vmul.f32 %v1226_v47, %v14522_v43  ;;  %v1353_v63 = vmul.f32 %v1225_v58, %v14523_v51 }
 0x497   :  { %v3149_v59 = vadd.f32 %v3148_v34, %v3147_v3  ;;  %v1813_v37 = vrot.slane %v1812_v62, 4  ;;  %v1822_v39 = vrot.slane %v1821_v30, 4  ;;  %v1831_v28 = vrot.slane %v1830_v42, 4 }
 0x498   :  { %v10904_v22 = vpop.permute.xlu1 %2802  ;;  %v1356_v24 = vmul.f32 %v1228_v38, %v14525_v49  ;;  %v1355_v14 = vmul.f32 %v1227_v9, %v14526_v13  ;;  %v1358_v21 = vmul.f32 %v1230_v7, %v14527_v1  ;;  %v1357_v27 = vmul.f32 %v1229_v29, %v14528_v8  ;;  %v1232_v38 = vld [vmem:[#allocation2 + $0x378] sm:$0xff]  ;;  %v1231_v49 = vld [vmem:[#allocation2 + $0x370] sm:$0xff] }
 0x499   :  { %14521 = vst [vmem:[#allocation157_spill] sm:$0xff] %v10904_v22  ;;  %v10910_v56 = vpop.permute.xlu0 %2686  ;;  %v3128_v15 = vadd.f32 %v3127_v23, %v3126_v48  ;;  %v1839_v45 = vadd.f32 %v1838_v25, %v1837_v4  ;;  %v1520_v47 = vrot.slane %v1519_v52, 1  ;;  %v3677_v58 = vsel %vm2034_vm5, %v3119_v2, %v3676_v18  ;;  %v14531_v1 = vld [vmem:[#allocation211_spill] sm:$0xff]  ;;  %v14532_v8 = vld [vmem:[#allocation212_spill] sm:$0xff] }
 0x49a   :  { %14524 = vst [vmem:[#allocation164_spill] sm:$0xff] %v10910_v56  ;;  %v3136_v43 = vrot.slane %v3135_v12, 1  ;;  %v3143_v34 = vrot.slane %v3142_v0, 2  ;;  %v1847_v3 = vsel %vm1377_vm2, %v1354_v20, 0.0  ;;  %v1846_v51 = vsel %vm1377_vm2, %v1353_v63, 0.0  ;;  %v10985_v56 = vld [vmem:[#allocation2 + $0x230] sm:$0xff] }
 0x49b   :  { %v3150_v7 = vrot.slane %v3149_v59, 4  ;;  %v1814_v13 = vadd.f32 %v1813_v37, %v1812_v62  ;;  %v1823_v29 = vadd.f32 %v1822_v39, %v1821_v30  ;;  %v1832_v48 = vadd.f32 %v1831_v28, %v1830_v42 }
 0x49c   :  { %v10916_v6 = vpop.permute.xlu1 %2866  ;;  %v1856_v23 = vsel %vm1377_vm2, %v1356_v24, 0.0  ;;  %v1855_v25 = vsel %vm1377_vm2, %v1355_v14, 0.0  ;;  %v1865_v18 = vsel %vm1377_vm2, %v1358_v21, 0.0  ;;  %v1864_v2 = vsel %vm1377_vm2, %v1357_v27, 0.0  ;;  %v10954_v27 = vld [vmem:[#allocation2 + $0x218] sm:$0xff] }
 0x49d   :  { %14529 = vst [vmem:[#allocation166_spill] sm:$0xff] %v10916_v6  ;;  %v10921_v9 = vpop.permute.xlu0 %2750  ;;  %v1840_v4 = vrot.slane %v1839_v45, 4  ;;  %v1848_v20 = vadd.f32 %v1847_v3, %v1846_v51  ;;  %v1360_v63 = vmul.f32 %v1232_v38, %v14531_v1  ;;  %v1359_v40 = vmul.f32 %v1231_v49, %v14532_v8  ;;  %v14538_v38 = vld [vmem:[#allocation215_spill] sm:$0xff] }
 0x49e   :  { %14530 = vst [vmem:[#allocation159_spill] sm:$0xff] %v10921_v9  ;;  %v10931_v9 = vld [vmem:[#allocation2 + $0x208] sm:$0xff]  ;;  %v10935_v30 = vadd.f32 %v1520_v47, %v1519_v52  ;;  %v10940_v42 = vsel %vm2040_vm8, %v10893_v60, %v10896_v33  ;;  %v10945_v37 = vsel %vm2042_vm9, %v10850_v36, %v10854_v11  ;;  %v10948_v39 = vsel %vm2036_vm6, %v3128_v15, %v3677_v58  ;;  %v10952_v52 = vld [vmem:[#allocation2 + $0x200] sm:$0xff]  ;;  %v10956_v47 = vld [vmem:[#allocation2 + $0x210] sm:$0xff] }
 0x49f   :  { %14535 = vst [vmem:[#allocation163_spill] sm:$0xff] %v10945_v37  ;;  %v10950_v28 = vadd.f32 %v3143_v34, %v3142_v0  ;;  %v3151_v24 = vadd.f32 %v3150_v7, %v3149_v59  ;;  %v1857_v14 = vadd.f32 %v1856_v23, %v1855_v25  ;;  %v1866_v21 = vadd.f32 %v1865_v18, %v1864_v2  ;;  %v14537_v58 = vld [vmem:[#allocation29_spill] sm:$0xff]  ;;  %v14539_v7 = vld [vmem:[#allocation30_spill] sm:$0xff]  ;;  %v14540_v25 = vld [vmem:[#allocation216_spill] sm:$0xff] }
 0x4a0   :  { %v10929_v41 = vpop.permute.xlu1 %2690  ;;  %v1815_v60 = vrot.slane %v1814_v13, 2  ;;  %v1824_v33 = vrot.slane %v1823_v29, 2  ;;  %v1833_v3 = vrot.slane %v1832_v48, 2  ;;  %v10958_v51 = vadd.f32 %v3136_v43, %v3135_v12  ;;  %v10983_v37 = vld [vmem:[#allocation2 + $0x238] sm:$0xff] }
 0x4a1   :  { %14533 = vst [vmem:[#allocation161_spill] sm:$0xff] %v10929_v41  ;;  %v10933_v62 = vpop.permute.xlu0 %2806  ;;  %v1841_v36 = vadd.f32 %v1840_v4, %v1839_v45  ;;  %v1849_v11 = vrot.slane %v1848_v20, 4  ;;  %v1874_v15 = vsel %vm1377_vm2, %v1360_v63, 0.0  ;;  %v1873_v0 = vsel %vm1377_vm2, %v1359_v40, 0.0  ;;  %v14542_v40 = vld [vmem:[#allocation213_spill] sm:$0xff]  ;;  %v14543_v4 = vld [vmem:[#allocation214_spill] sm:$0xff] }
 0x4a2   :  { %14534 = vst [vmem:[#allocation11_spill] sm:$0xff] %v10933_v62  ;;  %v1314_v34 = vmul.f32 %v10931_v9, %v14537_v58  ;;  %v1313_v49 = vmul.f32 %v10952_v52, %v14538_v38  ;;  %v1316_v23 = vmul.f32 %v10954_v27, %v14539_v7  ;;  %v1315_v12 = vmul.f32 %v10956_v47, %v14540_v25  ;;  %v10978_v38 = vld [vmem:[#allocation2 + $0x228] sm:$0xff] }
 0x4a3   :  { %v1858_v43 = vrot.slane %v1857_v14, 4  ;;  %v1867_v18 = vrot.slane %v1866_v21, 4  ;;  %v2981_v2 = vmul.f32 %v14542_v40, %v10845_v16  ;;  %v2980_v1 = vmul.f32 %v14543_v4, %v10847_v46  ;;  %v14547_v40 = vld [vmem:[#allocation217_spill] sm:$0xff]  ;;  %v14548_v4 = vld [vmem:[#allocation32_spill] sm:$0xff] }
 0x4a4   :  { %v10962_v59 = vpop.permute.xlu1 %2754  ;;  %v3152_v63 = vrot.slane %v3151_v24, 2  ;;  %v1816_v8 = vadd.f32 %v1815_v60, %v1814_v13  ;;  %v1825_v58 = vadd.f32 %v1824_v33, %v1823_v29  ;;  %v3145_v7 = vrot.slane %v10950_v28, 1 }
 0x4a5   :  { %14536 = vst [vmem:[#allocation140_spill] sm:$0xff] %v10962_v59  ;;  %v10972_v45 = vpop.permute.xlu0 %2870  ;;  %v1834_v59 = vadd.f32 %v1833_v3, %v1832_v48  ;;  %v1842_v6 = vrot.slane %v1841_v36, 2  ;;  %v1850_v25 = vadd.f32 %v1849_v11, %v1848_v20  ;;  %v1875_v54 = vadd.f32 %v1874_v15, %v1873_v0  ;;  %v14546_v15 = vld [vmem:[#allocation31_spill] sm:$0xff] }
 0x4a6   :  { %14541 = vst [vmem:[#allocation12_spill] sm:$0xff] %v10972_v45  ;;  %v10981_v45 = vld [vmem:[#allocation2 + $0x220] sm:$0xff]  ;;  %v1667_v46 = vsel %vm1377_vm2, %v1314_v34, 0.0  ;;  %v1666_v13 = vsel %vm1377_vm2, %v1313_v49, 0.0  ;;  %v1676_v29 = vsel %vm1377_vm2, %v1316_v23, 0.0  ;;  %v1675_v60 = vsel %vm1377_vm2, %v1315_v12, 0.0 }
 0x4a7   :  { %v1859_v20 = vadd.f32 %v1858_v43, %v1857_v14  ;;  %v1868_v33 = vadd.f32 %v1867_v18, %v1866_v21  ;;  %v3445_v3 = vsel %vm1377_vm2, %v2981_v2, 0.0  ;;  %v3444_v11 = vsel %vm1377_vm2, %v2980_v1, 0.0  ;;  %v14549_v23 = vld [vmem:[#allocation218_spill] sm:$0xff] }
 0x4a8   :  { %v10987_v16 = vpop.permute.xlu1 %2810  ;;  %v1318_v0 = vmul.f32 %v10978_v38, %v14546_v15  ;;  %v1317_v34 = vmul.f32 %v10981_v45, %v14547_v40  ;;  %v1320_v49 = vmul.f32 %v10983_v37, %v14548_v4  ;;  %v1319_v12 = vmul.f32 %v10985_v56, %v14549_v23 }
 0x4a9   :  { %14544 = vst [vmem:[#allocation165_spill] sm:$0xff] %v10987_v16  ;;  %v10993_v48 = vpop.permute.xlu0 %2814  ;;  %v1843_v26 = vadd.f32 %v1842_v6, %v1841_v36  ;;  %v1668_v14 = vadd.f32 %v1667_v46, %v1666_v13  ;;  %v1677_v21 = vadd.f32 %v1676_v29, %v1675_v60  ;;  %v1817_v18 = vrot.slane %v1816_v8, 1 }
 0x4aa   :  { %14545 = vst [vmem:[#allocation14_spill] sm:$0xff] %v10993_v48  ;;  %v1876_v48 = vrot.slane %v1875_v54, 4  ;;  %v1826_v2 = vrot.slane %v1825_v58, 1  ;;  %v1835_v1 = vrot.slane %v1834_v59, 1  ;;  %v3153_v15 = vadd.f32 %v3152_v63, %v3151_v24 }
 0x4ab   :  { %v1851_v62 = vrot.slane %v1850_v25, 2  ;;  %v1860_v40 = vrot.slane %v1859_v20, 2  ;;  %v1869_v32 = vrot.slane %v1868_v33, 2  ;;  %v3446_v16 = vadd.f32 %v3445_v3, %v3444_v11 }
 0x4ac   :  { %v11005_v43 = vpop.permute.xlu1 %2874  ;;  %v1685_v4 = vsel %vm1377_vm2, %v1318_v0, 0.0  ;;  %v1684_v23 = vsel %vm1377_vm2, %v1317_v34, 0.0  ;;  %v1694_v6 = vsel %vm1377_vm2, %v1320_v49, 0.0  ;;  %v1693_v36 = vsel %vm1377_vm2, %v1319_v12, 0.0  ;;  %v11019_v12 = vld [vmem:[#allocation2 + $0x248] sm:$0xff] }
 0x4ad   :  { %14550 = vst [vmem:[#allocation170_spill] sm:$0xff] %v11005_v43  ;;  %v11007_v41 = vpop.permute.xlu0 %2878  ;;  %v1844_v46 = vrot.slane %v1843_v26, 1  ;;  %v1877_v13 = vadd.f32 %v1876_v48, %v1875_v54  ;;  %v1669_v29 = vrot.slane %v1668_v14, 4  ;;  %v1678_v60 = vrot.slane %v1677_v21, 4  ;;  %v11021_v54 = vld [vmem:[#allocation2 + $0x240] sm:$0xff] }
 0x4ae   :  { %14551 = vst [vmem:[#allocation167_spill] sm:$0xff] %v11007_v41  ;;  %v1827_v41 = vadd.f32 %v1826_v2, %v1825_v58  ;;  %v3146_v63 = vadd.f32 %v3145_v7, %v10950_v28  ;;  %v3154_v35 = vrot.slane %v3153_v15, 1  ;;  %v3679_v3 = vsel %vm2038_vm7, %v10958_v51, %v10948_v39  ;;  %v14554_v39 = vld [vmem:[#allocation33_spill] sm:$0xff] }
 0x4af   :  { %v1818_v11 = vadd.f32 %v1817_v18, %v1816_v8  ;;  %v1836_v0 = vadd.f32 %v1835_v1, %v1834_v59  ;;  %v1686_v34 = vadd.f32 %v1685_v4, %v1684_v23  ;;  %v1695_v49 = vadd.f32 %v1694_v6, %v1693_v36  ;;  %v14555_v59 = vld [vmem:[#allocation219_spill] sm:$0xff]  ;;  %v11036_v4 = vld [vmem:[#allocation2 + $0x268] sm:$0xff]  ;;  %v11038_v23 = vld [vmem:[#allocation2 + $0x260] sm:$0xff] }
 0x4b0   :  { %v11013_v43 = vpop.permute.xlu1 %2818  ;;  %v1852_v48 = vadd.f32 %v1851_v62, %v1850_v25  ;;  %v1870_v58 = vadd.f32 %v1869_v32, %v1868_v33  ;;  %v3447_v2 = vrot.slane %v3446_v16, 4  ;;  %v1845_v28 = vadd.f32 %v1844_v46, %v1843_v26  ;;  %v11033_v26 = vld [vmem:[#allocation2 + $0x250] sm:$0xff] }
 0x4b1   :  { %14552 = vst [vmem:[#allocation13_spill] sm:$0xff] %v11013_v43  ;;  %v2284_v24 = vpop.permute.xlu0 %2283  ;;  %v1861_v43 = vadd.f32 %v1860_v40, %v1859_v20  ;;  %v1878_v7 = vrot.slane %v1877_v13, 2  ;;  %v1670_v57 = vadd.f32 %v1669_v29, %v1668_v14  ;;  %v1679_v61 = vadd.f32 %v1678_v60, %v1677_v21  ;;  %v11031_v20 = vld [vmem:[#allocation2 + $0x258] sm:$0xff] }
 0x4b2   :  { %7889 = vmatprep.subr.bf16.mxu0 %v2284_v24  ;;  %v1322_v51 = vmul.f32 %v11019_v12, %v14554_v39  ;;  %v1321_v8 = vmul.f32 %v11021_v54, %v14555_v59  ;;  %v2079_v18 = vsel %vm2030_vm3, %v1827_v41, %v1818_v11  ;;  %v3680_v62 = vsel %vm2040_vm8, %v3146_v63, %v3679_v3  ;;  %v14556_v3 = vld [vmem:[#allocation34_spill] sm:$0xff] }
 0x4b3   :  { %7890 = vmatpush3.bf16.msra.mxu0 %v2284_v24  ;;  %v1687_v25 = vrot.slane %v1686_v34, 4  ;;  %v1696_v32 = vrot.slane %v1695_v49, 4  ;;  %v2080_v33 = vsel %vm2032_vm4, %v1836_v0, %v2079_v18  ;;  %v3155_v14 = vadd.f32 %v3154_v35, %v3153_v15  ;;  %v14557_v15 = vld [vmem:[#allocation220_spill] sm:$0xff] }
 0x4b4   :  { %v11023_v22 = vpop.permute.xlu1 %2882  ;;  %v1853_v21 = vrot.slane %v1852_v48, 1  ;;  %v1862_v1 = vrot.slane %v1861_v43, 1  ;;  %v3448_v40 = vadd.f32 %v3447_v2, %v3446_v16  ;;  %v1871_v6 = vrot.slane %v1870_v58, 1 }
 0x4b5   :  { %14553 = vst [vmem:[#allocation15_spill] sm:$0xff] %v11023_v22  ;;  %v1671_v41 = vrot.slane %v1670_v57, 2  ;;  %v1680_v36 = vrot.slane %v1679_v61, 2  ;;  %v1879_v29 = vadd.f32 %v1878_v7, %v1877_v13  ;;  %v2081_v60 = vsel %vm2034_vm5, %v1845_v28, %v2080_v33  ;;  %v11051_v28 = vld [vmem:[#allocation2 + $0x278] sm:$0xff]  ;;  %v11053_v7 = vld [vmem:[#allocation2 + $0x270] sm:$0xff]  ;;  %v2288_v39 = vpop.permute.xlu0 %2287 }
 0x4b6   :  { %v1703_v24 = vsel %vm1377_vm2, %v1322_v51, 0.0  ;;  %v1702_v63 = vsel %vm1377_vm2, %v1321_v8, 0.0  ;;  %v1324_v35 = vmul.f32 %v11031_v20, %v14556_v3  ;;  %v1323_v16 = vmul.f32 %v11033_v26, %v14557_v15  ;;  %v14559_v15 = vld [vmem:[#allocation36_spill] sm:$0xff] }
 0x4b7   :  { %v1688_v11 = vadd.f32 %v1687_v25, %v1686_v34  ;;  %v1697_v0 = vadd.f32 %v1696_v32, %v1695_v49  ;;  %v1326_v2 = vmul.f32 %v11036_v4, %v9977_v53  ;;  %v1325_v13 = vmul.f32 %v11038_v23, %v9979_v44  ;;  %v14558_v44 = vld [vmem:[#allocation35_spill] sm:$0xff] }
 0x4b8   :  { %v2286_v46 = vpop.permute.xlu1 %2285  ;;  %v1854_v51 = vadd.f32 %v1853_v21, %v1852_v48  ;;  %v3449_v59 = vrot.slane %v3448_v40, 2  ;;  %v1863_v8 = vadd.f32 %v1862_v1, %v1861_v43  ;;  %v1872_v18 = vadd.f32 %v1871_v6, %v1870_v58 }
 0x4b9   :  { %7891 = vmatprep.subr.bf16.mxu0 %v2286_v46  ;;  %v1672_v33 = vadd.f32 %v1671_v41, %v1670_v57  ;;  %v1681_v34 = vadd.f32 %v1680_v36, %v1679_v61  ;;  %v1704_v49 = vadd.f32 %v1703_v24, %v1702_v63  ;;  %v1880_v25 = vrot.slane %v1879_v29, 1  ;;  %v11074_v63 = vld [vmem:[#allocation2 + $0x388] sm:$0xff] }
 0x4ba   :  { %7892 = vmatpush3.bf16.msra.mxu0 %v2286_v46  ;;  %v1712_v53 = vsel %vm1377_vm2, %v1324_v35, 0.0  ;;  %v1711_v32 = vsel %vm1377_vm2, %v1323_v16, 0.0  ;;  %v1328_v3 = vmul.f32 %v11051_v28, %v14558_v44  ;;  %v1327_v22 = vmul.f32 %v11053_v7, %v14559_v15  ;;  %v14563_v15 = vld [vmem:[#allocation221_spill] sm:$0xff] }
 0x4bb   :  { %7893 = vmatprep.subr.bf16.mxu0 %v2288_v39  ;;  %v1689_v46 = vrot.slane %v1688_v11, 2  ;;  %v1698_v48 = vrot.slane %v1697_v0, 2  ;;  %v1721_v21 = vsel %vm1377_vm2, %v1326_v2, 0.0  ;;  %v1720_v43 = vsel %vm1377_vm2, %v1325_v13, 0.0 }
 0x4bc   :  { %v2290_v57 = vpop.permute.xlu1 %2289  ;;  %v11063_v61 = vadd.f32 %v3449_v59, %v3448_v40  ;;  %v11068_v58 = vsel %vm2042_vm9, %v10935_v30, %v10940_v42  ;;  %v2082_v1 = vsel %vm2036_vm6, %v1854_v51, %v2081_v60  ;;  %v11072_v6 = vsel %vm2042_vm9, %v3155_v14, %v3680_v62  ;;  %v11079_v30 = vld [vmem:[#allocation2 + $0x398] sm:$0xff]  ;;  %v11083_v62 = vpop.permute.xlu0 %3913 }
 0x4bd   :  { %14560 = vst [vmem:[#allocation171_spill] sm:$0xff] %v11072_v6  ;;  %v1673_v41 = vrot.slane %v1672_v33, 1  ;;  %v1705_v36 = vrot.slane %v1704_v49, 4  ;;  %v1713_v24 = vadd.f32 %v1712_v53, %v1711_v32  ;;  %v2083_v35 = vsel %vm2038_vm7, %v1863_v8, %v2082_v1  ;;  %14561 = vst [vmem:[#allocation172_spill] sm:$0xff] %v11083_v62 }
 0x4be   :  { %7894 = vmatpush3.bf16.msra.mxu0 %v2288_v39  ;;  %v1682_v40 = vrot.slane %v1681_v34, 1  ;;  %v1722_v16 = vadd.f32 %v1721_v21, %v1720_v43  ;;  %v1730_v2 = vsel %vm1377_vm2, %v1328_v3, 0.0  ;;  %v1729_v13 = vsel %vm1377_vm2, %v1327_v22, 0.0  ;;  %v11081_v39 = vld [vmem:[#allocation2 + $0x380] sm:$0xff]  ;;  %v1240_v21 = vld [vmem:[#allocation2 + $0x3b8] sm:$0xff] }
 0x4bf   :  { %7895 = vmatprep.subr.bf16.mxu0 %v2290_v57  ;;  %v1690_v42 = vadd.f32 %v1689_v46, %v1688_v11  ;;  %v1699_v60 = vadd.f32 %v1698_v48, %v1697_v0  ;;  %v11085_v14 = vadd.f32 %v1880_v25, %v1879_v29  ;;  %v11088_v51 = vsel %vm2040_vm8, %v1872_v18, %v2083_v35  ;;  %v11095_v11 = vld [vmem:[#allocation2 + $0x390] sm:$0xff]  ;;  %v11115_v35 = vld [vmem:[#allocation2 + $0x3a0] sm:$0xff] }
 0x4c0   :  { %v2949_v8 = vmul.f32 %v10015_v10, %v10931_v9  ;;  %v2948_v22 = vmul.f32 %v10017_v19, %v10952_v52  ;;  %v1362_v0 = vmul.f32 %v11074_v63, %v10126_v50  ;;  %v1706_v29 = vadd.f32 %v1705_v36, %v1704_v49  ;;  %v14562_v10 = vld [vmem:[#allocation225_spill] sm:$0xff]  ;;  %v14564_v50 = vld [vmem:[#allocation226_spill] sm:$0xff]  ;;  %14567 = vst [vmem:[#allocation174_spill] sm:$0xff] %v11115_v35 }
 0x4c1   :  { %v1714_v25 = vrot.slane %v1713_v24, 4  ;;  %v1731_v53 = vadd.f32 %v1730_v2, %v1729_v13  ;;  %v1364_v18 = vmul.f32 %v11079_v30, %v10142_v17  ;;  %v1674_v32 = vadd.f32 %v1673_v41, %v1672_v33  ;;  %v11108_v49 = vld [vmem:[#allocation2 + $0x3a8] sm:$0xff] }
 0x4c2   :  { %7896 = vmatpush3.bf16.msra.mxu0 %v2290_v57  ;;  %v1683_v44 = vadd.f32 %v1682_v40, %v1681_v34  ;;  %v1723_v3 = vrot.slane %v1722_v16, 4  ;;  %v1361_v9 = vmul.f32 %v11081_v39, %v14562_v10  ;;  %v1691_v19 = vrot.slane %v1690_v42, 1  ;;  %14565 = vst [vmem:[#allocation173_spill] sm:$0xff] %v11108_v49  ;;  %v14566_v33 = vld [vmem:[#allocation222_spill] sm:$0xff] }
 0x4c3   :  { %7921 = vmatprep.subr.bf16.mxu0 %v11083_v62  ;;  %v1700_v52 = vrot.slane %v1699_v60, 1  ;;  %v2951_v46 = vmul.f32 %v14563_v15, %v10954_v27  ;;  %v1363_v48 = vmul.f32 %v11095_v11, %v14564_v50  ;;  %v3301_v43 = vsel %vm1377_vm2, %v2949_v8, 0.0  ;;  %v11117_v27 = vld [vmem:[#allocation2 + $0x3b0] sm:$0xff]  ;;  %v14569_v8 = vld [vmem:[#allocation108_spill] sm:$0xff]  ;;  %v14570_v10 = vld [vmem:[#allocation110_spill] sm:$0xff] }
 0x4c4   :  { %v3300_v17 = vsel %vm1377_vm2, %v2948_v22, 0.0  ;;  %v2950_v34 = vmul.f32 %v14566_v33, %v10956_v47  ;;  %v1883_v57 = vsel %vm1377_vm2, %v1362_v0, 0.0  ;;  %v1707_v1 = vrot.slane %v1706_v29, 2  ;;  %14568 = vst [vmem:[#allocation175_spill] sm:$0xff] %v11117_v27  ;;  %v14571_v33 = vld [vmem:[#allocation105_spill] sm:$0xff] }
 0x4c5   :  { %v1715_v41 = vadd.f32 %v1714_v25, %v1713_v24  ;;  %v1732_v36 = vrot.slane %v1731_v53, 4  ;;  %v1892_v40 = vsel %vm1377_vm2, %v1364_v18, 0.0  ;;  %v1724_v2 = vadd.f32 %v1723_v3, %v1722_v16  ;;  %v14572_v18 = vld [vmem:[#allocation106_spill] sm:$0xff] }
 0x4c6   :  { %v1882_v13 = vsel %vm1377_vm2, %v1361_v9, 0.0  ;;  %v1366_v22 = vmul.f32 %v11108_v49, %v14569_v8  ;;  %v1368_v15 = vmul.f32 %v1240_v21, %v14570_v10  ;;  %v3302_v47 = vadd.f32 %v3301_v43, %v3300_v17  ;;  %v11131_v9 = vld [vmem:[#allocation2 + $0x3c8] sm:$0xff]  ;;  %v8251_v49 = vld [vmem:[#allocation2 + $0x310] sm:$0xff] }
 0x4c7   :  { %v3310_v0 = vsel %vm1377_vm2, %v2951_v46, 0.0  ;;  %v1891_v24 = vsel %vm1377_vm2, %v1363_v48, 0.0  ;;  %v1884_v25 = vadd.f32 %v1883_v57, %v1882_v13  ;;  %v3309_v50 = vsel %vm1377_vm2, %v2950_v34, 0.0  ;;  %14573 = vst [vmem:[#allocation176_spill] sm:$0xff] %v11131_v9  ;;  %v11134_v48 = vld [vmem:[#allocation2 + $0x3c0] sm:$0xff] }
 0x4c8   :  { %v1365_v59 = vmul.f32 %v11115_v35, %v14571_v33  ;;  %v1367_v16 = vmul.f32 %v11117_v27, %v14572_v18  ;;  %v1893_v3 = vadd.f32 %v1892_v40, %v1891_v24  ;;  %v1692_v8 = vadd.f32 %v1691_v19, %v1690_v42  ;;  %14574 = vst [vmem:[#allocation177_spill] sm:$0xff] %v11134_v48 }
 0x4c9   :  { %v1701_v62 = vadd.f32 %v1700_v52, %v1699_v60  ;;  %v1733_v21 = vadd.f32 %v1732_v36, %v1731_v53  ;;  %v2065_v43 = vsel %vm2030_vm3, %v1683_v44, %v1674_v32  ;;  %v1708_v46 = vadd.f32 %v1707_v1, %v1706_v29  ;;  %v14575_v32 = vld [vmem:[#allocation107_spill] sm:$0xff] }
 0x4ca   :  { %v1716_v17 = vrot.slane %v1715_v41, 2  ;;  %v1901_v34 = vsel %vm1377_vm2, %v1366_v22, 0.0  ;;  %v1910_v57 = vsel %vm1377_vm2, %v1368_v15, 0.0  ;;  %v1725_v13 = vrot.slane %v1724_v2, 2  ;;  %v14576_v22 = vld [vmem:[#allocation223_spill] sm:$0xff] }
 0x4cb   :  { %v3311_v10 = vadd.f32 %v3310_v0, %v3309_v50  ;;  %v1885_v33 = vrot.slane %v1884_v25, 4  ;;  %v1370_v40 = vmul.f32 %v11131_v9, %v10210_v55  ;;  %v3303_v24 = vrot.slane %v3302_v47, 4  ;;  %v14577_v50 = vld [vmem:[#allocation224_spill] sm:$0xff] }
 0x4cc   :  { %v1900_v42 = vsel %vm1377_vm2, %v1365_v59, 0.0  ;;  %v1909_v60 = vsel %vm1377_vm2, %v1367_v16, 0.0  ;;  %v1894_v53 = vrot.slane %v1893_v3, 4  ;;  %v1734_v29 = vrot.slane %v1733_v21, 2 }
 0x4cd   :  { %v1369_v44 = vmul.f32 %v11134_v48, %v14575_v32  ;;  %v1902_v19 = vadd.f32 %v1901_v34, %v1900_v42  ;;  %v1911_v52 = vadd.f32 %v1910_v57, %v1909_v60  ;;  %v1709_v1 = vrot.slane %v1708_v46, 1  ;;  %v11150_v32 = vld [vmem:[#allocation2 + $0x3d8] sm:$0xff]  ;;  %v11154_v57 = vld [vmem:[#allocation2 + $0x3e8] sm:$0xff]  ;;  %v11253_v48 = vld [vmem:[#allocation2 + $0x2d0] sm:$0xff] }
 0x4ce   :  { %v1717_v36 = vadd.f32 %v1716_v17, %v1715_v41  ;;  %v2953_v15 = vmul.f32 %v14576_v22, %v10978_v38  ;;  %v2066_v0 = vsel %vm2032_vm4, %v1692_v8, %v2065_v43  ;;  %v3312_v55 = vrot.slane %v3311_v10, 4  ;;  %14578 = vst [vmem:[#allocation178_spill] sm:$0xff] %v11150_v32  ;;  %14579 = vst [vmem:[#allocation179_spill] sm:$0xff] %v11154_v57  ;;  %v14582_v60 = vld [vmem:[#allocation16_spill] sm:$0xff] }
 0x4cf   :  { %v2952_v59 = vmul.f32 %v14577_v50, %v10981_v45  ;;  %v1886_v18 = vadd.f32 %v1885_v33, %v1884_v25  ;;  %v1919_v16 = vsel %vm1377_vm2, %v1370_v40, 0.0  ;;  %v1726_v9 = vadd.f32 %v1725_v13, %v1724_v2  ;;  %v11157_v25 = vld [vmem:[#allocation2 + $0x3d0] sm:$0xff]  ;;  %v11160_v33 = vld [vmem:[#allocation2 + $0x3e0] sm:$0xff]  ;;  %14608 = vst [vmem:[#allocation193_spill] sm:$0xff] %v11253_v48 }
 0x4d0   :  { %v3304_v27 = vadd.f32 %v3303_v24, %v3302_v47  ;;  %v1895_v6 = vadd.f32 %v1894_v53, %v1893_v3  ;;  %v2067_v34 = vsel %vm2034_vm5, %v1701_v62, %v2066_v0  ;;  %v1918_v41 = vsel %vm1377_vm2, %v1369_v44, 0.0  ;;  %14580 = vst [vmem:[#allocation20_spill] sm:$0xff] %v11157_v25  ;;  %14581 = vst [vmem:[#allocation184_spill] sm:$0xff] %v11160_v33 }
 0x4d1   :  { %v1903_v17 = vrot.slane %v1902_v19, 4  ;;  %v1912_v38 = vrot.slane %v1911_v52, 4  ;;  %v1735_v8 = vadd.f32 %v1734_v29, %v1733_v21  ;;  %v1710_v43 = vadd.f32 %v1709_v1, %v1708_v46  ;;  %v14583_v29 = vld [vmem:[#allocation23_spill] sm:$0xff] }
 0x4d2   :  { %v1718_v42 = vrot.slane %v1717_v36, 1  ;;  %v3319_v45 = vsel %vm1377_vm2, %v2953_v15, 0.0  ;;  %v1920_v2 = vadd.f32 %v1919_v16, %v1918_v41  ;;  %v3313_v47 = vadd.f32 %v3312_v55, %v3311_v10  ;;  %v14584_v15 = vld [vmem:[#allocation111_spill] sm:$0xff] }
 0x4d3   :  { %v3318_v3 = vsel %vm1377_vm2, %v2952_v59, 0.0  ;;  %v1887_v13 = vrot.slane %v1886_v18, 2  ;;  %v1372_v62 = vmul.f32 %v11150_v32, %v10227_v5  ;;  %v3305_v40 = vrot.slane %v3304_v27, 2  ;;  %v14611_v32 = vld [vmem:[#allocation131_spill] sm:$0xff] }
 0x4d4   :  { %v1896_v24 = vrot.slane %v1895_v6, 2  ;;  %v1374_v21 = vmul.f32 %v11154_v57, %v14582_v60  ;;  %v1727_v46 = vrot.slane %v1726_v9, 1  ;;  %v1904_v53 = vadd.f32 %v1903_v17, %v1902_v19  ;;  %v11174_v17 = vld [vmem:[#allocation2 + $0x3f0] sm:$0xff]  ;;  %v14607_v57 = vld [vmem:[#allocation130_spill] sm:$0xff] }
 0x4d5   :  { %v1371_v44 = vmul.f32 %v11157_v25, %v14583_v29  ;;  %v1913_v1 = vadd.f32 %v1912_v38, %v1911_v52  ;;  %v1736_v10 = vrot.slane %v1735_v8, 1  ;;  %v3320_v22 = vadd.f32 %v3319_v45, %v3318_v3  ;;  %14585 = vst [vmem:[#allocation21_spill] sm:$0xff] %v11174_v17 }
 0x4d6   :  { %v1373_v0 = vmul.f32 %v11160_v33, %v14584_v15  ;;  %v1921_v55 = vrot.slane %v1920_v2, 4  ;;  %v2068_v50 = vsel %vm2036_vm6, %v1710_v43, %v2067_v34  ;;  %v3314_v5 = vrot.slane %v3313_v47, 2  ;;  %v11178_v15 = vld [vmem:[#allocation2 + $0x3f8] sm:$0xff]  ;;  %v11245_v33 = vld [vmem:[#allocation2 + $0x2c0] sm:$0xff] }
 0x4d7   :  { %v1888_v59 = vadd.f32 %v1887_v13, %v1886_v18  ;;  %v1928_v16 = vsel %vm1377_vm2, %v1372_v62, 0.0  ;;  %v1719_v41 = vadd.f32 %v1718_v42, %v1717_v36  ;;  %v11172_v60 = vadd.f32 %v3305_v40, %v3304_v27  ;;  %14586 = vst [vmem:[#allocation185_spill] sm:$0xff] %v11178_v15  ;;  %v14587_v42 = vld [vmem:[#allocation112_spill] sm:$0xff]  ;;  %14604 = vst [vmem:[#allocation191_spill] sm:$0xff] %v11245_v33 }
 0x4d8   :  { %v1897_v19 = vadd.f32 %v1896_v24, %v1895_v6  ;;  %v1937_v52 = vsel %vm1377_vm2, %v1374_v21, 0.0  ;;  %v1728_v38 = vadd.f32 %v1727_v46, %v1726_v9  ;;  %v1905_v45 = vrot.slane %v1904_v53, 2  ;;  %v14588_v24 = vld [vmem:[#allocation114_spill] sm:$0xff] }
 0x4d9   :  { %v1927_v3 = vsel %vm1377_vm2, %v1371_v44, 0.0  ;;  %v1914_v29 = vrot.slane %v1913_v1, 2  ;;  %v1737_v34 = vadd.f32 %v1736_v10, %v1735_v8  ;;  %v3321_v43 = vrot.slane %v3320_v22, 4  ;;  %v11198_v10 = vld [vmem:[#allocation2 + $0x280] sm:$0xff] }
 0x4da   :  { %v1936_v18 = vsel %vm1377_vm2, %v1373_v0, 0.0  ;;  %v1922_v13 = vadd.f32 %v1921_v55, %v1920_v2  ;;  %v1929_v36 = vadd.f32 %v1928_v16, %v1927_v3  ;;  %v11181_v27 = vadd.f32 %v3314_v5, %v3313_v47  ;;  %14589 = vst [vmem:[#allocation22_spill] sm:$0xff] %v11198_v10  ;;  %v11200_v0 = vld [vmem:[#allocation2 + $0x298] sm:$0xff]  ;;  %v11216_v3 = vld [vmem:[#allocation2 + $0x288] sm:$0xff] }
 0x4db   :  { %v1889_v6 = vrot.slane %v1888_v59, 1  ;;  %v1375_v62 = vmul.f32 %v11174_v17, %v14587_v42  ;;  %v1938_v40 = vadd.f32 %v1937_v52, %v1936_v18  ;;  %v1898_v9 = vrot.slane %v1897_v19, 1  ;;  %14590 = vst [vmem:[#allocation186_spill] sm:$0xff] %v11200_v0  ;;  %14593 = vst [vmem:[#allocation187_spill] sm:$0xff] %v11216_v3  ;;  %v14597_v42 = vld [vmem:[#allocation8_spill] sm:$0xff] }
 0x4dc   :  { %v1376_v21 = vmul.f32 %v11178_v15, %v14588_v24  ;;  %v11190_v8 = vsel %vm2042_vm9, %v11085_v14, %v11088_v51  ;;  %v2069_v46 = vsel %vm2038_vm7, %v1719_v41, %v2068_v50  ;;  %v11194_v47 = vadd.f32 %v1905_v45, %v1904_v53  ;;  %v11205_v14 = vld [vmem:[#allocation2 + $0x290] sm:$0xff]  ;;  %v11207_v51 = vld [vmem:[#allocation2 + $0x2a8] sm:$0xff] }
 0x4dd   :  { %v11196_v44 = vadd.f32 %v1914_v29, %v1913_v1  ;;  %v2070_v55 = vsel %vm2040_vm8, %v1728_v38, %v2069_v46  ;;  %v11203_v5 = vadd.f32 %v3321_v43, %v3320_v22  ;;  %v1923_v16 = vrot.slane %v1922_v13, 2  ;;  %14591 = vst [vmem:[#allocation180_spill] sm:$0xff] %v11205_v14  ;;  %14592 = vst [vmem:[#allocation181_spill] sm:$0xff] %v11207_v51  ;;  %v11218_v22 = vld [vmem:[#allocation2 + $0x2b8] sm:$0xff]  ;;  %v14595_v43 = vld [vmem:[#allocation125_spill] sm:$0xff] }
 0x4de   :  { %v1930_v52 = vrot.slane %v1929_v36, 4  ;;  %v11210_v50 = vsel %vm2042_vm9, %v1737_v34, %v2070_v55  ;;  %v11213_v1 = vadd.f32 %v1889_v6, %v1888_v59  ;;  %v1945_v41 = vsel %vm1377_vm2, %v1375_v62, 0.0  ;;  %14594 = vst [vmem:[#allocation188_spill] sm:$0xff] %v11218_v22  ;;  %v11225_v34 = vld [vmem:[#allocation2 + $0x2a0] sm:$0xff]  ;;  %v11229_v6 = vld [vmem:[#allocation2 + $0x2c8] sm:$0xff]  ;;  %v14599_v46 = vld [vmem:[#allocation127_spill] sm:$0xff] }
 0x4df   :  { %v1939_v45 = vrot.slane %v1938_v40, 4  ;;  %v11220_v38 = vadd.f32 %v1898_v9, %v1897_v19  ;;  %v1946_v29 = vsel %vm1377_vm2, %v1376_v21, 0.0  ;;  %v1329_v18 = vmul.f32 %v11198_v10, %v14595_v43  ;;  %14596 = vst [vmem:[#allocation182_spill] sm:$0xff] %v11225_v34  ;;  %14598 = vst [vmem:[#allocation183_spill] sm:$0xff] %v11229_v6  ;;  %v11235_v9 = vld [vmem:[#allocation2 + $0x2b0] sm:$0xff]  ;;  %v14601_v21 = vld [vmem:[#allocation132_spill] sm:$0xff] }
 0x4e0   :  { %v1332_v59 = vmul.f32 %v11200_v0, %v14597_v42  ;;  %v1331_v19 = vmul.f32 %v11205_v14, %v14599_v46  ;;  %14600 = vst [vmem:[#allocation189_spill] sm:$0xff] %v11235_v9  ;;  %v1334_v55 = vmul.f32 %v11207_v51, %v14601_v21  ;;  %v11239_v43 = vld [vmem:[#allocation2 + $0x2d8] sm:$0xff]  ;;  %v11241_v2 = vadd.f32 %v1923_v16, %v1922_v13  ;;  %v14603_v42 = vld [vmem:[#allocation129_spill] sm:$0xff]  ;;  %v11249_v15 = vld [vmem:[#allocation2 + $0x2e8] sm:$0xff] }
 0x4e1   :  { %14602 = vst [vmem:[#allocation190_spill] sm:$0xff] %v11239_v43  ;;  %v1931_v53 = vadd.f32 %v1930_v52, %v1929_v36  ;;  %v1330_v17 = vmul.f32 %v11216_v3, %v14603_v42  ;;  %v14605_v62 = vld [vmem:[#allocation133_spill] sm:$0xff]  ;;  %14606 = vst [vmem:[#allocation192_spill] sm:$0xff] %v11249_v15  ;;  %v1940_v46 = vadd.f32 %v1939_v45, %v1938_v40  ;;  %v14609_v13 = vld [vmem:[#allocation18_spill] sm:$0xff]  ;;  %v1738_v52 = vsel %vm1377_vm2, %v1329_v18, 0.0 }
 0x4e2   :  { %v1336_v24 = vmul.f32 %v11218_v22, %v14605_v62  ;;  %v1947_v25 = vadd.f32 %v1946_v29, %v1945_v41  ;;  %v1333_v21 = vmul.f32 %v11225_v34, %v14607_v57  ;;  %v1338_v36 = vmul.f32 %v11229_v6, %v14609_v13  ;;  %v11257_v16 = vld [vmem:[#allocation2 + $0x2f8] sm:$0xff]  ;;  %v11263_v22 = vld [vmem:[#allocation2 + $0x2e0] sm:$0xff]  ;;  %v11271_v6 = vld [vmem:[#allocation2 + $0x2f0] sm:$0xff] }
 0x4e3   :  { %14610 = vst [vmem:[#allocation194_spill] sm:$0xff] %v11257_v16  ;;  %v1748_v42 = vsel %vm1377_vm2, %v1332_v59, 0.0  ;;  %v1335_v62 = vmul.f32 %v11235_v9, %v14611_v32  ;;  %14612 = vst [vmem:[#allocation197_spill] sm:$0xff] %v11263_v22  ;;  %v14613_v40 = vld [vmem:[#allocation137_spill] sm:$0xff]  ;;  %v1747_v57 = vsel %vm1377_vm2, %v1331_v19, 0.0  ;;  %v1757_v45 = vsel %vm1377_vm2, %v1334_v55, 0.0 }
 0x4e4   :  { %v1340_v41 = vmul.f32 %v11239_v43, %v14613_v40  ;;  %v14614_v29 = vld [vmem:[#allocation25_spill] sm:$0xff]  ;;  %14615 = vst [vmem:[#allocation198_spill] sm:$0xff] %v11271_v6  ;;  %v14616_v18 = vld [vmem:[#allocation136_spill] sm:$0xff]  ;;  %v1739_v34 = vsel %vm1377_vm2, %v1330_v17, 0.0  ;;  %v1766_v32 = vsel %vm1377_vm2, %v1336_v24, 0.0  ;;  %v14617_v9 = vld [vmem:[#allocation134_spill] sm:$0xff]  ;;  %v1749_v43 = vadd.f32 %v1748_v42, %v1747_v57 }
 0x4e5   :  { %v1337_v13 = vmul.f32 %v11245_v33, %v14614_v29  ;;  %v1342_v59 = vmul.f32 %v11249_v15, %v14616_v18  ;;  %v1339_v14 = vmul.f32 %v11253_v48, %v14617_v9  ;;  %v14618_v40 = vld [vmem:[#allocation168_spill] sm:$0xff]  ;;  %v1756_v55 = vsel %vm1377_vm2, %v1333_v21, 0.0  ;;  %v14619_v33 = vld [vmem:[#allocation142_spill] sm:$0xff]  ;;  %v14620_v24 = vld [vmem:[#allocation135_spill] sm:$0xff] }
 0x4e6   :  { %v1344_v19 = vmul.f32 %v11257_v16, %v14618_v40  ;;  %v1775_v29 = vsel %vm1377_vm2, %v1338_v36, 0.0  ;;  %v1341_v51 = vmul.f32 %v11263_v22, %v14619_v33  ;;  %v1765_v18 = vsel %vm1377_vm2, %v1335_v62, 0.0 }
 0x4e7   :  { %v1758_v15 = vadd.f32 %v1757_v45, %v1756_v55  ;;  %v1784_v17 = vsel %vm1377_vm2, %v1340_v41, 0.0  ;;  %v1343_v0 = vmul.f32 %v11271_v6, %v14620_v24  ;;  %v1740_v9 = vadd.f32 %v1739_v34, %v1738_v52 }
 0x4e8   :  { %v1774_v48 = vsel %vm1377_vm2, %v1337_v13, 0.0  ;;  %v1767_v40 = vadd.f32 %v1766_v32, %v1765_v18  ;;  %v1793_v21 = vsel %vm1377_vm2, %v1342_v59, 0.0  ;;  %v1948_v42 = vrot.slane %v1947_v25, 4 }
 0x4e9   :  { %v1783_v36 = vsel %vm1377_vm2, %v1339_v14, 0.0  ;;  %v1776_v57 = vadd.f32 %v1775_v29, %v1774_v48  ;;  %v1802_v33 = vsel %vm1377_vm2, %v1344_v19, 0.0  ;;  %v1932_v22 = vrot.slane %v1931_v53, 2 }
 0x4ea   :  { %v1750_v62 = vrot.slane %v1749_v43, 4  ;;  %v1792_v45 = vsel %vm1377_vm2, %v1341_v51, 0.0  ;;  %v1785_v41 = vadd.f32 %v1784_v17, %v1783_v36  ;;  %v1941_v55 = vrot.slane %v1940_v46, 2 }
 0x4eb   :  { %v1759_v16 = vrot.slane %v1758_v15, 4  ;;  %v1801_v34 = vsel %vm1377_vm2, %v1343_v0, 0.0  ;;  %v1794_v52 = vadd.f32 %v1793_v21, %v1792_v45  ;;  %v1741_v32 = vrot.slane %v1740_v9, 4 }
 0x4ec   :  { %v1768_v59 = vrot.slane %v1767_v40, 4  ;;  %v1803_v18 = vadd.f32 %v1802_v33, %v1801_v34  ;;  %v1925_v14 = vrot.slane %v11241_v2, 1  ;;  %v1949_v48 = vadd.f32 %v1948_v42, %v1947_v25  ;;  %v8250_v25 = vld [vmem:[#allocation2 + $0x318] sm:$0xff]  ;;  %v14623_v42 = vld [vmem:[#allocation7_spill] sm:$0xff] }
 0x4ed   :  { %v1777_v29 = vrot.slane %v1776_v57, 4  ;;  %v2086_v19 = vsel %vm2030_vm3, %v11220_v38, %v11213_v1  ;;  %v14621_v51 = vrot.slane %v11194_v47, 1  ;;  %v1933_v24 = vadd.f32 %v1932_v22, %v1931_v53 }
 0x4ee   :  { %v1751_v0 = vadd.f32 %v1750_v62, %v1749_v43  ;;  %v1786_v21 = vrot.slane %v1785_v41, 4  ;;  %v14622_v36 = vrot.slane %v11196_v44, 1  ;;  %v1942_v33 = vadd.f32 %v1941_v55, %v1940_v46 }
 0x4ef   :  { %v1908_v17 = vadd.f32 %v14621_v51, %v11194_v47  ;;  %v1760_v34 = vadd.f32 %v1759_v16, %v1758_v15  ;;  %v1795_v13 = vrot.slane %v1794_v52, 4  ;;  %v2983_v6 = vmul.f32 %v8250_v25, %v14623_v42  ;;  %v14624_v47 = vld [vmem:[#allocation113_spill] sm:$0xff] }
 0x4f0   :  { %v1917_v45 = vadd.f32 %v14622_v36, %v11196_v44  ;;  %v1742_v10 = vadd.f32 %v1741_v32, %v1740_v9  ;;  %v1769_v3 = vadd.f32 %v1768_v59, %v1767_v40  ;;  %v1804_v1 = vrot.slane %v1803_v18, 4  ;;  %v14626_v36 = vld [vmem:[#allocation124_spill] sm:$0xff] }
 0x4f1   :  { %v1926_v38 = vadd.f32 %v1925_v14, %v11241_v2  ;;  %v2982_v53 = vmul.f32 %v8251_v49, %v14624_v47  ;;  %v1950_v22 = vrot.slane %v1949_v48, 2  ;;  %v1778_v43 = vadd.f32 %v1777_v29, %v1776_v57 }
 0x4f2   :  { %v1934_v62 = vrot.slane %v1933_v24, 1  ;;  %v1752_v51 = vrot.slane %v1751_v0, 2  ;;  %v1787_v35 = vadd.f32 %v1786_v21, %v1785_v41  ;;  %v2087_v44 = vsel %vm2032_vm4, %v1908_v17, %v2086_v19  ;;  %v14625_v41 = vld [vmem:[#allocation117_spill] sm:$0xff]  ;;  %v8252_v21 = vld [vmem:[#allocation2 + $0x328] sm:$0xff] }
 0x4f3   :  { %v1761_v15 = vrot.slane %v1760_v34, 2  ;;  %v1796_v46 = vadd.f32 %v1795_v13, %v1794_v52  ;;  %v1943_v16 = vrot.slane %v1942_v33, 1  ;;  %v2088_v55 = vsel %vm2034_vm5, %v1917_v45, %v2087_v44 }
 0x4f4   :  { %v3454_v9 = vsel %vm1377_vm2, %v2983_v6, 0.0  ;;  %v1743_v40 = vrot.slane %v1742_v10, 2  ;;  %v1770_v32 = vrot.slane %v1769_v3, 2  ;;  %v1805_v2 = vadd.f32 %v1804_v1, %v1803_v18 }
 0x4f5   :  { %v3453_v59 = vsel %vm1377_vm2, %v2982_v53, 0.0  ;;  %v1779_v49 = vrot.slane %v1778_v43, 2  ;;  %v1951_v14 = vadd.f32 %v1950_v22, %v1949_v48  ;;  %v2089_v57 = vsel %vm2036_vm6, %v1926_v38, %v2088_v55  ;;  %v8253_v53 = vld [vmem:[#allocation2 + $0x320] sm:$0xff]  ;;  %v14627_v48 = vld [vmem:[#allocation120_spill] sm:$0xff]  ;;  %v14628_v38 = vld [vmem:[#allocation122_spill] sm:$0xff] }
 0x4f6   :  { %v2954_v29 = vmul.f32 %v14625_v41, %v10985_v56  ;;  %v1753_v19 = vadd.f32 %v1752_v51, %v1751_v0  ;;  %v1788_v17 = vrot.slane %v1787_v35, 2  ;;  %v1935_v52 = vadd.f32 %v1934_v62, %v1933_v24 }
 0x4f7   :  { %v3455_v13 = vadd.f32 %v3454_v9, %v3453_v59  ;;  %v2985_v45 = vmul.f32 %v8252_v21, %v14626_v36  ;;  %v1762_v6 = vadd.f32 %v1761_v15, %v1760_v34  ;;  %v1797_v25 = vrot.slane %v1796_v46, 2  ;;  %v14631_v21 = vld [vmem:[#allocation126_spill] sm:$0xff] }
 0x4f8   :  { %v1744_v42 = vadd.f32 %v1743_v40, %v1742_v10  ;;  %v1771_v18 = vadd.f32 %v1770_v32, %v1769_v3  ;;  %v1806_v1 = vrot.slane %v1805_v2, 2  ;;  %v1944_v47 = vadd.f32 %v1943_v16, %v1942_v33 }
 0x4f9   :  { %v2984_v22 = vmul.f32 %v8253_v53, %v14627_v48  ;;  %v2955_v44 = vmul.f32 %v14628_v38, %v10983_v37  ;;  %v1780_v56 = vadd.f32 %v1779_v49, %v1778_v43  ;;  %v1952_v0 = vrot.slane %v1951_v14, 1  ;;  %v14632_v53 = vld [vmem:[#allocation143_spill] sm:$0xff] }
 0x4fa   :  { %v3327_v24 = vsel %vm1377_vm2, %v2954_v29, 0.0  ;;  %v1754_v62 = vrot.slane %v1753_v19, 1  ;;  %v1789_v51 = vadd.f32 %v1788_v17, %v1787_v35  ;;  %v2090_v55 = vsel %vm2038_vm7, %v1935_v52, %v2089_v57  ;;  %v8254_v57 = vld [vmem:[#allocation2 + $0x338] sm:$0xff]  ;;  %v14630_v52 = vld [vmem:[#allocation123_spill] sm:$0xff] }
 0x4fb   :  { %v3456_v34 = vrot.slane %v3455_v13, 4  ;;  %v3463_v10 = vsel %vm1377_vm2, %v2985_v45, 0.0  ;;  %v1763_v3 = vrot.slane %v1762_v6, 1  ;;  %v1798_v15 = vadd.f32 %v1797_v25, %v1796_v46  ;;  %v14629_v29 = vld [vmem:[#allocation152_spill] sm:$0xff] }
 0x4fc   :  { %v1745_v33 = vrot.slane %v1744_v42, 1  ;;  %v1772_v16 = vrot.slane %v1771_v18, 1  ;;  %v2091_v9 = vsel %vm2040_vm8, %v1944_v47, %v2090_v55  ;;  %v1807_v40 = vadd.f32 %v1806_v1, %v1805_v2  ;;  %v8255_v47 = vld [vmem:[#allocation2 + $0x330] sm:$0xff] }
 0x4fd   :  { %v3462_v37 = vsel %vm1377_vm2, %v2984_v22, 0.0  ;;  %v3328_v43 = vsel %vm1377_vm2, %v2955_v44, 0.0  ;;  %v1781_v32 = vrot.slane %v1780_v56, 1  ;;  %v1953_v59 = vadd.f32 %v1952_v0, %v1951_v14 }
 0x4fe   :  { %v3464_v49 = vadd.f32 %v3463_v10, %v3462_v37  ;;  %v1755_v35 = vadd.f32 %v1754_v62, %v1753_v19  ;;  %v1790_v41 = vrot.slane %v1789_v51, 1  ;;  %v2987_v17 = vmul.f32 %v8254_v57, %v14629_v29 }
 0x4ff   :  { %v2956_v46 = vmul.f32 %v14630_v52, %v11021_v54  ;;  %v2957_v36 = vmul.f32 %v14631_v21, %v11019_v12  ;;  %v1764_v45 = vadd.f32 %v1763_v3, %v1762_v6  ;;  %v1799_v2 = vrot.slane %v1798_v15, 1 }
 0x500   :  { %v1746_v25 = vadd.f32 %v1745_v33, %v1744_v42  ;;  %v1773_v1 = vadd.f32 %v1772_v16, %v1771_v18  ;;  %v2986_v48 = vmul.f32 %v8255_v47, %v14632_v53  ;;  %v1808_v14 = vrot.slane %v1807_v40, 1  ;;  %v14634_v16 = vld [vmem:[#allocation109_spill] sm:$0xff] }
 0x501   :  { %v11332_v22 = vadd.f32 %v3456_v34, %v3455_v13  ;;  %v11334_v19 = vadd.f32 %v3328_v43, %v3327_v24  ;;  %v1782_v38 = vadd.f32 %v1781_v32, %v1780_v56  ;;  %v11337_v44 = vsel %vm2042_vm9, %v1953_v59, %v2091_v9  ;;  %v14633_v56 = vld [vmem:[#allocation27_spill] sm:$0xff]  ;;  %v8256_v32 = vld [vmem:[#allocation2 + $0x348] sm:$0xff] }
 0x502   :  { %v3465_v54 = vrot.slane %v3464_v49, 4  ;;  %v3472_v0 = vsel %vm1377_vm2, %v2987_v17, 0.0  ;;  %v1791_v12 = vadd.f32 %v1790_v41, %v1789_v51  ;;  %v2072_v6 = vsel %vm2030_vm3, %v1755_v35, %v1746_v25  ;;  %v14635_v35 = vld [vmem:[#allocation157_spill] sm:$0xff]  ;;  %v14636_v17 = vld [vmem:[#allocation128_spill] sm:$0xff] }
 0x503   :  { %v3336_v42 = vsel %vm1377_vm2, %v2956_v46, 0.0  ;;  %v3337_v18 = vsel %vm1377_vm2, %v2957_v36, 0.0  ;;  %v1800_v62 = vadd.f32 %v1799_v2, %v1798_v15  ;;  %v2073_v13 = vsel %vm2032_vm4, %v1764_v45, %v2072_v6  ;;  %v8258_v2 = vld [vmem:[#allocation2 + $0x340] sm:$0xff] }
 0x504   :  { %v3471_v24 = vsel %vm1377_vm2, %v2986_v48, 0.0  ;;  %v2958_v55 = vmul.f32 %v14633_v56, %v11033_v26  ;;  %v1809_v10 = vadd.f32 %v1808_v14, %v1807_v40  ;;  %v2074_v3 = vsel %vm2034_vm5, %v1773_v1, %v2073_v13  ;;  %v8257_v26 = vld [vmem:[#allocation2 + $0x358] sm:$0xff]  ;;  %v14638_v25 = vld [vmem:[#allocation5_spill] sm:$0xff]  ;;  %v8259_v48 = vld [vmem:[#allocation2 + $0x350] sm:$0xff] }
 0x505   :  { %v3330_v51 = vrot.slane %v11334_v19, 4  ;;  %v11349_v33 = vadd.f32 %v3472_v0, %v3471_v24  ;;  %v2075_v15 = vsel %vm2036_vm6, %v1782_v38, %v2074_v3  ;;  %v11355_v43 = vadd.f32 %v3465_v54, %v3464_v49  ;;  %v14639_v14 = vld [vmem:[#allocation155_spill] sm:$0xff]  ;;  %v8260_v54 = vld [vmem:[#allocation2 + $0x368] sm:$0xff]  ;;  %v14640_v0 = vld [vmem:[#allocation165_spill] sm:$0xff] }
 0x506   :  { %v2989_v59 = vmul.f32 %v8256_v32, %v10830_v31  ;;  %v2991_v40 = vmul.f32 %v8257_v26, %v14635_v35  ;;  %v2076_v57 = vsel %vm2038_vm7, %v1791_v12, %v2075_v15  ;;  %v11360_v29 = vadd.f32 %v3337_v18, %v3336_v42  ;;  %v14637_v31 = vld [vmem:[#allocation169_spill] sm:$0xff]  ;;  %v8261_v13 = vld [vmem:[#allocation2 + $0x378] sm:$0xff]  ;;  %v8263_v26 = vld [vmem:[#allocation2 + $0x370] sm:$0xff] }
 0x507   :  { %v2077_v49 = vsel %vm2040_vm8, %v1800_v62, %v2076_v57  ;;  %v3345_v36 = vsel %vm1377_vm2, %v2958_v55, 0.0  ;;  %v2959_v45 = vmul.f32 %v14637_v31, %v11031_v20  ;;  %v2988_v1 = vmul.f32 %v8258_v2, %v14638_v25  ;;  %v14641_v20 = vld [vmem:[#allocation162_spill] sm:$0xff]  ;;  %v14642_v24 = vld [vmem:[#allocation13_spill] sm:$0xff] }
 0x508   :  { %v7883_v34 = vpop.f32.mrb[16].mxu1  ;;  %v2078_v47 = vsel %vm2042_vm9, %v1809_v10, %v2077_v49  ;;  %v3474_v53 = vrot.slane %v11349_v33, 4  ;;  %v2990_v38 = vmul.f32 %v8259_v48, %v14639_v14  ;;  %v2993_v12 = vmul.f32 %v8260_v54, %v14640_v0  ;;  %v8262_v55 = vld [vmem:[#allocation2 + $0x360] sm:$0xff]  ;;  %v14646_v35 = vld [vmem:[#allocation14_spill] sm:$0xff] }
 0x509   :  { %v11352_v9 = vadd.f32 %v7883_v34, %v14634_v16  ;;  %v2160_v37 = vpop.f32.mrb[17].mxu1  ;;  %v3481_v42 = vsel %vm1377_vm2, %v2989_v59, 0.0  ;;  %v2961_v18 = vmul.f32 %v14641_v20, %v11036_v4  ;;  %v3490_v62 = vsel %vm1377_vm2, %v2991_v40, 0.0  ;;  %v14643_v34 = vld [vmem:[#allocation11_spill] sm:$0xff]  ;;  %v14644_v3 = vld [vmem:[#allocation141_spill] sm:$0xff] }
 0x50a   :  { %v7884_v41 = vpop.f32.mrb[18].mxu1  ;;  %v11363_v52 = vadd.f32 %v2160_v37, %v14636_v17  ;;  %v2995_v56 = vmul.f32 %v8261_v13, %v14642_v24  ;;  %v2992_v10 = vmul.f32 %v8262_v55, %v14643_v34  ;;  %v3346_v15 = vsel %vm1377_vm2, %v2959_v45, 0.0  ;;  %v14645_v32 = vld [vmem:[#allocation161_spill] sm:$0xff] }
 0x50b   :  { %v2163_v46 = vpop.f32.mrb[19].mxu1  ;;  %v2197_v21 = vsel %vm1377_vm2, %v11352_v9, -inf  ;;  %v11386_v16 = vadd.f32 %v7884_v41, %v14644_v3  ;;  %v3480_v4 = vsel %vm1377_vm2, %v2988_v1, 0.0  ;;  %v2963_v59 = vmul.f32 %v14645_v32, %v11051_v28  ;;  %v14647_v17 = vld [vmem:[#allocation153_spill] sm:$0xff]  ;;  %v14648_v28 = vld [vmem:[#allocation164_spill] sm:$0xff] }
 0x50c   :  { %2198 = vmax.xlane.f32.xlu0 %v2197_v21  ;;  %v11377_v6 = vadd.f32 %v2163_v46, %v11068_v58  ;;  %v2191_v37 = vsel %vm1377_vm2, %v11363_v52, -inf  ;;  %v2994_v40 = vmul.f32 %v8263_v26, %v14646_v35  ;;  %v3482_v41 = vadd.f32 %v3481_v42, %v3480_v4 }
 0x50d   :  { %v2960_v46 = vmul.f32 %v14647_v17, %v11038_v23  ;;  %v3489_v21 = vsel %vm1377_vm2, %v2990_v38, 0.0  ;;  %v3499_v49 = vsel %vm1377_vm2, %v2993_v12, 0.0  ;;  %v3355_v45 = vsel %vm1377_vm2, %v2961_v18, 0.0 }
 0x50e   :  { %v2194_v58 = vsel %vm1377_vm2, %v11377_v6, -inf  ;;  %v3491_v2 = vadd.f32 %v3490_v62, %v3489_v21  ;;  %v2962_v25 = vmul.f32 %v14648_v28, %v11053_v7  ;;  %v3508_v1 = vsel %vm1377_vm2, %v2995_v56, 0.0 }
 0x50f   :  { %2195 = vmax.xlane.f32.xlu1 %v2194_v58  ;;  %v3498_v14 = vsel %vm1377_vm2, %v2992_v10, 0.0  ;;  %v2200_v0 = vsel %vm1377_vm2, %v11386_v16, -inf  ;;  %v3347_v12 = vadd.f32 %v3346_v15, %v3345_v36  ;;  %v3364_v42 = vsel %vm1377_vm2, %v2963_v59, 0.0 }
 0x510   :  { %v7887_v57 = vpop.f32.mrb[20].mxu1  ;;  %2192 = vmax.xlane.f32.xlu0 %v2191_v37  ;;  %v3500_v20 = vadd.f32 %v3499_v49, %v3498_v14  ;;  %v3507_v7 = vsel %vm1377_vm2, %v2994_v40, 0.0  ;;  %v3354_v18 = vsel %vm1377_vm2, %v2960_v46, 0.0  ;;  %v3483_v24 = vrot.slane %v3482_v41, 4 }
 0x511   :  { %v2176_v31 = vpop.f32.mrb[21].mxu1  ;;  %v11407_v54 = vadd.f32 %v7887_v57, %v11190_v8  ;;  %v3509_v62 = vadd.f32 %v3508_v1, %v3507_v7  ;;  %v3356_v56 = vadd.f32 %v3355_v45, %v3354_v18  ;;  %v3363_v36 = vsel %vm1377_vm2, %v2962_v25, 0.0 }
 0x512   :  { %v7888_v48 = vpop.f32.mrb[22].mxu1  ;;  %v3492_v55 = vrot.slane %v3491_v2, 4  ;;  %v3365_v34 = vadd.f32 %v3364_v42, %v3363_v36  ;;  %v11424_v10 = vadd.f32 %v2176_v31, %v11210_v50  ;;  %v14650_v37 = vrot.slane %v11203_v5, 2 }
 0x513   :  { %v11410_v23 = vadd.f32 %v7888_v48, %v11337_v44  ;;  %v2179_v38 = vpop.f32.mrb[23].mxu1  ;;  %v3339_v44 = vrot.slane %v11360_v29, 4  ;;  %v2209_v3 = vsel %vm1377_vm2, %v11407_v54, -inf  ;;  %v3458_v4 = vrot.slane %v11332_v22, 2 }
 0x514   :  { %2201 = vmax.xlane.f32.xlu0 %v2200_v0  ;;  %v11417_v13 = vadd.f32 %v2179_v38, %v2078_v47  ;;  %v14649_v47 = vrot.slane %v11181_v27, 1  ;;  %v3324_v15 = vadd.f32 %v14650_v37, %v11203_v5  ;;  %v3501_v32 = vrot.slane %v3500_v20, 4 }
 0x515   :  { %v2212_v8 = vsel %vm1377_vm2, %v11410_v23, -inf  ;;  %v3475_v59 = vadd.f32 %v3474_v53, %v11349_v33  ;;  %v3348_v26 = vrot.slane %v3347_v12, 4  ;;  %v3510_v50 = vrot.slane %v3509_v62, 4 }
 0x516   :  { %2213 = vmax.xlane.f32.xlu1 %v2212_v8  ;;  %v3317_v58 = vadd.f32 %v14649_v47, %v11181_v27  ;;  %v2206_v35 = vsel %vm1377_vm2, %v11417_v13, -inf  ;;  %v3331_v40 = vadd.f32 %v3330_v51, %v11334_v19  ;;  %v3467_v27 = vrot.slane %v11355_v43, 2 }
 0x517   :  { %v3484_v57 = vadd.f32 %v3483_v24, %v3482_v41  ;;  %v3357_v17 = vrot.slane %v3356_v56, 4  ;;  %v3340_v5 = vadd.f32 %v3339_v44, %v11360_v29  ;;  %v3493_v46 = vadd.f32 %v3492_v55, %v3491_v2 }
 0x518   :  { %2210 = vmax.xlane.f32.xlu0 %v2209_v3  ;;  %v3366_v21 = vrot.slane %v3365_v34, 4  ;;  %v2203_v33 = vsel %vm1377_vm2, %v11424_v10, -inf  ;;  %v14651_v53 = vrot.slane %v11172_v60, 1  ;;  %v3325_v31 = vrot.slane %v3324_v15, 1 }
 0x519   :  { %v3459_v45 = vadd.f32 %v3458_v4, %v11332_v22  ;;  %v3502_v19 = vadd.f32 %v3501_v32, %v3500_v20  ;;  %v14652_v51 = vrot.slane %v11063_v61, 1  ;;  %v3476_v28 = vrot.slane %v3475_v59, 2  ;;  %v14653_v20 = vld [vmem:[#allocation115_spill] sm:$0xff] }
 0x51a   :  { %2207 = vmax.xlane.f32.xlu1 %v2206_v35  ;;  %v3308_v49 = vadd.f32 %v14651_v53, %v11172_v60  ;;  %v3349_v29 = vadd.f32 %v3348_v26, %v3347_v12  ;;  %v3511_v2 = vadd.f32 %v3510_v50, %v3509_v62  ;;  %v3332_v25 = vrot.slane %v3331_v40, 2  ;;  %v14657_v53 = vld [vmem:[#allocation174_spill] sm:$0xff] }
 0x51b   :  { %v3452_v41 = vadd.f32 %v14652_v51, %v11063_v61  ;;  %v3485_v1 = vrot.slane %v3484_v57, 2  ;;  %v3358_v48 = vadd.f32 %v3357_v17, %v3356_v56  ;;  %v3468_v38 = vadd.f32 %v3467_v27, %v11355_v43  ;;  %v14654_v61 = vld [vmem:[#allocation116_spill] sm:$0xff]  ;;  %v14655_v56 = vld [vmem:[#allocation119_spill] sm:$0xff]  ;;  %v14659_v51 = vld [vmem:[#allocation173_spill] sm:$0xff] }
 0x51c   :  { %2204 = vmax.xlane.f32.xlu0 %v2203_v33  ;;  %v3696_v14 = vsel %vm2030_vm3, %v3317_v58, %v3308_v49  ;;  %v3341_v60 = vrot.slane %v3340_v5, 2  ;;  %v3494_v0 = vrot.slane %v3493_v46, 2  ;;  %v3367_v42 = vadd.f32 %v3366_v21, %v3365_v34  ;;  %v14656_v21 = vld [vmem:[#allocation24_spill] sm:$0xff]  ;;  %v14658_v49 = vld [vmem:[#allocation121_spill] sm:$0xff] }
 0x51d   :  { %v3326_v22 = vadd.f32 %v3325_v31, %v3324_v15  ;;  %v2996_v7 = vmul.f32 %v14653_v20, %v11081_v39  ;;  %v3460_v18 = vrot.slane %v3459_v45, 1  ;;  %v3503_v8 = vrot.slane %v3502_v19, 2 }
 0x51e   :  { %v2998_v12 = vmul.f32 %v14654_v61, %v11095_v11  ;;  %v3477_v62 = vadd.f32 %v3476_v28, %v3475_v59  ;;  %v3350_v44 = vrot.slane %v3349_v29, 2  ;;  %v3512_v24 = vrot.slane %v3511_v2, 2  ;;  %v14660_v28 = vld [vmem:[#allocation17_spill] sm:$0xff] }
 0x51f   :  { %v2997_v36 = vmul.f32 %v14655_v56, %v11074_v63  ;;  %v3333_v55 = vadd.f32 %v3332_v25, %v3331_v40  ;;  %v3486_v43 = vadd.f32 %v3485_v1, %v3484_v57  ;;  %v3359_v3 = vrot.slane %v3358_v48, 2 }
 0x520   :  { %v3469_v47 = vrot.slane %v3468_v38, 1  ;;  %v3342_v34 = vadd.f32 %v3341_v60, %v3340_v5  ;;  %v3495_v58 = vadd.f32 %v3494_v0, %v3493_v46  ;;  %v3368_v37 = vrot.slane %v3367_v42, 2  ;;  %v14661_v60 = vld [vmem:[#allocation118_spill] sm:$0xff] }
 0x521   :  { %v3516_v39 = vsel %vm1377_vm2, %v2996_v7, 0.0  ;;  %v3461_v15 = vadd.f32 %v3460_v18, %v3459_v45  ;;  %v3504_v4 = vadd.f32 %v3503_v8, %v3502_v19  ;;  %v3697_v32 = vsel %vm2032_vm4, %v3326_v22, %v3696_v14  ;;  %v14662_v8 = vld [vmem:[#allocation150_spill] sm:$0xff] }
 0x522   :  { %v3525_v11 = vsel %vm1377_vm2, %v2998_v12, 0.0  ;;  %v3478_v59 = vrot.slane %v3477_v62, 1  ;;  %v3351_v26 = vadd.f32 %v3350_v44, %v3349_v29  ;;  %v3513_v50 = vadd.f32 %v3512_v24, %v3511_v2  ;;  %v14663_v12 = vld [vmem:[#allocation163_spill] sm:$0xff] }
 0x523   :  { %v3517_v63 = vsel %vm1377_vm2, %v2997_v36, 0.0  ;;  %v3334_v35 = vrot.slane %v3333_v55, 1  ;;  %v3487_v40 = vrot.slane %v3486_v43, 1  ;;  %v3360_v27 = vadd.f32 %v3359_v3, %v3358_v48 }
 0x524   :  { %v3470_v57 = vadd.f32 %v3469_v47, %v3468_v38  ;;  %v3343_v17 = vrot.slane %v3342_v34, 1  ;;  %v3496_v5 = vrot.slane %v3495_v58, 1  ;;  %v3369_v46 = vadd.f32 %v3368_v37, %v3367_v42 }
 0x525   :  { %v2999_v33 = vmul.f32 %v14656_v21, %v11079_v30  ;;  %v3000_v31 = vmul.f32 %v14658_v49, %v14657_v53  ;;  %v3505_v45 = vrot.slane %v3504_v4, 1  ;;  %v3710_v19 = vsel %vm2030_vm3, %v3461_v15, %v3452_v41 }
 0x526   :  { %v3001_v29 = vmul.f32 %v14660_v28, %v14659_v51  ;;  %v3479_v2 = vadd.f32 %v3478_v59, %v3477_v62  ;;  %v3352_v25 = vrot.slane %v3351_v26, 1  ;;  %v3514_v48 = vrot.slane %v3513_v50, 1 }
 0x527   :  { %v3335_v14 = vadd.f32 %v3334_v35, %v3333_v55  ;;  %v3488_v38 = vadd.f32 %v3487_v40, %v3486_v43  ;;  %v3361_v30 = vrot.slane %v3360_v27, 1  ;;  %v3344_v22 = vadd.f32 %v3343_v17, %v3342_v34  ;;  %v11484_v55 = vpop.permute.xlu1 %3915  ;;  %v14664_v34 = vld [vmem:[#allocation171_spill] sm:$0xff] }
 0x528   :  { %v3497_v7 = vadd.f32 %v3496_v5, %v3495_v58  ;;  %v3711_v18 = vsel %vm2032_vm4, %v3470_v57, %v3710_v19  ;;  %v3370_v41 = vrot.slane %v3369_v46, 1  ;;  %v3506_v56 = vadd.f32 %v3505_v45, %v3504_v4 }
 0x529   :  { %v7915_v1 = vpop.f32.mrb[24].mxu1  ;;  %v3526_v36 = vsel %vm1377_vm2, %v2999_v33, 0.0  ;;  %v3515_v43 = vadd.f32 %v3514_v48, %v3513_v50  ;;  %v3712_v3 = vsel %vm2034_vm5, %v3479_v2, %v3711_v18  ;;  %v3353_v47 = vadd.f32 %v3352_v25, %v3351_v26  ;;  %v14667_v2 = vld [vmem:[#allocation22_spill] sm:$0xff]  ;;  %v14668_v25 = vld [vmem:[#allocation9_spill] sm:$0xff] }
 0x52a   :  { %v11472_v0 = vadd.f32 %v7915_v1, %v14661_v60  ;;  %v3790_v42 = vpop.f32.mrb[25].mxu1  ;;  %v3713_v15 = vsel %vm2036_vm6, %v3488_v38, %v3712_v3  ;;  %v3362_v59 = vadd.f32 %v3361_v30, %v3360_v27  ;;  %v3518_v35 = vadd.f32 %v3517_v63, %v3516_v39  ;;  %v14676_v3 = vld [vmem:[#allocation26_spill] sm:$0xff] }
 0x52b   :  { %v7916_v20 = vpop.f32.mrb[26].mxu1  ;;  %v11476_v61 = vadd.f32 %v3790_v42, %v14662_v8  ;;  %v3714_v4 = vsel %vm2038_vm7, %v3497_v7, %v3713_v15  ;;  %v3371_v40 = vadd.f32 %v3370_v41, %v3369_v46  ;;  %v3698_v57 = vsel %vm2034_vm5, %v3335_v14, %v3697_v32  ;;  %v14665_v46 = vld [vmem:[#allocation187_spill] sm:$0xff]  ;;  %v11510_v28 = vpop.permute.xlu1 %3917  ;;  %v14671_v41 = vld [vmem:[#allocation181_spill] sm:$0xff]  ;;  %v14672_v8 = vld [vmem:[#allocation148_spill] sm:$0xff] }
 0x52c   :  { %v11479_v62 = vadd.f32 %v7916_v20, %v14663_v12  ;;  %v3793_v44 = vpop.f32.mrb[27].mxu1  ;;  %v3827_v24 = vsel %vm1377_vm2, %v11472_v0, -inf  ;;  %v3535_v50 = vsel %vm1377_vm2, %v3001_v29, 0.0  ;;  %v3715_v26 = vsel %vm2040_vm8, %v3506_v56, %v3714_v4  ;;  %v14666_v32 = vld [vmem:[#allocation139_spill] sm:$0xff]  ;;  %v14670_v20 = vld [vmem:[#allocation146_spill] sm:$0xff]  ;;  %v14674_v56 = vld [vmem:[#allocation144_spill] sm:$0xff] }
 0x52d   :  { %3828 = vmax.xlane.f32.xlu0 %v3827_v24  ;;  %v11488_v58 = vadd.f32 %v3793_v44, %v14664_v34  ;;  %v3821_v17 = vsel %vm1377_vm2, %v11476_v61, -inf  ;;  %v3699_v5 = vsel %vm2036_vm6, %v3344_v22, %v3698_v57  ;;  %v3527_v21 = vadd.f32 %v3526_v36, %v3525_v11  ;;  %v14669_v22 = vld [vmem:[#allocation186_spill] sm:$0xff]  ;;  %v14673_v24 = vld [vmem:[#allocation180_spill] sm:$0xff]  ;;  %v14677_v15 = vld [vmem:[#allocation189_spill] sm:$0xff] }
 0x52e   :  { %v3830_v37 = vsel %vm1377_vm2, %v11479_v62, -inf  ;;  %v3534_v33 = vsel %vm1377_vm2, %v3000_v31, 0.0  ;;  %v3716_v39 = vsel %vm2042_vm9, %v3515_v43, %v3715_v26  ;;  %v3700_v27 = vsel %vm2038_vm7, %v3353_v47, %v3699_v5  ;;  %v14675_v43 = vld [vmem:[#allocation182_spill] sm:$0xff]  ;;  %v14681_v5 = vld [vmem:[#allocation28_spill] sm:$0xff] }
 0x52f   :  { %3831 = vmax.xlane.f32.xlu1 %v3830_v37  ;;  %v2965_v53 = vmul.f32 %v14666_v32, %v14665_v46  ;;  %v3701_v45 = vsel %vm2040_vm8, %v3362_v59, %v3700_v27  ;;  %v3824_v51 = vsel %vm1377_vm2, %v11488_v58, -inf  ;;  %v3536_v11 = vadd.f32 %v3535_v50, %v3534_v33  ;;  %v14678_v59 = vld [vmem:[#allocation6_spill] sm:$0xff]  ;;  %v14682_v27 = vld [vmem:[#allocation188_spill] sm:$0xff] }
 0x530   :  { %v3702_v31 = vsel %vm2042_vm9, %v3371_v40, %v3701_v45  ;;  %v2964_v1 = vmul.f32 %v14668_v25, %v14667_v2  ;;  %v3519_v60 = vrot.slane %v3518_v35, 4  ;;  %v3528_v42 = vrot.slane %v3527_v21, 4  ;;  %v11539_v40 = vpop.permute.xlu1 %3919  ;;  %v14683_v46 = vld [vmem:[#allocation10_spill] sm:$0xff]  ;;  %v14684_v45 = vld [vmem:[#allocation147_spill] sm:$0xff]  ;;  %v14687_v25 = vld [vmem:[#allocation176_spill] sm:$0xff] }
 0x531   :  { %v7919_v63 = vpop.f32.mrb[28].mxu1  ;;  %3822 = vmax.xlane.f32.xlu0 %v3821_v17  ;;  %v3373_v30 = vsel %vm1377_vm2, %v2965_v53, 0.0  ;;  %v2967_v7 = vmul.f32 %v14670_v20, %v14669_v22  ;;  %v3537_v18 = vrot.slane %v3536_v11, 4  ;;  %v2969_v12 = vmul.f32 %v14672_v8, %v14671_v41  ;;  %14679 = vst [vmem:[#allocation199_spill] sm:$0xff] %v11539_v40  ;;  %v14680_v17 = vld [vmem:[#allocation191_spill] sm:$0xff]  ;;  %v8264_v53 = vld [vmem:[#allocation2 + $0x3b8] sm:$0xff] }
 0x532   :  { %v11505_v49 = vadd.f32 %v7919_v63, %v3716_v39  ;;  %v3806_v19 = vpop.f32.mrb[29].mxu1  ;;  %v3372_v44 = vsel %vm1377_vm2, %v2964_v1, 0.0  ;;  %v2966_v36 = vmul.f32 %v14674_v56, %v14673_v24  ;;  %v2968_v47 = vmul.f32 %v14676_v3, %v14675_v43  ;;  %v14688_v1 = vld [vmem:[#allocation158_spill] sm:$0xff]  ;;  %v14691_v41 = vld [vmem:[#allocation177_spill] sm:$0xff]  ;;  %v14695_v3 = vld [vmem:[#allocation20_spill] sm:$0xff] }
 0x533   :  { %v11513_v29 = vpop.f32.mrb[30].mxu1  ;;  %3825 = vmax.xlane.f32.xlu1 %v3824_v51  ;;  %v11517_v48 = vadd.f32 %v3806_v19, %v3702_v31  ;;  %v11535_v37 = vadd.f32 %v3373_v30, %v3372_v44  ;;  %v2970_v4 = vmul.f32 %v14678_v59, %v14677_v15  ;;  %v11541_v57 = vadd.f32 %v3519_v60, %v3518_v35  ;;  %v14685_v51 = vld [vmem:[#allocation175_spill] sm:$0xff]  ;;  %v14686_v31 = vld [vmem:[#allocation145_spill] sm:$0xff]  ;;  %v14689_v30 = vld [vmem:[#allocation178_spill] sm:$0xff] }
 0x534   :  { %v11519_v14 = vpop.f32.mrb[31].mxu1  ;;  %v3839_v38 = vsel %vm1377_vm2, %v11505_v49, -inf  ;;  %v11543_v50 = vadd.f32 %v3528_v42, %v3527_v21  ;;  %v3382_v26 = vsel %vm1377_vm2, %v2967_v7, 0.0  ;;  %v2972_v33 = vmul.f32 %v14681_v5, %v14680_v17  ;;  %v14690_v22 = vld [vmem:[#allocation166_spill] sm:$0xff]  ;;  %v14693_v44 = vld [vmem:[#allocation179_spill] sm:$0xff]  ;;  %v14697_v15 = vld [vmem:[#allocation185_spill] sm:$0xff] }
 0x535   :  { %3840 = vmax.xlane.f32.xlu0 %v3839_v38  ;;  %v3833_v34 = vsel %vm1377_vm2, %v11517_v48, -inf  ;;  %v11548_v39 = vadd.f32 %v3537_v18, %v3536_v11  ;;  %v3391_v63 = vsel %vm1377_vm2, %v2969_v12, 0.0  ;;  %v2971_v32 = vmul.f32 %v14683_v46, %v14682_v27  ;;  %v14692_v8 = vld [vmem:[#allocation154_spill] sm:$0xff]  ;;  %v14698_v59 = vld [vmem:[#allocation15_spill] sm:$0xff]  ;;  %v14702_v46 = vld [vmem:[#allocation184_spill] sm:$0xff] }
 0x536   :  { %v3003_v19 = vmul.f32 %v8264_v53, %v14684_v45  ;;  %v3381_v35 = vsel %vm1377_vm2, %v2966_v36, 0.0  ;;  %v3390_v21 = vsel %vm1377_vm2, %v2968_v47, 0.0  ;;  %v3002_v2 = vmul.f32 %v14686_v31, %v14685_v51  ;;  %v14694_v24 = vld [vmem:[#allocation170_spill] sm:$0xff]  ;;  %v14696_v47 = vld [vmem:[#allocation151_spill] sm:$0xff]  ;;  %v14703_v53 = vld [vmem:[#allocation12_spill] sm:$0xff] }
 0x537   :  { %v3005_v38 = vmul.f32 %v14688_v1, %v14687_v25  ;;  %v3375_v11 = vrot.slane %v11535_v37, 4  ;;  %v11561_v60 = vadd.f32 %v3382_v26, %v3381_v35  ;;  %v3399_v42 = vsel %vm1377_vm2, %v2970_v4, 0.0  ;;  %v11579_v26 = vpop.permute.xlu1 %5460  ;;  %v14700_v17 = vld [vmem:[#allocation183_spill] sm:$0xff]  ;;  %v14701_v5 = vld [vmem:[#allocation138_spill] sm:$0xff]  ;;  %v14704_v45 = vld [vmem:[#allocation193_spill] sm:$0xff] }
 0x538   :  { %v3007_v20 = vmul.f32 %v14690_v22, %v14689_v30  ;;  %v11566_v7 = vadd.f32 %v3391_v63, %v3390_v21  ;;  %v3408_v18 = vsel %vm1377_vm2, %v2972_v33, 0.0  ;;  %v3004_v12 = vmul.f32 %v14692_v8, %v14691_v41  ;;  %14699 = vst [vmem:[#allocation200_spill] sm:$0xff] %v11579_v26  ;;  %v14706_v21 = vld [vmem:[#allocation190_spill] sm:$0xff]  ;;  %v14707_v51 = vld [vmem:[#allocation149_spill] sm:$0xff]  ;;  %v14709_v30 = vld [vmem:[#allocation167_spill] sm:$0xff] }
 0x539   :  { %3834 = vmax.xlane.f32.xlu0 %v3833_v34  ;;  %v3009_v56 = vmul.f32 %v14694_v24, %v14693_v44  ;;  %v3400_v36 = vsel %vm1377_vm2, %v2971_v32, 0.0  ;;  %v3544_v43 = vsel %vm1377_vm2, %v3003_v19, 0.0  ;;  %v3006_v34 = vmul.f32 %v14696_v47, %v14695_v3  ;;  %v14705_v19 = vld [vmem:[#allocation19_spill] sm:$0xff]  ;;  %v14708_v1 = vld [vmem:[#allocation21_spill] sm:$0xff]  ;;  %v14711_v44 = vld [vmem:[#allocation156_spill] sm:$0xff] }
 0x53a   :  { %v3011_v4 = vmul.f32 %v14698_v59, %v14697_v15  ;;  %v2973_v33 = vmul.f32 %v14701_v5, %v14700_v17  ;;  %v3543_v63 = vsel %vm1377_vm2, %v3002_v2, 0.0  ;;  %v3553_v27 = vsel %vm1377_vm2, %v3005_v38, 0.0  ;;  %v14710_v2 = vld [vmem:[#allocation192_spill] sm:$0xff]  ;;  %v14712_v15 = vld [vmem:[#allocation194_spill] sm:$0xff] }
 0x53b   :  { %v3008_v32 = vmul.f32 %v14703_v53, %v14702_v46  ;;  %v2974_v35 = vmul.f32 %v14705_v19, %v14704_v45  ;;  %v2975_v31 = vmul.f32 %v14707_v51, %v14706_v21  ;;  %v3562_v25 = vsel %vm1377_vm2, %v3007_v20, 0.0  ;;  %v14713_v59 = vld [vmem:[#allocation140_spill] sm:$0xff]  ;;  %v14714_v46 = vld [vmem:[#allocation197_spill] sm:$0xff]  ;;  %v14718_v19 = vld [vmem:[#allocation159_spill] sm:$0xff] }
 0x53c   :  { %v3010_v22 = vmul.f32 %v14709_v30, %v14708_v1  ;;  %v3545_v41 = vadd.f32 %v3544_v43, %v3543_v63  ;;  %v3552_v8 = vsel %vm1377_vm2, %v3004_v12, 0.0  ;;  %v2977_v38 = vmul.f32 %v14711_v44, %v14710_v2  ;;  %v14715_v53 = vld [vmem:[#allocation160_spill] sm:$0xff]  ;;  %v11611_v1 = vpop.permute.xlu1 %5462 }
 0x53d   :  { %v3571_v24 = vsel %vm1377_vm2, %v3009_v56, 0.0  ;;  %v3554_v3 = vadd.f32 %v3553_v27, %v3552_v8  ;;  %v3561_v47 = vsel %vm1377_vm2, %v3006_v34, 0.0  ;;  %v2979_v17 = vmul.f32 %v14713_v59, %v14712_v15  ;;  %v14716_v45 = vld [vmem:[#allocation52_spill] sm:$0xff]  ;;  %v14717_v27 = vld [vmem:[#allocation198_spill] sm:$0xff]  ;;  %14719 = vst [vmem:[#allocation201_spill] sm:$0xff] %v11611_v1 }
 0x53e   :  { %v3580_v5 = vsel %vm1377_vm2, %v3011_v4, 0.0  ;;  %v3409_v20 = vsel %vm1377_vm2, %v2973_v33, 0.0  ;;  %v2976_v43 = vmul.f32 %v14715_v53, %v14714_v46  ;;  %v3563_v63 = vadd.f32 %v3562_v25, %v3561_v47 }
 0x53f   :  { %v3570_v12 = vsel %vm1377_vm2, %v3008_v32, 0.0  ;;  %v3418_v56 = vsel %vm1377_vm2, %v2975_v31, 0.0  ;;  %v2978_v34 = vmul.f32 %v14718_v19, %v14717_v27  ;;  %v3579_v51 = vsel %vm1377_vm2, %v3010_v22, 0.0  ;;  %v11616_v31 = vpop.permute.xlu0 %5458 }
 0x540   :  { %v3572_v21 = vadd.f32 %v3571_v24, %v3570_v12  ;;  %v3401_v4 = vadd.f32 %v3400_v36, %v3399_v42  ;;  %v3546_v33 = vrot.slane %v3545_v41, 4  ;;  %v3427_v30 = vsel %vm1377_vm2, %v2977_v38, 0.0  ;;  %14720 = vst [vmem:[#allocation202_spill] sm:$0xff] %v11616_v31 }
 0x541   :  { %v3581_v8 = vadd.f32 %v3580_v5, %v3579_v51  ;;  %v3410_v25 = vadd.f32 %v3409_v20, %v3408_v18  ;;  %v3417_v32 = vsel %vm1377_vm2, %v2974_v35, 0.0  ;;  %v3555_v2 = vrot.slane %v3554_v3, 4 }
 0x542   :  { %v3436_v44 = vsel %vm1377_vm2, %v2979_v17, 0.0  ;;  %v3384_v47 = vrot.slane %v11561_v60, 4  ;;  %v3419_v24 = vadd.f32 %v3418_v56, %v3417_v32  ;;  %v3426_v22 = vsel %vm1377_vm2, %v2976_v43, 0.0  ;;  %v11624_v56 = vpop.permute.xlu1 %5464 }
 0x543   :  { %v3564_v15 = vrot.slane %v3563_v63, 4  ;;  %v3393_v42 = vrot.slane %v11566_v7, 4  ;;  %v3428_v36 = vadd.f32 %v3427_v30, %v3426_v22  ;;  %v3435_v38 = vsel %vm1377_vm2, %v2978_v34, 0.0  ;;  %14721 = vst [vmem:[#allocation195_spill] sm:$0xff] %v11624_v56  ;;  %v11632_v32 = vpop.permute.xlu0 %4051 }
 0x544   :  { %4341 = vbcast.lane.b32.xlu1 %v14716_v45, 264  ;;  %v3573_v59 = vrot.slane %v3572_v21, 4  ;;  %v3402_v18 = vrot.slane %v3401_v4, 4  ;;  %v3547_v5 = vadd.f32 %v3546_v33, %v3545_v41  ;;  %v3437_v35 = vadd.f32 %v3436_v44, %v3435_v38  ;;  %14722 = vst [vmem:[#allocation196_spill] sm:$0xff] %v11632_v32 }
 0x545   :  { %v3582_v20 = vrot.slane %v3581_v8, 4  ;;  %v3521_v17 = vrot.slane %v11541_v57, 2  ;;  %v3530_v46 = vrot.slane %v11543_v50, 2  ;;  %v3411_v53 = vrot.slane %v3410_v25, 4 }
 0x546   :  { %v3556_v12 = vadd.f32 %v3555_v2, %v3554_v3  ;;  %v3539_v43 = vrot.slane %v11548_v39, 2  ;;  %v3385_v27 = vadd.f32 %v3384_v47, %v11561_v60  ;;  %v3420_v19 = vrot.slane %v3419_v24, 4 }
 0x547   :  { %v3565_v51 = vadd.f32 %v3564_v15, %v3563_v63  ;;  %v3376_v41 = vadd.f32 %v3375_v11, %v11535_v37  ;;  %v3394_v34 = vadd.f32 %v3393_v42, %v11566_v7  ;;  %v3429_v33 = vrot.slane %v3428_v36, 4 }
 0x548   :  { %v3574_v30 = vadd.f32 %v3573_v59, %v3572_v21  ;;  %v3403_v44 = vadd.f32 %v3402_v18, %v3401_v4  ;;  %v3548_v3 = vrot.slane %v3547_v5, 2  ;;  %v3438_v2 = vrot.slane %v3437_v35, 4  ;;  %v11638_v18 = vpop.permute.xlu1 %4055 }
 0x549   :  { %v3583_v22 = vadd.f32 %v3582_v20, %v3581_v8  ;;  %v3522_v38 = vadd.f32 %v3521_v17, %v11541_v57  ;;  %v3531_v60 = vadd.f32 %v3530_v46, %v11543_v50  ;;  %v3412_v47 = vadd.f32 %v3411_v53, %v3410_v25  ;;  %14723 = vst [vmem:[#allocation203_spill] sm:$0xff] %v11638_v18 }
 0x54a   :  { %v3557_v63 = vrot.slane %v3556_v12, 2  ;;  %v3540_v37 = vadd.f32 %v3539_v43, %v11548_v39  ;;  %v3386_v11 = vrot.slane %v3385_v27, 2  ;;  %v3421_v7 = vadd.f32 %v3420_v19, %v3419_v24 }
 0x54b   :  { %v3566_v15 = vrot.slane %v3565_v51, 2  ;;  %v3377_v21 = vrot.slane %v3376_v41, 2  ;;  %v3395_v42 = vrot.slane %v3394_v34, 2  ;;  %v3430_v59 = vadd.f32 %v3429_v33, %v3428_v36 }
 0x54c   :  { %v3575_v4 = vrot.slane %v3574_v30, 2  ;;  %v3404_v8 = vrot.slane %v3403_v44, 2  ;;  %v3549_v20 = vadd.f32 %v3548_v3, %v3547_v5  ;;  %v3439_v57 = vadd.f32 %v3438_v2, %v3437_v35  ;;  %v11642_v40 = vpop.permute.xlu1 %4066 }
 0x54d   :  { %v3584_v17 = vrot.slane %v3583_v22, 2  ;;  %v3523_v50 = vrot.slane %v3522_v38, 1  ;;  %v3532_v25 = vrot.slane %v3531_v60, 1  ;;  %v3413_v46 = vrot.slane %v3412_v47, 2 }
 0x54e   :  { %v3558_v53 = vadd.f32 %v3557_v63, %v3556_v12  ;;  %v3541_v39 = vrot.slane %v3540_v37, 1  ;;  %v3387_v43 = vadd.f32 %v3386_v11, %v3385_v27  ;;  %v3422_v24 = vrot.slane %v3421_v7, 2 }
 0x54f   :  { %4337 = vbcast.lane.b32.xlu0 %v14716_v45, 256  ;;  %v11640_v45 = vpop.permute.xlu0 %4062  ;;  %v3567_v19 = vadd.f32 %v3566_v15, %v3565_v51  ;;  %v3378_v32 = vadd.f32 %v3377_v21, %v3376_v41  ;;  %v3396_v56 = vadd.f32 %v3395_v42, %v3394_v34  ;;  %v3431_v36 = vrot.slane %v3430_v59, 2 }
 0x550   :  { %14724 = vst [vmem:[#allocation204_spill] sm:$0xff] %v11640_v45  ;;  %v3576_v33 = vadd.f32 %v3575_v4, %v3574_v30  ;;  %v3405_v1 = vadd.f32 %v3404_v8, %v3403_v44  ;;  %v3550_v18 = vrot.slane %v3549_v20, 1  ;;  %v3440_v26 = vrot.slane %v3439_v57, 2 }
 0x551   :  { %v3585_v5 = vadd.f32 %v3584_v17, %v3583_v22  ;;  %v3524_v35 = vadd.f32 %v3523_v50, %v3522_v38  ;;  %v3533_v3 = vadd.f32 %v3532_v25, %v3531_v60  ;;  %v3414_v2 = vadd.f32 %v3413_v46, %v3412_v47  ;;  %v11648_v50 = vpop.permute.xlu1 %4143 }
 0x552   :  { %v3559_v31 = vrot.slane %v3558_v53, 1  ;;  %v3542_v12 = vadd.f32 %v3541_v39, %v3540_v37  ;;  %v3388_v63 = vrot.slane %v3387_v43, 1  ;;  %v3423_v45 = vadd.f32 %v3422_v24, %v3421_v7 }
 0x553   :  { %v3568_v27 = vrot.slane %v3567_v19, 1  ;;  %v3379_v11 = vrot.slane %v3378_v32, 1  ;;  %v3397_v51 = vrot.slane %v3396_v56, 1  ;;  %v3432_v41 = vadd.f32 %v3431_v36, %v3430_v59  ;;  %v11644_v34 = vpop.permute.xlu0 %4139 }
 0x554   :  { %v3577_v30 = vrot.slane %v3576_v33, 1  ;;  %v3406_v44 = vrot.slane %v3405_v1, 1  ;;  %v3551_v15 = vadd.f32 %v3550_v18, %v3549_v20  ;;  %v3586_v21 = vrot.slane %v3585_v5, 1 }
 0x555   :  { %v3441_v22 = vadd.f32 %v3440_v26, %v3439_v57  ;;  %v3415_v38 = vrot.slane %v3414_v2, 1  ;;  %v3560_v60 = vadd.f32 %v3559_v31, %v3558_v53  ;;  %v3717_v47 = vsel %vm2030_vm3, %v3533_v3, %v3524_v35 }
 0x556   :  { %v3389_v42 = vadd.f32 %v3388_v63, %v3387_v43  ;;  %v3424_v4 = vrot.slane %v3423_v45, 1  ;;  %v3569_v37 = vadd.f32 %v3568_v27, %v3567_v19  ;;  %v3718_v7 = vsel %vm2032_vm4, %v3542_v12, %v3717_v47 }
 0x557   :  { %v3380_v8 = vadd.f32 %v3379_v11, %v3378_v32  ;;  %v3398_v17 = vadd.f32 %v3397_v51, %v3396_v56  ;;  %v3578_v59 = vadd.f32 %v3577_v30, %v3576_v33  ;;  %v3433_v25 = vrot.slane %v3432_v41, 1  ;;  %v11651_v31 = vpop.permute.xlu0 %4150 }
 0x558   :  { %v3407_v46 = vadd.f32 %v3406_v44, %v3405_v1  ;;  %v3587_v39 = vadd.f32 %v3586_v21, %v3585_v5  ;;  %v3719_v18 = vsel %vm2034_vm5, %v3551_v15, %v3718_v7  ;;  %v3442_v26 = vrot.slane %v3441_v22, 1  ;;  %v11660_v5 = vpop.permute.xlu1 %4154 }
 0x559   :  { %v3416_v20 = vadd.f32 %v3415_v38, %v3414_v2  ;;  %v3720_v57 = vsel %vm2036_vm6, %v3560_v60, %v3719_v18  ;;  %v3425_v43 = vadd.f32 %v3424_v4, %v3423_v45  ;;  %v3703_v32 = vsel %vm2030_vm3, %v3389_v42, %v3380_v8 }
 0x55a   :  { %v3721_v53 = vsel %vm2038_vm7, %v3569_v37, %v3720_v57  ;;  %v3434_v24 = vadd.f32 %v3433_v25, %v3432_v41  ;;  %v3704_v19 = vsel %vm2032_vm4, %v3398_v17, %v3703_v32  ;;  %v3443_v36 = vadd.f32 %v3442_v26, %v3441_v22 }
 0x55b   :  { %v3722_v56 = vsel %vm2040_vm8, %v3578_v59, %v3721_v53  ;;  %v3705_v33 = vsel %vm2034_vm5, %v3407_v46, %v3704_v19  ;;  %v11667_v2 = vpop.permute.xlu0 %4073 }
 0x55c   :  { %v3723_v1 = vsel %vm2042_vm9, %v3587_v39, %v3722_v56  ;;  %v3706_v3 = vsel %vm2036_vm6, %v3416_v20, %v3705_v33  ;;  %v11676_v51 = vpop.permute.xlu1 %4077 }
 0x55d   :  { %v11663_v35 = vadd.f32 %v11513_v29, %v3723_v1  ;;  %v3707_v45 = vsel %vm2038_vm7, %v3425_v43, %v3706_v3 }
 0x55e   :  { %v3708_v12 = vsel %vm2040_vm8, %v3434_v24, %v3707_v45 }
 0x55f   :  { %v3709_v63 = vsel %vm2042_vm9, %v3443_v36, %v3708_v12  ;;  %v3842_v11 = vsel %vm1377_vm2, %v11663_v35, -inf  ;;  %v11678_v29 = vpop.permute.xlu0 %4161 }
 0x560   :  { %v11672_v27 = vadd.f32 %v11519_v14, %v3709_v63  ;;  %v11682_v30 = vpop.permute.xlu1 %4165 }
 0x562   :  { %v3836_v41 = vsel %vm1377_vm2, %v11672_v27, -inf }
 0x563   :  { %v11684_v44 = vpop.permute.xlu0 %4227 }
 0x564   :  { %v11686_v15 = vpop.permute.xlu1 %4231 }
 0x567   :  { %v11688_v14 = vpop.permute.xlu0 %4238 }
 0x568   :  { %3843 = vmax.xlane.f32.xlu1 %v3842_v11  ;;  %v11690_v21 = vpop.permute.xlu1 %4242 }
 0x56b   :  { %v11692_v22 = vpop.permute.xlu0 %4315 }
 0x56c   :  { %3837 = vmax.xlane.f32.xlu1 %v3836_v41  ;;  %v11694_v38 = vpop.permute.xlu1 %4319 }
 0x56f   :  { %v11696_v60 = vpop.permute.xlu0 %4326 }
 0x570   :  { %v11698_v47 = vpop.permute.xlu1 %4330 }
 0x573   :  { %v11700_v42 = vpop.permute.xlu0 %4084 }
 0x574   :  { %v11702_v4 = vpop.permute.xlu1 %4088 }
 0x577   :  { %v11704_v37 = vpop.permute.xlu0 %4172 }
 0x578   :  { %v11706_v7 = vpop.permute.xlu1 %4176 }
 0x57b   :  { %v11708_v8 = vpop.permute.xlu0 %4249 }
 0x57c   :  { %v11710_v17 = vpop.permute.xlu1 %4253 }
 0x599   :  { %v2199_v59 = vpop.xlane.xlu0 %2198 }
 0x59a   :  { %v2217_v25 = vsub.f32 %v11352_v9, %v2199_v59 }
 0x59c   :  { %v2227_v46 = vmul.f32 1.442695, %v2217_v25  ;;  %v2196_v39 = vpop.xlane.xlu1 %2195 }
 0x59d   :  { %v2193_v18 = vpop.xlane.xlu0 %2192  ;;  %v2216_v20 = vsub.f32 %v11377_v6, %v2196_v39 }
 0x59e   :  { %8122 = vpow2.f32 %v2227_v46  ;;  %v2215_v26 = vsub.f32 %v11363_v52, %v2193_v18 }
 0x59f   :  { %v2225_v56 = vmul.f32 1.442695, %v2216_v20 }
 0x5a0   :  { %v2223_v57 = vmul.f32 1.442695, %v2215_v26 }
 0x5a1   :  { %v2202_v53 = vpop.xlane.xlu0 %2201 }
 0x5a2   :  { %v2218_v43 = vsub.f32 %v11386_v16, %v2202_v53  ;;  %8124 = vpow2.f32 %v2223_v57 }
 0x5a3   :  { %v2214_v32 = vpop.xlane.xlu1 %2213 }
 0x5a4   :  { %v2229_v24 = vmul.f32 1.442695, %v2218_v43  ;;  %v2222_v36 = vsub.f32 %v11410_v23, %v2214_v32 }
 0x5a5   :  { %v2211_v19 = vpop.xlane.xlu0 %2210 }
 0x5a6   :  { %8126 = vpow2.f32 %v2229_v24  ;;  %v2221_v9 = vsub.f32 %v11407_v54, %v2211_v19  ;;  %v2237_v45 = vmul.f32 1.442695, %v2222_v36 }
 0x5a7   :  { %8128 = vpow2.f32 %v2225_v56  ;;  %v2208_v33 = vpop.xlane.xlu1 %2207 }
 0x5a8   :  { %v11717_v1 = vpop.eup %8122  ;;  %v2235_v52 = vmul.f32 1.442695, %v2221_v9  ;;  %v2220_v12 = vsub.f32 %v11417_v13, %v2208_v33 }
 0x5a9   :  { %v2205_v6 = vpop.xlane.xlu0 %2204  ;;  %v2245_v3 = vsel %vm1377_vm2, %v11717_v1, 0.0 }
 0x5aa   :  { %v2219_v16 = vsub.f32 %v11424_v10, %v2205_v6  ;;  %2246 = vadd.xlane.f32.xlu0 %v2245_v3  ;;  %8130 = vpow2.f32 %v2235_v52  ;;  %v2233_v41 = vmul.f32 1.442695, %v2220_v12 }
 0x5ac   :  { %v2231_v63 = vmul.f32 1.442695, %v2219_v16  ;;  %v11724_v54 = vpop.eup %8124 }
 0x5ad   :  { %v2239_v23 = vsel %vm1377_vm2, %v11724_v54, 0.0 }
 0x5ae   :  { %8132 = vpow2.f32 %v2231_v63  ;;  %2240 = vadd.xlane.f32.xlu0 %v2239_v23 }
 0x5af   :  { %8134 = vpow2.f32 %v2237_v45 }
 0x5b0   :  { %v11728_v11 = vpop.eup %8126  ;;  %8136 = vpow2.f32 %v2233_v41  ;;  %v14725_v41 = vld [vmem:[#allocation54_spill] sm:$0xff] }
 0x5b1   :  { %v2248_v10 = vsel %vm1377_vm2, %v11728_v11, 0.0  ;;  %v11732_v59 = vpop.eup %8128 }
 0x5b2   :  { %2249 = vadd.xlane.f32.xlu1 %v2248_v10  ;;  %v2242_v13 = vsel %vm1377_vm2, %v11732_v59, 0.0  ;;  %v14726_v10 = vld [vmem:[#allocation55_spill] sm:$0xff] }
 0x5b4   :  { %v11736_v25 = vpop.eup %8130 }
 0x5b5   :  { %v2257_v39 = vsel %vm1377_vm2, %v11736_v25, 0.0 }
 0x5b6   :  { %2243 = vadd.xlane.f32.xlu1 %v2242_v13  ;;  %v14727_v13 = vld [vmem:[#allocation57_spill] sm:$0xff] }
 0x5b8   :  { %v11738_v46 = vpop.eup %8132 }
 0x5b9   :  { %v2251_v18 = vsel %vm1377_vm2, %v11738_v46, 0.0  ;;  %v11744_v26 = vpop.eup %8134 }
 0x5ba   :  { %v3829_v20 = vpop.xlane.xlu0 %3828  ;;  %2258 = vadd.xlane.f32.xlu1 %v2257_v39  ;;  %2252 = vadd.xlane.f32.xlu0 %v2251_v18  ;;  %v2260_v56 = vsel %vm1377_vm2, %v11744_v26, 0.0  ;;  %v11750_v24 = vpop.eup %8136  ;;  %v14728_v39 = vld [vmem:[#allocation58_spill] sm:$0xff] }
 0x5bb   :  { %v3847_v57 = vsub.f32 %v11472_v0, %v3829_v20  ;;  %v2254_v6 = vsel %vm1377_vm2, %v11750_v24, 0.0  ;;  %v14729_v20 = vld [vmem:[#allocation59_spill] sm:$0xff] }
 0x5bc   :  { %v3832_v53 = vpop.xlane.xlu1 %3831 }
 0x5bd   :  { %v3857_v43 = vmul.f32 1.442695, %v3847_v57  ;;  %v3848_v32 = vsub.f32 %v11479_v62, %v3832_v53 }
 0x5be   :  { %v3823_v19 = vpop.xlane.xlu0 %3822  ;;  %2261 = vadd.xlane.f32.xlu1 %v2260_v56 }
 0x5bf   :  { %8138 = vpow2.f32 %v3857_v43  ;;  %v3859_v9 = vmul.f32 1.442695, %v3848_v32  ;;  %v3845_v36 = vsub.f32 %v11476_v61, %v3823_v19  ;;  %v14730_v32 = vld [vmem:[#allocation60_spill] sm:$0xff] }
 0x5c0   :  { %v3826_v52 = vpop.xlane.xlu1 %3825 }
 0x5c1   :  { %8140 = vpow2.f32 %v3859_v9  ;;  %v3853_v33 = vmul.f32 1.442695, %v3845_v36  ;;  %v3846_v0 = vsub.f32 %v11488_v58, %v3826_v52  ;;  %v14731_v36 = vld [vmem:[#allocation61_spill] sm:$0xff] }
 0x5c2   :  { %2255 = vadd.xlane.f32.xlu1 %v2254_v6  ;;  %v3841_v18 = vpop.xlane.xlu0 %3840 }
 0x5c3   :  { %8142 = vpow2.f32 %v3853_v33  ;;  %v3855_v62 = vmul.f32 1.442695, %v3846_v0  ;;  %v3851_v57 = vsub.f32 %v11505_v49, %v3841_v18  ;;  %v14732_v0 = vld [vmem:[#allocation62_spill] sm:$0xff]  ;;  %v14733_v49 = vld [vmem:[#allocation63_spill] sm:$0xff] }
 0x5c4   :  { %v11779_v53 = vpop.permute.xlu1 %4341  ;;  %v14736_v18 = vld [vmem:[#allocation66_spill] sm:$0xff] }
 0x5c5   :  { %8144 = vpow2.f32 %v3855_v62  ;;  %v3865_v56 = vmul.f32 1.442695, %v3851_v57 }
 0x5c6   :  { %v3835_v43 = vpop.xlane.xlu0 %3834 }
 0x5c7   :  { %v3849_v19 = vsub.f32 %v11517_v48, %v3835_v43  ;;  %8146 = vpow2.f32 %v3865_v56  ;;  %v14737_v43 = vld [vmem:[#allocation67_spill] sm:$0xff] }
 0x5c9   :  { %v11756_v3 = vpop.eup %8138  ;;  %v3861_v52 = vmul.f32 1.442695, %v3849_v19 }
 0x5ca   :  { %v3875_v16 = vsel %vm1377_vm2, %v11756_v3, 0.0 }
 0x5cb   :  { %v11760_v45 = vpop.eup %8140  ;;  %3876 = vadd.xlane.f32.xlu0 %v3875_v16  ;;  %8148 = vpow2.f32 %v3861_v52  ;;  %v14734_v16 = vld [vmem:[#allocation64_spill] sm:$0xff] }
 0x5cc   :  { %v3878_v58 = vsel %vm1377_vm2, %v11760_v45, 0.0 }
 0x5cd   :  { %v11762_v61 = vpop.eup %8142 }
 0x5ce   :  { %v3869_v12 = vsel %vm1377_vm2, %v11762_v61, 0.0 }
 0x5cf   :  { %v11768_v63 = vpop.eup %8144  ;;  %3879 = vadd.xlane.f32.xlu0 %v3878_v58  ;;  %3870 = vadd.xlane.f32.xlu1 %v3869_v12  ;;  %v14735_v12 = vld [vmem:[#allocation65_spill] sm:$0xff] }
 0x5d0   :  { %v3872_v23 = vsel %vm1377_vm2, %v11768_v63, 0.0 }
 0x5d1   :  { %v11787_v62 = vpop.eup %8146 }
 0x5d2   :  { %v3887_v48 = vsel %vm1377_vm2, %v11787_v62, 0.0 }
 0x5d3   :  { %3873 = vadd.xlane.f32.xlu0 %v3872_v23 }
 0x5d5   :  { %v11792_v58 = vpop.eup %8148 }
 0x5e0   :  { %4099 = vbcast.lane.b32.xlu1 %v14725_v41, 264 }
 0x5e4   :  { %4187 = vbcast.lane.b32.xlu1 %v14726_v10, 264 }
 0x5e8   :  { %4264 = vbcast.lane.b32.xlu1 %v14727_v13, 264 }
 0x5e9   :  { %4095 = vbcast.lane.b32.xlu0 %v14725_v41, 256 }
 0x5ec   :  { %4352 = vbcast.lane.b32.xlu1 %v14728_v39, 264 }
 0x5f0   :  { %4110 = vbcast.lane.b32.xlu1 %v14729_v20, 264 }
 0x5f4   :  { %4198 = vbcast.lane.b32.xlu1 %v14730_v32, 264 }
 0x5f5   :  { %v3844_v9 = vpop.xlane.xlu1 %3843 }
 0x5f6   :  { %v3852_v33 = vsub.f32 %v11663_v35, %v3844_v9  ;;  %v3881_v35 = vsel %vm1377_vm2, %v11792_v58, 0.0 }
 0x5f8   :  { %4275 = vbcast.lane.b32.xlu1 %v14731_v36, 264  ;;  %v3867_v6 = vmul.f32 1.442695, %v3852_v33 }
 0x5f9   :  { %v3838_v56 = vpop.xlane.xlu1 %3837 }
 0x5fa   :  { %8150 = vpow2.f32 %v3867_v6  ;;  %v3850_v19 = vsub.f32 %v11672_v27, %v3838_v56  ;;  %v11812_v6 = vpop.permute.xlu0 %4337  ;;  %v14738_v56 = vld [vmem:[#allocation68_spill] sm:$0xff] }
 0x5fc   :  { %4363 = vbcast.lane.b32.xlu1 %v14732_v0, 264  ;;  %v3863_v9 = vmul.f32 1.442695, %v3850_v19 }
 0x5fe   :  { %8152 = vpow2.f32 %v3863_v9  ;;  %v14739_v9 = vld [vmem:[#allocation69_spill] sm:$0xff] }
 0x600   :  { %4121 = vbcast.lane.b32.xlu1 %v14733_v49, 264 }
 0x604   :  { %4209 = vbcast.lane.b32.xlu1 %v14734_v16, 264  ;;  %v11797_v23 = vpop.eup %8150 }
 0x605   :  { %v3890_v57 = vsel %vm1377_vm2, %v11797_v23, 0.0 }
 0x608   :  { %4286 = vbcast.lane.b32.xlu1 %v14735_v12, 264  ;;  %3888 = vadd.xlane.f32.xlu0 %v3887_v48  ;;  %v11807_v52 = vpop.eup %8152 }
 0x609   :  { %v3884_v33 = vsel %vm1377_vm2, %v11807_v52, 0.0 }
 0x60c   :  { %4374 = vbcast.lane.b32.xlu1 %v14736_v18, 264  ;;  %3882 = vadd.xlane.f32.xlu0 %v3881_v35 }
 0x610   :  { %4132 = vbcast.lane.b32.xlu1 %v14737_v43, 264  ;;  %3891 = vadd.xlane.f32.xlu0 %v3890_v57 }
 0x626   :  { %4183 = vbcast.lane.b32.xlu0 %v14726_v10, 256 }
 0x62a   :  { %4260 = vbcast.lane.b32.xlu0 %v14727_v13, 256 }
 0x62e   :  { %4348 = vbcast.lane.b32.xlu0 %v14728_v39, 256  ;;  %v14741_v39 = vld [vmem:[#allocation71_spill] sm:$0xff] }
 0x632   :  { %4106 = vbcast.lane.b32.xlu0 %v14729_v20, 256 }
 0x634   :  { %3885 = vadd.xlane.f32.xlu1 %v3884_v33 }
 0x636   :  { %4194 = vbcast.lane.b32.xlu0 %v14730_v32, 256 }
 0x637   :  { %v2247_v27 = vpop.xlane.xlu0 %2246 }
 0x63a   :  { %4271 = vbcast.lane.b32.xlu0 %v14731_v36, 256 }
 0x63b   :  { %v2241_v48 = vpop.xlane.xlu0 %2240 }
 0x63e   :  { %4359 = vbcast.lane.b32.xlu0 %v14732_v0, 256 }
 0x63f   :  { %v2250_v35 = vpop.xlane.xlu1 %2249 }
 0x640   :  { %8154 = vrcp.f32 %v2250_v35 }
 0x641   :  { %8156 = vrcp.f32 %v2241_v48  ;;  %v14740_v48 = vld [vmem:[#allocation70_spill] sm:$0xff] }
 0x642   :  { %4117 = vbcast.lane.b32.xlu0 %v14733_v49, 256  ;;  %8158 = vrcp.f32 %v2247_v27 }
 0x643   :  { %v2244_v57 = vpop.xlane.xlu1 %2243 }
 0x644   :  { %8160 = vrcp.f32 %v2244_v57 }
 0x645   :  { %4220 = vbcast.lane.b32.xlu1 %v14738_v56, 264 }
 0x646   :  { %4205 = vbcast.lane.b32.xlu0 %v14734_v16, 256 }
 0x647   :  { %v2259_v19 = vpop.xlane.xlu1 %2258  ;;  %v2253_v0 = vpop.xlane.xlu0 %2252 }
 0x649   :  { %4297 = vbcast.lane.b32.xlu1 %v14739_v9, 264 }
 0x64a   :  { %4282 = vbcast.lane.b32.xlu0 %v14735_v12, 256  ;;  %v8155_v33 = vpop.eup %8154 }
 0x64b   :  { %v2262_v36 = vpop.xlane.xlu1 %2261  ;;  %v8157_v32 = vpop.eup %8156  ;;  %v2274_v57 = vmul.f32 %v8155_v33, %v11728_v11  ;;  %v14742_v11 = vld [vmem:[#allocation72_spill] sm:$0xff] }
 0x64c   :  { %v8159_v35 = vpop.eup %8158  ;;  %8162 = vrcp.f32 %v2262_v36  ;;  %v2271_v49 = vmul.f32 %v8157_v32, %v11724_v54 }
 0x64d   :  { %4385 = vbcast.lane.b32.xlu1 %v14740_v48, 264  ;;  %8164 = vrcp.f32 %v2253_v0  ;;  %v2273_v20 = vmul.f32 %v8159_v35, %v11717_v1  ;;  %v14743_v0 = vld [vmem:[#allocation172_spill] sm:$0xff] }
 0x64e   :  { %v8161_v27 = vpop.eup %8160  ;;  %4370 = vbcast.lane.b32.xlu0 %v14736_v18, 256  ;;  %8166 = vrcp.f32 %v2259_v19 }
 0x64f   :  { %v2256_v16 = vpop.xlane.xlu1 %2255  ;;  %v2272_v12 = vmul.f32 %v8161_v27, %v11732_v59  ;;  %v2280_v13 = vpack.c.bf16 %v2274_v57, %v2273_v20  ;;  %v14745_v27 = vld [vmem:[#allocation74_spill] sm:$0xff]  ;;  %v14746_v57 = vld [vmem:[#allocation199_spill] sm:$0xff] }
 0x650   :  { %8168 = vrcp.f32 %v2256_v16 }
 0x651   :  { %4308 = vbcast.lane.b32.xlu1 %v14741_v39, 264  ;;  %v2279_v36 = vpack.c.bf16 %v2272_v12, %v2271_v49  ;;  %v14744_v49 = vld [vmem:[#allocation73_spill] sm:$0xff] }
 0x652   :  { %4128 = vbcast.lane.b32.xlu0 %v14737_v43, 256  ;;  %v14779_v43 = vld [vmem:[#allocation98_spill] sm:$0xff] }
 0x653   :  { %7897 = vmatprep.mubr.msk.bf16.mxu0 %vm1377_vm2, %v2279_v36 }
 0x654   :  { %7898 = vmatmul.mubr.msk.bf16.vlgmr.msra.gmra.mrb[0].mxu0 %vm1377_vm2, %v2280_v13 }
 0x655   :  { %4396 = vbcast.lane.b32.xlu1 %v14742_v11, 264  ;;  %7922 = vmatpush3.bf16.msra.mxu0 %v14743_v0 }
 0x656   :  { %4216 = vbcast.lane.b32.xlu0 %v14738_v56, 256  ;;  %7923 = vmatprep.subr.bf16.mxu0 %v11484_v55  ;;  %v8163_v54 = vpop.eup %8162 }
 0x657   :  { %v8165_v1 = vpop.eup %8164  ;;  %v2278_v13 = vmul.f32 %v8163_v54, %v11744_v26  ;;  %v14749_v26 = vld [vmem:[#allocation76_spill] sm:$0xff]  ;;  %v14750_v54 = vld [vmem:[#allocation77_spill] sm:$0xff] }
 0x658   :  { %v3877_v59 = vpop.xlane.xlu0 %3876  ;;  %v8167_v32 = vpop.eup %8166  ;;  %v2275_v16 = vmul.f32 %v8165_v1, %v11738_v46 }
 0x659   :  { %4407 = vbcast.lane.b32.xlu1 %v14744_v49, 264  ;;  %7924 = vmatpush3.bf16.msra.mxu0 %v11484_v55  ;;  %v2277_v35 = vmul.f32 %v8167_v32, %v11736_v25  ;;  %v14747_v25 = vld [vmem:[#allocation75_spill] sm:$0xff] }
 0x65a   :  { %v8169_v20 = vpop.eup %8168  ;;  %4293 = vbcast.lane.b32.xlu0 %v14739_v9, 256  ;;  %7925 = vmatprep.subr.bf16.mxu0 %v11510_v28  ;;  %v14776_v9 = vld [vmem:[#allocation97_spill] sm:$0xff] }
 0x65b   :  { %v2276_v12 = vmul.f32 %v8169_v20, %v11750_v24  ;;  %v2282_v36 = vpack.c.bf16 %v2278_v13, %v2277_v35  ;;  %v14752_v35 = vld [vmem:[#allocation79_spill] sm:$0xff] }
 0x65c   :  { %v3871_v19 = vpop.xlane.xlu1 %3870  ;;  %v3880_v33 = vpop.xlane.xlu0 %3879 }
 0x65d   :  { %4418 = vbcast.lane.b32.xlu1 %v14745_v27, 264  ;;  %7926 = vmatpush3.bf16.msra.mxu0 %v11510_v28  ;;  %v2281_v55 = vpack.c.bf16 %v2276_v12, %v2275_v16  ;;  %8170 = vrcp.f32 %v3880_v33  ;;  %v14748_v28 = vld [vmem:[#allocation202_spill] sm:$0xff] }
 0x65e   :  { %4381 = vbcast.lane.b32.xlu0 %v14740_v48, 256  ;;  %7927 = vmatprep.subr.bf16.mxu0 %v14746_v57  ;;  %8172 = vrcp.f32 %v3871_v19  ;;  %v14751_v12 = vld [vmem:[#allocation78_spill] sm:$0xff] }
 0x65f   :  { %7901 = vmatprep.mubr.msk.bf16.mxu0 %vm1377_vm2, %v2281_v55  ;;  %8174 = vrcp.f32 %v3877_v59  ;;  %v14755_v55 = vld [vmem:[#allocation81_spill] sm:$0xff] }
 0x660   :  { %v3874_v46 = vpop.xlane.xlu0 %3873  ;;  %7902 = vmatmul.mubr.msk.bf16.gmra.mrb[4].mxu0 %vm1377_vm2, %v2282_v36 }
 0x661   :  { %8176 = vrcp.f32 %v3874_v46  ;;  %4495 = vbcast.lane.b32.xlu1 %v14747_v25, 264  ;;  %7928 = vmatpush3.bf16.msra.mxu0 %v14746_v57  ;;  %v14756_v46 = vld [vmem:[#allocation201_spill] sm:$0xff] }
 0x662   :  { %4304 = vbcast.lane.b32.xlu0 %v14741_v39, 256  ;;  %8029 = vmatprep.subr.msk.bf16.mxu0 %vm2101_vm1, %v14748_v28 }
 0x665   :  { %4506 = vbcast.lane.b32.xlu1 %v14749_v26, 264 }
 0x666   :  { %4392 = vbcast.lane.b32.xlu0 %v14742_v11, 256  ;;  %v14773_v11 = vld [vmem:[#allocation95_spill] sm:$0xff] }
 0x667   :  { %v8171_v24 = vpop.eup %8170 }
 0x668   :  { %v8173_v0 = vpop.eup %8172  ;;  %v3904_v32 = vmul.f32 %v8171_v24, %v11760_v45  ;;  %v5607_v45 = vsel %vm2101_vm1, %v14748_v28, 0  ;;  %v14757_v28 = vld [vmem:[#allocation82_spill] sm:$0xff] }
 0x669   :  { %4429 = vbcast.lane.b32.xlu1 %v14750_v54, 264  ;;  %v8175_v1 = vpop.eup %8174  ;;  %v3901_v20 = vmul.f32 %v8173_v0, %v11762_v61  ;;  %v14753_v61 = vld [vmem:[#allocation200_spill] sm:$0xff]  ;;  %v14758_v0 = vld [vmem:[#allocation83_spill] sm:$0xff] }
 0x66a   :  { %4403 = vbcast.lane.b32.xlu0 %v14744_v49, 256  ;;  %v3903_v16 = vmul.f32 %v8175_v1, %v11756_v3  ;;  %v11873_v3 = vpop.permute.xlu1 %4099  ;;  %v5610_v57 = vsel %vm2101_vm1, %v14753_v61, 0  ;;  %v5613_v1 = vsel %vm2101_vm1, %v14756_v46, 0 }
 0x66b   :  { %v8177_v59 = vpop.eup %8176 }
 0x66c   :  { %v3902_v13 = vmul.f32 %v8177_v59, %v11768_v63  ;;  %v3910_v33 = vpack.c.bf16 %v3904_v32, %v3903_v16  ;;  %v14754_v63 = vld [vmem:[#allocation80_spill] sm:$0xff]  ;;  %v14759_v59 = vld [vmem:[#allocation195_spill] sm:$0xff] }
 0x66d   :  { %4517 = vbcast.lane.b32.xlu1 %v14751_v12, 264  ;;  %v14760_v32 = vld [vmem:[#allocation84_spill] sm:$0xff]  ;;  %v5616_v16 = vsel %vm2101_vm1, %v14759_v59, 0 }
 0x66e   :  { %4414 = vbcast.lane.b32.xlu0 %v14745_v27, 256  ;;  %v3909_v19 = vpack.c.bf16 %v3902_v13, %v3901_v20  ;;  %v11881_v36 = vpop.permute.xlu1 %4187  ;;  %v14761_v13 = vld [vmem:[#allocation85_spill] sm:$0xff]  ;;  %v14771_v27 = vld [vmem:[#allocation94_spill] sm:$0xff] }
 0x670   :  { %7929 = vmatprep.mubr.msk.bf16.mxu0 %vm1377_vm2, %v3909_v19 }
 0x671   :  { %4583 = vbcast.lane.b32.xlu1 %v14752_v35, 264  ;;  %7930 = vmatmul.mubr.msk.bf16.vlgmr.msra.gmra.mrb[8].mxu0 %vm1377_vm2, %v3910_v33  ;;  %v14762_v33 = vld [vmem:[#allocation86_spill] sm:$0xff] }
 0x672   :  { %7938 = vmatpush3.bf16.xpose.msra.mxu0 %v5607_v45  ;;  %4491 = vbcast.lane.b32.xlu0 %v14747_v25, 256  ;;  %v11887_v24 = vpop.permute.xlu1 %4264  ;;  %v11907_v45 = vpop.permute.xlu0 %4095 }
 0x673   :  { %8030 = vmatprep.subr.msk.bf16.mxu0 %vm2101_vm1, %v14753_v61  ;;  %v14763_v61 = vld [vmem:[#allocation87_spill] sm:$0xff] }
 0x675   :  { %4594 = vbcast.lane.b32.xlu1 %v14754_v63, 264 }
 0x676   :  { %4502 = vbcast.lane.b32.xlu0 %v14749_v26, 256  ;;  %v11897_v20 = vpop.permute.xlu1 %4352 }
 0x679   :  { %4671 = vbcast.lane.b32.xlu1 %v14755_v55, 264 }
 0x67a   :  { %7940 = vmatpush3.bf16.xpose.msra.mxu0 %v5610_v57  ;;  %4425 = vbcast.lane.b32.xlu0 %v14750_v54, 256  ;;  %v11903_v19 = vpop.permute.xlu1 %4110  ;;  %v14768_v54 = vld [vmem:[#allocation92_spill] sm:$0xff] }
 0x67b   :  { %8031 = vmatprep.subr.msk.bf16.mxu0 %vm2101_vm1, %v14756_v46  ;;  %v14764_v46 = vld [vmem:[#allocation88_spill] sm:$0xff] }
 0x67d   :  { %4682 = vbcast.lane.b32.xlu1 %v14757_v28, 264 }
 0x67e   :  { %4513 = vbcast.lane.b32.xlu0 %v14751_v12, 256  ;;  %v11911_v57 = vpop.permute.xlu1 %4198 }
 0x681   :  { %4440 = vbcast.lane.b32.xlu1 %v14758_v0, 264 }
 0x682   :  { %7942 = vmatpush3.bf16.xpose.msra.mxu0 %v5613_v1  ;;  %4579 = vbcast.lane.b32.xlu0 %v14752_v35, 256  ;;  %v14767_v35 = vld [vmem:[#allocation91_spill] sm:$0xff] }
 0x683   :  { %8032 = vmatprep.subr.msk.bf16.mxu0 %vm2101_vm1, %v14759_v59  ;;  %v11915_v59 = vpop.permute.xlu1 %4275 }
 0x685   :  { %4528 = vbcast.lane.b32.xlu1 %v14760_v32, 264 }
 0x686   :  { %4590 = vbcast.lane.b32.xlu0 %v14754_v63, 256 }
 0x689   :  { %4605 = vbcast.lane.b32.xlu1 %v14761_v13, 264 }
 0x68a   :  { %7944 = vmatpush3.bf16.xpose.msra.mxu0 %v5616_v16  ;;  %4667 = vbcast.lane.b32.xlu0 %v14755_v55, 256  ;;  %v14765_v16 = vld [vmem:[#allocation89_spill] sm:$0xff] }
 0x68d   :  { %4693 = vbcast.lane.b32.xlu1 %v14762_v33, 264 }
 0x68e   :  { %4678 = vbcast.lane.b32.xlu0 %v14757_v28, 256  ;;  %v14766_v28 = vld [vmem:[#allocation90_spill] sm:$0xff] }
 0x691   :  { %4451 = vbcast.lane.b32.xlu1 %v14763_v61, 264 }
 0x692   :  { %4436 = vbcast.lane.b32.xlu0 %v14758_v0, 256  ;;  %v11921_v0 = vpop.permute.xlu1 %4363 }
 0x695   :  { %4539 = vbcast.lane.b32.xlu1 %v14764_v46, 264  ;;  %v3889_v1 = vpop.xlane.xlu0 %3888 }
 0x696   :  { %4524 = vbcast.lane.b32.xlu0 %v14760_v32, 256  ;;  %v11927_v32 = vpop.permute.xlu1 %4121 }
 0x699   :  { %4616 = vbcast.lane.b32.xlu1 %v14765_v16, 264  ;;  %v3883_v55 = vpop.xlane.xlu0 %3882 }
 0x69a   :  { %4601 = vbcast.lane.b32.xlu0 %v14761_v13, 256  ;;  %v14769_v13 = vld [vmem:[#allocation93_spill] sm:$0xff] }
 0x69d   :  { %4704 = vbcast.lane.b32.xlu1 %v14766_v28, 264  ;;  %v3892_v63 = vpop.xlane.xlu0 %3891 }
 0x69e   :  { %4689 = vbcast.lane.b32.xlu0 %v14762_v33, 256  ;;  %v11937_v33 = vpop.permute.xlu1 %4209  ;;  %8178 = vrcp.f32 %v3892_v63  ;;  %v14786_v63 = vld [vmem:[#allocation101_spill] sm:$0xff] }
 0x69f   :  { %14770 = vst [vmem:[#allocation205_spill] sm:$0xff] %v11937_v33  ;;  %8180 = vrcp.f32 %v3883_v55 }
 0x6a0   :  { %8182 = vrcp.f32 %v3889_v1 }
 0x6a1   :  { %4462 = vbcast.lane.b32.xlu1 %v14767_v35, 264  ;;  %v11924_v12 = vpop.permute.xlu0 %4183 }
 0x6a2   :  { %4447 = vbcast.lane.b32.xlu0 %v14763_v61, 256  ;;  %v11943_v61 = vpop.permute.xlu1 %4286 }
 0x6a3   :  { %14772 = vst [vmem:[#allocation206_spill] sm:$0xff] %v11943_v61 }
 0x6a5   :  { %4550 = vbcast.lane.b32.xlu1 %v14768_v54, 264  ;;  %v11930_v26 = vpop.permute.xlu0 %4260 }
 0x6a6   :  { %4535 = vbcast.lane.b32.xlu0 %v14764_v46, 256  ;;  %v14774_v46 = vld [vmem:[#allocation96_spill] sm:$0xff] }
 0x6a9   :  { %4627 = vbcast.lane.b32.xlu1 %v14769_v13, 264  ;;  %v11934_v25 = vpop.permute.xlu0 %4348 }
 0x6aa   :  { %4612 = vbcast.lane.b32.xlu0 %v14765_v16, 256  ;;  %v11953_v16 = vpop.permute.xlu1 %4374 }
 0x6ab   :  { %14775 = vst [vmem:[#allocation207_spill] sm:$0xff] %v11953_v16  ;;  %v14789_v16 = vld [vmem:[#allocation102_spill] sm:$0xff] }
 0x6ad   :  { %4715 = vbcast.lane.b32.xlu1 %v14771_v27, 264  ;;  %v11940_v49 = vpop.permute.xlu0 %4106 }
 0x6ae   :  { %4700 = vbcast.lane.b32.xlu0 %v14766_v28, 256  ;;  %v11959_v28 = vpop.permute.xlu1 %4132 }
 0x6af   :  { %14778 = vst [vmem:[#allocation209_spill] sm:$0xff] %v11959_v28 }
 0x6b1   :  { %4473 = vbcast.lane.b32.xlu1 %v14773_v11, 264  ;;  %v11946_v39 = vpop.permute.xlu0 %4194 }
 0x6b2   :  { %4458 = vbcast.lane.b32.xlu0 %v14767_v35, 256 }
 0x6b5   :  { %4561 = vbcast.lane.b32.xlu1 %v14774_v46, 264  ;;  %v11950_v48 = vpop.permute.xlu0 %4271 }
 0x6b6   :  { %4546 = vbcast.lane.b32.xlu0 %v14768_v54, 256  ;;  %v14781_v54 = vld [vmem:[#allocation99_spill] sm:$0xff] }
 0x6b9   :  { %4638 = vbcast.lane.b32.xlu1 %v14776_v9, 264  ;;  %v11956_v56 = vpop.permute.xlu0 %4359 }
 0x6ba   :  { %14777 = vst [vmem:[#allocation208_spill] sm:$0xff] %v11956_v56  ;;  %4623 = vbcast.lane.b32.xlu0 %v14769_v13, 256  ;;  %v14783_v13 = vld [vmem:[#allocation100_spill] sm:$0xff]  ;;  %v14790_v56 = vld [vmem:[#allocation103_spill] sm:$0xff] }
 0x6bd   :  { %4726 = vbcast.lane.b32.xlu1 %v14779_v43, 264  ;;  %v11962_v18 = vpop.permute.xlu0 %4117 }
 0x6be   :  { %14780 = vst [vmem:[#allocation210_spill] sm:$0xff] %v11962_v18  ;;  %4711 = vbcast.lane.b32.xlu0 %v14771_v27, 256  ;;  %v8179_v27 = vpop.eup %8178 }
 0x6bf   :  { %v8181_v18 = vpop.eup %8180 }
 0x6c1   :  { %4484 = vbcast.lane.b32.xlu1 %v14781_v54, 264  ;;  %v3886_v35 = vpop.xlane.xlu1 %3885  ;;  %v11966_v10 = vpop.permute.xlu0 %4205 }
 0x6c2   :  { %14782 = vst [vmem:[#allocation211_spill] sm:$0xff] %v11966_v10  ;;  %8184 = vrcp.f32 %v3886_v35  ;;  %4469 = vbcast.lane.b32.xlu0 %v14773_v11, 256  ;;  %v8183_v35 = vpop.eup %8182  ;;  %v3908_v10 = vmul.f32 %v8179_v27, %v11797_v23 }
 0x6c5   :  { %4572 = vbcast.lane.b32.xlu1 %v14783_v13, 264  ;;  %v11970_v41 = vpop.permute.xlu1 %4220  ;;  %v11972_v28 = vpop.permute.xlu0 %4282 }
 0x6c6   :  { %14784 = vst [vmem:[#allocation212_spill] sm:$0xff] %v11970_v41  ;;  %14785 = vst [vmem:[#allocation29_spill] sm:$0xff] %v11972_v28  ;;  %4557 = vbcast.lane.b32.xlu0 %v14774_v46, 256  ;;  %v3905_v46 = vmul.f32 %v8181_v18, %v11792_v58  ;;  %v14792_v58 = vld [vmem:[#allocation37_spill] sm:$0xff]  ;;  %v14793_v18 = vld [vmem:[#allocation104_spill] sm:$0xff] }
 0x6c9   :  { %4649 = vbcast.lane.b32.xlu1 %v14786_v63, 264  ;;  %v11976_v55 = vpop.permute.xlu1 %4297  ;;  %v11978_v1 = vpop.permute.xlu0 %4370 }
 0x6ca   :  { %14787 = vst [vmem:[#allocation215_spill] sm:$0xff] %v11976_v55  ;;  %14788 = vst [vmem:[#allocation30_spill] sm:$0xff] %v11978_v1  ;;  %4634 = vbcast.lane.b32.xlu0 %v14776_v9, 256  ;;  %v3907_v55 = vmul.f32 %v8183_v35, %v11787_v62 }
 0x6cc   :  { %v8185_v11 = vpop.eup %8184  ;;  %v3912_v9 = vpack.c.bf16 %v3908_v10, %v3907_v55  ;;  %v14799_v55 = vld [vmem:[#allocation53_spill] sm:$0xff] }
 0x6cd   :  { %4737 = vbcast.lane.b32.xlu1 %v14789_v16, 264  ;;  %v11983_v41 = vpop.permute.xlu1 %4385  ;;  %v11985_v28 = vpop.permute.xlu0 %4128  ;;  %v3906_v61 = vmul.f32 %v8185_v11, %v11807_v52  ;;  %v14795_v52 = vld [vmem:[#allocation41_spill] sm:$0xff] }
 0x6ce   :  { %4722 = vbcast.lane.b32.xlu0 %v14779_v43, 256 }
 0x6cf   :  { %v3911_v1 = vpack.c.bf16 %v3906_v61, %v3905_v46 }
 0x6d1   :  { %4660 = vbcast.lane.b32.xlu1 %v14790_v56, 264  ;;  %v11992_v33 = vpop.permute.xlu1 %4308  ;;  %7933 = vmatprep.mubr.msk.bf16.mxu0 %vm1377_vm2, %v3911_v1  ;;  %v11995_v23 = vpop.permute.xlu0 %4216 }
 0x6d2   :  { %14791 = vst [vmem:[#allocation216_spill] sm:$0xff] %v11992_v33  ;;  %4480 = vbcast.lane.b32.xlu0 %v14781_v54, 256  ;;  %7934 = vmatmul.mubr.msk.bf16.gmra.mrb[12].mxu0 %vm1377_vm2, %v3912_v9  ;;  %v14797_v9 = vld [vmem:[#allocation56_spill] sm:$0xff] }
 0x6d3   :  { %7945 = vmatprep.mubr.msk.bf16.mxu0 %vm2101_vm1, %v14792_v58 }
 0x6d5   :  { %4748 = vbcast.lane.b32.xlu1 %v14793_v18, 264  ;;  %v12002_v62 = vpop.permute.xlu1 %4396  ;;  %v12004_v10 = vpop.permute.xlu0 %4293 }
 0x6d6   :  { %14794 = vst [vmem:[#allocation213_spill] sm:$0xff] %v12002_v62  ;;  %4568 = vbcast.lane.b32.xlu0 %v14783_v13, 256 }
 0x6d9   :  { %5777 = vrot.lane.b32.xlu1 %v14795_v52, %s8567_s19  ;;  %v12009_v11 = vpop.permute.xlu1 %4407  ;;  %v12011_v27 = vpop.permute.xlu0 %4381 }
 0x6da   :  { %14796 = vst [vmem:[#allocation214_spill] sm:$0xff] %v12009_v11  ;;  %4645 = vbcast.lane.b32.xlu0 %v14786_v63, 256  ;;  %7946 = vmatmul.mubr.msk.bf16.vlgmr.msra.gmra.mrb[16].mxu0 %vm2101_vm1, %v14795_v52  ;;  %v14831_v11 = vld [vmem:[#allocation196_spill] sm:$0xff] }
 0x6db   :  { %7949 = vmatprep.mubr.msk.bf16.mxu0 %vm2101_vm1, %v14797_v9 }
 0x6dd   :  { %5779 = vrot.lane.b32.xlu1 %v14797_v9, %s8567_s19  ;;  %v12020_v61 = vpop.permute.xlu1 %4418  ;;  %v12022_v46 = vpop.permute.xlu0 %4304 }
 0x6de   :  { %14798 = vst [vmem:[#allocation31_spill] sm:$0xff] %v12020_v61  ;;  %4733 = vbcast.lane.b32.xlu0 %v14789_v16, 256  ;;  %v14832_v61 = vld [vmem:[#allocation45_spill] sm:$0xff] }
 0x6e1   :  { %5781 = vrot.lane.b32.xlu1 %v14799_v55, %s8567_s19  ;;  %v12027_v1 = vpop.permute.xlu1 %4495  ;;  %v12029_v35 = vpop.permute.xlu0 %4392 }
 0x6e2   :  { %14800 = vst [vmem:[#allocation217_spill] sm:$0xff] %v12027_v1  ;;  %14801 = vst [vmem:[#allocation32_spill] sm:$0xff] %v12029_v35  ;;  %4656 = vbcast.lane.b32.xlu0 %v14790_v56, 256  ;;  %7950 = vmatmul.mubr.msk.bf16.gmra.mrb[20].mxu0 %vm2101_vm1, %v14799_v55 }
 0x6e5   :  { %7090 = vrot.lane.b32.xlu1 %v14795_v52, %s8565_s17  ;;  %v12036_v63 = vpop.permute.xlu1 %4506  ;;  %v12038_v13 = vpop.permute.xlu0 %4403 }
 0x6e6   :  { %14802 = vst [vmem:[#allocation218_spill] sm:$0xff] %v12036_v63  ;;  %14803 = vst [vmem:[#allocation33_spill] sm:$0xff] %v12038_v13  ;;  %4744 = vbcast.lane.b32.xlu0 %v14793_v18, 256 }
 0x6e9   :  { %7092 = vrot.lane.b32.xlu1 %v14797_v9, %s8565_s17  ;;  %v12043_v16 = vpop.permute.xlu1 %4429  ;;  %v12045_v54 = vpop.permute.xlu0 %4414 }
 0x6ea   :  { %14804 = vst [vmem:[#allocation219_spill] sm:$0xff] %v12043_v16  ;;  %14805 = vst [vmem:[#allocation34_spill] sm:$0xff] %v12045_v54  ;;  %5775 = vrot.lane.b32.xlu0 %v14792_v58, %s8567_s19  ;;  %v14835_v54 = vld [vmem:[#allocation46_spill] sm:$0xff] }
 0x6ed   :  { %7094 = vrot.lane.b32.xlu1 %v14799_v55, %s8565_s17  ;;  %v12051_v56 = vpop.permute.xlu1 %4517  ;;  %v12053_v43 = vpop.permute.xlu0 %4491 }
 0x6ee   :  { %14806 = vst [vmem:[#allocation220_spill] sm:$0xff] %v12051_v56  ;;  %14807 = vst [vmem:[#allocation35_spill] sm:$0xff] %v12053_v43  ;;  %7088 = vrot.lane.b32.xlu0 %v14792_v58, %s8565_s17  ;;  %v14812_v43 = vld [vmem:[#allocation38_spill] sm:$0xff] }
 0x6f1   :  { %7082 = vrot.lane.b32.xlu1 %v14795_v52, %s8566_s18  ;;  %v12059_v18 = vpop.permute.xlu1 %4583  ;;  %v12061_v63 = vpop.permute.xlu0 %4502 }
 0x6f2   :  { %14808 = vst [vmem:[#allocation36_spill] sm:$0xff] %v12059_v18  ;;  %14809 = vst [vmem:[#allocation225_spill] sm:$0xff] %v12061_v63  ;;  %7080 = vrot.lane.b32.xlu0 %v14792_v58, %s8566_s18  ;;  %v14815_v63 = vld [vmem:[#allocation39_spill] sm:$0xff] }
 0x6f5   :  { %7086 = vrot.lane.b32.xlu1 %v14799_v55, %s8566_s18  ;;  %v12067_v1 = vpop.permute.xlu1 %4594  ;;  %v12069_v56 = vpop.permute.xlu0 %4425 }
 0x6f6   :  { %14810 = vst [vmem:[#allocation221_spill] sm:$0xff] %v12067_v1  ;;  %14811 = vst [vmem:[#allocation226_spill] sm:$0xff] %v12069_v56  ;;  %7084 = vrot.lane.b32.xlu0 %v14797_v9, %s8566_s18  ;;  %v14818_v1 = vld [vmem:[#allocation40_spill] sm:$0xff] }
 0x6f9   :  { %5870 = vbcast.lane.b32.xlu1 %v14812_v43, 280  ;;  %v12074_v52 = vpop.permute.xlu1 %4671  ;;  %v12076_v18 = vpop.permute.xlu0 %4513 }
 0x6fa   :  { %14813 = vst [vmem:[#allocation222_spill] sm:$0xff] %v12074_v52  ;;  %14814 = vst [vmem:[#allocation108_spill] sm:$0xff] %v12076_v18  ;;  %5866 = vbcast.lane.b32.xlu0 %v14812_v43, 272  ;;  %v14821_v52 = vld [vmem:[#allocation42_spill] sm:$0xff] }
 0x6fd   :  { %5878 = vbcast.lane.b32.xlu1 %v14815_v63, 280  ;;  %v12080_v58 = vpop.permute.xlu1 %4682  ;;  %v12082_v55 = vpop.permute.xlu0 %4579 }
 0x6fe   :  { %14816 = vst [vmem:[#allocation110_spill] sm:$0xff] %v12080_v58  ;;  %14817 = vst [vmem:[#allocation105_spill] sm:$0xff] %v12082_v55  ;;  %5874 = vbcast.lane.b32.xlu0 %v14815_v63, 272  ;;  %v14824_v58 = vld [vmem:[#allocation43_spill] sm:$0xff] }
 0x701   :  { %5934 = vbcast.lane.b32.xlu1 %v14818_v1, 280  ;;  %v12086_v16 = vpop.permute.xlu1 %4440  ;;  %v12088_v9 = vpop.permute.xlu0 %4590 }
 0x702   :  { %14819 = vst [vmem:[#allocation106_spill] sm:$0xff] %v12086_v16  ;;  %14820 = vst [vmem:[#allocation107_spill] sm:$0xff] %v12088_v9  ;;  %5930 = vbcast.lane.b32.xlu0 %v14818_v1, 272  ;;  %v14827_v16 = vld [vmem:[#allocation44_spill] sm:$0xff] }
 0x705   :  { %5942 = vbcast.lane.b32.xlu1 %v14821_v52, 280  ;;  %v12092_v18 = vpop.permute.xlu1 %4528  ;;  %v12094_v43 = vpop.permute.xlu0 %4667 }
 0x706   :  { %14822 = vst [vmem:[#allocation223_spill] sm:$0xff] %v12092_v18  ;;  %14823 = vst [vmem:[#allocation224_spill] sm:$0xff] %v12094_v43  ;;  %5938 = vbcast.lane.b32.xlu0 %v14821_v52, 272  ;;  %v8265_v18 = vld [vmem:[#allocation2 + $0x8] sm:$0xff]  ;;  %v14830_v43 = vld [vmem:[#allocation203_spill] sm:$0xff] }
 0x707   :  { %v4751_v56 = vmul.f32 %v8265_v18, %v14830_v43  ;;  %v8266_v52 = vld [vmem:[#allocation2] sm:$0xff]  ;;  %v8268_v43 = vld [vmem:[#allocation2 + $0x10] sm:$0xff] }
 0x708   :  { %v4750_v13 = vmul.f32 %v8266_v52, %v14831_v11  ;;  %v14838_v52 = vld [vmem:[#allocation204_spill] sm:$0xff] }
 0x709   :  { %5886 = vbcast.lane.b32.xlu1 %v14824_v58, 280  ;;  %v12098_v55 = vpop.permute.xlu1 %4605  ;;  %v12100_v63 = vpop.permute.xlu0 %4678 }
 0x70a   :  { %14825 = vst [vmem:[#allocation16_spill] sm:$0xff] %v12098_v55  ;;  %14826 = vst [vmem:[#allocation23_spill] sm:$0xff] %v12100_v63  ;;  %5882 = vbcast.lane.b32.xlu0 %v14824_v58, 272  ;;  %v4879_v58 = vsel %vm1377_vm2, %v4751_v56, 0.0  ;;  %v8269_v56 = vld [vmem:[#allocation2 + $0x88] sm:$0xff] }
 0x70d   :  { %5950 = vbcast.lane.b32.xlu1 %v14827_v16, 280  ;;  %v12104_v9 = vpop.permute.xlu1 %4693  ;;  %v12106_v1 = vpop.permute.xlu0 %4436 }
 0x70e   :  { %14828 = vst [vmem:[#allocation111_spill] sm:$0xff] %v12104_v9  ;;  %14829 = vst [vmem:[#allocation112_spill] sm:$0xff] %v12106_v1  ;;  %5946 = vbcast.lane.b32.xlu0 %v14827_v16, 272  ;;  %v8267_v9 = vld [vmem:[#allocation2 + $0x18] sm:$0xff]  ;;  %v4878_v16 = vsel %vm1377_vm2, %v4750_v13, 0.0 }
 0x70f   :  { %v4753_v1 = vmul.f32 %v8267_v9, %v11642_v40  ;;  %v4880_v62 = vadd.f32 %v4879_v58, %v4878_v16  ;;  %v8270_v40 = vld [vmem:[#allocation2 + $0x98] sm:$0xff]  ;;  %v8272_v16 = vld [vmem:[#allocation2 + $0x90] sm:$0xff] }
 0x710   :  { %v4769_v13 = vmul.f32 %v8270_v40, %v11660_v5 }
 0x711   :  { %5998 = vbcast.lane.b32.xlu1 %v14832_v61, 280  ;;  %v12112_v55 = vpop.permute.xlu1 %4451  ;;  %v12114_v63 = vpop.permute.xlu0 %4524  ;;  %v4881_v58 = vrot.slane %v4880_v62, 4 }
 0x712   :  { %14833 = vst [vmem:[#allocation114_spill] sm:$0xff] %v12112_v55  ;;  %14834 = vst [vmem:[#allocation125_spill] sm:$0xff] %v12114_v63  ;;  %5994 = vbcast.lane.b32.xlu0 %v14832_v61, 272  ;;  %v4752_v55 = vmul.f32 %v8268_v43, %v14838_v52  ;;  %v4888_v61 = vsel %vm1377_vm2, %v4753_v1, 0.0  ;;  %v4767_v63 = vmul.f32 %v8269_v56, %v11648_v50  ;;  %v4960_v50 = vsel %vm1377_vm2, %v4769_v13, 0.0 }
 0x714   :  { %v4951_v52 = vsel %vm1377_vm2, %v4767_v63, 0.0  ;;  %v8273_v63 = vld [vmem:[#allocation2 + $0x28] sm:$0xff] }
 0x715   :  { %6006 = vbcast.lane.b32.xlu1 %v14835_v54, 280  ;;  %v12121_v18 = vpop.permute.xlu1 %4539  ;;  %v12123_v11 = vpop.permute.xlu0 %4601 }
 0x716   :  { %14836 = vst [vmem:[#allocation8_spill] sm:$0xff] %v12121_v18  ;;  %14837 = vst [vmem:[#allocation127_spill] sm:$0xff] %v12123_v11  ;;  %6002 = vbcast.lane.b32.xlu0 %v14835_v54, 272  ;;  %v4887_v18 = vsel %vm1377_vm2, %v4752_v55, 0.0  ;;  %v8271_v11 = vld [vmem:[#allocation2 + $0x80] sm:$0xff]  ;;  %v4768_v54 = vmul.f32 %v8272_v16, %v11651_v31 }
 0x717   :  { %v4766_v43 = vmul.f32 %v8271_v11, %v11644_v34  ;;  %v4889_v1 = vadd.f32 %v4888_v61, %v4887_v18  ;;  %v4755_v61 = vmul.f32 %v8273_v63, %v11676_v51 }
 0x718   :  { %v4959_v55 = vsel %vm1377_vm2, %v4768_v54, 0.0 }
 0x719   :  { %v12130_v9 = vpop.permute.xlu1 %4616  ;;  %v12132_v35 = vpop.permute.xlu0 %4689  ;;  %v4950_v40 = vsel %vm1377_vm2, %v4766_v43, 0.0  ;;  %v4961_v11 = vadd.f32 %v4960_v50, %v4959_v55 }
 0x71a   :  { %14839 = vst [vmem:[#allocation132_spill] sm:$0xff] %v12130_v9  ;;  %14840 = vst [vmem:[#allocation129_spill] sm:$0xff] %v12132_v35  ;;  %v4882_v35 = vadd.f32 %v4881_v58, %v4880_v62  ;;  %v4890_v9 = vrot.slane %v4889_v1, 4  ;;  %v4952_v34 = vadd.f32 %v4951_v52, %v4950_v40  ;;  %v4897_v52 = vsel %vm1377_vm2, %v4755_v61, 0.0 }
 0x71b   :  { %v4962_v43 = vrot.slane %v4961_v11, 4 }
 0x71c   :  { %v4883_v18 = vrot.slane %v4882_v35, 2  ;;  %v4891_v13 = vadd.f32 %v4890_v9, %v4889_v1  ;;  %v4953_v16 = vrot.slane %v4952_v34, 4  ;;  %v8275_v1 = vld [vmem:[#allocation2 + $0xa0] sm:$0xff] }
 0x71d   :  { %v12139_v56 = vpop.permute.xlu1 %4704  ;;  %v12141_v5 = vpop.permute.xlu0 %4447  ;;  %v4963_v51 = vadd.f32 %v4962_v43, %v4961_v11 }
 0x71e   :  { %14841 = vst [vmem:[#allocation133_spill] sm:$0xff] %v12139_v56  ;;  %14842 = vst [vmem:[#allocation130_spill] sm:$0xff] %v12141_v5  ;;  %v8274_v56 = vld [vmem:[#allocation2 + $0x20] sm:$0xff]  ;;  %v4884_v54 = vadd.f32 %v4883_v18, %v4882_v35  ;;  %v4892_v50 = vrot.slane %v4891_v13, 2  ;;  %v4954_v40 = vadd.f32 %v4953_v16, %v4952_v34  ;;  %v8277_v34 = vld [vmem:[#allocation2 + $0x110] sm:$0xff] }
 0x71f   :  { %v4754_v5 = vmul.f32 %v8274_v56, %v11667_v2  ;;  %v4770_v2 = vmul.f32 %v8275_v1, %v11678_v29  ;;  %v8276_v56 = vld [vmem:[#allocation2 + $0x100] sm:$0xff]  ;;  %v4784_v61 = vmul.f32 %v8277_v34, %v11688_v14  ;;  %v8279_v1 = vld [vmem:[#allocation2 + $0x190] sm:$0xff]  ;;  %v8282_v34 = vld [vmem:[#allocation2 + $0x118] sm:$0xff] }
 0x720   :  { %v4782_v63 = vmul.f32 %v8276_v56, %v11684_v44  ;;  %v4885_v18 = vrot.slane %v4884_v54, 1  ;;  %v8278_v16 = vld [vmem:[#allocation2 + $0x180] sm:$0xff]  ;;  %v12171_v43 = vadd.f32 %v4892_v50, %v4891_v13  ;;  %v4955_v29 = vrot.slane %v4954_v40, 2 }
 0x721   :  { %v12145_v33 = vpop.permute.xlu1 %4462  ;;  %v12147_v31 = vpop.permute.xlu0 %4535  ;;  %v4800_v44 = vmul.f32 %v8279_v1, %v11696_v60 }
 0x722   :  { %14843 = vst [vmem:[#allocation18_spill] sm:$0xff] %v12145_v33  ;;  %14844 = vst [vmem:[#allocation131_spill] sm:$0xff] %v12147_v31  ;;  %v4896_v31 = vsel %vm1377_vm2, %v4754_v5, 0.0  ;;  %v4798_v5 = vmul.f32 %v8278_v16, %v11692_v22  ;;  %v4785_v22 = vmul.f32 %v8282_v34, %v11690_v21  ;;  %v4968_v16 = vsel %vm1377_vm2, %v4770_v2, 0.0 }
 0x723   :  { %v5022_v13 = vsel %vm1377_vm2, %v4782_v63, 0.0  ;;  %v12192_v63 = vadd.f32 %v4955_v29, %v4954_v40  ;;  %v5103_v34 = vsel %vm1377_vm2, %v4800_v44, 0.0  ;;  %v8287_v29 = vld [vmem:[#allocation2 + $0x38] sm:$0xff] }
 0x724   :  { %v4757_v44 = vmul.f32 %v8287_v29, %v11702_v4 }
 0x725   :  { %v12151_v62 = vpop.permute.xlu1 %4550  ;;  %v12153_v58 = vpop.permute.xlu0 %4612 }
 0x726   :  { %14845 = vst [vmem:[#allocation137_spill] sm:$0xff] %v12151_v62  ;;  %v4898_v62 = vadd.f32 %v4897_v52, %v4896_v31  ;;  %v8280_v31 = vld [vmem:[#allocation2 + $0xa8] sm:$0xff] }
 0x727   :  { %v12156_v55 = vpop.f32.mrb[0].mxu0  ;;  %v4771_v52 = vmul.f32 %v8280_v31, %v11682_v30  ;;  %v12186_v31 = vadd.f32 %v4885_v18, %v4884_v54 }
 0x728   :  { %14846 = vst [vmem:[#allocation25_spill] sm:$0xff] %v12156_v55  ;;  %v12159_v9 = vpop.f32.mrb[1].mxu0  ;;  %v4964_v55 = vrot.slane %v4963_v51, 2  ;;  %v4899_v50 = vrot.slane %v4898_v62, 4 }
 0x729   :  { %14847 = vst [vmem:[#allocation136_spill] sm:$0xff] %v12159_v9  ;;  %v12163_v33 = vpop.permute.xlu1 %4627  ;;  %v12165_v35 = vpop.permute.xlu0 %4700  ;;  %v8281_v9 = vld [vmem:[#allocation2 + $0x108] sm:$0xff] }
 0x72a   :  { %14848 = vst [vmem:[#allocation134_spill] sm:$0xff] %v12165_v35  ;;  %v12169_v11 = vpop.f32.mrb[2].mxu0  ;;  %v4783_v14 = vmul.f32 %v8281_v9, %v11686_v15  ;;  %v5094_v15 = vsel %vm1377_vm2, %v4798_v5, 0.0  ;;  %v8284_v9 = vld [vmem:[#allocation2 + $0x30] sm:$0xff]  ;;  %v4900_v5 = vadd.f32 %v4899_v50, %v4898_v62  ;;  %v8286_v35 = vld [vmem:[#allocation2 + $0x188] sm:$0xff] }
 0x72b   :  { %14849 = vst [vmem:[#allocation168_spill] sm:$0xff] %v12169_v11  ;;  %v12175_v56 = vpop.f32.mrb[3].mxu0  ;;  %v8283_v11 = vld [vmem:[#allocation2 + $0x198] sm:$0xff]  ;;  %v4756_v21 = vmul.f32 %v8284_v9, %v11700_v42  ;;  %v4799_v42 = vmul.f32 %v8286_v35, %v11694_v38  ;;  %v8290_v38 = vld [vmem:[#allocation2 + $0x120] sm:$0xff] }
 0x72c   :  { %14850 = vst [vmem:[#allocation142_spill] sm:$0xff] %v12175_v56  ;;  %v4801_v60 = vmul.f32 %v8283_v11, %v11698_v47  ;;  %v5031_v56 = vsel %vm1377_vm2, %v4784_v61, 0.0  ;;  %v4969_v47 = vsel %vm1377_vm2, %v4771_v52, 0.0  ;;  %v12196_v11 = vadd.f32 %v4964_v55, %v4963_v51  ;;  %v8288_v52 = vld [vmem:[#allocation2 + $0xb8] sm:$0xff] }
 0x72d   :  { %v12182_v1 = vpop.permute.xlu1 %4715  ;;  %v12184_v30 = vpop.permute.xlu0 %4458  ;;  %v5023_v18 = vsel %vm1377_vm2, %v4783_v14, 0.0  ;;  %v5032_v61 = vsel %vm1377_vm2, %v4785_v22, 0.0  ;;  %v4905_v51 = vsel %vm1377_vm2, %v4756_v21, 0.0  ;;  %v4773_v14 = vmul.f32 %v8288_v52, %v11706_v7  ;;  %v8289_v22 = vld [vmem:[#allocation2 + $0x128] sm:$0xff] }
 0x72e   :  { %14851 = vst [vmem:[#allocation135_spill] sm:$0xff] %v12182_v1  ;;  %14852 = vst [vmem:[#allocation7_spill] sm:$0xff] %v12184_v30  ;;  %v8285_v1 = vld [vmem:[#allocation2 + $0xb0] sm:$0xff]  ;;  %v5104_v40 = vsel %vm1377_vm2, %v4801_v60, 0.0  ;;  %v4787_v62 = vmul.f32 %v8289_v22, %v11710_v17  ;;  %v5024_v50 = vadd.f32 %v5023_v18, %v5022_v13  ;;  %v4786_v35 = vmul.f32 %v8290_v38, %v11708_v8 }
 0x72f   :  { %v4772_v54 = vmul.f32 %v8285_v1, %v11704_v37  ;;  %v4970_v37 = vadd.f32 %v4969_v47, %v4968_v16  ;;  %v5033_v60 = vadd.f32 %v5032_v61, %v5031_v56  ;;  %v8291_v1 = vld [vmem:[#allocation2 + $0x1a0] sm:$0xff]  ;;  %v4966_v2 = vrot.slane %v12196_v11, 1  ;;  %v8293_v56 = vld [vmem:[#allocation2 + $0x1a8] sm:$0xff] }
 0x730   :  { %v4802_v4 = vmul.f32 %v8291_v1, %v11812_v6  ;;  %v5105_v21 = vadd.f32 %v5104_v40, %v5103_v34  ;;  %v8292_v47 = vld [vmem:[#allocation2 + $0x40] sm:$0xff]  ;;  %v4901_v17 = vrot.slane %v4900_v5, 2  ;;  %v5095_v13 = vsel %vm1377_vm2, %v4799_v42, 0.0 }
 0x731   :  { %v12204_v9 = vpop.permute.xlu1 %4473  ;;  %v12206_v55 = vpop.permute.xlu0 %4546  ;;  %v4977_v16 = vsel %vm1377_vm2, %v4772_v54, 0.0  ;;  %v4758_v7 = vmul.f32 %v8292_v47, %v11907_v45  ;;  %v4906_v8 = vsel %vm1377_vm2, %v4757_v44, 0.0  ;;  %v4803_v6 = vmul.f32 %v8293_v56, %v11779_v53  ;;  %v8294_v45 = vld [vmem:[#allocation2 + $0x48] sm:$0xff] }
 0x732   :  { %14853 = vst [vmem:[#allocation113_spill] sm:$0xff] %v12204_v9  ;;  %14854 = vst [vmem:[#allocation117_spill] sm:$0xff] %v12206_v55  ;;  %v4971_v22 = vrot.slane %v4970_v37, 4  ;;  %v4978_v34 = vsel %vm1377_vm2, %v4773_v14, 0.0  ;;  %v5041_v54 = vsel %vm1377_vm2, %v4787_v62, 0.0  ;;  %v4759_v40 = vmul.f32 %v8294_v45, %v11873_v3 }
 0x733   :  { %v12213_v29 = vpop.f32.mrb[4].mxu0  ;;  %v5025_v42 = vrot.slane %v5024_v50, 4  ;;  %v5040_v44 = vsel %vm1377_vm2, %v4786_v35, 0.0  ;;  %v5034_v1 = vrot.slane %v5033_v60, 4  ;;  %v5112_v53 = vsel %vm1377_vm2, %v4802_v4, 0.0 }
 0x734   :  { %14855 = vst [vmem:[#allocation124_spill] sm:$0xff] %v12213_v29  ;;  %v12218_v52 = vpop.f32.mrb[5].mxu0  ;;  %v5096_v56 = vadd.f32 %v5095_v13, %v5094_v15  ;;  %v5106_v29 = vrot.slane %v5105_v21, 4  ;;  %v4914_v14 = vsel %vm1377_vm2, %v4758_v7, 0.0  ;;  %v4957_v62 = vrot.slane %v12192_v63, 1 }
 0x735   :  { %14856 = vst [vmem:[#allocation120_spill] sm:$0xff] %v12218_v52  ;;  %v12223_v18 = vpop.permute.xlu1 %4561  ;;  %v12225_v61 = vpop.permute.xlu0 %4623  ;;  %v4907_v52 = vadd.f32 %v4906_v8, %v4905_v51  ;;  %v5042_v55 = vadd.f32 %v5041_v54, %v5040_v44  ;;  %v5113_v3 = vsel %vm1377_vm2, %v4803_v6, 0.0  ;;  %v14862_v35 = vrot.slane %v12171_v43, 1 }
 0x736   :  { %14857 = vst [vmem:[#allocation122_spill] sm:$0xff] %v12223_v18  ;;  %v12230_v38 = vpop.f32.mrb[6].mxu0  ;;  %v4979_v18 = vadd.f32 %v4978_v34, %v4977_v16  ;;  %v5114_v15 = vadd.f32 %v5113_v3, %v5112_v53  ;;  %v4915_v51 = vsel %vm1377_vm2, %v4759_v40, 0.0  ;;  %v4967_v7 = vadd.f32 %v4966_v2, %v12196_v11 }
 0x737   :  { %14858 = vst [vmem:[#allocation152_spill] sm:$0xff] %v12230_v38  ;;  %v12234_v47 = vpop.f32.mrb[7].mxu0  ;;  %v4895_v4 = vadd.f32 %v14862_v35, %v12171_v43  ;;  %v12248_v13 = vadd.f32 %v4901_v17, %v4900_v5  ;;  %v5026_v16 = vadd.f32 %v5025_v42, %v5024_v50  ;;  %v4916_v8 = vadd.f32 %v4915_v51, %v4914_v14  ;;  %v8296_v14 = vld [vmem:[#allocation2 + $0x130] sm:$0xff] }
 0x738   :  { %14859 = vst [vmem:[#allocation123_spill] sm:$0xff] %v12234_v47  ;;  %v4972_v47 = vadd.f32 %v4971_v22, %v4970_v37  ;;  %v5035_v34 = vadd.f32 %v5034_v1, %v5033_v60  ;;  %v5097_v6 = vrot.slane %v5096_v56, 4  ;;  %v5107_v54 = vadd.f32 %v5106_v29, %v5105_v21  ;;  %v8295_v1 = vld [vmem:[#allocation2 + $0xc0] sm:$0xff] }
 0x739   :  { %v12239_v45 = vpop.permute.xlu1 %4638  ;;  %v12241_v38 = vpop.permute.xlu0 %4711  ;;  %v4908_v44 = vrot.slane %v4907_v52, 4  ;;  %v4980_v9 = vrot.slane %v4979_v18, 4  ;;  %v5043_v30 = vrot.slane %v5042_v55, 4  ;;  %v5115_v22 = vrot.slane %v5114_v15, 4 }
 0x73a   :  { %14860 = vst [vmem:[#allocation126_spill] sm:$0xff] %v12239_v45  ;;  %14861 = vst [vmem:[#allocation143_spill] sm:$0xff] %v12241_v38  ;;  %v4958_v38 = vadd.f32 %v4957_v62, %v12192_v63  ;;  %v4973_v37 = vrot.slane %v4972_v47, 2  ;;  %v12257_v2 = vsel %vm2030_vm3, %v4895_v4, %v12186_v31  ;;  %v4903_v11 = vrot.slane %v12248_v13, 1 }
 0x73b   :  { %v5027_v5 = vrot.slane %v5026_v16, 2  ;;  %v4917_v50 = vrot.slane %v4916_v8, 4  ;;  %v5036_v63 = vrot.slane %v5035_v34, 2  ;;  %v5098_v29 = vadd.f32 %v5097_v6, %v5096_v56  ;;  %v8298_v56 = vld [vmem:[#allocation2 + $0x1b0] sm:$0xff] }
 0x73c   :  { %v12261_v60 = vsel %vm2030_vm3, %v4967_v7, %v4958_v38  ;;  %v5108_v21 = vrot.slane %v5107_v54, 2  ;;  %v4909_v17 = vadd.f32 %v4908_v44, %v4907_v52  ;;  %v4981_v40 = vadd.f32 %v4980_v9, %v4979_v18  ;;  %v8297_v38 = vld [vmem:[#allocation2 + $0xc8] sm:$0xff]  ;;  %v8300_v18 = vld [vmem:[#allocation2 + $0x1b8] sm:$0xff] }
 0x73d   :  { %v12251_v45 = vpop.permute.xlu1 %4726  ;;  %v12253_v43 = vpop.permute.xlu0 %4469  ;;  %v5044_v42 = vadd.f32 %v5043_v30, %v5042_v55  ;;  %v4774_v53 = vmul.f32 %v8295_v1, %v11924_v12  ;;  %v4788_v31 = vmul.f32 %v8296_v14, %v11930_v26  ;;  %v4974_v35 = vadd.f32 %v4973_v37, %v4972_v47  ;;  %v8299_v55 = vld [vmem:[#allocation2 + $0x138] sm:$0xff] }
 0x73e   :  { %14863 = vst [vmem:[#allocation27_spill] sm:$0xff] %v12251_v45  ;;  %v5116_v4 = vadd.f32 %v5115_v22, %v5114_v15  ;;  %v4775_v51 = vmul.f32 %v8297_v38, %v11881_v36  ;;  %v4804_v52 = vmul.f32 %v8298_v56, %v11934_v25  ;;  %v12271_v9 = vadd.f32 %v5027_v5, %v5026_v16  ;;  %v8302_v14 = vld [vmem:[#allocation2 + $0x58] sm:$0xff] }
 0x73f   :  { %v4918_v30 = vadd.f32 %v4917_v50, %v4916_v8  ;;  %v4789_v12 = vmul.f32 %v8299_v55, %v11887_v24  ;;  %v4805_v26 = vmul.f32 %v8300_v18, %v11897_v20  ;;  %v5037_v7 = vadd.f32 %v5036_v63, %v5035_v34  ;;  %v8301_v34 = vld [vmem:[#allocation2 + $0x50] sm:$0xff] }
 0x740   :  { %v5099_v6 = vrot.slane %v5098_v29, 2  ;;  %v5109_v44 = vadd.f32 %v5108_v21, %v5107_v54  ;;  %v4910_v47 = vrot.slane %v4909_v17, 2  ;;  %v4982_v37 = vrot.slane %v4981_v40, 2 }
 0x741   :  { %v12265_v62 = vpop.permute.xlu1 %4484  ;;  %v12267_v3 = vpop.permute.xlu0 %4557  ;;  %v5045_v36 = vrot.slane %v5044_v42, 2  ;;  %v4986_v22 = vsel %vm1377_vm2, %v4774_v53, 0.0  ;;  %v5049_v25 = vsel %vm1377_vm2, %v4788_v31, 0.0  ;;  %v5117_v24 = vrot.slane %v5116_v4, 2 }
 0x742   :  { %14864 = vst [vmem:[#allocation109_spill] sm:$0xff] %v12267_v3  ;;  %v4987_v5 = vsel %vm1377_vm2, %v4775_v51, 0.0  ;;  %v5121_v20 = vsel %vm1377_vm2, %v4804_v52, 0.0  ;;  %v4760_v54 = vmul.f32 %v8301_v34, %v11940_v49  ;;  %v4919_v21 = vrot.slane %v4918_v30, 2 }
 0x743   :  { %v5050_v1 = vsel %vm1377_vm2, %v4789_v12, 0.0  ;;  %v5122_v53 = vsel %vm1377_vm2, %v4805_v26, 0.0  ;;  %v4761_v31 = vmul.f32 %v8302_v14, %v11903_v19  ;;  %v4988_v51 = vadd.f32 %v4987_v5, %v4986_v22 }
 0x744   :  { %v12275_v15 = vpop.f32.mrb[8].mxu0  ;;  %v5051_v56 = vadd.f32 %v5050_v1, %v5049_v25  ;;  %v4904_v55 = vadd.f32 %v4903_v11, %v12248_v13  ;;  %v4975_v18 = vrot.slane %v4974_v35, 1  ;;  %v5038_v34 = vrot.slane %v5037_v7, 1 }
 0x745   :  { %14865 = vst [vmem:[#allocation157_spill] sm:$0xff] %v12275_v15  ;;  %v12279_v16 = vpop.permute.xlu1 %4572  ;;  %v12281_v8 = vpop.f32.mrb[9].mxu0  ;;  %v5123_v12 = vadd.f32 %v5122_v53, %v5121_v20  ;;  %v4911_v26 = vadd.f32 %v4910_v47, %v4909_v17  ;;  %v4983_v3 = vadd.f32 %v4982_v37, %v4981_v40  ;;  %v4923_v19 = vsel %vm1377_vm2, %v4760_v54, 0.0 }
 0x746   :  { %14866 = vst [vmem:[#allocation128_spill] sm:$0xff] %v12279_v16  ;;  %14867 = vst [vmem:[#allocation169_spill] sm:$0xff] %v12281_v8  ;;  %v12286_v50 = vpop.permute.xlu0 %4634  ;;  %v12288_v63 = vpop.f32.mrb[10].mxu0  ;;  %v5100_v16 = vadd.f32 %v5099_v6, %v5098_v29  ;;  %v5029_v22 = vrot.slane %v12271_v9, 1  ;;  %v5046_v25 = vadd.f32 %v5045_v36, %v5044_v42  ;;  %v5118_v5 = vadd.f32 %v5117_v24, %v5116_v4  ;;  %v8303_v24 = vld [vmem:[#allocation2 + $0xd0] sm:$0xff] }
 0x747   :  { %14868 = vst [vmem:[#allocation5_spill] sm:$0xff] %v12288_v63  ;;  %v12293_v38 = vpop.f32.mrb[11].mxu0  ;;  %v4920_v1 = vadd.f32 %v4919_v21, %v4918_v30  ;;  %v5110_v52 = vrot.slane %v5109_v44, 1  ;;  %v4924_v49 = vsel %vm1377_vm2, %v4761_v31, 0.0  ;;  %v4989_v15 = vrot.slane %v4988_v51, 4 }
 0x748   :  { %14869 = vst [vmem:[#allocation155_spill] sm:$0xff] %v12293_v38  ;;  %v5052_v13 = vrot.slane %v5051_v56, 4  ;;  %v4976_v20 = vadd.f32 %v4975_v18, %v4974_v35  ;;  %v5124_v29 = vrot.slane %v5123_v12, 4  ;;  %v4925_v17 = vadd.f32 %v4924_v49, %v4923_v19  ;;  %v8304_v18 = vld [vmem:[#allocation2 + $0xd8] sm:$0xff] }
 0x749   :  { %v12305_v11 = vpop.permute.xlu1 %4649  ;;  %v5531_v40 = vsel %vm2032_vm4, %v4904_v55, %v12257_v2  ;;  %v5039_v6 = vadd.f32 %v5038_v34, %v5037_v7  ;;  %v5101_v47 = vrot.slane %v5100_v16, 1  ;;  %v4912_v37 = vrot.slane %v4911_v26, 1 }
 0x74a   :  { %v12301_v14 = vpop.permute.xlu0 %4722  ;;  %v4984_v54 = vrot.slane %v4983_v3, 1  ;;  %v5047_v4 = vrot.slane %v5046_v25, 1  ;;  %v5119_v30 = vrot.slane %v5118_v5, 1  ;;  %v4921_v36 = vrot.slane %v4920_v1, 1 }
 0x74b   :  { %v4776_v21 = vmul.f32 %v8303_v24, %v11946_v39  ;;  %v5030_v53 = vadd.f32 %v5029_v22, %v12271_v9  ;;  %v5111_v35 = vadd.f32 %v5110_v52, %v5109_v44  ;;  %v4990_v31 = vadd.f32 %v4989_v15, %v4988_v51  ;;  %v8305_v52 = vld [vmem:[#allocation2 + $0x140] sm:$0xff] }
 0x74c   :  { %v5053_v49 = vadd.f32 %v5052_v13, %v5051_v56  ;;  %v4777_v2 = vmul.f32 %v8304_v18, %v11911_v57  ;;  %v5125_v7 = vadd.f32 %v5124_v29, %v5123_v12  ;;  %v4926_v55 = vrot.slane %v4925_v17, 4 }
 0x74d   :  { %v5538_v34 = vsel %vm2032_vm4, %v4976_v20, %v12261_v60  ;;  %v5102_v19 = vadd.f32 %v5101_v47, %v5100_v16  ;;  %v4913_v63 = vadd.f32 %v4912_v37, %v4911_v26  ;;  %v4985_v8 = vadd.f32 %v4984_v54, %v4983_v3  ;;  %v12316_v38 = vpop.permute.xlu1 %4737  ;;  %v8306_v16 = vld [vmem:[#allocation2 + $0x148] sm:$0xff]  ;;  %v14870_v54 = vld [vmem:[#allocation205_spill] sm:$0xff] }
 0x74e   :  { %v12309_v42 = vpop.permute.xlu0 %4480  ;;  %v5544_v39 = vsel %vm2030_vm3, %v5039_v6, %v5030_v53  ;;  %v5048_v9 = vadd.f32 %v5047_v4, %v5046_v25  ;;  %v5120_v44 = vadd.f32 %v5119_v30, %v5118_v5  ;;  %v4922_v15 = vadd.f32 %v4921_v36, %v4920_v1  ;;  %v8307_v20 = vld [vmem:[#allocation2 + $0x1c8] sm:$0xff]  ;;  %v8310_v53 = vld [vmem:[#allocation2 + $0x1c0] sm:$0xff] }
 0x74f   :  { %v4995_v51 = vsel %vm1377_vm2, %v4776_v21, 0.0  ;;  %v4991_v57 = vrot.slane %v4990_v31, 2  ;;  %v5054_v56 = vrot.slane %v5053_v49, 2  ;;  %v4790_v12 = vmul.f32 %v8305_v52, %v11950_v48  ;;  %v8308_v5 = vld [vmem:[#allocation2 + $0x68] sm:$0xff] }
 0x750   :  { %v5551_v60 = vsel %vm2030_vm3, %v5111_v35, %v5102_v19  ;;  %v4996_v3 = vsel %vm1377_vm2, %v4777_v2, 0.0  ;;  %v4791_v26 = vmul.f32 %v8306_v16, %v11915_v59  ;;  %v5126_v22 = vrot.slane %v5125_v7, 2  ;;  %v14871_v35 = vld [vmem:[#allocation208_spill] sm:$0xff]  ;;  %v14875_v52 = vld [vmem:[#allocation210_spill] sm:$0xff] }
 0x751   :  { %v4927_v13 = vadd.f32 %v4926_v55, %v4925_v17  ;;  %v4807_v25 = vmul.f32 %v8307_v20, %v11921_v0  ;;  %v4763_v1 = vmul.f32 %v8308_v5, %v11927_v32  ;;  %v4997_v29 = vadd.f32 %v4996_v3, %v4995_v51  ;;  %v8309_v0 = vld [vmem:[#allocation2 + $0xe8] sm:$0xff]  ;;  %v8311_v55 = vld [vmem:[#allocation2 + $0x158] sm:$0xff]  ;;  %v14874_v51 = vld [vmem:[#allocation209_spill] sm:$0xff] }
 0x752   :  { %v12318_v45 = vpop.permute.xlu0 %4568  ;;  %v5532_v48 = vsel %vm2034_vm5, %v4913_v63, %v5531_v40  ;;  %v12332_v47 = vsel %vm2032_vm4, %v5048_v9, %v5544_v39  ;;  %v12338_v59 = vsel %vm2032_vm4, %v5120_v44, %v5551_v60  ;;  %v12341_v17 = vsel %vm2034_vm5, %v4985_v8, %v5538_v34  ;;  %v12345_v63 = vpop.permute.xlu1 %4660  ;;  %v14872_v34 = vld [vmem:[#allocation206_spill] sm:$0xff]  ;;  %v8312_v39 = vld [vmem:[#allocation2 + $0x1d8] sm:$0xff]  ;;  %v14873_v9 = vld [vmem:[#allocation207_spill] sm:$0xff] }
 0x753   :  { %v12335_v37 = vsel %vm2036_vm6, %v4922_v15, %v5532_v48  ;;  %v4779_v32 = vmul.f32 %v8309_v0, %v14870_v54  ;;  %v4992_v4 = vadd.f32 %v4991_v57, %v4990_v31  ;;  %v5055_v30 = vadd.f32 %v5054_v56, %v5053_v49  ;;  %v8313_v15 = vld [vmem:[#allocation2 + $0x78] sm:$0xff]  ;;  %v8314_v56 = vld [vmem:[#allocation2 + $0x60] sm:$0xff]  ;;  %v8316_v48 = vld [vmem:[#allocation2 + $0x150] sm:$0xff] }
 0x754   :  { %v5058_v36 = vsel %vm1377_vm2, %v4790_v12, 0.0  ;;  %v5059_v40 = vsel %vm1377_vm2, %v4791_v26, 0.0  ;;  %v5127_v24 = vadd.f32 %v5126_v22, %v5125_v7  ;;  %v4928_v21 = vrot.slane %v4927_v13, 2  ;;  %v8315_v26 = vld [vmem:[#allocation2 + $0xe0] sm:$0xff]  ;;  %v14876_v22 = vld [vmem:[#allocation211_spill] sm:$0xff] }
 0x755   :  { %v4806_v18 = vmul.f32 %v8310_v53, %v14871_v35  ;;  %v5131_v2 = vsel %vm1377_vm2, %v4807_v25, 0.0  ;;  %v4933_v8 = vsel %vm1377_vm2, %v4763_v1, 0.0  ;;  %v4793_v19 = vmul.f32 %v8311_v55, %v14872_v34  ;;  %v14877_v0 = vld [vmem:[#allocation29_spill] sm:$0xff]  ;;  %v14878_v35 = vld [vmem:[#allocation30_spill] sm:$0xff]  ;;  %v8318_v34 = vld [vmem:[#allocation2 + $0x70] sm:$0xff] }
 0x756   :  { %v12328_v6 = vpop.permute.xlu0 %4645  ;;  %v4998_v31 = vrot.slane %v4997_v29, 4  ;;  %v4809_v44 = vmul.f32 %v8312_v39, %v14873_v9  ;;  %v4765_v7 = vmul.f32 %v8313_v15, %v14874_v51  ;;  %v5060_v57 = vadd.f32 %v5059_v40, %v5058_v36  ;;  %v8317_v40 = vld [vmem:[#allocation2 + $0x1d0] sm:$0xff]  ;;  %v12364_v39 = vpop.permute.xlu1 %4748 }
 0x757   :  { %v4762_v12 = vmul.f32 %v8314_v56, %v14875_v52  ;;  %v5005_v60 = vsel %vm1377_vm2, %v4779_v32, 0.0  ;;  %v4993_v3 = vrot.slane %v4992_v4, 1  ;;  %v5056_v16 = vrot.slane %v5055_v30, 1 }
 0x758   :  { %v4778_v20 = vmul.f32 %v8315_v26, %v14876_v22  ;;  %v5128_v25 = vrot.slane %v5127_v24, 1  ;;  %v4929_v5 = vadd.f32 %v4928_v21, %v4927_v13  ;;  %v5130_v1 = vsel %vm1377_vm2, %v4806_v18, 0.0  ;;  %v8319_v26 = vld [vmem:[#allocation2 + $0xf0] sm:$0xff] }
 0x759   :  { %v4792_v54 = vmul.f32 %v8316_v48, %v14877_v0  ;;  %v5068_v53 = vsel %vm1377_vm2, %v4793_v19, 0.0  ;;  %v4999_v36 = vadd.f32 %v4998_v31, %v4997_v29  ;;  %v4808_v55 = vmul.f32 %v8317_v40, %v14878_v35 }
 0x75a   :  { %v12352_v49 = vpop.permute.xlu0 %4733  ;;  %v4764_v32 = vmul.f32 %v8318_v34, %v11985_v28  ;;  %v5140_v13 = vsel %vm1377_vm2, %v4809_v44, 0.0  ;;  %v4942_v21 = vsel %vm1377_vm2, %v4765_v7, 0.0  ;;  %v5061_v18 = vrot.slane %v5060_v57, 4 }
 0x75b   :  { %v4932_v15 = vsel %vm1377_vm2, %v4762_v12, 0.0  ;;  %v4994_v51 = vadd.f32 %v4993_v3, %v4992_v4  ;;  %v5057_v19 = vadd.f32 %v5056_v16, %v5055_v30  ;;  %v5132_v29 = vadd.f32 %v5131_v2, %v5130_v1  ;;  %v8320_v2 = vld [vmem:[#allocation2 + $0xf8] sm:$0xff]  ;;  %v5778_v1 = vpop.permute.xlu1 %5777 }
 0x75c   :  { %v5004_v31 = vsel %vm1377_vm2, %v4778_v20, 0.0  ;;  %v5129_v56 = vadd.f32 %v5128_v25, %v5127_v24  ;;  %v4930_v52 = vrot.slane %v4929_v5, 1  ;;  %v5067_v28 = vsel %vm1377_vm2, %v4792_v54, 0.0  ;;  %v14879_v12 = vld [vmem:[#allocation212_spill] sm:$0xff]  ;;  %v8321_v24 = vld [vmem:[#allocation2 + $0x160] sm:$0xff]  ;;  %v8322_v54 = vld [vmem:[#allocation2 + $0x168] sm:$0xff] }
 0x75d   :  { %v4780_v22 = vmul.f32 %v8319_v26, %v11995_v23  ;;  %v5000_v48 = vrot.slane %v4999_v36, 2  ;;  %v4934_v0 = vadd.f32 %v4933_v8, %v4932_v15  ;;  %v5139_v44 = vsel %vm1377_vm2, %v4808_v55, 0.0 }
 0x75e   :  { %v12366_v9 = vpop.permute.xlu0 %4656  ;;  %v4941_v7 = vsel %vm1377_vm2, %v4764_v32, 0.0  ;;  %v5062_v4 = vadd.f32 %v5061_v18, %v5060_v57  ;;  %v5006_v30 = vadd.f32 %v5005_v60, %v5004_v31  ;;  %v4781_v3 = vmul.f32 %v8320_v2, %v14879_v12  ;;  %v14880_v57 = vld [vmem:[#allocation215_spill] sm:$0xff] }
 0x75f   :  { %v4794_v16 = vmul.f32 %v8321_v24, %v12004_v10  ;;  %v5133_v20 = vrot.slane %v5132_v29, 4  ;;  %v5069_v25 = vadd.f32 %v5068_v53, %v5067_v28  ;;  %v12382_v23 = vsel %vm2034_vm5, %v5057_v19, %v12332_v47  ;;  %v5780_v2 = vpop.permute.xlu1 %5779  ;;  %v14881_v24 = vld [vmem:[#allocation216_spill] sm:$0xff] }
 0x760   :  { %v12386_v8 = vsel %vm2036_vm6, %v4994_v51, %v12341_v17  ;;  %v4795_v60 = vmul.f32 %v8322_v54, %v14880_v57  ;;  %v5141_v35 = vadd.f32 %v5140_v13, %v5139_v44  ;;  %v4943_v55 = vadd.f32 %v4942_v21, %v4941_v7  ;;  %v8325_v44 = vld [vmem:[#allocation2 + $0x1e8] sm:$0xff]  ;;  %v14882_v54 = vld [vmem:[#allocation32_spill] sm:$0xff] }
 0x761   :  { %v5013_v34 = vsel %vm1377_vm2, %v4780_v22, 0.0  ;;  %v12390_v32 = vadd.f32 %v5000_v48, %v4999_v36  ;;  %v4935_v10 = vrot.slane %v4934_v0, 4  ;;  %v12392_v18 = vadd.f32 %v4930_v52, %v4929_v5  ;;  %v8323_v36 = vld [vmem:[#allocation2 + $0x1e0] sm:$0xff] }
 0x762   :  { %v12376_v40 = vpop.permute.xlu0 %4744  ;;  %v12396_v47 = vsel %vm2034_vm5, %v5129_v56, %v12338_v59  ;;  %v5063_v15 = vrot.slane %v5062_v4, 2  ;;  %v5007_v17 = vrot.slane %v5006_v30, 4  ;;  %v5014_v51 = vsel %vm1377_vm2, %v4781_v3, 0.0  ;;  %v8324_v59 = vld [vmem:[#allocation2 + $0x170] sm:$0xff]  ;;  %v8326_v3 = vld [vmem:[#allocation2 + $0x178] sm:$0xff] }
 0x763   :  { %v5076_v19 = vsel %vm1377_vm2, %v4794_v16, 0.0  ;;  %v5134_v13 = vadd.f32 %v5133_v20, %v5132_v29  ;;  %v5070_v21 = vrot.slane %v5069_v25, 4  ;;  %v5015_v31 = vadd.f32 %v5014_v51, %v5013_v34  ;;  %v8327_v20 = vld [vmem:[#allocation2 + $0x1f0] sm:$0xff]  ;;  %v14883_v51 = vld [vmem:[#allocation213_spill] sm:$0xff] }
 0x764   :  { %v4810_v28 = vmul.f32 %v8323_v36, %v12011_v27  ;;  %v5077_v5 = vsel %vm1377_vm2, %v4795_v60, 0.0  ;;  %v5142_v52 = vrot.slane %v5141_v35, 4  ;;  %v4944_v26 = vrot.slane %v4943_v55, 4  ;;  %v8329_v36 = vld [vmem:[#allocation2 + $0x210] sm:$0xff] }
 0x765   :  { %v4796_v56 = vmul.f32 %v8324_v59, %v12022_v46  ;;  %v5002_v22 = vrot.slane %v12390_v32, 1  ;;  %v4936_v48 = vadd.f32 %v4935_v10, %v4934_v0  ;;  %v4811_v29 = vmul.f32 %v8325_v44, %v11983_v41  ;;  %v8328_v41 = vld [vmem:[#allocation2 + $0x1f8] sm:$0xff] }
 0x766   :  { %v5776_v53 = vpop.permute.xlu0 %5775  ;;  %v5078_v7 = vadd.f32 %v5077_v5, %v5076_v19  ;;  %v12405_v12 = vadd.f32 %v5063_v15, %v5062_v4  ;;  %v5008_v27 = vadd.f32 %v5007_v17, %v5006_v30  ;;  %v4797_v16 = vmul.f32 %v8326_v3, %v14881_v24  ;;  %v14884_v5 = vld [vmem:[#allocation34_spill] sm:$0xff]  ;;  %v14886_v3 = vld [vmem:[#allocation33_spill] sm:$0xff] }
 0x767   :  { %7953 = vmatprep.subr.bf16.mxu1 %v5776_v53  ;;  %v4812_v57 = vmul.f32 %v8327_v20, %v14882_v54  ;;  %v5135_v60 = vrot.slane %v5134_v13, 2  ;;  %v5071_v46 = vadd.f32 %v5070_v21, %v5069_v25  ;;  %v5016_v34 = vrot.slane %v5015_v31, 4  ;;  %v5782_v20 = vpop.permute.xlu1 %5781 }
 0x768   :  { %7954 = vmatpush3.bf16.msra.mxu1 %v5776_v53  ;;  %v5148_v53 = vsel %vm1377_vm2, %v4810_v28, 0.0  ;;  %v5143_v0 = vadd.f32 %v5142_v52, %v5141_v35  ;;  %v4945_v10 = vadd.f32 %v4944_v26, %v4943_v55  ;;  %v4813_v19 = vmul.f32 %v8328_v41, %v14883_v51  ;;  %v8330_v55 = vld [vmem:[#allocation2 + $0x218] sm:$0xff]  ;;  %v14885_v52 = vld [vmem:[#allocation31_spill] sm:$0xff] }
 0x769   :  { %7955 = vmatprep.subr.bf16.mxu1 %v5778_v1  ;;  %v5085_v4 = vsel %vm1377_vm2, %v4796_v56, 0.0  ;;  %v4937_v30 = vrot.slane %v4936_v48, 2  ;;  %v5149_v15 = vsel %vm1377_vm2, %v4811_v29, 0.0  ;;  %v5079_v17 = vrot.slane %v5078_v7, 4  ;;  %v8331_v56 = vld [vmem:[#allocation2 + $0x200] sm:$0xff] }
 0x76a   :  { %v4816_v59 = vmul.f32 %v8329_v36, %v14884_v5  ;;  %v5009_v25 = vrot.slane %v5008_v27, 2  ;;  %v5086_v21 = vsel %vm1377_vm2, %v4797_v16, 0.0  ;;  %v5150_v28 = vadd.f32 %v5149_v15, %v5148_v53  ;;  %v8332_v53 = vld [vmem:[#allocation2 + $0x208] sm:$0xff] }
 0x76b   :  { %v5017_v35 = vadd.f32 %v5016_v34, %v5015_v31  ;;  %v4817_v26 = vmul.f32 %v8330_v55, %v14885_v52  ;;  %v5087_v44 = vadd.f32 %v5086_v21, %v5085_v4  ;;  %v4814_v24 = vmul.f32 %v8331_v56, %v14886_v3  ;;  %v14887_v15 = vld [vmem:[#allocation214_spill] sm:$0xff]  ;;  %v12423_v3 = vpop.permute.xlu0 %7088 }
 0x76c   :  { %7956 = vmatpush3.bf16.msra.mxu1 %v5778_v1  ;;  %v5157_v1 = vsel %vm1377_vm2, %v4812_v57, 0.0  ;;  %v5072_v29 = vrot.slane %v5071_v46, 2  ;;  %v5144_v54 = vrot.slane %v5143_v0, 2  ;;  %v4946_v41 = vrot.slane %v4945_v10, 2 }
 0x76d   :  { %7957 = vmatprep.subr.bf16.mxu1 %v5780_v2  ;;  %v5158_v51 = vsel %vm1377_vm2, %v4813_v19, 0.0  ;;  %v5080_v16 = vadd.f32 %v5079_v17, %v5078_v7  ;;  %v4815_v57 = vmul.f32 %v8332_v53, %v14887_v15  ;;  %v5175_v34 = vsel %vm1377_vm2, %v4816_v59, 0.0 }
 0x76e   :  { %v5159_v31 = vadd.f32 %v5158_v51, %v5157_v1  ;;  %v5136_v36 = vadd.f32 %v5135_v60, %v5134_v13  ;;  %v4938_v4 = vadd.f32 %v4937_v30, %v4936_v48  ;;  %v5010_v5 = vadd.f32 %v5009_v25, %v5008_v27 }
 0x76f   :  { %v5151_v21 = vrot.slane %v5150_v28, 4  ;;  %v5018_v55 = vrot.slane %v5017_v35, 2  ;;  %v5088_v52 = vrot.slane %v5087_v44, 4  ;;  %v5166_v56 = vsel %vm1377_vm2, %v4814_v24, 0.0 }
 0x770   :  { %7958 = vmatpush3.bf16.msra.mxu1 %v5780_v2  ;;  %v5176_v2 = vsel %vm1377_vm2, %v4817_v26, 0.0  ;;  %v5065_v7 = vrot.slane %v12405_v12, 1  ;;  %v5073_v19 = vadd.f32 %v5072_v29, %v5071_v46  ;;  %v5145_v17 = vadd.f32 %v5144_v54, %v5143_v0 }
 0x771   :  { %7959 = vmatprep.subr.bf16.mxu1 %v5782_v20  ;;  %v5177_v1 = vadd.f32 %v5176_v2, %v5175_v34  ;;  %v5081_v13 = vrot.slane %v5080_v16, 2  ;;  %v5167_v48 = vsel %vm1377_vm2, %v4815_v57, 0.0  ;;  %v5160_v27 = vrot.slane %v5159_v31, 4 }
 0x772   :  { %v4947_v60 = vadd.f32 %v4946_v41, %v4945_v10  ;;  %v5137_v30 = vrot.slane %v5136_v36, 1  ;;  %v5152_v59 = vadd.f32 %v5151_v21, %v5150_v28  ;;  %v5168_v25 = vadd.f32 %v5167_v48, %v5166_v56  ;;  %v8333_v56 = vld [vmem:[#allocation2 + $0x220] sm:$0xff] }
 0x773   :  { %v4939_v26 = vrot.slane %v4938_v4, 1  ;;  %v5089_v24 = vadd.f32 %v5088_v52, %v5087_v44  ;;  %v5011_v46 = vrot.slane %v5010_v5, 1  ;;  %v5019_v0 = vadd.f32 %v5018_v55, %v5017_v35 }
 0x774   :  { %7960 = vmatpush3.bf16.msra.mxu1 %v5782_v20  ;;  %v5003_v20 = vadd.f32 %v5002_v22, %v12390_v32  ;;  %v5066_v29 = vadd.f32 %v5065_v7, %v12405_v12  ;;  %v5074_v54 = vrot.slane %v5073_v19, 1  ;;  %v5146_v51 = vrot.slane %v5145_v17, 1  ;;  %v14888_v7 = vld [vmem:[#allocation226_spill] sm:$0xff] }
 0x775   :  { %8033 = vmatprep.subr.msk.bf16.mxu1 %vm2101_vm1, %v12423_v3  ;;  %v5178_v53 = vrot.slane %v5177_v1, 4  ;;  %v5082_v15 = vadd.f32 %v5081_v13, %v5080_v16  ;;  %v5161_v57 = vadd.f32 %v5160_v27, %v5159_v31  ;;  %v4948_v34 = vrot.slane %v4947_v60, 1 }
 0x776   :  { %v5534_v10 = vsel %vm2038_vm7, %v12392_v18, %v12335_v37  ;;  %v5138_v28 = vadd.f32 %v5137_v30, %v5136_v36  ;;  %v5153_v44 = vrot.slane %v5152_v59, 2  ;;  %v5169_v41 = vrot.slane %v5168_v25, 4 }
 0x777   :  { %v4940_v21 = vadd.f32 %v4939_v26, %v4938_v4  ;;  %v5090_v2 = vrot.slane %v5089_v24, 2  ;;  %v5012_v32 = vadd.f32 %v5011_v46, %v5010_v5  ;;  %v5020_v22 = vrot.slane %v5019_v0, 1  ;;  %v14890_v26 = vld [vmem:[#allocation217_spill] sm:$0xff] }
 0x778   :  { %v5541_v12 = vsel %vm2038_vm7, %v5003_v20, %v12386_v8  ;;  %v5179_v35 = vadd.f32 %v5178_v53, %v5177_v1  ;;  %v5075_v55 = vadd.f32 %v5074_v54, %v5073_v19  ;;  %v5547_v16 = vsel %vm2036_vm6, %v5066_v29, %v12382_v23  ;;  %v8334_v8 = vld [vmem:[#allocation2 + $0x228] sm:$0xff]  ;;  %v14889_v1 = vld [vmem:[#allocation219_spill] sm:$0xff] }
 0x779   :  { %v5147_v31 = vadd.f32 %v5146_v51, %v5145_v17  ;;  %v5162_v52 = vrot.slane %v5161_v57, 2  ;;  %v4818_v37 = vmul.f32 %v8333_v56, %v14888_v7  ;;  %v5083_v18 = vrot.slane %v5082_v15, 1  ;;  %v8335_v17 = vld [vmem:[#allocation2 + $0x288] sm:$0xff]  ;;  %v8340_v56 = vld [vmem:[#allocation2 + $0x298] sm:$0xff] }
 0x77a   :  { %v4949_v36 = vadd.f32 %v4948_v34, %v4947_v60  ;;  %v5154_v13 = vadd.f32 %v5153_v44, %v5152_v59  ;;  %v5170_v4 = vadd.f32 %v5169_v41, %v5168_v25  ;;  %v5535_v5 = vsel %vm2040_vm8, %v4940_v21, %v5534_v10  ;;  %v8337_v34 = vld [vmem:[#allocation2 + $0x310] sm:$0xff]  ;;  %v8338_v21 = vld [vmem:[#allocation2 + $0x308] sm:$0xff] }
 0x77b   :  { %v5554_v48 = vsel %vm2036_vm6, %v5138_v28, %v12396_v47  ;;  %v4819_v19 = vmul.f32 %v8334_v8, %v14889_v1  ;;  %v5091_v27 = vadd.f32 %v5090_v2, %v5089_v24  ;;  %v5021_v30 = vadd.f32 %v5020_v22, %v5019_v0  ;;  %v8336_v24 = vld [vmem:[#allocation2 + $0x300] sm:$0xff]  ;;  %v14892_v10 = vld [vmem:[#allocation107_spill] sm:$0xff]  ;;  %v14893_v2 = vld [vmem:[#allocation36_spill] sm:$0xff] }
 0x77c   :  { %v5542_v23 = vsel %vm2040_vm8, %v5012_v32, %v5541_v12  ;;  %v4831_v20 = vmul.f32 %v8335_v17, %v14890_v26  ;;  %v5180_v46 = vrot.slane %v5179_v35, 2  ;;  %v5548_v60 = vsel %vm2038_vm7, %v5075_v55, %v5547_v16  ;;  %v14891_v0 = vld [vmem:[#allocation105_spill] sm:$0xff]  ;;  %v8339_v55 = vld [vmem:[#allocation2 + $0x318] sm:$0xff]  ;;  %v14895_v7 = vld [vmem:[#allocation218_spill] sm:$0xff] }
 0x77d   :  { %v5555_v59 = vsel %vm2038_vm7, %v5147_v31, %v5554_v48  ;;  %v5184_v25 = vsel %vm1377_vm2, %v4818_v37, 0.0  ;;  %v5084_v29 = vadd.f32 %v5083_v18, %v5082_v15  ;;  %v12451_v47 = vsel %vm2042_vm9, %v4949_v36, %v5535_v5  ;;  %v14894_v16 = vld [vmem:[#allocation221_spill] sm:$0xff]  ;;  %v14896_v36 = vld [vmem:[#allocation35_spill] sm:$0xff]  ;;  %v14897_v17 = vld [vmem:[#allocation220_spill] sm:$0xff] }
 0x77e   :  { %v5163_v54 = vadd.f32 %v5162_v52, %v5161_v57  ;;  %v5171_v51 = vrot.slane %v5170_v4, 2  ;;  %v4846_v53 = vmul.f32 %v8336_v24, %v14891_v0  ;;  %v4848_v28 = vmul.f32 %v8337_v34, %v14892_v10  ;;  %v8341_v18 = vld [vmem:[#allocation2 + $0x280] sm:$0xff] }
 0x77f   :  { %v5155_v44 = vrot.slane %v5154_v13, 1  ;;  %v5185_v41 = vsel %vm1377_vm2, %v4819_v19, 0.0  ;;  %v4847_v32 = vmul.f32 %v8338_v21, %v14893_v2  ;;  %v5092_v22 = vrot.slane %v5091_v27, 1  ;;  %v8345_v2 = vld [vmem:[#allocation2 + $0x328] sm:$0xff] }
 0x780   :  { %v12458_v15 = vsel %vm2042_vm9, %v5021_v30, %v5542_v23  ;;  %v5239_v12 = vsel %vm1377_vm2, %v4831_v20, 0.0  ;;  %v5181_v57 = vadd.f32 %v5180_v46, %v5179_v35  ;;  %v4849_v31 = vmul.f32 %v8339_v55, %v14894_v16  ;;  %v8342_v35 = vld [vmem:[#allocation2 + $0x2a8] sm:$0xff]  ;;  %v8343_v46 = vld [vmem:[#allocation2 + $0x290] sm:$0xff] }
 0x781   :  { %v5186_v52 = vadd.f32 %v5185_v41, %v5184_v25  ;;  %v4833_v37 = vmul.f32 %v8340_v56, %v14895_v7  ;;  %v4830_v5 = vmul.f32 %v8341_v18, %v14896_v36  ;;  %v5549_v48 = vsel %vm2040_vm8, %v5084_v29, %v5548_v60  ;;  %v14898_v25 = vld [vmem:[#allocation225_spill] sm:$0xff]  ;;  %v14901_v56 = vld [vmem:[#allocation112_spill] sm:$0xff] }
 0x782   :  { %v5164_v8 = vrot.slane %v5163_v54, 1  ;;  %v5172_v1 = vadd.f32 %v5171_v51, %v5170_v4  ;;  %v5310_v19 = vsel %vm1377_vm2, %v4846_v53, 0.0  ;;  %v5319_v30 = vsel %vm1377_vm2, %v4848_v28, 0.0  ;;  %v8344_v29 = vld [vmem:[#allocation2 + $0x320] sm:$0xff]  ;;  %v14899_v4 = vld [vmem:[#allocation127_spill] sm:$0xff] }
 0x783   :  { %v5156_v23 = vadd.f32 %v5155_v44, %v5154_v13  ;;  %v4835_v26 = vmul.f32 %v8342_v35, %v14897_v17  ;;  %v5311_v20 = vsel %vm1377_vm2, %v4847_v32, 0.0  ;;  %v4832_v24 = vmul.f32 %v8343_v46, %v14898_v25  ;;  %v14900_v32 = vld [vmem:[#allocation16_spill] sm:$0xff] }
 0x784   :  { %v5093_v0 = vadd.f32 %v5092_v22, %v5091_v27  ;;  %v5182_v34 = vrot.slane %v5181_v57, 1  ;;  %v5320_v10 = vsel %vm1377_vm2, %v4849_v31, 0.0  ;;  %v5187_v60 = vrot.slane %v5186_v52, 4  ;;  %v8346_v31 = vld [vmem:[#allocation2 + $0x230] sm:$0xff]  ;;  %v14904_v46 = vld [vmem:[#allocation108_spill] sm:$0xff] }
 0x785   :  { %v4850_v51 = vmul.f32 %v8344_v29, %v14899_v4  ;;  %v5238_v53 = vsel %vm1377_vm2, %v4830_v5, 0.0  ;;  %v5312_v28 = vadd.f32 %v5311_v20, %v5310_v19  ;;  %v5321_v13 = vadd.f32 %v5320_v10, %v5319_v30  ;;  %v14902_v19 = vld [vmem:[#allocation106_spill] sm:$0xff]  ;;  %v14905_v29 = vld [vmem:[#allocation132_spill] sm:$0xff] }
 0x786   :  { %v5165_v44 = vadd.f32 %v5164_v8, %v5163_v54  ;;  %v5248_v41 = vsel %vm1377_vm2, %v4833_v37, 0.0  ;;  %v5173_v21 = vrot.slane %v5172_v1, 1  ;;  %v4851_v55 = vmul.f32 %v8345_v2, %v14900_v32  ;;  %v14903_v20 = vld [vmem:[#allocation222_spill] sm:$0xff]  ;;  %v8353_v32 = vld [vmem:[#allocation2 + $0x350] sm:$0xff] }
 0x787   :  { %v5556_v27 = vsel %vm2040_vm8, %v5156_v23, %v5555_v59  ;;  %v12477_v22 = vsel %vm1377_vm2, %v4835_v26, 0.0  ;;  %v5247_v16 = vsel %vm1377_vm2, %v4832_v24, 0.0  ;;  %v4820_v7 = vmul.f32 %v8346_v31, %v14901_v56  ;;  %v8347_v59 = vld [vmem:[#allocation2 + $0x238] sm:$0xff]  ;;  %v8355_v56 = vld [vmem:[#allocation2 + $0x348] sm:$0xff] }
 0x788   :  { %v12482_v18 = vsel %vm2042_vm9, %v5093_v0, %v5549_v48  ;;  %v5183_v54 = vadd.f32 %v5182_v34, %v5181_v57  ;;  %v12484_v36 = vadd.f32 %v5239_v12, %v5238_v53  ;;  %v12486_v37 = vadd.f32 %v5187_v60, %v5186_v52  ;;  %v8348_v48 = vld [vmem:[#allocation2 + $0x388] sm:$0xff]  ;;  %v8349_v52 = vld [vmem:[#allocation2 + $0x2a0] sm:$0xff]  ;;  %v8350_v34 = vld [vmem:[#allocation2 + $0x330] sm:$0xff] }
 0x789   :  { %v5328_v5 = vsel %vm1377_vm2, %v4850_v51, 0.0  ;;  %v5313_v8 = vrot.slane %v5312_v28, 4  ;;  %v4821_v30 = vmul.f32 %v8347_v59, %v14902_v19  ;;  %v5322_v23 = vrot.slane %v5321_v13, 4  ;;  %v8351_v60 = vld [vmem:[#allocation2 + $0x338] sm:$0xff]  ;;  %v8352_v51 = vld [vmem:[#allocation2 + $0x340] sm:$0xff]  ;;  %v8358_v19 = vld [vmem:[#allocation2 + $0x370] sm:$0xff] }
 0x78a   :  { %v12491_v35 = vsel %vm2042_vm9, %v5165_v44, %v5556_v27  ;;  %v5174_v17 = vadd.f32 %v5173_v21, %v5172_v1  ;;  %v12493_v26 = vadd.f32 %v5248_v41, %v5247_v16  ;;  %v12496_v57 = vmul.f32 %v8348_v48, %v14903_v20  ;;  %v8354_v27 = vld [vmem:[#allocation2 + $0x248] sm:$0xff] }
 0x78b   :  { %v5329_v12 = vsel %vm1377_vm2, %v4851_v55, 0.0  ;;  %v12500_v25 = vmul.f32 %v8349_v52, %v14904_v46  ;;  %v5193_v24 = vsel %vm1377_vm2, %v4820_v7, 0.0  ;;  %v4852_v10 = vmul.f32 %v8350_v34, %v12153_v58  ;;  %v14906_v16 = vld [vmem:[#allocation114_spill] sm:$0xff]  ;;  %v8356_v7 = vld [vmem:[#allocation2 + $0x360] sm:$0xff]  ;;  %v14910_v34 = vld [vmem:[#allocation7_spill] sm:$0xff] }
 0x78c   :  { %v12503_v0 = vadd.f32 %v5329_v12, %v5328_v5  ;;  %v5189_v1 = vrot.slane %v12486_v37, 2  ;;  %v4853_v4 = vmul.f32 %v8351_v60, %v14905_v29  ;;  %v4854_v53 = vmul.f32 %v8352_v51, %v12225_v61  ;;  %v8360_v20 = vld [vmem:[#allocation2 + $0x368] sm:$0xff]  ;;  %v8361_v12 = vld [vmem:[#allocation2 + $0x258] sm:$0xff] }
 0x78d   :  { %v12510_v44 = vsel %vm2030_vm3, %v5183_v54, %v5174_v17  ;;  %v12512_v41 = vadd.f32 %v5313_v8, %v5312_v28  ;;  %v5194_v21 = vsel %vm1377_vm2, %v4821_v30, 0.0  ;;  %v12515_v2 = vadd.f32 %v5322_v23, %v5321_v13  ;;  %v8357_v13 = vld [vmem:[#allocation2 + $0x358] sm:$0xff]  ;;  %v14907_v8 = vld [vmem:[#allocation126_spill] sm:$0xff]  ;;  %v8359_v23 = vld [vmem:[#allocation2 + $0x240] sm:$0xff] }
 0x78e   :  { %v4856_v58 = vmul.f32 %v8353_v32, %v12286_v50  ;;  %v12518_v55 = vadd.f32 %v5194_v21, %v5193_v24  ;;  %v4823_v31 = vmul.f32 %v8354_v27, %v14906_v16  ;;  %v4855_v61 = vmul.f32 %v8355_v56, %v12163_v33  ;;  %v14908_v17 = vld [vmem:[#allocation130_spill] sm:$0xff]  ;;  %v8362_v24 = vld [vmem:[#allocation2 + $0x250] sm:$0xff]  ;;  %v8363_v29 = vld [vmem:[#allocation2 + $0x378] sm:$0xff] }
 0x78f   :  { %v4858_v54 = vmul.f32 %v8356_v7, %v12328_v6  ;;  %v5331_v28 = vrot.slane %v12503_v0, 4  ;;  %v5337_v5 = vsel %vm1377_vm2, %v4852_v10, 0.0  ;;  %v4857_v59 = vmul.f32 %v8357_v13, %v14907_v8  ;;  %v14909_v52 = vld [vmem:[#allocation18_spill] sm:$0xff]  ;;  %v8364_v21 = vld [vmem:[#allocation2 + $0x260] sm:$0xff]  ;;  %v8365_v16 = vld [vmem:[#allocation2 + $0x270] sm:$0xff] }
 0x790   :  { %v4860_v50 = vmul.f32 %v8358_v19, %v12366_v9  ;;  %v5338_v30 = vsel %vm1377_vm2, %v4853_v4, 0.0  ;;  %v4822_v48 = vmul.f32 %v8359_v23, %v14908_v17  ;;  %v5346_v33 = vsel %vm1377_vm2, %v4854_v53, 0.0  ;;  %v8366_v13 = vld [vmem:[#allocation2 + $0x268] sm:$0xff]  ;;  %v8367_v19 = vld [vmem:[#allocation2 + $0x278] sm:$0xff] }
 0x791   :  { %v4859_v6 = vmul.f32 %v8360_v20, %v12305_v11  ;;  %v4825_v46 = vmul.f32 %v8361_v12, %v14909_v52  ;;  %v4824_v10 = vmul.f32 %v8362_v24, %v14910_v34  ;;  %v5355_v60 = vsel %vm1377_vm2, %v4856_v58, 0.0 }
 0x792   :  { %v4861_v9 = vmul.f32 %v8363_v29, %v12345_v63  ;;  %v5339_v4 = vadd.f32 %v5338_v30, %v5337_v5  ;;  %v5347_v51 = vsel %vm1377_vm2, %v4855_v61, 0.0  ;;  %v4826_v53 = vmul.f32 %v8364_v21, %v12253_v43  ;;  %v14911_v63 = vld [vmem:[#allocation113_spill] sm:$0xff] }
 0x793   :  { %v5364_v32 = vsel %vm1377_vm2, %v4858_v54, 0.0  ;;  %v5348_v11 = vadd.f32 %v5347_v51, %v5346_v33  ;;  %v5356_v27 = vsel %vm1377_vm2, %v4857_v59, 0.0  ;;  %v4828_v56 = vmul.f32 %v8365_v16, %v12309_v42 }
 0x794   :  { %v5373_v7 = vsel %vm1377_vm2, %v4860_v50, 0.0  ;;  %v5202_v58 = vsel %vm1377_vm2, %v4822_v48, 0.0  ;;  %v4827_v5 = vmul.f32 %v8366_v13, %v14911_v63  ;;  %v5357_v8 = vadd.f32 %v5356_v27, %v5355_v60 }
 0x795   :  { %v5365_v61 = vsel %vm1377_vm2, %v4859_v6, 0.0  ;;  %v5211_v43 = vsel %vm1377_vm2, %v4824_v10, 0.0  ;;  %v4829_v54 = vmul.f32 %v8367_v19, %v12265_v62  ;;  %v5374_v59 = vsel %vm1377_vm2, %v4861_v9, 0.0 }
 0x796   :  { %v5366_v30 = vadd.f32 %v5365_v61, %v5364_v32  ;;  %v5203_v42 = vsel %vm1377_vm2, %v4823_v31, 0.0  ;;  %v5340_v23 = vrot.slane %v5339_v4, 4  ;;  %v5220_v50 = vsel %vm1377_vm2, %v4826_v53, 0.0  ;;  %v8368_v61 = vld [vmem:[#allocation2 + $0x398] sm:$0xff] }
 0x797   :  { %v5375_v17 = vadd.f32 %v5374_v59, %v5373_v7  ;;  %v5204_v48 = vadd.f32 %v5203_v42, %v5202_v58  ;;  %v5212_v33 = vsel %vm1377_vm2, %v4825_v46, 0.0  ;;  %v5349_v20 = vrot.slane %v5348_v11, 4 }
 0x798   :  { %v5229_v6 = vsel %vm1377_vm2, %v4828_v56, 0.0  ;;  %v5196_v12 = vrot.slane %v12518_v55, 4  ;;  %v5213_v52 = vadd.f32 %v5212_v33, %v5211_v43  ;;  %v5221_v62 = vsel %vm1377_vm2, %v4827_v5, 0.0  ;;  %v14912_v43 = vld [vmem:[#allocation110_spill] sm:$0xff] }
 0x799   :  { %v5358_v24 = vrot.slane %v5357_v8, 4  ;;  %v5332_v34 = vadd.f32 %v5331_v28, %v12503_v0  ;;  %v5222_v10 = vadd.f32 %v5221_v62, %v5220_v50  ;;  %v5230_v31 = vsel %vm1377_vm2, %v4829_v54, 0.0 }
 0x79a   :  { %v5367_v60 = vrot.slane %v5366_v30, 4  ;;  %v5324_v29 = vrot.slane %v12515_v2, 2  ;;  %v5341_v9 = vadd.f32 %v5340_v23, %v5339_v4  ;;  %v5231_v51 = vadd.f32 %v5230_v31, %v5229_v6  ;;  %v14914_v23 = vld [vmem:[#allocation224_spill] sm:$0xff] }
 0x79b   :  { %v5376_v46 = vrot.slane %v5375_v17, 4  ;;  %v12558_v21 = vsel %vm1377_vm2, %v12496_v57, 0.0  ;;  %v5315_v53 = vrot.slane %v12512_v41, 2  ;;  %v5205_v32 = vrot.slane %v5204_v48, 4 }
 0x79c   :  { %v5350_v27 = vadd.f32 %v5349_v20, %v5348_v11  ;;  %v5190_v0 = vadd.f32 %v5189_v1, %v12486_v37  ;;  %v5197_v28 = vadd.f32 %v5196_v12, %v12518_v55  ;;  %v5214_v16 = vrot.slane %v5213_v52, 4 }
 0x79d   :  { %v5359_v56 = vadd.f32 %v5358_v24, %v5357_v8  ;;  %v12567_v4 = vsel %vm1377_vm2, %v12500_v25, 0.0  ;;  %v5333_v7 = vrot.slane %v5332_v34, 2  ;;  %v5223_v58 = vrot.slane %v5222_v10, 4 }
 0x79e   :  { %v5368_v57 = vadd.f32 %v5367_v60, %v5366_v30  ;;  %v5325_v13 = vadd.f32 %v5324_v29, %v12515_v2  ;;  %v5342_v63 = vrot.slane %v5341_v9, 2  ;;  %v5232_v5 = vrot.slane %v5231_v51, 4  ;;  %v8369_v30 = vld [vmem:[#allocation2 + $0x380] sm:$0xff] }
 0x79f   :  { %v5377_v11 = vadd.f32 %v5376_v46, %v5375_v17  ;;  %v12571_v19 = vmul.f32 %v8368_v61, %v14912_v43  ;;  %v5316_v37 = vadd.f32 %v5315_v53, %v12512_v41  ;;  %v5206_v1 = vadd.f32 %v5205_v32, %v5204_v48  ;;  %v8370_v61 = vld [vmem:[#allocation2 + $0x390] sm:$0xff] }
 0x7a0   :  { %v5351_v55 = vrot.slane %v5350_v27, 2  ;;  %v5191_v8 = vrot.slane %v5190_v0, 1  ;;  %v5198_v54 = vrot.slane %v5197_v28, 2  ;;  %v5215_v25 = vadd.f32 %v5214_v16, %v5213_v52  ;;  %v14918_v43 = vld [vmem:[#allocation23_spill] sm:$0xff] }
 0x7a1   :  { %v5360_v59 = vrot.slane %v5359_v56, 2  ;;  %v4862_v2 = vmul.f32 %v8369_v30, %v14914_v23  ;;  %v5334_v50 = vadd.f32 %v5333_v7, %v5332_v34  ;;  %v5224_v33 = vadd.f32 %v5223_v58, %v5222_v10 }
 0x7a2   :  { %v5369_v17 = vrot.slane %v5368_v57, 2  ;;  %v5326_v6 = vrot.slane %v5325_v13, 1  ;;  %v5343_v12 = vadd.f32 %v5342_v63, %v5341_v9  ;;  %v5233_v62 = vadd.f32 %v5232_v5, %v5231_v51 }
 0x7a3   :  { %v5378_v41 = vrot.slane %v5377_v11, 2  ;;  %v5317_v24 = vrot.slane %v5316_v37, 1  ;;  %v5207_v31 = vrot.slane %v5206_v1, 2  ;;  %v5352_v52 = vadd.f32 %v5351_v55, %v5350_v27 }
 0x7a4   :  { %v5199_v46 = vadd.f32 %v5198_v54, %v5197_v28  ;;  %v5216_v34 = vrot.slane %v5215_v25, 2  ;;  %v5361_v10 = vadd.f32 %v5360_v59, %v5359_v56  ;;  %v5192_v32 = vadd.f32 %v5191_v8, %v5190_v0 }
 0x7a5   :  { %v12574_v42 = vpop.f32.mrb[12].mxu0  ;;  %v5335_v9 = vrot.slane %v5334_v50, 1  ;;  %v5225_v51 = vrot.slane %v5224_v33, 2  ;;  %v5370_v16 = vadd.f32 %v5369_v17, %v5368_v57  ;;  %v5327_v7 = vadd.f32 %v5326_v6, %v5325_v13 }
 0x7a6   :  { %14913 = vst [vmem:[#allocation165_spill] sm:$0xff] %v12574_v42  ;;  %v12577_v20 = vpop.f32.mrb[13].mxu0  ;;  %v5344_v58 = vrot.slane %v5343_v12, 1  ;;  %v5234_v63 = vrot.slane %v5233_v62, 2  ;;  %v5379_v5 = vadd.f32 %v5378_v41, %v5377_v11  ;;  %v5382_v27 = vsel %vm1377_vm2, %v4862_v2, 0.0 }
 0x7a7   :  { %14915 = vst [vmem:[#allocation162_spill] sm:$0xff] %v12577_v20  ;;  %v12579_v48 = vpop.f32.mrb[14].mxu0  ;;  %v4864_v55 = vmul.f32 %v8370_v61, %v14918_v43  ;;  %v5208_v30 = vadd.f32 %v5207_v31, %v5206_v1  ;;  %v5353_v28 = vrot.slane %v5352_v52, 1  ;;  %v5318_v54 = vadd.f32 %v5317_v24, %v5316_v37  ;;  %v8405_v20 = vld [vmem:[#allocation2 + $0xa8] sm:$0xff] }
 0x7a8   :  { %14916 = vst [vmem:[#allocation13_spill] sm:$0xff] %v12579_v48  ;;  %v12583_v29 = vpop.f32.mrb[15].mxu0  ;;  %v5200_v56 = vrot.slane %v5199_v46, 1  ;;  %v5217_v59 = vadd.f32 %v5216_v34, %v5215_v25  ;;  %v5362_v23 = vrot.slane %v5361_v10, 1  ;;  %v5336_v0 = vadd.f32 %v5335_v9, %v5334_v50 }
 0x7a9   :  { %14917 = vst [vmem:[#allocation11_spill] sm:$0xff] %v12583_v29  ;;  %v5226_v8 = vadd.f32 %v5225_v51, %v5224_v33  ;;  %v5371_v17 = vrot.slane %v5370_v16, 1  ;;  %v5345_v11 = vadd.f32 %v5344_v58, %v5343_v12  ;;  %v5380_v2 = vrot.slane %v5379_v5, 1  ;;  %v8371_v33 = vld [vmem:[#allocation2 + $0x3a0] sm:$0xff] }
 0x7aa   :  { %v5572_v41 = vsel %vm2030_vm3, %v5327_v7, %v5318_v54  ;;  %v5235_v61 = vadd.f32 %v5234_v63, %v5233_v62  ;;  %v5209_v1 = vrot.slane %v5208_v30, 1  ;;  %v5354_v31 = vadd.f32 %v5353_v28, %v5352_v52 }
 0x7ab   :  { %v5363_v34 = vadd.f32 %v5362_v23, %v5361_v10  ;;  %v5201_v9 = vadd.f32 %v5200_v56, %v5199_v46  ;;  %v5372_v62 = vadd.f32 %v5371_v17, %v5370_v16  ;;  %v5573_v52 = vsel %vm2032_vm4, %v5336_v0, %v5572_v41  ;;  %v14920_v23 = vld [vmem:[#allocation111_spill] sm:$0xff] }
 0x7ac   :  { %v5227_v51 = vrot.slane %v5226_v8, 1  ;;  %v5381_v7 = vadd.f32 %v5380_v2, %v5379_v5  ;;  %v5574_v58 = vsel %vm2034_vm5, %v5345_v11, %v5573_v52  ;;  %v5236_v63 = vrot.slane %v5235_v61, 1  ;;  %v14921_v2 = vld [vmem:[#allocation125_spill] sm:$0xff] }
 0x7ad   :  { %v7947_v60 = vpop.f32.mrb[16].mxu0  ;;  %v5210_v43 = vadd.f32 %v5209_v1, %v5208_v30  ;;  %v5384_v10 = vadd.f32 %v12558_v21, %v5382_v27  ;;  %v5559_v56 = vsel %vm2032_vm4, %v5192_v32, %v12510_v44  ;;  %v5391_v30 = vsel %vm1377_vm2, %v4864_v55, 0.0 }
 0x7ae   :  { %v12590_v57 = vadd.f32 %v7947_v60, %v12482_v18  ;;  %v5652_v13 = vpop.f32.mrb[17].mxu0  ;;  %v14919_v18 = vld [vmem:[#allocation129_spill] sm:$0xff]  ;;  %v5218_v60 = vrot.slane %v5217_v59, 1  ;;  %v5228_v17 = vadd.f32 %v5227_v51, %v5226_v8  ;;  %v5237_v41 = vadd.f32 %v5236_v63, %v5235_v61 }
 0x7af   :  { %v7948_v6 = vpop.f32.mrb[18].mxu0  ;;  %v12594_v37 = vadd.f32 %v5652_v13, %v12451_v47  ;;  %v4866_v24 = vmul.f32 %v8371_v33, %v14919_v18  ;;  %v5392_v61 = vsel %vm1377_vm2, %v12571_v19, 0.0  ;;  %v14922_v33 = vld [vmem:[#allocation223_spill] sm:$0xff]  ;;  %v5241_v52 = vrot.slane %v12484_v36, 4 }
 0x7b0   :  { %v5655_v25 = vpop.f32.mrb[19].mxu0  ;;  %v5689_v50 = vsel %vm1377_vm2, %v12590_v57, -inf  ;;  %v12607_v28 = vadd.f32 %v7948_v6, %v12491_v35  ;;  %v5219_v5 = vadd.f32 %v5218_v60, %v5217_v59  ;;  %v8372_v35 = vld [vmem:[#allocation2 + $0x3a8] sm:$0xff]  ;;  %v8373_v6 = vld [vmem:[#allocation2 + $0x2b0] sm:$0xff]  ;;  %v5560_v59 = vsel %vm2034_vm5, %v5201_v9, %v5559_v56  ;;  %v8377_v56 = vld [vmem:[#allocation2 + $0x3c0] sm:$0xff] }
 0x7b1   :  { %v12600_v12 = vadd.f32 %v5655_v25, %v12458_v15  ;;  %5690 = vmax.xlane.f32.xlu0 %v5689_v50  ;;  %v5575_v15 = vsel %vm2036_vm6, %v5354_v31, %v5574_v58  ;;  %v5683_v46 = vsel %vm1377_vm2, %v12594_v37, -inf  ;;  %v4867_v0 = vmul.f32 %v8372_v35, %v14920_v23  ;;  %v8374_v50 = vld [vmem:[#allocation2 + $0x2b8] sm:$0xff] }
 0x7b2   :  { %v5576_v16 = vsel %vm2038_vm7, %v5363_v34, %v5575_v15  ;;  %v4836_v21 = vmul.f32 %v8373_v6, %v14921_v2  ;;  %v5400_v44 = vsel %vm1377_vm2, %v4866_v24, 0.0  ;;  %v5561_v55 = vsel %vm2036_vm6, %v5210_v43, %v5560_v59  ;;  %v8379_v6 = vld [vmem:[#allocation2 + $0x2c8] sm:$0xff]  ;;  %v14926_v2 = vld [vmem:[#allocation8_spill] sm:$0xff]  ;;  %v14927_v59 = vld [vmem:[#allocation135_spill] sm:$0xff] }
 0x7b3   :  { %v5686_v47 = vsel %vm1377_vm2, %v12600_v12, -inf  ;;  %v5577_v13 = vsel %vm2040_vm8, %v5372_v62, %v5576_v16  ;;  %v5692_v8 = vsel %vm1377_vm2, %v12607_v28, -inf  ;;  %v12634_v25 = vadd.f32 %v12477_v22, %v12567_v4  ;;  %v8376_v16 = vld [vmem:[#allocation2 + $0x3b8] sm:$0xff] }
 0x7b4   :  { %5687 = vmax.xlane.f32.xlu1 %v5686_v47  ;;  %v5578_v27 = vsel %vm2042_vm9, %v5381_v7, %v5577_v13  ;;  %v4837_v18 = vmul.f32 %v8374_v50, %v14922_v33  ;;  %v5562_v24 = vsel %vm2038_vm7, %v5219_v5, %v5561_v55  ;;  %v5385_v60 = vrot.slane %v5384_v10, 4  ;;  %v8375_v47 = vld [vmem:[#allocation2 + $0x3b0] sm:$0xff]  ;;  %v14923_v7 = vld [vmem:[#allocation134_spill] sm:$0xff]  ;;  %v8381_v55 = vld [vmem:[#allocation2 + $0x3e0] sm:$0xff] }
 0x7b5   :  { %v7951_v54 = vpop.f32.mrb[20].mxu0  ;;  %5684 = vmax.xlane.f32.xlu0 %v5683_v46  ;;  %v12640_v34 = vadd.f32 %v5392_v61, %v5391_v30  ;;  %v5401_v9 = vsel %vm1377_vm2, %v4867_v0, 0.0  ;;  %v5563_v62 = vsel %vm2040_vm8, %v5228_v17, %v5562_v24  ;;  %v5265_v22 = vsel %vm1377_vm2, %v4836_v21, 0.0  ;;  %v14925_v30 = vld [vmem:[#allocation143_spill] sm:$0xff]  ;;  %v8382_v61 = vld [vmem:[#allocation2 + $0x3d8] sm:$0xff] }
 0x7b6   :  { %v5668_v11 = vpop.f32.mrb[21].mxu0  ;;  %v12625_v32 = vadd.f32 %v7951_v54, %v5578_v27  ;;  %v12646_v4 = vadd.f32 %v5401_v9, %v5400_v44  ;;  %v5564_v19 = vsel %vm2042_vm9, %v5237_v41, %v5563_v62  ;;  %v5250_v51 = vrot.slane %v12493_v26, 4  ;;  %v14924_v54 = vld [vmem:[#allocation133_spill] sm:$0xff]  ;;  %v8378_v17 = vld [vmem:[#allocation2 + $0x3d0] sm:$0xff]  ;;  %v8380_v41 = vld [vmem:[#allocation2 + $0x3c8] sm:$0xff] }
 0x7b7   :  { %v12622_v1 = vpop.f32.mrb[22].mxu0  ;;  %v4868_v58 = vmul.f32 %v8375_v47, %v14923_v7  ;;  %v12651_v63 = vadd.f32 %v5668_v11, %v5564_v19  ;;  %v5259_v15 = vrot.slane %v12634_v25, 4  ;;  %v5266_v46 = vsel %vm1377_vm2, %v4837_v18, 0.0  ;;  %v14928_v50 = vld [vmem:[#allocation27_spill] sm:$0xff]  ;;  %v8384_v9 = vld [vmem:[#allocation2 + $0x2c0] sm:$0xff]  ;;  %v8385_v47 = vld [vmem:[#allocation2 + $0x3e8] sm:$0xff] }
 0x7b8   :  { %v12628_v31 = vpop.f32.mrb[23].mxu0  ;;  %v5701_v43 = vsel %vm1377_vm2, %v12625_v32, -inf  ;;  %v4869_v5 = vmul.f32 %v8376_v16, %v14924_v54  ;;  %v4870_v35 = vmul.f32 %v8377_v56, %v14925_v30  ;;  %v12659_v23 = vadd.f32 %v5385_v60, %v5384_v10  ;;  %v8383_v18 = vld [vmem:[#allocation2 + $0x3f0] sm:$0xff]  ;;  %v8386_v7 = vld [vmem:[#allocation2 + $0x2d8] sm:$0xff]  ;;  %v14931_v16 = vld [vmem:[#allocation117_spill] sm:$0xff] }
 0x7b9   :  { %5693 = vmax.xlane.f32.xlu0 %v5692_v8  ;;  %v5394_v0 = vrot.slane %v12640_v34, 4  ;;  %v12662_v13 = vadd.f32 %v5266_v46, %v5265_v22  ;;  %v4872_v11 = vmul.f32 %v8378_v17, %v12301_v14  ;;  %v4839_v21 = vmul.f32 %v8379_v6, %v14926_v2  ;;  %v14929_v62 = vld [vmem:[#allocation131_spill] sm:$0xff]  ;;  %v8388_v56 = vld [vmem:[#allocation2 + $0x3f8] sm:$0xff]  ;;  %v8389_v6 = vld [vmem:[#allocation2 + $0x2e0] sm:$0xff] }
 0x7ba   :  { %v5403_v27 = vrot.slane %v12646_v4, 4  ;;  %v4871_v44 = vmul.f32 %v8380_v41, %v14927_v59  ;;  %v4874_v8 = vmul.f32 %v8381_v55, %v12352_v49  ;;  %v5409_v10 = vsel %vm1377_vm2, %v4868_v58, 0.0  ;;  %v14930_v58 = vld [vmem:[#allocation137_spill] sm:$0xff]  ;;  %v8387_v46 = vld [vmem:[#allocation2 + $0x2d0] sm:$0xff] }
 0x7bb   :  { %v4873_v33 = vmul.f32 %v8382_v61, %v14928_v50  ;;  %v4876_v24 = vmul.f32 %v8383_v18, %v12376_v40  ;;  %v5695_v14 = vsel %vm1377_vm2, %v12651_v63, -inf  ;;  %v5410_v60 = vsel %vm1377_vm2, %v4869_v5, 0.0  ;;  %v8390_v55 = vld [vmem:[#allocation2 + $0x2f0] sm:$0xff]  ;;  %v8391_v18 = vld [vmem:[#allocation2 + $0x2e8] sm:$0xff] }
 0x7bc   :  { %v4838_v22 = vmul.f32 %v8384_v9, %v14929_v62  ;;  %v5418_v19 = vsel %vm1377_vm2, %v4870_v35, 0.0  ;;  %v4875_v49 = vmul.f32 %v8385_v47, %v12316_v38  ;;  %v4840_v40 = vmul.f32 %v8387_v46, %v14931_v16  ;;  %v14932_v35 = vld [vmem:[#allocation109_spill] sm:$0xff]  ;;  %v8392_v9 = vld [vmem:[#allocation2 + $0x2f8] sm:$0xff] }
 0x7bd   :  { %5702 = vmax.xlane.f32.xlu0 %v5701_v43  ;;  %v4841_v43 = vmul.f32 %v8386_v7, %v14930_v58  ;;  %v5427_v54 = vsel %vm1377_vm2, %v4872_v11, 0.0  ;;  %v4877_v5 = vmul.f32 %v8388_v56, %v12364_v39  ;;  %v5411_v30 = vadd.f32 %v5410_v60, %v5409_v10  ;;  %v14933_v39 = vld [vmem:[#allocation122_spill] sm:$0xff]  ;;  %v14934_v60 = vld [vmem:[#allocation47_spill] sm:$0xff]  ;;  %v14935_v62 = vld [vmem:[#allocation128_spill] sm:$0xff] }
 0x7be   :  { %v5419_v17 = vsel %vm1377_vm2, %v4871_v44, 0.0  ;;  %v4842_v2 = vmul.f32 %v8389_v6, %v14932_v35  ;;  %v5436_v38 = vsel %vm1377_vm2, %v4874_v8, 0.0  ;;  %v5428_v59 = vsel %vm1377_vm2, %v4873_v33, 0.0 }
 0x7bf   :  { %v5420_v41 = vadd.f32 %v5419_v17, %v5418_v19  ;;  %v4844_v61 = vmul.f32 %v8390_v55, %v12318_v45  ;;  %v5445_v50 = vsel %vm1377_vm2, %v4876_v24, 0.0  ;;  %v5274_v11 = vsel %vm1377_vm2, %v4838_v22, 0.0 }
 0x7c0   :  { %v4843_v10 = vmul.f32 %v8391_v18, %v14933_v39  ;;  %v5437_v44 = vsel %vm1377_vm2, %v4875_v49, 0.0  ;;  %v5283_v8 = vsel %vm1377_vm2, %v4840_v40, 0.0  ;;  %v4845_v33 = vmul.f32 %v8392_v9, %v14935_v62 }
 0x7c1   :  { %5696 = vmax.xlane.f32.xlu0 %v5695_v14  ;;  %v5429_v14 = vadd.f32 %v5428_v59, %v5427_v54  ;;  %v5446_v19 = vsel %vm1377_vm2, %v4877_v5, 0.0  ;;  %v5438_v45 = vadd.f32 %v5437_v44, %v5436_v38  ;;  %v5275_v24 = vsel %vm1377_vm2, %v4839_v21, 0.0 }
 0x7c2   :  { %v5412_v47 = vrot.slane %v5411_v30, 4  ;;  %v5292_v22 = vsel %vm1377_vm2, %v4842_v2, 0.0  ;;  %v5447_v7 = vadd.f32 %v5446_v19, %v5445_v50  ;;  %v5276_v58 = vadd.f32 %v5275_v24, %v5274_v11 }
 0x7c3   :  { %v5284_v46 = vsel %vm1377_vm2, %v4841_v43, 0.0  ;;  %v5421_v49 = vrot.slane %v5420_v41, 4  ;;  %v5301_v16 = vsel %vm1377_vm2, %v4844_v61, 0.0  ;;  %v5395_v40 = vadd.f32 %v5394_v0, %v12640_v34 }
 0x7c4   :  { %v5285_v54 = vadd.f32 %v5284_v46, %v5283_v8  ;;  %v5293_v56 = vsel %vm1377_vm2, %v4843_v10, 0.0  ;;  %v5430_v17 = vrot.slane %v5429_v14, 4  ;;  %v5404_v5 = vadd.f32 %v5403_v27, %v12646_v4 }
 0x7c5   :  { %6062 = vbcast.lane.b32.xlu1 %v14934_v60, 280  ;;  %v5294_v6 = vadd.f32 %v5293_v56, %v5292_v22  ;;  %v5302_v21 = vsel %vm1377_vm2, %v4845_v33, 0.0  ;;  %v5439_v35 = vrot.slane %v5438_v45, 4  ;;  %v5268_v2 = vrot.slane %v12662_v13, 4 }
 0x7c6   :  { %v5413_v38 = vadd.f32 %v5412_v47, %v5411_v30  ;;  %v5303_v59 = vadd.f32 %v5302_v21, %v5301_v16  ;;  %v5448_v43 = vrot.slane %v5447_v7, 4  ;;  %v5242_v55 = vadd.f32 %v5241_v52, %v12484_v36 }
 0x7c7   :  { %v5251_v34 = vadd.f32 %v5250_v51, %v12493_v26  ;;  %v5277_v0 = vrot.slane %v5276_v58, 4  ;;  %v5422_v61 = vadd.f32 %v5421_v49, %v5420_v41  ;;  %v5260_v4 = vadd.f32 %v5259_v15, %v12634_v25 }
 0x7c8   :  { %v5396_v27 = vrot.slane %v5395_v40, 2  ;;  %v5286_v50 = vrot.slane %v5285_v54, 4  ;;  %v5431_v11 = vadd.f32 %v5430_v17, %v5429_v14  ;;  %v5387_v30 = vrot.slane %v12659_v23, 2 }
 0x7c9   :  { %v5405_v18 = vrot.slane %v5404_v5, 2  ;;  %v5295_v39 = vrot.slane %v5294_v6, 4  ;;  %v5440_v10 = vadd.f32 %v5439_v35, %v5438_v45  ;;  %v5269_v36 = vadd.f32 %v5268_v2, %v12662_v13 }
 0x7ca   :  { %v5414_v52 = vrot.slane %v5413_v38, 2  ;;  %v5304_v44 = vrot.slane %v5303_v59, 4  ;;  %v5449_v8 = vadd.f32 %v5448_v43, %v5447_v7  ;;  %v5243_v26 = vrot.slane %v5242_v55, 2 }
 0x7cb   :  { %v5252_v51 = vrot.slane %v5251_v34, 2  ;;  %v5278_v41 = vadd.f32 %v5277_v0, %v5276_v58  ;;  %v5423_v9 = vrot.slane %v5422_v61, 2  ;;  %v5261_v62 = vrot.slane %v5260_v4, 2 }
 0x7cc   :  { %v5397_v33 = vadd.f32 %v5396_v27, %v5395_v40  ;;  %v5287_v25 = vadd.f32 %v5286_v50, %v5285_v54  ;;  %v5432_v15 = vrot.slane %v5431_v11, 2  ;;  %v5388_v14 = vadd.f32 %v5387_v30, %v12659_v23 }
 0x7cd   :  { %v5406_v19 = vadd.f32 %v5405_v18, %v5404_v5  ;;  %v5296_v24 = vadd.f32 %v5295_v39, %v5294_v6  ;;  %v5441_v47 = vrot.slane %v5440_v10, 2  ;;  %v5270_v22 = vrot.slane %v5269_v36, 2 }
 0x7ce   :  { %v5415_v45 = vadd.f32 %v5414_v52, %v5413_v38  ;;  %v5305_v46 = vadd.f32 %v5304_v44, %v5303_v59  ;;  %v5450_v13 = vrot.slane %v5449_v8, 2  ;;  %v5244_v49 = vadd.f32 %v5243_v26, %v5242_v55 }
 0x7cf   :  { %v5253_v16 = vadd.f32 %v5252_v51, %v5251_v34  ;;  %v5279_v7 = vrot.slane %v5278_v41, 2  ;;  %v5424_v56 = vadd.f32 %v5423_v9, %v5422_v61  ;;  %v5262_v17 = vadd.f32 %v5261_v62, %v5260_v4 }
 0x7d0   :  { %v5398_v58 = vrot.slane %v5397_v33, 1  ;;  %v5288_v21 = vrot.slane %v5287_v25, 2  ;;  %v5433_v35 = vadd.f32 %v5432_v15, %v5431_v11  ;;  %v5389_v40 = vrot.slane %v5388_v14, 1 }
 0x7d1   :  { %v5407_v54 = vrot.slane %v5406_v19, 1  ;;  %v5297_v2 = vrot.slane %v5296_v24, 2  ;;  %v5442_v43 = vadd.f32 %v5441_v47, %v5440_v10  ;;  %v5271_v23 = vadd.f32 %v5270_v22, %v5269_v36 }
 0x7d2   :  { %v5416_v5 = vrot.slane %v5415_v45, 1  ;;  %v5306_v6 = vrot.slane %v5305_v46, 2  ;;  %v5451_v0 = vadd.f32 %v5450_v13, %v5449_v8  ;;  %v5245_v38 = vrot.slane %v5244_v49, 1 }
 0x7d3   :  { %v5254_v59 = vrot.slane %v5253_v16, 1  ;;  %v5280_v55 = vadd.f32 %v5279_v7, %v5278_v41  ;;  %v5425_v34 = vrot.slane %v5424_v56, 1  ;;  %v5263_v27 = vrot.slane %v5262_v17, 1 }
 0x7d4   :  { %v5399_v61 = vadd.f32 %v5398_v58, %v5397_v33  ;;  %v5289_v4 = vadd.f32 %v5288_v21, %v5287_v25  ;;  %v5434_v50 = vrot.slane %v5433_v35, 1  ;;  %v5390_v30 = vadd.f32 %v5389_v40, %v5388_v14 }
 0x7d5   :  { %v5408_v11 = vadd.f32 %v5407_v54, %v5406_v19  ;;  %v5298_v18 = vadd.f32 %v5297_v2, %v5296_v24  ;;  %v5443_v39 = vrot.slane %v5442_v43, 1  ;;  %v5272_v52 = vrot.slane %v5271_v23, 1 }
 0x7d6   :  { %v5417_v10 = vadd.f32 %v5416_v5, %v5415_v45  ;;  %v5452_v36 = vrot.slane %v5451_v0, 1  ;;  %v5307_v44 = vadd.f32 %v5306_v6, %v5305_v46  ;;  %v5246_v26 = vadd.f32 %v5245_v38, %v5244_v49 }
 0x7d7   :  { %6058 = vbcast.lane.b32.xlu0 %v14934_v60, 272  ;;  %v5281_v8 = vrot.slane %v5280_v55, 1  ;;  %v5426_v51 = vadd.f32 %v5425_v34, %v5424_v56  ;;  %v5255_v60 = vadd.f32 %v5254_v59, %v5253_v16  ;;  %v5290_v9 = vrot.slane %v5289_v4, 1  ;;  %v14936_v59 = vld [vmem:[#allocation48_spill] sm:$0xff]  ;;  %v12748_v34 = vpop.permute.xlu0 %7080 }
 0x7d8   :  { %v5435_v62 = vadd.f32 %v5434_v50, %v5433_v35  ;;  %v5579_v41 = vsel %vm2030_vm3, %v5399_v61, %v5390_v30  ;;  %v5264_v15 = vadd.f32 %v5263_v27, %v5262_v17  ;;  %v5444_v33 = vadd.f32 %v5443_v39, %v5442_v43 }
 0x7d9   :  { %v5580_v25 = vsel %vm2032_vm4, %v5408_v11, %v5579_v41  ;;  %v5299_v14 = vrot.slane %v5298_v18, 1  ;;  %v5273_v19 = vadd.f32 %v5272_v52, %v5271_v23  ;;  %v5453_v24 = vadd.f32 %v5452_v36, %v5451_v0 }
 0x7da   :  { %v5581_v47 = vsel %vm2034_vm5, %v5417_v10, %v5580_v25  ;;  %v5308_v22 = vrot.slane %v5307_v44, 1  ;;  %v5282_v45 = vadd.f32 %v5281_v8, %v5280_v55  ;;  %v5291_v49 = vadd.f32 %v5290_v9, %v5289_v4 }
 0x7db   :  { %v5582_v46 = vsel %vm2036_vm6, %v5426_v51, %v5581_v47  ;;  %v5565_v16 = vsel %vm2030_vm3, %v5255_v60, %v5246_v26  ;;  %v5300_v56 = vadd.f32 %v5299_v14, %v5298_v18  ;;  %v12752_v27 = vpop.permute.xlu0 %7084 }
 0x7dc   :  { %v5583_v13 = vsel %vm2038_vm7, %v5435_v62, %v5582_v46  ;;  %v5566_v17 = vsel %vm2032_vm4, %v5264_v15, %v5565_v16  ;;  %v5309_v21 = vadd.f32 %v5308_v22, %v5307_v44 }
 0x7dd   :  { %v5584_v7 = vsel %vm2040_vm8, %v5444_v33, %v5583_v13  ;;  %v5567_v35 = vsel %vm2034_vm5, %v5273_v19, %v5566_v17  ;;  %v14937_v17 = vld [vmem:[#allocation49_spill] sm:$0xff] }
 0x7de   :  { %v5585_v58 = vsel %vm2042_vm9, %v5453_v24, %v5584_v7  ;;  %v5568_v54 = vsel %vm2036_vm6, %v5282_v45, %v5567_v35 }
 0x7df   :  { %v12728_v40 = vadd.f32 %v12622_v1, %v5585_v58  ;;  %v5569_v2 = vsel %vm2038_vm7, %v5291_v49, %v5568_v54  ;;  %v12741_v1 = vpop.permute.xlu1 %7090  ;;  %v12756_v4 = vpop.permute.xlu0 %5866 }
 0x7e0   :  { %v5570_v43 = vsel %vm2040_vm8, %v5300_v56, %v5569_v2 }
 0x7e1   :  { %v5571_v23 = vsel %vm2042_vm9, %v5309_v21, %v5570_v43  ;;  %v5704_v6 = vsel %vm1377_vm2, %v12728_v40, -inf }
 0x7e2   :  { %v12735_v5 = vadd.f32 %v12628_v31, %v5571_v23 }
 0x7e3   :  { %v12743_v38 = vpop.permute.xlu1 %7092  ;;  %v12760_v30 = vpop.permute.xlu0 %5874 }
 0x7e4   :  { %v5698_v0 = vsel %vm1377_vm2, %v12735_v5, -inf }
 0x7e7   :  { %v12746_v55 = vpop.permute.xlu1 %7094  ;;  %v12764_v18 = vpop.permute.xlu0 %5930 }
 0x7e9   :  { %5705 = vmax.xlane.f32.xlu1 %v5704_v6 }
 0x7eb   :  { %v12750_v31 = vpop.permute.xlu1 %7082  ;;  %v12768_v52 = vpop.permute.xlu0 %5938 }
 0x7ed   :  { %5699 = vmax.xlane.f32.xlu1 %v5698_v0 }
 0x7ef   :  { %v12754_v61 = vpop.permute.xlu1 %7086  ;;  %v12772_v36 = vpop.permute.xlu0 %5882 }
 0x7f3   :  { %v12758_v50 = vpop.permute.xlu1 %5870  ;;  %v12776_v26 = vpop.permute.xlu0 %5946 }
 0x7f7   :  { %v12762_v11 = vpop.permute.xlu1 %5878  ;;  %v12780_v51 = vpop.permute.xlu0 %5994 }
 0x7fb   :  { %v12766_v39 = vpop.permute.xlu1 %5934  ;;  %v12784_v9 = vpop.permute.xlu0 %6002 }
 0x7fe   :  { %6070 = vbcast.lane.b32.xlu1 %v14936_v59, 280 }
 0x7ff   :  { %v12770_v10 = vpop.permute.xlu1 %5942 }
 0x803   :  { %v12774_v44 = vpop.permute.xlu1 %5886 }
 0x807   :  { %v12778_v8 = vpop.permute.xlu1 %5950 }
 0x808   :  { %v6397_v29 = vmul.f32 %v8405_v20, %v12778_v8 }
 0x80b   :  { %v12782_v60 = vpop.permute.xlu1 %5998 }
 0x80f   :  { %v12786_v62 = vpop.permute.xlu1 %6006 }
 0x83e   :  { %v5691_v41 = vpop.xlane.xlu0 %5690 }
 0x83f   :  { %v5709_v15 = vsub.f32 %v12590_v57, %v5691_v41 }
 0x841   :  { %v5719_v33 = vmul.f32 1.442695, %v5709_v15  ;;  %v5688_v25 = vpop.xlane.xlu1 %5687 }
 0x842   :  { %v5685_v14 = vpop.xlane.xlu0 %5684  ;;  %v5708_v24 = vsub.f32 %v12600_v12, %v5688_v25 }
 0x843   :  { %8186 = vpow2.f32 %v5719_v33  ;;  %v5707_v19 = vsub.f32 %v12594_v37, %v5685_v14 }
 0x844   :  { %v5717_v46 = vmul.f32 1.442695, %v5708_v24 }
 0x845   :  { %v5715_v47 = vmul.f32 1.442695, %v5707_v19  ;;  %v12810_v21 = vpop.permute.xlu1 %6062 }
 0x846   :  { %v5694_v22 = vpop.xlane.xlu0 %5693 }
 0x847   :  { %8188 = vpow2.f32 %v5715_v47  ;;  %v5710_v45 = vsub.f32 %v12607_v28, %v5694_v22  ;;  %v14938_v47 = vld [vmem:[#allocation50_spill] sm:$0xff]  ;;  %v14939_v22 = vld [vmem:[#allocation51_spill] sm:$0xff] }
 0x849   :  { %v5721_v13 = vmul.f32 1.442695, %v5710_v45  ;;  %v14940_v45 = vld [vmem:[#allocation52_spill] sm:$0xff] }
 0x84a   :  { %v5703_v58 = vpop.xlane.xlu0 %5702 }
 0x84b   :  { %8190 = vpow2.f32 %v5721_v13  ;;  %v5713_v35 = vsub.f32 %v12625_v32, %v5703_v58  ;;  %v14942_v13 = vld [vmem:[#allocation55_spill] sm:$0xff]  ;;  %v14948_v58 = vld [vmem:[#allocation62_spill] sm:$0xff] }
 0x84c   :  { %8192 = vpow2.f32 %v5717_v46  ;;  %v14941_v46 = vld [vmem:[#allocation54_spill] sm:$0xff] }
 0x84d   :  { %v12792_v49 = vpop.eup %8186  ;;  %v5727_v2 = vmul.f32 1.442695, %v5713_v35  ;;  %v14949_v35 = vld [vmem:[#allocation63_spill] sm:$0xff] }
 0x84e   :  { %v5737_v57 = vsel %vm1377_vm2, %v12792_v49, 0.0  ;;  %v5697_v54 = vpop.xlane.xlu0 %5696 }
 0x84f   :  { %5738 = vadd.xlane.f32.xlu0 %v5737_v57  ;;  %v5711_v43 = vsub.f32 %v12651_v63, %v5697_v54  ;;  %8194 = vpow2.f32 %v5727_v2  ;;  %v14943_v57 = vld [vmem:[#allocation57_spill] sm:$0xff]  ;;  %v14950_v54 = vld [vmem:[#allocation64_spill] sm:$0xff] }
 0x850   :  { %v14951_v2 = vld [vmem:[#allocation65_spill] sm:$0xff] }
 0x851   :  { %v12796_v16 = vpop.eup %8188  ;;  %v5723_v0 = vmul.f32 1.442695, %v5711_v43  ;;  %v14952_v43 = vld [vmem:[#allocation66_spill] sm:$0xff] }
 0x852   :  { %v5731_v37 = vsel %vm1377_vm2, %v12796_v16, 0.0 }
 0x853   :  { %5732 = vadd.xlane.f32.xlu0 %v5731_v37  ;;  %8196 = vpow2.f32 %v5723_v0  ;;  %v14944_v37 = vld [vmem:[#allocation58_spill] sm:$0xff] }
 0x855   :  { %v12800_v12 = vpop.eup %8190 }
 0x856   :  { %v5740_v28 = vsel %vm1377_vm2, %v12800_v12, 0.0  ;;  %v12804_v7 = vpop.eup %8192 }
 0x857   :  { %5741 = vadd.xlane.f32.xlu1 %v5740_v28  ;;  %v5734_v56 = vsel %vm1377_vm2, %v12804_v7, 0.0  ;;  %v14945_v28 = vld [vmem:[#allocation59_spill] sm:$0xff] }
 0x859   :  { %v12816_v25 = vpop.eup %8194 }
 0x85a   :  { %v5749_v32 = vsel %vm1377_vm2, %v12816_v25, 0.0 }
 0x85b   :  { %5735 = vadd.xlane.f32.xlu1 %v5734_v56  ;;  %v14946_v56 = vld [vmem:[#allocation60_spill] sm:$0xff] }
 0x85d   :  { %v12820_v14 = vpop.eup %8196 }
 0x869   :  { %6066 = vbcast.lane.b32.xlu0 %v14936_v59, 272 }
 0x86c   :  { %5894 = vbcast.lane.b32.xlu1 %v14937_v17, 280 }
 0x876   :  { %v5706_v23 = vpop.xlane.xlu1 %5705 }
 0x877   :  { %v5714_v6 = vsub.f32 %v12728_v40, %v5706_v23  ;;  %v5743_v40 = vsel %vm1377_vm2, %v12820_v14, 0.0  ;;  %v12860_v23 = vpop.permute.xlu0 %6058 }
 0x879   :  { %v5729_v59 = vmul.f32 1.442695, %v5714_v6  ;;  %v14953_v6 = vld [vmem:[#allocation67_spill] sm:$0xff] }
 0x87a   :  { %v5700_v41 = vpop.xlane.xlu1 %5699 }
 0x87b   :  { %v5712_v15 = vsub.f32 %v12735_v5, %v5700_v41  ;;  %8198 = vpow2.f32 %v5729_v59 }
 0x87d   :  { %v5725_v33 = vmul.f32 1.442695, %v5712_v15  ;;  %v14954_v15 = vld [vmem:[#allocation68_spill] sm:$0xff] }
 0x87e   :  { %v12865_v41 = vpop.permute.xlu1 %6070 }
 0x87f   :  { %8200 = vpow2.f32 %v5725_v33 }
 0x885   :  { %v12822_v63 = vpop.eup %8198 }
 0x886   :  { %v5752_v24 = vsel %vm1377_vm2, %v12822_v63, 0.0 }
 0x888   :  { %5750 = vadd.xlane.f32.xlu0 %v5749_v32  ;;  %v14955_v32 = vld [vmem:[#allocation69_spill] sm:$0xff] }
 0x889   :  { %v12826_v19 = vpop.eup %8200 }
 0x88a   :  { %v5746_v5 = vsel %vm1377_vm2, %v12826_v19, 0.0 }
 0x88c   :  { %5744 = vadd.xlane.f32.xlu0 %v5743_v40 }
 0x890   :  { %5747 = vadd.xlane.f32.xlu1 %v5746_v5  ;;  %5753 = vadd.xlane.f32.xlu0 %v5752_v24  ;;  %v14956_v5 = vld [vmem:[#allocation70_spill] sm:$0xff]  ;;  %v14957_v24 = vld [vmem:[#allocation71_spill] sm:$0xff] }
 0x8a1   :  { %5958 = vbcast.lane.b32.xlu1 %v14938_v47, 280 }
 0x8a5   :  { %6014 = vbcast.lane.b32.xlu1 %v14939_v22, 280 }
 0x8a6   :  { %5890 = vbcast.lane.b32.xlu0 %v14937_v17, 272  ;;  %v14947_v17 = vld [vmem:[#allocation61_spill] sm:$0xff] }
 0x8a9   :  { %6078 = vbcast.lane.b32.xlu1 %v14940_v45, 280 }
 0x8aa   :  { %5954 = vbcast.lane.b32.xlu0 %v14938_v47, 272 }
 0x8ad   :  { %5902 = vbcast.lane.b32.xlu1 %v14941_v46, 280 }
 0x8ae   :  { %6010 = vbcast.lane.b32.xlu0 %v14939_v22, 272 }
 0x8b1   :  { %5966 = vbcast.lane.b32.xlu1 %v14942_v13, 280 }
 0x8b2   :  { %6074 = vbcast.lane.b32.xlu0 %v14940_v45, 272  ;;  %v14958_v45 = vld [vmem:[#allocation72_spill] sm:$0xff] }
 0x8b5   :  { %6022 = vbcast.lane.b32.xlu1 %v14943_v57, 280 }
 0x8b6   :  { %5898 = vbcast.lane.b32.xlu0 %v14941_v46, 272 }
 0x8b9   :  { %6086 = vbcast.lane.b32.xlu1 %v14944_v37, 280 }
 0x8ba   :  { %5962 = vbcast.lane.b32.xlu0 %v14942_v13, 272 }
 0x8bd   :  { %5910 = vbcast.lane.b32.xlu1 %v14945_v28, 280 }
 0x8be   :  { %6018 = vbcast.lane.b32.xlu0 %v14943_v57, 272 }
 0x8c1   :  { %5974 = vbcast.lane.b32.xlu1 %v14946_v56, 280 }
 0x8c2   :  { %6082 = vbcast.lane.b32.xlu0 %v14944_v37, 272 }
 0x8c5   :  { %6030 = vbcast.lane.b32.xlu1 %v14947_v17, 280 }
 0x8c6   :  { %5906 = vbcast.lane.b32.xlu0 %v14945_v28, 272 }
 0x8c9   :  { %6094 = vbcast.lane.b32.xlu1 %v14948_v58, 280 }
 0x8ca   :  { %5970 = vbcast.lane.b32.xlu0 %v14946_v56, 272 }
 0x8cd   :  { %5918 = vbcast.lane.b32.xlu1 %v14949_v35, 280 }
 0x8ce   :  { %6026 = vbcast.lane.b32.xlu0 %v14947_v17, 272  ;;  %v14959_v17 = vld [vmem:[#allocation73_spill] sm:$0xff] }
 0x8d1   :  { %5982 = vbcast.lane.b32.xlu1 %v14950_v54, 280 }
 0x8d2   :  { %6090 = vbcast.lane.b32.xlu0 %v14948_v58, 272 }
 0x8d5   :  { %6038 = vbcast.lane.b32.xlu1 %v14951_v2, 280 }
 0x8d6   :  { %5914 = vbcast.lane.b32.xlu0 %v14949_v35, 272 }
 0x8d9   :  { %6102 = vbcast.lane.b32.xlu1 %v14952_v43, 280 }
 0x8da   :  { %5978 = vbcast.lane.b32.xlu0 %v14950_v54, 272  ;;  %v14960_v54 = vld [vmem:[#allocation74_spill] sm:$0xff] }
 0x8dc   :  { %v5739_v0 = vpop.xlane.xlu0 %5738 }
 0x8dd   :  { %5926 = vbcast.lane.b32.xlu1 %v14953_v6, 280 }
 0x8de   :  { %6034 = vbcast.lane.b32.xlu0 %v14951_v2, 272  ;;  %v14964_v2 = vld [vmem:[#allocation78_spill] sm:$0xff] }
 0x8e0   :  { %v5733_v59 = vpop.xlane.xlu0 %5732 }
 0x8e1   :  { %5990 = vbcast.lane.b32.xlu1 %v14954_v15, 280 }
 0x8e2   :  { %6098 = vbcast.lane.b32.xlu0 %v14952_v43, 272  ;;  %v7243_v43 = vsel %vm2101_vm1, %v12743_v38, 0 }
 0x8e4   :  { %v5742_v33 = vpop.xlane.xlu1 %5741 }
 0x8e5   :  { %6046 = vbcast.lane.b32.xlu1 %v14955_v32, 280  ;;  %8202 = vrcp.f32 %v5742_v33 }
 0x8e6   :  { %5922 = vbcast.lane.b32.xlu0 %v14953_v6, 272  ;;  %8204 = vrcp.f32 %v5733_v59  ;;  %v12909_v6 = vpop.permute.xlu0 %6066 }
 0x8e7   :  { %8206 = vrcp.f32 %v5739_v0  ;;  %v14966_v0 = vld [vmem:[#allocation80_spill] sm:$0xff] }
 0x8e8   :  { %v5736_v40 = vpop.xlane.xlu1 %5735 }
 0x8e9   :  { %8208 = vrcp.f32 %v5736_v40  ;;  %6110 = vbcast.lane.b32.xlu1 %v14956_v5, 280 }
 0x8ea   :  { %5986 = vbcast.lane.b32.xlu0 %v14954_v15, 272  ;;  %v7246_v15 = vsel %vm2101_vm1, %v12746_v55, 0 }
 0x8ec   :  { %v12917_v33 = vpop.permute.xlu1 %5894 }
 0x8ed   :  { %6054 = vbcast.lane.b32.xlu1 %v14957_v24, 280 }
 0x8ee   :  { %6042 = vbcast.lane.b32.xlu0 %v14955_v32, 272  ;;  %v14968_v32 = vld [vmem:[#allocation82_spill] sm:$0xff] }
 0x8ef   :  { %v8203_v47 = vpop.eup %8202 }
 0x8f0   :  { %v8205_v22 = vpop.eup %8204  ;;  %v5766_v57 = vmul.f32 %v8203_v47, %v12800_v12  ;;  %v7237_v12 = vsel %vm2101_vm1, %v12423_v3, 0  ;;  %v14963_v3 = vld [vmem:[#allocation77_spill] sm:$0xff]  ;;  %v14970_v47 = vld [vmem:[#allocation84_spill] sm:$0xff] }
 0x8f1   :  { %6118 = vbcast.lane.b32.xlu1 %v14958_v45, 280  ;;  %v8207_v46 = vpop.eup %8206  ;;  %v5763_v37 = vmul.f32 %v8205_v22, %v12796_v16  ;;  %v14962_v16 = vld [vmem:[#allocation76_spill] sm:$0xff] }
 0x8f2   :  { %6106 = vbcast.lane.b32.xlu0 %v14956_v5, 272  ;;  %v5765_v56 = vmul.f32 %v8207_v46, %v12792_v49  ;;  %v14961_v49 = vld [vmem:[#allocation75_spill] sm:$0xff]  ;;  %v14971_v46 = vld [vmem:[#allocation85_spill] sm:$0xff] }
 0x8f3   :  { %v8209_v13 = vpop.eup %8208  ;;  %v14969_v5 = vld [vmem:[#allocation83_spill] sm:$0xff] }
 0x8f4   :  { %v5764_v28 = vmul.f32 %v8209_v13, %v12804_v7  ;;  %v5772_v35 = vpack.c.bf16 %v5766_v57, %v5765_v56  ;;  %v7240_v7 = vsel %vm2101_vm1, %v12741_v1, 0 }
 0x8f5   :  { %6126 = vbcast.lane.b32.xlu1 %v14959_v17, 280 }
 0x8f6   :  { %6050 = vbcast.lane.b32.xlu0 %v14957_v24, 272  ;;  %v5771_v58 = vpack.c.bf16 %v5764_v28, %v5763_v37 }
 0x8f8   :  { %7961 = vmatprep.mubr.msk.bf16.mxu1 %vm1377_vm2, %v5771_v58  ;;  %v14972_v58 = vld [vmem:[#allocation86_spill] sm:$0xff] }
 0x8f9   :  { %6134 = vbcast.lane.b32.xlu1 %v14960_v54, 280  ;;  %7962 = vmatmul.mubr.msk.bf16.vlgmr.msra.gmra.mrb[32].mxu1 %vm1377_vm2, %v5772_v35 }
 0x8fa   :  { %7970 = vmatpush3.bf16.xpose.msra.mxu1 %v7237_v12  ;;  %6114 = vbcast.lane.b32.xlu0 %v14958_v45, 272 }
 0x8fb   :  { %8034 = vmatprep.subr.msk.bf16.mxu1 %vm2101_vm1, %v12741_v1  ;;  %v14965_v1 = vld [vmem:[#allocation79_spill] sm:$0xff] }
 0x8fd   :  { %6190 = vbcast.lane.b32.xlu1 %v14961_v49, 280 }
 0x8fe   :  { %6122 = vbcast.lane.b32.xlu0 %v14959_v17, 272 }
 0x901   :  { %6198 = vbcast.lane.b32.xlu1 %v14962_v16, 280 }
 0x902   :  { %7972 = vmatpush3.bf16.xpose.msra.mxu1 %v7240_v7  ;;  %6130 = vbcast.lane.b32.xlu0 %v14960_v54, 272 }
 0x903   :  { %8035 = vmatprep.subr.msk.bf16.mxu1 %vm2101_vm1, %v12743_v38  ;;  %v14967_v38 = vld [vmem:[#allocation81_spill] sm:$0xff] }
 0x905   :  { %6142 = vbcast.lane.b32.xlu1 %v14963_v3, 280 }
 0x906   :  { %6186 = vbcast.lane.b32.xlu0 %v14961_v49, 272 }
 0x909   :  { %6206 = vbcast.lane.b32.xlu1 %v14964_v2, 280 }
 0x90a   :  { %7974 = vmatpush3.bf16.xpose.msra.mxu1 %v7243_v43  ;;  %6194 = vbcast.lane.b32.xlu0 %v14962_v16, 272  ;;  %v14973_v43 = vld [vmem:[#allocation87_spill] sm:$0xff] }
 0x90b   :  { %8036 = vmatprep.subr.msk.bf16.mxu1 %vm2101_vm1, %v12746_v55 }
 0x90d   :  { %6254 = vbcast.lane.b32.xlu1 %v14965_v1, 280 }
 0x90e   :  { %6138 = vbcast.lane.b32.xlu0 %v14963_v3, 272 }
 0x911   :  { %6262 = vbcast.lane.b32.xlu1 %v14966_v0, 280 }
 0x912   :  { %7976 = vmatpush3.bf16.xpose.msra.mxu1 %v7246_v15  ;;  %6202 = vbcast.lane.b32.xlu0 %v14964_v2, 272 }
 0x915   :  { %6318 = vbcast.lane.b32.xlu1 %v14967_v38, 280  ;;  %v5751_v59 = vpop.xlane.xlu0 %5750 }
 0x916   :  { %6250 = vbcast.lane.b32.xlu0 %v14965_v1, 272 }
 0x919   :  { %6326 = vbcast.lane.b32.xlu1 %v14968_v32, 280  ;;  %v5745_v40 = vpop.xlane.xlu0 %5744 }
 0x91a   :  { %6258 = vbcast.lane.b32.xlu0 %v14966_v0, 272  ;;  %8210 = vrcp.f32 %v5745_v40  ;;  %v14977_v40 = vld [vmem:[#allocation91_spill] sm:$0xff] }
 0x91b   :  { %8212 = vrcp.f32 %v5751_v59 }
 0x91d   :  { %6150 = vbcast.lane.b32.xlu1 %v14969_v5, 280  ;;  %v5748_v55 = vpop.xlane.xlu1 %5747  ;;  %v5754_v24 = vpop.xlane.xlu0 %5753 }
 0x91e   :  { %8214 = vrcp.f32 %v5748_v55  ;;  %6314 = vbcast.lane.b32.xlu0 %v14967_v38, 272 }
 0x91f   :  { %8216 = vrcp.f32 %v5754_v24 }
 0x921   :  { %6214 = vbcast.lane.b32.xlu1 %v14970_v47, 280  ;;  %v12924_v22 = vpop.permute.xlu1 %5958  ;;  %v12926_v45 = vpop.permute.xlu0 %5890 }
 0x922   :  { %6322 = vbcast.lane.b32.xlu0 %v14968_v32, 272 }
 0x924   :  { %v8211_v37 = vpop.eup %8210 }
 0x925   :  { %6270 = vbcast.lane.b32.xlu1 %v14971_v46, 280  ;;  %v12930_v13 = vpop.permute.xlu1 %6014  ;;  %v12932_v57 = vpop.permute.xlu0 %5954  ;;  %v5767_v12 = vmul.f32 %v8211_v37, %v12820_v14  ;;  %v8394_v37 = vld [vmem:[#allocation2 + $0x18] sm:$0xff] }
 0x926   :  { %6146 = vbcast.lane.b32.xlu0 %v14969_v5, 272  ;;  %v8213_v28 = vpop.eup %8212 }
 0x927   :  { %v5769_v16 = vmul.f32 %v8213_v28, %v12816_v25  ;;  %v14974_v25 = vld [vmem:[#allocation88_spill] sm:$0xff]  ;;  %v6379_v28 = vmul.f32 %v8394_v37, %v12762_v11 }
 0x928   :  { %v8215_v56 = vpop.eup %8214  ;;  %v8399_v37 = vld [vmem:[#allocation2 + $0x98] sm:$0xff] }
 0x929   :  { %v8217_v17 = vpop.eup %8216  ;;  %6334 = vbcast.lane.b32.xlu1 %v14972_v58, 280  ;;  %v12936_v35 = vpop.permute.xlu1 %6078  ;;  %v5768_v49 = vmul.f32 %v8215_v56, %v12826_v19  ;;  %v14975_v19 = vld [vmem:[#allocation89_spill] sm:$0xff] }
 0x92a   :  { %v12938_v54 = vpop.permute.xlu0 %6010  ;;  %6210 = vbcast.lane.b32.xlu0 %v14970_v47, 272  ;;  %v5770_v7 = vmul.f32 %v8217_v17, %v12822_v63  ;;  %v8393_v47 = vld [vmem:[#allocation2 + $0x8] sm:$0xff]  ;;  %v8395_v56 = vld [vmem:[#allocation2] sm:$0xff] }
 0x92b   :  { %v5773_v3 = vpack.c.bf16 %v5768_v49, %v5767_v12  ;;  %v6376_v17 = vmul.f32 %v8395_v56, %v12756_v4  ;;  %v14979_v12 = vld [vmem:[#allocation93_spill] sm:$0xff]  ;;  %v14981_v56 = vld [vmem:[#allocation95_spill] sm:$0xff] }
 0x92c   :  { %v5774_v2 = vpack.c.bf16 %v5770_v7, %v5769_v16 }
 0x92d   :  { %6158 = vbcast.lane.b32.xlu1 %v14973_v43, 280  ;;  %v12946_v1 = vpop.permute.xlu1 %5902  ;;  %7965 = vmatprep.mubr.msk.bf16.mxu1 %vm1377_vm2, %v5773_v3  ;;  %v6504_v11 = vsel %vm1377_vm2, %v6376_v17, 0.0  ;;  %v8397_v3 = vld [vmem:[#allocation2 + $0x88] sm:$0xff] }
 0x92e   :  { %v12949_v0 = vpop.permute.xlu0 %6074  ;;  %6266 = vbcast.lane.b32.xlu0 %v14971_v46, 272  ;;  %7966 = vmatmul.mubr.msk.bf16.gmra.mrb[36].mxu1 %vm1377_vm2, %v5774_v2  ;;  %v6377_v46 = vmul.f32 %v8393_v47, %v12758_v50  ;;  %v6514_v50 = vsel %vm1377_vm2, %v6379_v28, 0.0  ;;  %v6393_v4 = vmul.f32 %v8397_v3, %v12766_v39  ;;  %v8398_v47 = vld [vmem:[#allocation2 + $0x80] sm:$0xff]  ;;  %v6395_v39 = vmul.f32 %v8399_v37, %v12770_v10  ;;  %v14983_v10 = vld [vmem:[#allocation96_spill] sm:$0xff] }
 0x92f   :  { %7977 = vmatprep.mubr.msk.bf16.mxu1 %vm2101_vm1, %v12748_v34  ;;  %v14976_v34 = vld [vmem:[#allocation90_spill] sm:$0xff] }
 0x930   :  { %v6505_v7 = vsel %vm1377_vm2, %v6377_v46, 0.0  ;;  %v6577_v46 = vsel %vm1377_vm2, %v6393_v4, 0.0 }
 0x931   :  { %6222 = vbcast.lane.b32.xlu1 %v14974_v25, 280  ;;  %v12956_v14 = vpop.permute.xlu1 %5966  ;;  %v6506_v2 = vadd.f32 %v6505_v7, %v6504_v11  ;;  %v6586_v11 = vsel %vm1377_vm2, %v6395_v39, 0.0 }
 0x932   :  { %v12958_v63 = vpop.permute.xlu0 %5898  ;;  %6330 = vbcast.lane.b32.xlu0 %v14972_v58, 272  ;;  %v8396_v58 = vld [vmem:[#allocation2 + $0x10] sm:$0xff] }
 0x933   :  { %v6507_v28 = vrot.slane %v6506_v2, 4 }
 0x935   :  { %6278 = vbcast.lane.b32.xlu1 %v14975_v19, 280  ;;  %v12962_v15 = vpop.permute.xlu1 %6022  ;;  %v6508_v3 = vadd.f32 %v6507_v28, %v6506_v2 }
 0x936   :  { %v12964_v38 = vpop.permute.xlu0 %5962  ;;  %6154 = vbcast.lane.b32.xlu0 %v14973_v43, 272  ;;  %7978 = vmatmul.mubr.msk.bf16.vlgmr.msra.gmra.mrb[40].mxu1 %vm2101_vm1, %v12750_v31  ;;  %v14978_v31 = vld [vmem:[#allocation92_spill] sm:$0xff]  ;;  %v14980_v43 = vld [vmem:[#allocation94_spill] sm:$0xff] }
 0x937   :  { %7981 = vmatprep.mubr.msk.bf16.mxu1 %vm2101_vm1, %v12752_v27 }
 0x939   :  { %6342 = vbcast.lane.b32.xlu1 %v14976_v34, 280  ;;  %v12972_v59 = vpop.permute.xlu1 %6086 }
 0x93a   :  { %v12974_v32 = vpop.permute.xlu0 %6018  ;;  %6218 = vbcast.lane.b32.xlu0 %v14974_v25, 272 }
 0x93d   :  { %6166 = vbcast.lane.b32.xlu1 %v14977_v40, 280  ;;  %v12978_v5 = vpop.permute.xlu1 %5910 }
 0x93e   :  { %v12980_v55 = vpop.permute.xlu0 %6082  ;;  %6274 = vbcast.lane.b32.xlu0 %v14975_v19, 272  ;;  %7982 = vmatmul.mubr.msk.bf16.gmra.mrb[44].mxu1 %vm2101_vm1, %v12754_v61  ;;  %v6378_v61 = vmul.f32 %v8396_v58, %v12760_v30 }
 0x940   :  { %v6513_v30 = vsel %vm1377_vm2, %v6378_v61, 0.0 }
 0x941   :  { %6230 = vbcast.lane.b32.xlu1 %v14978_v31, 280  ;;  %v12986_v27 = vpop.permute.xlu1 %5974 }
 0x942   :  { %v12988_v24 = vpop.permute.xlu0 %5906  ;;  %6338 = vbcast.lane.b32.xlu0 %v14976_v34, 272  ;;  %v6515_v34 = vadd.f32 %v6514_v50, %v6513_v30  ;;  %v8400_v50 = vld [vmem:[#allocation2 + $0x90] sm:$0xff] }
 0x944   :  { %v6516_v61 = vrot.slane %v6515_v34, 4 }
 0x945   :  { %6286 = vbcast.lane.b32.xlu1 %v14979_v12, 280  ;;  %v12996_v49 = vpop.permute.xlu1 %6030 }
 0x946   :  { %v12998_v16 = vpop.permute.xlu0 %5970  ;;  %6162 = vbcast.lane.b32.xlu0 %v14977_v40, 272  ;;  %v6392_v40 = vmul.f32 %v8398_v47, %v12764_v18  ;;  %v6394_v18 = vmul.f32 %v8400_v50, %v12768_v52  ;;  %v6517_v47 = vadd.f32 %v6516_v61, %v6515_v34  ;;  %v8401_v52 = vld [vmem:[#allocation2 + $0x28] sm:$0xff]  ;;  %v8402_v50 = vld [vmem:[#allocation2 + $0x20] sm:$0xff] }
 0x947   :  { %v6380_v34 = vmul.f32 %v8402_v50, %v12772_v36 }
 0x948   :  { %v6576_v7 = vsel %vm1377_vm2, %v6392_v40, 0.0  ;;  %v6585_v37 = vsel %vm1377_vm2, %v6394_v18, 0.0  ;;  %v6518_v28 = vrot.slane %v6517_v47, 2 }
 0x949   :  { %6350 = vbcast.lane.b32.xlu1 %v14980_v43, 280  ;;  %v13007_v25 = vpop.permute.xlu1 %6094  ;;  %v6587_v53 = vadd.f32 %v6586_v11, %v6585_v37  ;;  %v6522_v48 = vsel %vm1377_vm2, %v6380_v34, 0.0 }
 0x94a   :  { %v13009_v19 = vpop.permute.xlu0 %6026  ;;  %6226 = vbcast.lane.b32.xlu0 %v14978_v31, 272  ;;  %v6578_v31 = vadd.f32 %v6577_v46, %v6576_v7  ;;  %v6509_v46 = vrot.slane %v6508_v3, 2  ;;  %v14985_v7 = vld [vmem:[#allocation97_spill] sm:$0xff]  ;;  %v13045_v42 = vadd.f32 %v6518_v28, %v6517_v47  ;;  %v14989_v47 = vld [vmem:[#allocation99_spill] sm:$0xff] }
 0x94c   :  { %v6579_v40 = vrot.slane %v6578_v31, 4  ;;  %v13040_v11 = vadd.f32 %v6509_v46, %v6508_v3 }
 0x94d   :  { %6174 = vbcast.lane.b32.xlu1 %v14981_v56, 280  ;;  %v13016_v17 = vpop.permute.xlu1 %5918 }
 0x94e   :  { %14982 = vst [vmem:[#allocation141_spill] sm:$0xff] %v13016_v17  ;;  %v13018_v58 = vpop.permute.xlu0 %6090  ;;  %6282 = vbcast.lane.b32.xlu0 %v14979_v12, 272  ;;  %v6381_v12 = vmul.f32 %v8401_v52, %v12774_v44  ;;  %v6580_v61 = vadd.f32 %v6579_v40, %v6578_v31  ;;  %v14987_v44 = vld [vmem:[#allocation98_spill] sm:$0xff]  ;;  %v8403_v31 = vld [vmem:[#allocation2 + $0x190] sm:$0xff] }
 0x94f   :  { %v6426_v40 = vmul.f32 %v8403_v31, %v12909_v6 }
 0x950   :  { %v6523_v18 = vsel %vm1377_vm2, %v6381_v12, 0.0  ;;  %v6581_v36 = vrot.slane %v6580_v61, 2  ;;  %v8404_v12 = vld [vmem:[#allocation2 + $0xa0] sm:$0xff] }
 0x951   :  { %6238 = vbcast.lane.b32.xlu1 %v14983_v10, 280  ;;  %v13025_v4 = vpop.permute.xlu1 %5982  ;;  %v6396_v46 = vmul.f32 %v8404_v12, %v12776_v26  ;;  %v8409_v12 = vld [vmem:[#allocation2 + $0x1b0] sm:$0xff] }
 0x952   :  { %14984 = vst [vmem:[#allocation161_spill] sm:$0xff] %v13025_v4  ;;  %v13027_v30 = vpop.permute.xlu0 %5914  ;;  %6346 = vbcast.lane.b32.xlu0 %v14980_v43, 272  ;;  %v6588_v43 = vrot.slane %v6587_v53, 4  ;;  %v13061_v26 = vadd.f32 %v6581_v36, %v6580_v61  ;;  %v6430_v3 = vmul.f32 %v8409_v12, %v12980_v55  ;;  %v6595_v61 = vsel %vm1377_vm2, %v6397_v29, 0.0  ;;  %v8413_v36 = vld [vmem:[#allocation2 + $0x1b8] sm:$0xff] }
 0x953   :  { %v14991_v12 = vld [vmem:[#allocation100_spill] sm:$0xff] }
 0x954   :  { %v6589_v50 = vadd.f32 %v6588_v43, %v6587_v53  ;;  %v8406_v53 = vld [vmem:[#allocation2 + $0x180] sm:$0xff]  ;;  %v8407_v43 = vld [vmem:[#allocation2 + $0x198] sm:$0xff] }
 0x955   :  { %6294 = vbcast.lane.b32.xlu1 %v14985_v7, 280  ;;  %v13033_v2 = vpop.permute.xlu1 %6038  ;;  %v6427_v6 = vmul.f32 %v8407_v43, %v12865_v41  ;;  %v8412_v43 = vld [vmem:[#allocation2 + $0x1c0] sm:$0xff] }
 0x956   :  { %14986 = vst [vmem:[#allocation14_spill] sm:$0xff] %v13033_v2  ;;  %v13035_v39 = vpop.permute.xlu0 %5978  ;;  %6170 = vbcast.lane.b32.xlu0 %v14981_v56, 272  ;;  %v6524_v56 = vadd.f32 %v6523_v18, %v6522_v48  ;;  %v6424_v48 = vmul.f32 %v8406_v53, %v12860_v23  ;;  %v8408_v18 = vld [vmem:[#allocation2 + $0x1a0] sm:$0xff]  ;;  %v6590_v20 = vrot.slane %v6589_v50, 2  ;;  %v6729_v23 = vsel %vm1377_vm2, %v6426_v40, 0.0  ;;  %v8411_v53 = vld [vmem:[#allocation2 + $0x1a8] sm:$0xff] }
 0x957   :  { %v6428_v31 = vmul.f32 %v8408_v18, %v12949_v0  ;;  %v6429_v41 = vmul.f32 %v8411_v53, %v12936_v35  ;;  %v6432_v0 = vmul.f32 %v8412_v43, %v13018_v58  ;;  %v6431_v18 = vmul.f32 %v8413_v36, %v12972_v59 }
 0x958   :  { %v6525_v8 = vrot.slane %v6524_v56, 4  ;;  %v6720_v35 = vsel %vm1377_vm2, %v6424_v48, 0.0  ;;  %v6591_v59 = vadd.f32 %v6590_v20, %v6589_v50 }
 0x959   :  { %6358 = vbcast.lane.b32.xlu1 %v14987_v44, 280  ;;  %v6103_v37 = vpop.permute.xlu1 %6102  ;;  %v6738_v58 = vsel %vm1377_vm2, %v6428_v31, 0.0  ;;  %v6739_v48 = vsel %vm1377_vm2, %v6429_v41, 0.0  ;;  %v6748_v4 = vsel %vm1377_vm2, %v6431_v18, 0.0 }
 0x95a   :  { %v13043_v52 = vpop.permute.xlu0 %6034  ;;  %6234 = vbcast.lane.b32.xlu0 %v14983_v10, 272  ;;  %v6520_v10 = vrot.slane %v13045_v42, 1  ;;  %v6526_v36 = vadd.f32 %v6525_v8, %v6524_v56  ;;  %v6740_v31 = vadd.f32 %v6739_v48, %v6738_v58  ;;  %v8417_v8 = vld [vmem:[#allocation2 + $0x108] sm:$0xff] }
 0x95b   :  { %14988 = vst [vmem:[#allocation153_spill] sm:$0xff] %v13043_v52  ;;  %v8414_v52 = vld [vmem:[#allocation2 + $0x1d0] sm:$0xff]  ;;  %v14998_v58 = vld [vmem:[#allocation102_spill] sm:$0xff] }
 0x95d   :  { %6182 = vbcast.lane.b32.xlu1 %v14989_v47, 280  ;;  %v13054_v28 = vpop.permute.xlu1 %5926 }
 0x95e   :  { %14990 = vst [vmem:[#allocation164_spill] sm:$0xff] %v13054_v28  ;;  %v6099_v34 = vpop.permute.xlu0 %6098  ;;  %6290 = vbcast.lane.b32.xlu0 %v14985_v7, 272  ;;  %v8410_v28 = vld [vmem:[#allocation2 + $0x188] sm:$0xff]  ;;  %v6594_v7 = vsel %vm1377_vm2, %v6396_v46, 0.0 }
 0x95f   :  { %v6425_v2 = vmul.f32 %v8410_v28, %v12810_v21  ;;  %v6434_v55 = vmul.f32 %v8414_v52, %v6099_v34  ;;  %v6730_v28 = vsel %vm1377_vm2, %v6427_v6, 0.0  ;;  %v8415_v46 = vld [vmem:[#allocation2 + $0x1c8] sm:$0xff]  ;;  %v6747_v52 = vsel %vm1377_vm2, %v6430_v3, 0.0  ;;  %v8416_v34 = vld [vmem:[#allocation2 + $0x1d8] sm:$0xff] }
 0x960   :  { %v6433_v29 = vmul.f32 %v8415_v46, %v13007_v25  ;;  %v6731_v53 = vadd.f32 %v6730_v28, %v6729_v23  ;;  %v6435_v43 = vmul.f32 %v8416_v34, %v6103_v37  ;;  %v6756_v6 = vsel %vm1377_vm2, %v6432_v0, 0.0 }
 0x961   :  { %6246 = vbcast.lane.b32.xlu1 %v14991_v12, 280  ;;  %v13072_v21 = vpop.permute.xlu1 %5990  ;;  %v6765_v25 = vsel %vm1377_vm2, %v6434_v55, 0.0  ;;  %v6521_v37 = vadd.f32 %v6520_v10, %v13045_v42  ;;  %v6596_v56 = vadd.f32 %v6595_v61, %v6594_v7  ;;  %v6409_v23 = vmul.f32 %v8417_v8, %v12782_v60  ;;  %v8418_v42 = vld [vmem:[#allocation2 + $0x100] sm:$0xff] }
 0x962   :  { %14992 = vst [vmem:[#allocation115_spill] sm:$0xff] %v13072_v21  ;;  %v13074_v40 = vpop.permute.xlu0 %5922  ;;  %6354 = vbcast.lane.b32.xlu0 %v14987_v44, 272  ;;  %v6721_v21 = vsel %vm1377_vm2, %v6425_v2, 0.0  ;;  %v14994_v44 = vld [vmem:[#allocation101_spill] sm:$0xff]  ;;  %v6749_v2 = vadd.f32 %v6748_v4, %v6747_v52  ;;  %v6757_v20 = vsel %vm1377_vm2, %v6433_v29, 0.0  ;;  %v6732_v41 = vrot.slane %v6731_v53, 4 }
 0x963   :  { %14993 = vst [vmem:[#allocation116_spill] sm:$0xff] %v13074_v40  ;;  %v6722_v40 = vadd.f32 %v6721_v21, %v6720_v35  ;;  %v6758_v0 = vadd.f32 %v6757_v20, %v6756_v6  ;;  %v6766_v18 = vsel %vm1377_vm2, %v6435_v43, 0.0  ;;  %v14997_v55 = vrot.slane %v13040_v11, 1 }
 0x964   :  { %v6583_v35 = vrot.slane %v13061_v26, 1  ;;  %v6408_v4 = vmul.f32 %v8418_v42, %v12780_v51  ;;  %v6767_v10 = vadd.f32 %v6766_v18, %v6765_v25  ;;  %v6592_v7 = vrot.slane %v6591_v59, 1  ;;  %v8419_v51 = vld [vmem:[#allocation2 + $0x110] sm:$0xff]  ;;  %v8420_v18 = vld [vmem:[#allocation2 + $0x1e8] sm:$0xff] }
 0x965   :  { %6302 = vbcast.lane.b32.xlu1 %v14994_v44, 280  ;;  %v13088_v50 = vpop.permute.xlu1 %6046  ;;  %v6512_v21 = vadd.f32 %v14997_v55, %v13040_v11  ;;  %v6527_v61 = vrot.slane %v6526_v36, 2  ;;  %v6741_v28 = vrot.slane %v6740_v31, 4  ;;  %v6597_v29 = vrot.slane %v6596_v56, 4 }
 0x966   :  { %14995 = vst [vmem:[#allocation119_spill] sm:$0xff] %v13088_v50  ;;  %v13090_v3 = vpop.permute.xlu0 %5986  ;;  %6178 = vbcast.lane.b32.xlu0 %v14989_v47, 272  ;;  %v6723_v47 = vrot.slane %v6722_v40, 4  ;;  %v6750_v52 = vrot.slane %v6749_v2, 4  ;;  %v6649_v34 = vsel %vm1377_vm2, %v6409_v23, 0.0  ;;  %v6410_v43 = vmul.f32 %v8419_v51, %v12784_v9 }
 0x967   :  { %14996 = vst [vmem:[#allocation24_spill] sm:$0xff] %v13090_v3  ;;  %v13107_v11 = vsel %vm2030_vm3, %v6521_v37, %v6512_v21  ;;  %v6733_v48 = vadd.f32 %v6732_v41, %v6731_v53  ;;  %v6759_v6 = vrot.slane %v6758_v0, 4  ;;  %v6584_v25 = vadd.f32 %v6583_v35, %v13061_v26  ;;  %v15000_v37 = vld [vmem:[#allocation103_spill] sm:$0xff]  ;;  %v8421_v53 = vld [vmem:[#allocation2 + $0x1e0] sm:$0xff]  ;;  %v8422_v35 = vld [vmem:[#allocation2 + $0x118] sm:$0xff] }
 0x968   :  { %v6648_v20 = vsel %vm1377_vm2, %v6408_v4, 0.0  ;;  %v6768_v8 = vrot.slane %v6767_v10, 4  ;;  %v6593_v42 = vadd.f32 %v6592_v7, %v6591_v59  ;;  %v6528_v50 = vadd.f32 %v6527_v61, %v6526_v36  ;;  %v8423_v7 = vld [vmem:[#allocation2 + $0x178] sm:$0xff] }
 0x969   :  { %6366 = vbcast.lane.b32.xlu1 %v14998_v58, 280  ;;  %v6111_v60 = vpop.permute.xlu1 %6110  ;;  %v6598_v3 = vadd.f32 %v6597_v29, %v6596_v56  ;;  %v6650_v17 = vadd.f32 %v6649_v34, %v6648_v20  ;;  %v6751_v9 = vadd.f32 %v6750_v52, %v6749_v2  ;;  %v6657_v26 = vsel %vm1377_vm2, %v6410_v43, 0.0  ;;  %v15001_v29 = vld [vmem:[#allocation104_spill] sm:$0xff]  ;;  %v8424_v43 = vld [vmem:[#allocation2 + $0x170] sm:$0xff] }
 0x96a   :  { %v13103_v46 = vpop.permute.xlu0 %6042  ;;  %6242 = vbcast.lane.b32.xlu0 %v14991_v12, 272  ;;  %v6437_v55 = vmul.f32 %v8420_v18, %v6111_v60  ;;  %v6724_v12 = vadd.f32 %v6723_v47, %v6722_v40  ;;  %v6411_v4 = vmul.f32 %v8422_v35, %v12786_v62  ;;  %v6734_v59 = vrot.slane %v6733_v48, 2 }
 0x96b   :  { %14999 = vst [vmem:[#allocation174_spill] sm:$0xff] %v13103_v46  ;;  %v6742_v46 = vadd.f32 %v6741_v28, %v6740_v31  ;;  %v6760_v36 = vadd.f32 %v6759_v6, %v6758_v0  ;;  %v6769_v40 = vadd.f32 %v6768_v8, %v6767_v10  ;;  %v6529_v47 = vrot.slane %v6528_v50, 1 }
 0x96c   :  { %v6775_v31 = vsel %vm1377_vm2, %v6437_v55, 0.0  ;;  %v6725_v2 = vrot.slane %v6724_v12, 2  ;;  %v6599_v34 = vrot.slane %v6598_v3, 2  ;;  %v6651_v51 = vrot.slane %v6650_v17, 4 }
 0x96d   :  { %6310 = vbcast.lane.b32.xlu1 %v15000_v37, 280  ;;  %v6055_v21 = vpop.permute.xlu1 %6054  ;;  %v6743_v28 = vrot.slane %v6742_v46, 2  ;;  %v6752_v62 = vrot.slane %v6751_v9, 2  ;;  %v6735_v10 = vadd.f32 %v6734_v59, %v6733_v48  ;;  %v6761_v6 = vrot.slane %v6760_v36, 2 }
 0x96e   :  { %v6107_v23 = vpop.permute.xlu0 %6106  ;;  %6298 = vbcast.lane.b32.xlu0 %v14994_v44, 272  ;;  %v6423_v61 = vmul.f32 %v8423_v7, %v6055_v21  ;;  %v13122_v8 = vsel %vm2030_vm3, %v6593_v42, %v6584_v25  ;;  %v6770_v18 = vrot.slane %v6769_v40, 2  ;;  %v8425_v21 = vld [vmem:[#allocation2 + $0x1f8] sm:$0xff]  ;;  %v13128_v48 = vadd.f32 %v6529_v47, %v6528_v50  ;;  %v8426_v42 = vld [vmem:[#allocation2 + $0x1f0] sm:$0xff] }
 0x96f   :  { %v6436_v41 = vmul.f32 %v8421_v53, %v6107_v23  ;;  %v6744_v35 = vadd.f32 %v6743_v28, %v6742_v46  ;;  %v6658_v59 = vsel %vm1377_vm2, %v6411_v4, 0.0  ;;  %v6753_v25 = vadd.f32 %v6752_v62, %v6751_v9  ;;  %v8427_v28 = vld [vmem:[#allocation2 + $0x208] sm:$0xff] }
 0x970   :  { %v6712_v55 = vsel %vm1377_vm2, %v6423_v61, 0.0  ;;  %v13132_v61 = vadd.f32 %v6599_v34, %v6598_v3  ;;  %v6771_v46 = vadd.f32 %v6770_v18, %v6769_v40  ;;  %v13136_v47 = vadd.f32 %v6651_v51, %v6650_v17  ;;  %v8429_v51 = vld [vmem:[#allocation2 + $0x218] sm:$0xff] }
 0x971   :  { %v6774_v56 = vsel %vm1377_vm2, %v6436_v41, 0.0  ;;  %6374 = vbcast.lane.b32.xlu1 %v15001_v29, 280  ;;  %v6119_v44 = vpop.permute.xlu1 %6118  ;;  %v6726_v41 = vadd.f32 %v6725_v2, %v6724_v12  ;;  %v6745_v9 = vrot.slane %v6744_v35, 1  ;;  %v6754_v3 = vrot.slane %v6753_v25, 1 }
 0x972   :  { %v6776_v60 = vadd.f32 %v6775_v31, %v6774_v56  ;;  %v6051_v52 = vpop.permute.xlu0 %6050  ;;  %6362 = vbcast.lane.b32.xlu0 %v14998_v58, 272  ;;  %v6439_v23 = vmul.f32 %v8425_v21, %v6119_v44  ;;  %v6736_v44 = vrot.slane %v6735_v10, 1  ;;  %v6601_v40 = vrot.slane %v13132_v61, 1 }
 0x973   :  { %v6422_v0 = vmul.f32 %v8424_v43, %v6051_v52  ;;  %v6762_v43 = vadd.f32 %v6761_v6, %v6760_v36  ;;  %v6727_v4 = vrot.slane %v6726_v41, 1 }
 0x974   :  { %v6777_v20 = vrot.slane %v6776_v60, 4  ;;  %v6784_v2 = vsel %vm1377_vm2, %v6439_v23, 0.0  ;;  %v6737_v6 = vadd.f32 %v6736_v44, %v6735_v10  ;;  %v6772_v23 = vrot.slane %v6771_v46, 1  ;;  %v8430_v10 = vld [vmem:[#allocation2 + $0x210] sm:$0xff] }
 0x975   :  { %v6711_v53 = vsel %vm1377_vm2, %v6422_v0, 0.0  ;;  %v6127_v56 = vpop.permute.xlu1 %6126  ;;  %v6763_v18 = vrot.slane %v6762_v43, 1 }
 0x976   :  { %v6778_v31 = vadd.f32 %v6777_v20, %v6776_v60  ;;  %v13126_v7 = vadd.f32 %v6712_v55, %v6711_v53  ;;  %v6115_v58 = vpop.permute.xlu0 %6114  ;;  %6306 = vbcast.lane.b32.xlu0 %v15000_v37, 272  ;;  %v6441_v60 = vmul.f32 %v8427_v28, %v6127_v56  ;;  %v6659_v37 = vadd.f32 %v6658_v59, %v6657_v26  ;;  %v8428_v55 = vld [vmem:[#allocation2 + $0x200] sm:$0xff] }
 0x977   :  { %v6438_v52 = vmul.f32 %v8426_v42, %v6115_v58  ;;  %v6728_v58 = vadd.f32 %v6727_v4, %v6726_v41  ;;  %v6746_v26 = vadd.f32 %v6745_v9, %v6744_v35  ;;  %v6764_v28 = vadd.f32 %v6763_v18, %v6762_v43  ;;  %v8432_v43 = vld [vmem:[#allocation2 + $0x280] sm:$0xff] }
 0x978   :  { %v6779_v12 = vrot.slane %v6778_v31, 2  ;;  %v6793_v17 = vsel %vm1377_vm2, %v6441_v60, 0.0  ;;  %v6773_v4 = vadd.f32 %v6772_v23, %v6771_v46  ;;  %v8433_v23 = vld [vmem:[#allocation2 + $0x298] sm:$0xff] }
 0x979   :  { %v6783_v50 = vsel %vm1377_vm2, %v6438_v52, 0.0  ;;  %v6135_v0 = vpop.permute.xlu1 %6134  ;;  %v7181_v60 = vsel %vm2030_vm3, %v6737_v6, %v6728_v58 }
 0x97a   :  { %v6785_v62 = vadd.f32 %v6784_v2, %v6783_v50  ;;  %v6123_v20 = vpop.permute.xlu0 %6122  ;;  %v6780_v34 = vadd.f32 %v6779_v12, %v6778_v31  ;;  %6370 = vbcast.lane.b32.xlu0 %v15001_v29, 272  ;;  %v6443_v53 = vmul.f32 %v8429_v51, %v6135_v0  ;;  %v6653_v29 = vrot.slane %v13136_v47, 2 }
 0x97b   :  { %v6440_v36 = vmul.f32 %v8428_v55, %v6123_v20  ;;  %v6755_v12 = vadd.f32 %v6754_v3, %v6753_v25  ;;  %v8431_v55 = vld [vmem:[#allocation2 + $0x288] sm:$0xff]  ;;  %v7182_v3 = vsel %vm2032_vm4, %v6746_v26, %v7181_v60 }
 0x97c   :  { %v6786_v21 = vrot.slane %v6785_v62, 4  ;;  %v6781_v2 = vrot.slane %v6780_v34, 1  ;;  %v6802_v0 = vsel %vm1377_vm2, %v6443_v53, 0.0 }
 0x97d   :  { %v6792_v56 = vsel %vm1377_vm2, %v6440_v36, 0.0  ;;  %v6191_v42 = vpop.permute.xlu1 %6190  ;;  %v7183_v6 = vsel %vm2034_vm5, %v6755_v12, %v7182_v3  ;;  %v13153_v12 = vadd.f32 %v6653_v29, %v13136_v47  ;;  %v8435_v29 = vld [vmem:[#allocation2 + $0x228] sm:$0xff] }
 0x97e   :  { %v6787_v59 = vadd.f32 %v6786_v21, %v6785_v62  ;;  %v6794_v31 = vadd.f32 %v6793_v17, %v6792_v56  ;;  %v6131_v52 = vpop.permute.xlu0 %6130  ;;  %v6457_v41 = vmul.f32 %v8431_v55, %v6191_v42  ;;  %v6660_v17 = vrot.slane %v6659_v37, 4 }
 0x97f   :  { %v6442_v44 = vmul.f32 %v8430_v10, %v6131_v52  ;;  %v6782_v51 = vadd.f32 %v6781_v2, %v6780_v34  ;;  %v7184_v42 = vsel %vm2036_vm6, %v6764_v28, %v7183_v6  ;;  %v8434_v28 = vld [vmem:[#allocation2 + $0x290] sm:$0xff]  ;;  %v8437_v6 = vld [vmem:[#allocation2 + $0x220] sm:$0xff] }
 0x980   :  { %v6788_v50 = vrot.slane %v6787_v59, 2  ;;  %v6795_v20 = vrot.slane %v6794_v31, 4  ;;  %v6865_v46 = vsel %vm1377_vm2, %v6457_v41, 0.0  ;;  %v7185_v52 = vsel %vm2038_vm7, %v6773_v4, %v7184_v42 }
 0x981   :  { %v6801_v35 = vsel %vm1377_vm2, %v6442_v44, 0.0  ;;  %v6199_v21 = vpop.permute.xlu1 %6198 }
 0x982   :  { %v6789_v9 = vadd.f32 %v6788_v50, %v6787_v59  ;;  %v6796_v62 = vadd.f32 %v6795_v20, %v6794_v31  ;;  %v6803_v36 = vadd.f32 %v6802_v0, %v6801_v35  ;;  %v6187_v25 = vpop.permute.xlu0 %6186  ;;  %v6459_v59 = vmul.f32 %v8433_v23, %v6199_v21 }
 0x983   :  { %v6456_v18 = vmul.f32 %v8432_v43, %v6187_v25  ;;  %v13155_v20 = vadd.f32 %v6660_v17, %v6659_v37  ;;  %v7186_v0 = vsel %vm2040_vm8, %v6782_v51, %v7185_v52  ;;  %v13161_v35 = vsel %vm2032_vm4, %v13128_v48, %v13107_v11 }
 0x984   :  { %v6797_v56 = vrot.slane %v6796_v62, 2  ;;  %v6804_v53 = vrot.slane %v6803_v36, 4  ;;  %v6790_v58 = vrot.slane %v6789_v9, 1  ;;  %v6874_v47 = vsel %vm1377_vm2, %v6459_v59, 0.0  ;;  %v8439_v59 = vld [vmem:[#allocation2 + $0x2a8] sm:$0xff] }
 0x985   :  { %v6864_v31 = vsel %vm1377_vm2, %v6456_v18, 0.0  ;;  %v6143_v50 = vpop.permute.xlu1 %6142  ;;  %v6655_v48 = vrot.slane %v13153_v12, 1  ;;  %v6662_v43 = vrot.slane %v13155_v20, 2  ;;  %v8436_v18 = vld [vmem:[#allocation2 + $0x30] sm:$0xff] }
 0x986   :  { %v6798_v26 = vadd.f32 %v6797_v56, %v6796_v62  ;;  %v6805_v10 = vadd.f32 %v6804_v53, %v6803_v36  ;;  %v6866_v44 = vadd.f32 %v6865_v46, %v6864_v31  ;;  %v6195_v34 = vpop.permute.xlu0 %6194  ;;  %v6791_v2 = vadd.f32 %v6790_v58, %v6789_v9  ;;  %v8438_v53 = vld [vmem:[#allocation2 + $0x38] sm:$0xff] }
 0x987   :  { %v6458_v60 = vmul.f32 %v8434_v28, %v6195_v34  ;;  %v6445_v37 = vmul.f32 %v8435_v29, %v6143_v50  ;;  %v6602_v36 = vadd.f32 %v6601_v40, %v13132_v61  ;;  %v6382_v51 = vmul.f32 %v8436_v18, %v12926_v45  ;;  %v8440_v28 = vld [vmem:[#allocation2 + $0xb8] sm:$0xff] }
 0x988   :  { %v6806_v55 = vrot.slane %v6805_v10, 2  ;;  %v6867_v41 = vrot.slane %v6866_v44, 4  ;;  %v13164_v4 = vsel %vm2042_vm9, %v6791_v2, %v7186_v0  ;;  %v6799_v9 = vrot.slane %v6798_v26, 1  ;;  %v8441_v0 = vld [vmem:[#allocation2 + $0x2a0] sm:$0xff] }
 0x989   :  { %v6873_v62 = vsel %vm1377_vm2, %v6458_v60, 0.0  ;;  %v6207_v17 = vpop.permute.xlu1 %6206  ;;  %v6383_v58 = vmul.f32 %v8438_v53, %v12917_v33  ;;  %v6811_v23 = vsel %vm1377_vm2, %v6445_v37, 0.0  ;;  %v6399_v60 = vmul.f32 %v8440_v28, %v12924_v22  ;;  %v8443_v22 = vld [vmem:[#allocation2 + $0x308] sm:$0xff]  ;;  %v8444_v53 = vld [vmem:[#allocation2 + $0x300] sm:$0xff] }
 0x98a   :  { %v6807_v21 = vadd.f32 %v6806_v55, %v6805_v10  ;;  %v6868_v25 = vadd.f32 %v6867_v41, %v6866_v44  ;;  %v6875_v3 = vadd.f32 %v6874_v47, %v6873_v62  ;;  %v6139_v11 = vpop.permute.xlu0 %6138  ;;  %v6800_v40 = vadd.f32 %v6799_v9, %v6798_v26  ;;  %v8442_v41 = vld [vmem:[#allocation2 + $0xb0] sm:$0xff] }
 0x98b   :  { %v6444_v56 = vmul.f32 %v8437_v6, %v6139_v11  ;;  %v6461_v31 = vmul.f32 %v8439_v59, %v6207_v17  ;;  %v6531_v33 = vsel %vm1377_vm2, %v6382_v51, 0.0  ;;  %v13181_v26 = vsel %vm2032_vm4, %v6602_v36, %v13122_v8 }
 0x98c   :  { %v6808_v42 = vrot.slane %v6807_v21, 1  ;;  %v6869_v46 = vrot.slane %v6868_v25, 2  ;;  %v6876_v61 = vrot.slane %v6875_v3, 4  ;;  %v6398_v9 = vmul.f32 %v8442_v41, %v12932_v57 }
 0x98d   :  { %v6810_v52 = vsel %vm1377_vm2, %v6444_v56, 0.0  ;;  %v6255_v45 = vpop.permute.xlu1 %6254  ;;  %v6532_v17 = vsel %vm1377_vm2, %v6383_v58, 0.0  ;;  %v13191_v57 = vadd.f32 %v6662_v43, %v13155_v20  ;;  %v6604_v6 = vsel %vm1377_vm2, %v6399_v60, 0.0 }
 0x98e   :  { %v6809_v10 = vadd.f32 %v6808_v42, %v6807_v21  ;;  %v6870_v44 = vadd.f32 %v6869_v46, %v6868_v25  ;;  %v6877_v50 = vadd.f32 %v6876_v61, %v6875_v3  ;;  %v6812_v34 = vadd.f32 %v6811_v23, %v6810_v52  ;;  %v6203_v2 = vpop.permute.xlu0 %6202 }
 0x98f   :  { %v6460_v55 = vmul.f32 %v8441_v0, %v6203_v2  ;;  %v6883_v21 = vsel %vm1377_vm2, %v6461_v31, 0.0  ;;  %v6473_v25 = vmul.f32 %v8443_v22, %v6255_v45  ;;  %v6533_v56 = vadd.f32 %v6532_v17, %v6531_v33  ;;  %v8445_v31 = vld [vmem:[#allocation2 + $0x318] sm:$0xff]  ;;  %v8446_v33 = vld [vmem:[#allocation2 + $0x310] sm:$0xff] }
 0x990   :  { %v13185_v47 = vsel %vm2030_vm3, %v6809_v10, %v6800_v40  ;;  %v6878_v29 = vrot.slane %v6877_v50, 2  ;;  %v6813_v37 = vrot.slane %v6812_v34, 4  ;;  %v6871_v62 = vrot.slane %v6870_v44, 1 }
 0x991   :  { %v6882_v3 = vsel %vm1377_vm2, %v6460_v55, 0.0  ;;  %v6263_v18 = vpop.permute.xlu1 %6262  ;;  %v6603_v46 = vsel %vm1377_vm2, %v6398_v9, 0.0  ;;  %v6937_v58 = vsel %vm1377_vm2, %v6473_v25, 0.0  ;;  %v13200_v28 = vadd.f32 %v6655_v48, %v13153_v12 }
 0x992   :  { %v6879_v11 = vadd.f32 %v6878_v29, %v6877_v50  ;;  %v6814_v8 = vadd.f32 %v6813_v37, %v6812_v34  ;;  %v6884_v36 = vadd.f32 %v6883_v21, %v6882_v3  ;;  %v6251_v51 = vpop.permute.xlu0 %6250  ;;  %v6872_v59 = vadd.f32 %v6871_v62, %v6870_v44  ;;  %v8447_v21 = vld [vmem:[#allocation2 + $0x388] sm:$0xff] }
 0x993   :  { %v6472_v42 = vmul.f32 %v8444_v53, %v6251_v51  ;;  %v6475_v52 = vmul.f32 %v8445_v31, %v6263_v18  ;;  %v6664_v60 = vrot.slane %v13191_v57, 1  ;;  %v6605_v44 = vadd.f32 %v6604_v6, %v6603_v46  ;;  %v8449_v6 = vld [vmem:[#allocation2 + $0x120] sm:$0xff] }
 0x994   :  { %v6880_v61 = vrot.slane %v6879_v11, 1  ;;  %v6815_v40 = vrot.slane %v6814_v8, 2  ;;  %v6885_v23 = vrot.slane %v6884_v36, 4  ;;  %v6534_v37 = vrot.slane %v6533_v56, 4 }
 0x995   :  { %v6936_v10 = vsel %vm1377_vm2, %v6472_v42, 0.0  ;;  %v6319_v45 = vpop.permute.xlu1 %6318  ;;  %v6946_v62 = vsel %vm1377_vm2, %v6475_v52, 0.0  ;;  %v6606_v51 = vrot.slane %v6605_v44, 4  ;;  %v6412_v53 = vmul.f32 %v8449_v6, %v12938_v54  ;;  %v8450_v42 = vld [vmem:[#allocation2 + $0x380] sm:$0xff]  ;;  %v8451_v52 = vld [vmem:[#allocation2 + $0x398] sm:$0xff] }
 0x996   :  { %v6881_v50 = vadd.f32 %v6880_v61, %v6879_v11  ;;  %v6816_v20 = vadd.f32 %v6815_v40, %v6814_v8  ;;  %v6886_v43 = vadd.f32 %v6885_v23, %v6884_v36  ;;  %v6938_v34 = vadd.f32 %v6937_v58, %v6936_v10  ;;  %v6259_v2 = vpop.permute.xlu0 %6258  ;;  %v8448_v36 = vld [vmem:[#allocation2 + $0x128] sm:$0xff] }
 0x997   :  { %v6474_v0 = vmul.f32 %v8446_v33, %v6259_v2  ;;  %v6489_v22 = vmul.f32 %v8447_v21, %v6319_v45  ;;  %v6413_v18 = vmul.f32 %v8448_v36, %v12930_v13  ;;  %v6535_v58 = vadd.f32 %v6534_v37, %v6533_v56  ;;  %v8453_v56 = vld [vmem:[#allocation2 + $0x40] sm:$0xff] }
 0x998   :  { %v7195_v55 = vsel %vm2030_vm3, %v6881_v50, %v6872_v59  ;;  %v6817_v41 = vrot.slane %v6816_v20, 1  ;;  %v6887_v9 = vrot.slane %v6886_v43, 2  ;;  %v6939_v29 = vrot.slane %v6938_v34, 4 }
 0x999   :  { %v6945_v25 = vsel %vm1377_vm2, %v6474_v0, 0.0  ;;  %v6327_v11 = vpop.permute.xlu1 %6326  ;;  %v7009_v31 = vsel %vm1377_vm2, %v6489_v22, 0.0  ;;  %v6667_v2 = vsel %vm1377_vm2, %v6413_v18, 0.0  ;;  %v6607_v33 = vadd.f32 %v6606_v51, %v6605_v44  ;;  %v8455_v51 = vld [vmem:[#allocation2 + $0x48] sm:$0xff] }
 0x99a   :  { %v6818_v3 = vadd.f32 %v6817_v41, %v6816_v20  ;;  %v6888_v12 = vadd.f32 %v6887_v9, %v6886_v43  ;;  %v6940_v48 = vadd.f32 %v6939_v29, %v6938_v34  ;;  %v6947_v17 = vadd.f32 %v6946_v62, %v6945_v25  ;;  %v6315_v8 = vpop.permute.xlu0 %6314  ;;  %v8454_v25 = vld [vmem:[#allocation2 + $0x238] sm:$0xff] }
 0x99b   :  { %v6488_v46 = vmul.f32 %v8450_v42, %v6315_v8  ;;  %v6491_v10 = vmul.f32 %v8451_v52, %v6327_v11  ;;  %v6666_v0 = vsel %vm1377_vm2, %v6412_v53, 0.0  ;;  %v6384_v9 = vmul.f32 %v8453_v56, %v12958_v63  ;;  %v8457_v52 = vld [vmem:[#allocation2 + $0x2b8] sm:$0xff] }
 0x99c   :  { %v6889_v61 = vrot.slane %v6888_v12, 1  ;;  %v6941_v40 = vrot.slane %v6940_v48, 2  ;;  %v6948_v23 = vrot.slane %v6947_v17, 4  ;;  %v13210_v59 = vsel %vm2032_vm4, %v6818_v3, %v13185_v47  ;;  %v8452_v47 = vld [vmem:[#allocation2 + $0x390] sm:$0xff] }
 0x99d   :  { %v7008_v13 = vsel %vm1377_vm2, %v6488_v46, 0.0  ;;  %v6151_v34 = vpop.permute.xlu1 %6150  ;;  %v7018_v22 = vsel %vm1377_vm2, %v6491_v10, 0.0  ;;  %v6536_v44 = vrot.slane %v6535_v58, 2  ;;  %v6608_v18 = vrot.slane %v6607_v33, 2 }
 0x99e   :  { %v6890_v50 = vadd.f32 %v6889_v61, %v6888_v12  ;;  %v6942_v20 = vadd.f32 %v6941_v40, %v6940_v48  ;;  %v6949_v43 = vadd.f32 %v6948_v23, %v6947_v17  ;;  %v7010_v54 = vadd.f32 %v7009_v31, %v7008_v13  ;;  %v6323_v45 = vpop.permute.xlu0 %6322 }
 0x99f   :  { %v6490_v41 = vmul.f32 %v8452_v47, %v6323_v45  ;;  %v6447_v3 = vmul.f32 %v8454_v25, %v6151_v34  ;;  %v6668_v63 = vadd.f32 %v6667_v2, %v6666_v0  ;;  %v6385_v6 = vmul.f32 %v8455_v51, %v12946_v1  ;;  %v8459_v25 = vld [vmem:[#allocation2 + $0x328] sm:$0xff] }
 0x9a0   :  { %v6950_v29 = vrot.slane %v6949_v43, 2  ;;  %v7011_v37 = vrot.slane %v7010_v54, 4  ;;  %v13218_v62 = vsel %vm2032_vm4, %v6890_v50, %v7195_v55  ;;  %v6943_v21 = vrot.slane %v6942_v20, 1  ;;  %v8456_v55 = vld [vmem:[#allocation2 + $0x230] sm:$0xff]  ;;  %v8460_v51 = vld [vmem:[#allocation2 + $0xc8] sm:$0xff] }
 0x9a1   :  { %v7017_v12 = vsel %vm1377_vm2, %v6490_v41, 0.0  ;;  %v6215_v8 = vpop.permute.xlu1 %6214  ;;  %v6540_v42 = vsel %vm1377_vm2, %v6384_v9, 0.0  ;;  %v6820_v31 = vsel %vm1377_vm2, %v6447_v3, 0.0  ;;  %v13226_v2 = vadd.f32 %v6536_v44, %v6535_v58  ;;  %v8458_v41 = vld [vmem:[#allocation2 + $0x2b0] sm:$0xff] }
 0x9a2   :  { %v6951_v48 = vadd.f32 %v6950_v29, %v6949_v43  ;;  %v7012_v17 = vadd.f32 %v7011_v37, %v7010_v54  ;;  %v7019_v11 = vadd.f32 %v7018_v22, %v7017_v12  ;;  %v6147_v36 = vpop.permute.xlu0 %6146  ;;  %v6944_v23 = vadd.f32 %v6943_v21, %v6942_v20 }
 0x9a3   :  { %v6446_v53 = vmul.f32 %v8456_v55, %v6147_v36  ;;  %v6463_v10 = vmul.f32 %v8457_v52, %v6215_v8  ;;  %v6669_v0 = vrot.slane %v6668_v63, 4  ;;  %v6541_v47 = vsel %vm1377_vm2, %v6385_v6, 0.0  ;;  %v8461_v55 = vld [vmem:[#allocation2 + $0xc0] sm:$0xff]  ;;  %v8463_v52 = vld [vmem:[#allocation2 + $0x3a8] sm:$0xff] }
 0x9a4   :  { %v6952_v46 = vrot.slane %v6951_v48, 1  ;;  %v7013_v61 = vrot.slane %v7012_v17, 2  ;;  %v7020_v40 = vrot.slane %v7019_v11, 4  ;;  %v6542_v20 = vadd.f32 %v6541_v47, %v6540_v42  ;;  %v8462_v42 = vld [vmem:[#allocation2 + $0x320] sm:$0xff] }
 0x9a5   :  { %v6819_v13 = vsel %vm1377_vm2, %v6446_v53, 0.0  ;;  %v6271_v45 = vpop.permute.xlu1 %6270  ;;  %v6892_v22 = vsel %vm1377_vm2, %v6463_v10, 0.0  ;;  %v13234_v58 = vadd.f32 %v6608_v18, %v6607_v33  ;;  %v6670_v36 = vadd.f32 %v6669_v0, %v6668_v63  ;;  %v8464_v47 = vld [vmem:[#allocation2 + $0x3a0] sm:$0xff] }
 0x9a6   :  { %v6953_v50 = vadd.f32 %v6952_v46, %v6951_v48  ;;  %v7014_v43 = vadd.f32 %v7013_v61, %v7012_v17  ;;  %v7021_v54 = vadd.f32 %v7020_v40, %v7019_v11  ;;  %v6821_v34 = vadd.f32 %v6820_v31, %v6819_v13  ;;  %v6211_v1 = vpop.permute.xlu0 %6210 }
 0x9a7   :  { %v6462_v56 = vmul.f32 %v8458_v41, %v6211_v1  ;;  %v6477_v3 = vmul.f32 %v8459_v25, %v6271_v45  ;;  %v6401_v6 = vmul.f32 %v8460_v51, %v12956_v14  ;;  %v6400_v53 = vmul.f32 %v8461_v55, %v12964_v38 }
 0x9a8   :  { %v13230_v9 = vsel %vm2030_vm3, %v6953_v50, %v6944_v23  ;;  %v7022_v29 = vrot.slane %v7021_v54, 2  ;;  %v6822_v37 = vrot.slane %v6821_v34, 4  ;;  %v7015_v21 = vrot.slane %v7014_v43, 1 }
 0x9a9   :  { %v6891_v12 = vsel %vm1377_vm2, %v6462_v56, 0.0  ;;  %v6335_v11 = vpop.permute.xlu1 %6334  ;;  %v6543_v61 = vrot.slane %v6542_v20, 4  ;;  %v6955_v18 = vsel %vm1377_vm2, %v6477_v3, 0.0  ;;  %v6671_v45 = vrot.slane %v6670_v36, 2 }
 0x9aa   :  { %v7023_v44 = vadd.f32 %v7022_v29, %v7021_v54  ;;  %v6823_v48 = vadd.f32 %v6822_v37, %v6821_v34  ;;  %v6893_v17 = vadd.f32 %v6892_v22, %v6891_v12  ;;  %v6267_v8 = vpop.permute.xlu0 %6266  ;;  %v7016_v33 = vadd.f32 %v7015_v21, %v7014_v43  ;;  %v8465_v22 = vld [vmem:[#allocation2 + $0x130] sm:$0xff] }
 0x9ab   :  { %v6476_v46 = vmul.f32 %v8462_v42, %v6267_v8  ;;  %v6493_v10 = vmul.f32 %v8463_v52, %v6335_v11  ;;  %v6613_v1 = vsel %vm1377_vm2, %v6401_v6, 0.0  ;;  %v6612_v0 = vsel %vm1377_vm2, %v6400_v53, 0.0  ;;  %v8467_v52 = vld [vmem:[#allocation2 + $0x50] sm:$0xff] }
 0x9ac   :  { %v7024_v40 = vrot.slane %v7023_v44, 1  ;;  %v6824_v23 = vrot.slane %v6823_v48, 2  ;;  %v6894_v31 = vrot.slane %v6893_v17, 4  ;;  %v6544_v21 = vadd.f32 %v6543_v61, %v6542_v20  ;;  %v8466_v20 = vld [vmem:[#allocation2 + $0x138] sm:$0xff] }
 0x9ad   :  { %v6954_v13 = vsel %vm1377_vm2, %v6476_v46, 0.0  ;;  %v13240_v34 = vpop.permute.xlu1 %6158  ;;  %v6414_v25 = vmul.f32 %v8465_v22, %v12974_v32  ;;  %v7027_v3 = vsel %vm1377_vm2, %v6493_v10, 0.0  ;;  %v6538_v6 = vrot.slane %v13226_v2, 1 }
 0x9ae   :  { %v7025_v63 = vadd.f32 %v7024_v40, %v7023_v44  ;;  %v6825_v50 = vadd.f32 %v6824_v23, %v6823_v48  ;;  %v6895_v54 = vadd.f32 %v6894_v31, %v6893_v17  ;;  %v6956_v14 = vadd.f32 %v6955_v18, %v6954_v13  ;;  %v6331_v38 = vpop.permute.xlu0 %6330 }
 0x9af   :  { %v6492_v43 = vmul.f32 %v8464_v47, %v6331_v38  ;;  %v6610_v55 = vrot.slane %v13234_v58, 1  ;;  %v6415_v53 = vmul.f32 %v8466_v20, %v12962_v15  ;;  %v6614_v32 = vadd.f32 %v6613_v1, %v6612_v0 }
 0x9b0   :  { %v13245_v41 = vsel %vm2030_vm3, %v7025_v63, %v7016_v33  ;;  %v6826_v56 = vrot.slane %v6825_v50, 1  ;;  %v6896_v29 = vrot.slane %v6895_v54, 2  ;;  %v6957_v37 = vrot.slane %v6956_v14, 4 }
 0x9b1   :  { %v7026_v12 = vsel %vm1377_vm2, %v6492_v43, 0.0  ;;  %v13250_v8 = vpop.permute.xlu1 %6222  ;;  %v13264_v23 = vadd.f32 %v6664_v60, %v13191_v57  ;;  %v6672_v31 = vadd.f32 %v6671_v45, %v6670_v36  ;;  %v6545_v33 = vrot.slane %v6544_v21, 2  ;;  %v8468_v36 = vld [vmem:[#allocation2 + $0x58] sm:$0xff] }
 0x9b2   :  { %v6827_v44 = vadd.f32 %v6826_v56, %v6825_v50  ;;  %v6897_v48 = vadd.f32 %v6896_v29, %v6895_v54  ;;  %v6958_v17 = vadd.f32 %v6957_v37, %v6956_v14  ;;  %v7028_v11 = vadd.f32 %v7027_v3, %v7026_v12  ;;  %v13252_v51 = vpop.permute.xlu0 %6154  ;;  %v8470_v29 = vld [vmem:[#allocation2 + $0x140] sm:$0xff] }
 0x9b3   :  { %v6675_v18 = vsel %vm1377_vm2, %v6414_v25, 0.0  ;;  %v6386_v15 = vmul.f32 %v8467_v52, %v12988_v24  ;;  %v13276_v57 = vadd.f32 %v6610_v55, %v13234_v58  ;;  %v6615_v60 = vrot.slane %v6614_v32, 4 }
 0x9b4   :  { %v6898_v42 = vrot.slane %v6897_v48, 1  ;;  %v6959_v46 = vrot.slane %v6958_v17, 2  ;;  %v7029_v61 = vrot.slane %v7028_v11, 4  ;;  %v13259_v40 = vsel %vm2034_vm5, %v6827_v44, %v13210_v59  ;;  %v8471_v44 = vld [vmem:[#allocation2 + $0xd8] sm:$0xff] }
 0x9b5   :  { %v13268_v50 = vpop.permute.xlu1 %6278  ;;  %v13273_v59 = vadd.f32 %v6538_v6, %v13226_v2  ;;  %v6387_v14 = vmul.f32 %v8468_v36, %v12978_v5  ;;  %v6676_v38 = vsel %vm1377_vm2, %v6415_v53, 0.0  ;;  %v6673_v0 = vrot.slane %v6672_v31, 1  ;;  %v8469_v2 = vld [vmem:[#allocation2 + $0xd0] sm:$0xff]  ;;  %v8474_v6 = vld [vmem:[#allocation2 + $0xe0] sm:$0xff] }
 0x9b6   :  { %v6899_v10 = vadd.f32 %v6898_v42, %v6897_v48  ;;  %v6960_v13 = vadd.f32 %v6959_v46, %v6958_v17  ;;  %v7030_v63 = vadd.f32 %v7029_v61, %v7028_v11  ;;  %v13270_v54 = vpop.permute.xlu0 %6218  ;;  %v6546_v47 = vadd.f32 %v6545_v33, %v6544_v21  ;;  %v8472_v48 = vld [vmem:[#allocation2 + $0x148] sm:$0xff]  ;;  %v8473_v17 = vld [vmem:[#allocation2 + $0x60] sm:$0xff] }
 0x9b7   :  { %v6677_v43 = vadd.f32 %v6676_v38, %v6675_v18  ;;  %v6402_v56 = vmul.f32 %v8469_v2, %v12998_v16  ;;  %v6549_v58 = vsel %vm1377_vm2, %v6386_v15, 0.0  ;;  %v6416_v37 = vmul.f32 %v8470_v29, %v13009_v19  ;;  %v8475_v61 = vld [vmem:[#allocation2 + $0x68] sm:$0xff]  ;;  %v15004_v38 = vld [vmem:[#allocation153_spill] sm:$0xff] }
 0x9b8   :  { %v6961_v24 = vrot.slane %v6960_v13, 1  ;;  %v7031_v45 = vrot.slane %v7030_v63, 2  ;;  %v13282_v1 = vsel %vm2034_vm5, %v6899_v10, %v13218_v62  ;;  %v6616_v12 = vadd.f32 %v6615_v60, %v6614_v32  ;;  %v8476_v18 = vld [vmem:[#allocation2 + $0xe8] sm:$0xff] }
 0x9b9   :  { %v13287_v25 = vpop.permute.xlu1 %6342  ;;  %v6550_v62 = vsel %vm1377_vm2, %v6387_v14, 0.0  ;;  %v6403_v21 = vmul.f32 %v8471_v44, %v12986_v27  ;;  %v6417_v16 = vmul.f32 %v8472_v48, %v12996_v49  ;;  %v6388_v11 = vmul.f32 %v8473_v17, %v13027_v30  ;;  %v15002_v49 = vld [vmem:[#allocation141_spill] sm:$0xff]  ;;  %v8477_v14 = vld [vmem:[#allocation2 + $0x150] sm:$0xff] }
 0x9ba   :  { %v6962_v5 = vadd.f32 %v6961_v24, %v6960_v13  ;;  %v7032_v22 = vadd.f32 %v7031_v45, %v7030_v63  ;;  %v13289_v3 = vpop.permute.xlu0 %6274  ;;  %v6404_v19 = vmul.f32 %v8474_v6, %v13035_v39  ;;  %v6674_v53 = vadd.f32 %v6673_v0, %v6672_v31  ;;  %v15003_v30 = vld [vmem:[#allocation161_spill] sm:$0xff] }
 0x9bb   :  { %v6678_v32 = vrot.slane %v6677_v43, 4  ;;  %v6551_v42 = vadd.f32 %v6550_v62, %v6549_v58  ;;  %v6621_v46 = vsel %vm1377_vm2, %v6402_v56, 0.0  ;;  %v6684_v27 = vsel %vm1377_vm2, %v6416_v37, 0.0 }
 0x9bc   :  { %v7033_v55 = vrot.slane %v7032_v22, 1  ;;  %v13298_v20 = vsel %vm2032_vm4, %v6962_v5, %v13230_v9  ;;  %v6389_v33 = vmul.f32 %v8475_v61, %v15002_v49  ;;  %v6405_v52 = vmul.f32 %v8476_v18, %v15003_v30  ;;  %v8478_v5 = vld [vmem:[#allocation2 + $0x158] sm:$0xff]  ;;  %v8479_v61 = vld [vmem:[#allocation2 + $0x70] sm:$0xff] }
 0x9bd   :  { %v13304_v39 = vpop.permute.xlu1 %6166  ;;  %v6547_v9 = vrot.slane %v6546_v47, 1  ;;  %v6617_v13 = vrot.slane %v6616_v12, 2  ;;  %v6622_v31 = vsel %vm1377_vm2, %v6403_v21, 0.0  ;;  %v6685_v63 = vsel %vm1377_vm2, %v6417_v16, 0.0  ;;  %v8480_v49 = vld [vmem:[#allocation2 + $0xf0] sm:$0xff] }
 0x9be   :  { %v7034_v15 = vadd.f32 %v7033_v55, %v7032_v22  ;;  %v13306_v10 = vpop.permute.xlu0 %6338  ;;  %v6558_v60 = vsel %vm1377_vm2, %v6388_v11, 0.0  ;;  %v6630_v36 = vsel %vm1377_vm2, %v6404_v19, 0.0  ;;  %v6418_v24 = vmul.f32 %v8477_v14, %v15004_v38  ;;  %v15005_v22 = vld [vmem:[#allocation14_spill] sm:$0xff]  ;;  %v15011_v38 = vld [vmem:[#allocation119_spill] sm:$0xff] }
 0x9bf   :  { %v6679_v0 = vadd.f32 %v6678_v32, %v6677_v43  ;;  %v6552_v2 = vrot.slane %v6551_v42, 4  ;;  %v6623_v56 = vadd.f32 %v6622_v31, %v6621_v46  ;;  %v6686_v58 = vadd.f32 %v6685_v63, %v6684_v27  ;;  %v8483_v63 = vld [vmem:[#allocation2 + $0xf8] sm:$0xff]  ;;  %v8484_v14 = vld [vmem:[#allocation2 + $0x168] sm:$0xff] }
 0x9c0   :  { %v13315_v45 = vsel %vm2032_vm4, %v7034_v15, %v13245_v41  ;;  %v6559_v29 = vsel %vm1377_vm2, %v6389_v33, 0.0  ;;  %v6631_v37 = vsel %vm1377_vm2, %v6405_v52, 0.0  ;;  %v6419_v62 = vmul.f32 %v8478_v5, %v15005_v22  ;;  %v15007_v33 = vld [vmem:[#allocation24_spill] sm:$0xff] }
 0x9c1   :  { %v13320_v44 = vpop.permute.xlu1 %6230  ;;  %v7174_v41 = vsel %vm2030_vm3, %v13264_v23, %v13200_v28  ;;  %v6560_v48 = vadd.f32 %v6559_v29, %v6558_v60  ;;  %v6632_v43 = vadd.f32 %v6631_v37, %v6630_v36  ;;  %v7162_v16 = vsel %vm2034_vm5, %v13273_v59, %v13161_v35  ;;  %v15006_v35 = vld [vmem:[#allocation116_spill] sm:$0xff]  ;;  %v15010_v60 = vld [vmem:[#allocation115_spill] sm:$0xff] }
 0x9c2   :  { %v13322_v21 = vpop.permute.xlu0 %6162  ;;  %v13333_v17 = vsel %vm2034_vm5, %v13276_v57, %v13181_v26  ;;  %v6548_v11 = vadd.f32 %v6547_v9, %v6546_v47  ;;  %v6618_v6 = vadd.f32 %v6617_v13, %v6616_v12  ;;  %v6693_v19 = vsel %vm1377_vm2, %v6418_v24, 0.0  ;;  %v8481_v57 = vld [vmem:[#allocation2 + $0x160] sm:$0xff]  ;;  %v15008_v47 = vld [vmem:[#allocation174_spill] sm:$0xff]  ;;  %v8482_v15 = vld [vmem:[#allocation2 + $0x78] sm:$0xff] }
 0x9c3   :  { %v13337_v55 = vsel %vm2032_vm4, %v6674_v53, %v7174_v41  ;;  %v6680_v32 = vrot.slane %v6679_v0, 2  ;;  %v6553_v28 = vadd.f32 %v6552_v2, %v6551_v42  ;;  %v6624_v23 = vrot.slane %v6623_v56, 4  ;;  %v15009_v9 = vld [vmem:[#allocation164_spill] sm:$0xff]  ;;  %v8485_v2 = vld [vmem:[#allocation2 + $0x240] sm:$0xff] }
 0x9c4   :  { %v6687_v46 = vrot.slane %v6686_v58, 4  ;;  %v6694_v27 = vsel %vm1377_vm2, %v6419_v62, 0.0  ;;  %v6390_v59 = vmul.f32 %v8479_v61, %v15006_v35  ;;  %v6406_v26 = vmul.f32 %v8480_v49, %v15007_v33  ;;  %v8486_v61 = vld [vmem:[#allocation2 + $0x248] sm:$0xff] }
 0x9c5   :  { %v6420_v12 = vmul.f32 %v8481_v57, %v15008_v47  ;;  %v13343_v18 = vpop.permute.xlu1 %6286  ;;  %v6561_v53 = vrot.slane %v6560_v48, 4  ;;  %v6633_v52 = vrot.slane %v6632_v43, 4  ;;  %v6695_v42 = vadd.f32 %v6694_v27, %v6693_v19 }
 0x9c6   :  { %v13345_v30 = vpop.permute.xlu0 %6226  ;;  %v6391_v13 = vmul.f32 %v8482_v15, %v15009_v9  ;;  %v6619_v31 = vrot.slane %v6618_v6, 1  ;;  %v6407_v36 = vmul.f32 %v8483_v63, %v15010_v60  ;;  %v6421_v24 = vmul.f32 %v8484_v14, %v15011_v38  ;;  %v8488_v15 = vld [vmem:[#allocation2 + $0x2c8] sm:$0xff] }
 0x9c7   :  { %v6448_v29 = vmul.f32 %v8485_v2, %v13252_v51  ;;  %v13351_v37 = vadd.f32 %v6680_v32, %v6679_v0  ;;  %v6554_v5 = vrot.slane %v6553_v28, 2  ;;  %v6625_v22 = vadd.f32 %v6624_v23, %v6623_v56 }
 0x9c8   :  { %v6688_v62 = vadd.f32 %v6687_v46, %v6686_v58  ;;  %v6567_v41 = vsel %vm1377_vm2, %v6390_v59, 0.0  ;;  %v6639_v19 = vsel %vm1377_vm2, %v6406_v26, 0.0  ;;  %v6702_v27 = vsel %vm1377_vm2, %v6420_v12, 0.0  ;;  %v8487_v46 = vld [vmem:[#allocation2 + $0x2c0] sm:$0xff] }
 0x9c9   :  { %v6449_v35 = vmul.f32 %v8486_v61, %v13240_v34  ;;  %v13357_v49 = vpop.permute.xlu1 %6350  ;;  %v6562_v57 = vadd.f32 %v6561_v53, %v6560_v48  ;;  %v6634_v51 = vadd.f32 %v6633_v52, %v6632_v43  ;;  %v6696_v0 = vrot.slane %v6695_v42, 4  ;;  %v8489_v61 = vld [vmem:[#allocation2 + $0x330] sm:$0xff] }
 0x9ca   :  { %v13359_v33 = vpop.permute.xlu0 %6282  ;;  %v6568_v32 = vsel %vm1377_vm2, %v6391_v13, 0.0  ;;  %v6640_v56 = vsel %vm1377_vm2, %v6407_v36, 0.0  ;;  %v6703_v58 = vsel %vm1377_vm2, %v6421_v24, 0.0  ;;  %v6828_v23 = vsel %vm1377_vm2, %v6448_v29, 0.0 }
 0x9cb   :  { %v6464_v59 = vmul.f32 %v8487_v46, %v13270_v54  ;;  %v6569_v26 = vadd.f32 %v6568_v32, %v6567_v41  ;;  %v6641_v34 = vadd.f32 %v6640_v56, %v6639_v19  ;;  %v6704_v47 = vadd.f32 %v6703_v58, %v6702_v27 }
 0x9cc   :  { %v13366_v12 = vpop.f32.mrb[32].mxu1  ;;  %v13369_v48 = vsel %vm2036_vm6, %v6548_v11, %v7162_v16  ;;  %v6626_v43 = vrot.slane %v6625_v22, 2  ;;  %v6689_v53 = vrot.slane %v6688_v62, 2  ;;  %v6829_v52 = vsel %vm1377_vm2, %v6449_v35, 0.0 }
 0x9cd   :  { %v6465_v9 = vmul.f32 %v8488_v15, %v13250_v8  ;;  %v13373_v13 = vpop.permute.xlu1 %6174  ;;  %v13375_v63 = vpop.f32.mrb[33].mxu1  ;;  %v6620_v54 = vadd.f32 %v6619_v31, %v6618_v6  ;;  %v6682_v60 = vrot.slane %v13351_v37, 1  ;;  %v6555_v36 = vadd.f32 %v6554_v5, %v6553_v28 }
 0x9ce   :  { %15012 = vst [vmem:[#allocation121_spill] sm:$0xff] %v13375_v63  ;;  %v6830_v14 = vadd.f32 %v6829_v52, %v6828_v23  ;;  %v13378_v38 = vpop.permute.xlu0 %6346  ;;  %v13380_v16 = vpop.f32.mrb[34].mxu1  ;;  %v6563_v11 = vrot.slane %v6562_v57, 2  ;;  %v6635_v24 = vrot.slane %v6634_v51, 2  ;;  %v6697_v2 = vadd.f32 %v6696_v0, %v6695_v42  ;;  %v8490_v0 = vld [vmem:[#allocation2 + $0x338] sm:$0xff] }
 0x9cf   :  { %v6900_v29 = vsel %vm1377_vm2, %v6464_v59, 0.0  ;;  %v13383_v41 = vpop.f32.mrb[35].mxu1  ;;  %v6570_v8 = vrot.slane %v6569_v26, 4  ;;  %v6642_v19 = vrot.slane %v6641_v34, 4  ;;  %v6705_v27 = vrot.slane %v6704_v47, 4 }
 0x9d0   :  { %v6478_v6 = vmul.f32 %v8489_v61, %v13289_v3  ;;  %v6627_v31 = vadd.f32 %v6626_v43, %v6625_v22  ;;  %v6690_v28 = vadd.f32 %v6689_v53, %v6688_v62  ;;  %v6714_v5 = vrot.slane %v13126_v7, 4 }
 0x9d1   :  { %v6901_v35 = vsel %vm1377_vm2, %v6465_v9, 0.0  ;;  %v13388_v32 = vpop.permute.xlu1 %6238  ;;  %v6556_v56 = vrot.slane %v6555_v36, 1  ;;  %v6831_v42 = vrot.slane %v6830_v14, 4  ;;  %v6479_v58 = vmul.f32 %v8490_v0, %v13268_v50 }
 0x9d2   :  { %v6902_v23 = vadd.f32 %v6901_v35, %v6900_v29  ;;  %v13391_v46 = vpop.permute.xlu0 %6170  ;;  %v6564_v59 = vadd.f32 %v6563_v11, %v6562_v57  ;;  %v6636_v52 = vadd.f32 %v6635_v24, %v6634_v51  ;;  %v6698_v15 = vrot.slane %v6697_v2, 2 }
 0x9d3   :  { %v7170_v3 = vsel %vm2036_vm6, %v6620_v54, %v13333_v17  ;;  %v6571_v22 = vadd.f32 %v6570_v8, %v6569_v26  ;;  %v6643_v62 = vadd.f32 %v6642_v19, %v6641_v34  ;;  %v6706_v43 = vadd.f32 %v6705_v27, %v6704_v47 }
 0x9d4   :  { %v6963_v53 = vsel %vm1377_vm2, %v6478_v6, 0.0  ;;  %v6683_v9 = vadd.f32 %v6682_v60, %v13351_v37  ;;  %v6628_v61 = vrot.slane %v6627_v31, 1  ;;  %v6691_v63 = vrot.slane %v6690_v28, 1  ;;  %v8491_v60 = vld [vmem:[#allocation2 + $0x3b0] sm:$0xff] }
 0x9d5   :  { %v6715_v50 = vadd.f32 %v6714_v5, %v13126_v7  ;;  %v13398_v29 = vpop.permute.xlu1 %6294  ;;  %v6832_v35 = vadd.f32 %v6831_v42, %v6830_v14  ;;  %v6964_v57 = vsel %vm1377_vm2, %v6479_v58, 0.0  ;;  %v6903_v51 = vrot.slane %v6902_v23, 4 }
 0x9d6   :  { %v13401_v11 = vpop.permute.xlu0 %6234  ;;  %v6557_v17 = vadd.f32 %v6556_v56, %v6555_v36  ;;  %v6699_v26 = vadd.f32 %v6698_v15, %v6697_v2  ;;  %v6965_v34 = vadd.f32 %v6964_v57, %v6963_v53  ;;  %v6565_v47 = vrot.slane %v6564_v59, 1  ;;  %v8492_v2 = vld [vmem:[#allocation2 + $0x3b8] sm:$0xff] }
 0x9d7   :  { %v6637_v54 = vrot.slane %v6636_v52, 1  ;;  %v6572_v24 = vrot.slane %v6571_v22, 2  ;;  %v6644_v8 = vrot.slane %v6643_v62, 2  ;;  %v6707_v37 = vrot.slane %v6706_v43, 2 }
 0x9d8   :  { %v6494_v19 = vmul.f32 %v8491_v60, %v13306_v10  ;;  %v6692_v7 = vadd.f32 %v6691_v63, %v6690_v28  ;;  %v6716_v27 = vrot.slane %v6715_v50, 2  ;;  %v7176_v14 = vsel %vm2034_vm5, %v6683_v9, %v13337_v55  ;;  %v8493_v9 = vld [vmem:[#allocation2 + $0x250] sm:$0xff] }
 0x9d9   :  { %v13404_v6 = vpop.permute.xlu1 %6358  ;;  %v6629_v5 = vadd.f32 %v6628_v61, %v6627_v31  ;;  %v6833_v42 = vrot.slane %v6832_v35, 2  ;;  %v6904_v36 = vadd.f32 %v6903_v51, %v6902_v23  ;;  %v6495_v56 = vmul.f32 %v8492_v2, %v13287_v25  ;;  %v8497_v2 = vld [vmem:[#allocation2 + $0x2d8] sm:$0xff] }
 0x9da   :  { %v13409_v0 = vpop.permute.xlu0 %6290  ;;  %v7164_v58 = vsel %vm2038_vm7, %v6557_v17, %v13369_v48  ;;  %v6700_v15 = vrot.slane %v6699_v26, 1  ;;  %v6966_v10 = vrot.slane %v6965_v34, 4  ;;  %v6566_v63 = vadd.f32 %v6565_v47, %v6564_v59 }
 0x9db   :  { %v6638_v28 = vadd.f32 %v6637_v54, %v6636_v52  ;;  %v6708_v53 = vadd.f32 %v6707_v37, %v6706_v43  ;;  %v7035_v57 = vsel %vm1377_vm2, %v6494_v19, 0.0  ;;  %v6573_v60 = vadd.f32 %v6572_v24, %v6571_v22  ;;  %v8494_v52 = vld [vmem:[#allocation2 + $0x258] sm:$0xff] }
 0x9dc   :  { %v6645_v55 = vadd.f32 %v6644_v8, %v6643_v62  ;;  %v6717_v31 = vadd.f32 %v6716_v27, %v6715_v50  ;;  %v6450_v23 = vmul.f32 %v8493_v9, %v13322_v21  ;;  %v7177_v25 = vsel %vm2036_vm6, %v6692_v7, %v7176_v14  ;;  %v8496_v7 = vld [vmem:[#allocation2 + $0x340] sm:$0xff] }
 0x9dd   :  { %v13415_v61 = vpop.permute.xlu1 %6182  ;;  %v7171_v51 = vsel %vm2038_vm7, %v6629_v5, %v7170_v3  ;;  %v6834_v48 = vadd.f32 %v6833_v42, %v6832_v35  ;;  %v6905_v17 = vrot.slane %v6904_v36, 2  ;;  %v7036_v59 = vsel %vm1377_vm2, %v6495_v56, 0.0  ;;  %v8495_v35 = vld [vmem:[#allocation2 + $0x2d0] sm:$0xff] }
 0x9de   :  { %v6451_v43 = vmul.f32 %v8494_v52, %v13304_v39  ;;  %v13421_v47 = vpop.permute.xlu0 %6354  ;;  %v6967_v22 = vadd.f32 %v6966_v10, %v6965_v34  ;;  %v7037_v62 = vadd.f32 %v7036_v59, %v7035_v57  ;;  %v7165_v50 = vsel %vm2040_vm8, %v6566_v63, %v7164_v58  ;;  %v8498_v10 = vld [vmem:[#allocation2 + $0x348] sm:$0xff]  ;;  %v8499_v63 = vld [vmem:[#allocation2 + $0x3c0] sm:$0xff] }
 0x9df   :  { %v7172_v21 = vsel %vm2040_vm8, %v6638_v28, %v7171_v51  ;;  %v6701_v54 = vadd.f32 %v6700_v15, %v6699_v26  ;;  %v6709_v24 = vrot.slane %v6708_v53, 1  ;;  %v6574_v8 = vrot.slane %v6573_v60, 1  ;;  %v8500_v51 = vld [vmem:[#allocation2 + $0x3c8] sm:$0xff] }
 0x9e0   :  { %v6646_v37 = vrot.slane %v6645_v55, 1  ;;  %v6837_v3 = vsel %vm1377_vm2, %v6450_v23, 0.0  ;;  %v6466_v19 = vmul.f32 %v8495_v35, %v13345_v30  ;;  %v6480_v39 = vmul.f32 %v8496_v7, %v13359_v33 }
 0x9e1   :  { %v13428_v27 = vpop.permute.xlu1 %6246  ;;  %v6718_v34 = vrot.slane %v6717_v31, 1  ;;  %v6835_v14 = vrot.slane %v6834_v48, 1  ;;  %v6906_v5 = vadd.f32 %v6905_v17, %v6904_v36  ;;  %v6838_v42 = vsel %vm1377_vm2, %v6451_v43, 0.0 }
 0x9e2   :  { %v6467_v26 = vmul.f32 %v8497_v2, %v13320_v44  ;;  %v13432_v56 = vpop.permute.xlu0 %6178  ;;  %v6968_v58 = vrot.slane %v6967_v22, 2  ;;  %v7038_v15 = vrot.slane %v7037_v62, 4  ;;  %v6481_v30 = vmul.f32 %v8498_v10, %v13343_v18 }
 0x9e3   :  { %v6496_v33 = vmul.f32 %v8499_v63, %v13378_v38  ;;  %v6839_v28 = vadd.f32 %v6838_v42, %v6837_v3  ;;  %v7178_v57 = vsel %vm2038_vm7, %v6701_v54, %v7177_v25  ;;  %v6575_v9 = vadd.f32 %v6574_v8, %v6573_v60 }
 0x9e4   :  { %v6647_v36 = vadd.f32 %v6646_v37, %v6645_v55  ;;  %v6909_v23 = vsel %vm1377_vm2, %v6466_v19, 0.0  ;;  %v6497_v44 = vmul.f32 %v8500_v51, %v13357_v49  ;;  %v6972_v17 = vsel %vm1377_vm2, %v6480_v39, 0.0 }
 0x9e5   :  { %v6303_v59 = vpop.permute.xlu1 %6302  ;;  %v6710_v52 = vadd.f32 %v6709_v24, %v6708_v53  ;;  %v6836_v43 = vadd.f32 %v6835_v14, %v6834_v48  ;;  %v6907_v35 = vrot.slane %v6906_v5, 1  ;;  %v6910_v18 = vsel %vm1377_vm2, %v6467_v26, 0.0  ;;  %v8501_v24 = vld [vmem:[#allocation2 + $0x268] sm:$0xff]  ;;  %v8503_v26 = vld [vmem:[#allocation2 + $0x350] sm:$0xff] }
 0x9e6   :  { %v6243_v7 = vpop.permute.xlu0 %6242  ;;  %v6719_v38 = vadd.f32 %v6718_v34, %v6717_v31  ;;  %v13441_v3 = vadd.f32 %v6968_v58, %v6967_v22  ;;  %v13443_v25 = vadd.f32 %v7038_v15, %v7037_v62  ;;  %v6973_v60 = vsel %vm1377_vm2, %v6481_v30, 0.0  ;;  %v8502_v22 = vld [vmem:[#allocation2 + $0x260] sm:$0xff]  ;;  %v8504_v30 = vld [vmem:[#allocation2 + $0x358] sm:$0xff] }
 0x9e7   :  { %v7044_v55 = vsel %vm1377_vm2, %v6496_v33, 0.0  ;;  %v6840_v54 = vrot.slane %v6839_v28, 4  ;;  %v13447_v49 = vadd.f32 %v6910_v18, %v6909_v23  ;;  %v13449_v8 = vadd.f32 %v6973_v60, %v6972_v17  ;;  %v8505_v33 = vld [vmem:[#allocation2 + $0x3d0] sm:$0xff] }
 0x9e8   :  { %v13452_v53 = vsel %vm2042_vm9, %v6575_v9, %v7165_v50  ;;  %v7045_v48 = vsel %vm1377_vm2, %v6497_v44, 0.0  ;;  %v6453_v31 = vmul.f32 %v8501_v24, %v13373_v13  ;;  %v6452_v62 = vmul.f32 %v8502_v22, %v13391_v46  ;;  %v8506_v9 = vld [vmem:[#allocation2 + $0x360] sm:$0xff]  ;;  %v8510_v18 = vld [vmem:[#allocation2 + $0x270] sm:$0xff] }
 0x9e9   :  { %v6367_v37 = vpop.permute.xlu1 %6366  ;;  %v7179_v19 = vsel %vm2040_vm8, %v6710_v52, %v7178_v57  ;;  %v13458_v39 = vadd.f32 %v7045_v48, %v7044_v55  ;;  %v13464_v50 = vsel %vm2042_vm9, %v6647_v36, %v7172_v21  ;;  %v13468_v42 = vsel %vm2036_vm6, %v6836_v43, %v13259_v40  ;;  %v8508_v44 = vld [vmem:[#allocation2 + $0x2e0] sm:$0xff]  ;;  %v8509_v52 = vld [vmem:[#allocation2 + $0x3d8] sm:$0xff] }
 0x9ea   :  { %v6299_v34 = vpop.permute.xlu0 %6298  ;;  %v13461_v14 = vsel %vm2042_vm9, %v6719_v38, %v7179_v19  ;;  %v13470_v13 = vadd.f32 %v6907_v35, %v6906_v5  ;;  %v6970_v46 = vrot.slane %v13441_v3, 1  ;;  %v7040_v2 = vrot.slane %v13443_v25, 2  ;;  %v8511_v38 = vld [vmem:[#allocation2 + $0x368] sm:$0xff]  ;;  %v8512_v55 = vld [vmem:[#allocation2 + $0x3e0] sm:$0xff] }
 0x9eb   :  { %v6482_v58 = vmul.f32 %v8503_v26, %v13409_v0  ;;  %v13475_v15 = vadd.f32 %v6840_v54, %v6839_v28  ;;  %v6912_v10 = vrot.slane %v13447_v49, 4  ;;  %v6975_v21 = vrot.slane %v13449_v8, 4  ;;  %v8507_v28 = vld [vmem:[#allocation2 + $0x2e8] sm:$0xff]  ;;  %v8516_v26 = vld [vmem:[#allocation2 + $0x378] sm:$0xff] }
 0x9ec   :  { %v6483_v63 = vmul.f32 %v8504_v30, %v13398_v29  ;;  %v6847_v40 = vsel %vm1377_vm2, %v6453_v31, 0.0  ;;  %v6846_v5 = vsel %vm1377_vm2, %v6452_v62, 0.0  ;;  %v6498_v57 = vmul.f32 %v8505_v33, %v13421_v47  ;;  %v8515_v62 = vld [vmem:[#allocation2 + $0x3e8] sm:$0xff] }
 0x9ed   :  { %v6484_v36 = vmul.f32 %v8506_v9, %v6299_v34  ;;  %v6311_v23 = vpop.permute.xlu1 %6310  ;;  %v7047_v0 = vrot.slane %v13458_v39, 4  ;;  %v6469_v51 = vmul.f32 %v8507_v28, %v13388_v32  ;;  %v6468_v17 = vmul.f32 %v8508_v44, %v13401_v11  ;;  %v8513_v32 = vld [vmem:[#allocation2 + $0x278] sm:$0xff]  ;;  %v8514_v11 = vld [vmem:[#allocation2 + $0x2f0] sm:$0xff] }
 0x9ee   :  { %v6499_v29 = vmul.f32 %v8509_v52, %v13404_v6  ;;  %v6363_v43 = vpop.permute.xlu0 %6362  ;;  %v6981_v35 = vsel %vm1377_vm2, %v6482_v58, 0.0  ;;  %v6454_v47 = vmul.f32 %v8510_v18, %v13432_v56  ;;  %v6485_v60 = vmul.f32 %v8511_v38, %v6303_v59  ;;  %v8519_v52 = vld [vmem:[#allocation2 + $0x3f8] sm:$0xff] }
 0x9ef   :  { %v6500_v54 = vmul.f32 %v8512_v55, %v6363_v43  ;;  %v6848_v48 = vadd.f32 %v6847_v40, %v6846_v5  ;;  %v6982_v24 = vsel %vm1377_vm2, %v6483_v63, 0.0  ;;  %v6455_v31 = vmul.f32 %v8513_v32, %v13415_v61  ;;  %v8517_v40 = vld [vmem:[#allocation2 + $0x2f8] sm:$0xff]  ;;  %v8520_v32 = vld [vmem:[#allocation2 + $0x3f0] sm:$0xff] }
 0x9f0   :  { %v6470_v22 = vmul.f32 %v8514_v11, %v6243_v7  ;;  %v7053_v6 = vsel %vm1377_vm2, %v6498_v57, 0.0  ;;  %v6501_v19 = vmul.f32 %v8515_v62, %v6367_v37  ;;  %v6990_v34 = vsel %vm1377_vm2, %v6484_v36, 0.0  ;;  %v8518_v57 = vld [vmem:[#allocation2 + $0x370] sm:$0xff] }
 0x9f1   :  { %v6487_v56 = vmul.f32 %v8516_v26, %v6311_v23  ;;  %v6918_v59 = vsel %vm1377_vm2, %v6468_v17, 0.0  ;;  %v7054_v58 = vsel %vm1377_vm2, %v6499_v29, 0.0  ;;  %v6983_v30 = vadd.f32 %v6982_v24, %v6981_v35  ;;  %v6375_v5 = vpop.permute.xlu1 %6374 }
 0x9f2   :  { %v6471_v63 = vmul.f32 %v8517_v40, %v13428_v27  ;;  %v6307_v61 = vpop.permute.xlu0 %6306  ;;  %v6855_v7 = vsel %vm1377_vm2, %v6454_v47, 0.0  ;;  %v6991_v33 = vsel %vm1377_vm2, %v6485_v60, 0.0  ;;  %v7062_v37 = vsel %vm1377_vm2, %v6500_v54, 0.0 }
 0x9f3   :  { %v6486_v9 = vmul.f32 %v8518_v57, %v6307_v61  ;;  %v6856_v36 = vsel %vm1377_vm2, %v6455_v31, 0.0  ;;  %v7055_v23 = vadd.f32 %v7054_v58, %v7053_v6  ;;  %v6927_v28 = vsel %vm1377_vm2, %v6470_v22, 0.0 }
 0x9f4   :  { %v6992_v44 = vadd.f32 %v6991_v33, %v6990_v34  ;;  %v7063_v17 = vsel %vm1377_vm2, %v6501_v19, 0.0  ;;  %v7000_v27 = vsel %vm1377_vm2, %v6487_v56, 0.0  ;;  %v6503_v29 = vmul.f32 %v8519_v52, %v6375_v5 }
 0x9f5   :  { %v6999_v43 = vsel %vm1377_vm2, %v6486_v9, 0.0  ;;  %v6919_v35 = vsel %vm1377_vm2, %v6469_v51, 0.0  ;;  %v6857_v18 = vadd.f32 %v6856_v36, %v6855_v7  ;;  %v7064_v47 = vadd.f32 %v7063_v17, %v7062_v37 }
 0x9f6   :  { %v7001_v38 = vadd.f32 %v7000_v27, %v6999_v43  ;;  %v6371_v60 = vpop.permute.xlu0 %6370  ;;  %v6920_v55 = vadd.f32 %v6919_v35, %v6918_v59  ;;  %v6984_v54 = vrot.slane %v6983_v30, 4  ;;  %v6928_v24 = vsel %vm1377_vm2, %v6471_v63, 0.0 }
 0x9f7   :  { %v6502_v31 = vmul.f32 %v8520_v32, %v6371_v60  ;;  %v6976_v11 = vadd.f32 %v6975_v21, %v13449_v8  ;;  %v6849_v22 = vrot.slane %v6848_v48, 4  ;;  %v6929_v6 = vadd.f32 %v6928_v24, %v6927_v28 }
 0x9f8   :  { %v6993_v62 = vrot.slane %v6992_v44, 4  ;;  %v7056_v19 = vrot.slane %v7055_v23, 4  ;;  %v7072_v51 = vsel %vm1377_vm2, %v6503_v29, 0.0  ;;  %v7002_v34 = vrot.slane %v7001_v38, 4 }
 0x9f9   :  { %v7071_v26 = vsel %vm1377_vm2, %v6502_v31, 0.0  ;;  %v7048_v56 = vadd.f32 %v7047_v0, %v13458_v39  ;;  %v6858_v59 = vrot.slane %v6857_v18, 4  ;;  %v7065_v58 = vrot.slane %v7064_v47, 4 }
 0x9fa   :  { %v7073_v40 = vadd.f32 %v7072_v51, %v7071_v26  ;;  %v7041_v8 = vadd.f32 %v7040_v2, %v13443_v25  ;;  %v6842_v21 = vrot.slane %v13475_v15, 2  ;;  %v6921_v63 = vrot.slane %v6920_v55, 4 }
 0x9fb   :  { %v6985_v5 = vadd.f32 %v6984_v54, %v6983_v30  ;;  %v6850_v61 = vadd.f32 %v6849_v22, %v6848_v48  ;;  %v6930_v7 = vrot.slane %v6929_v6, 4  ;;  %v6994_v33 = vadd.f32 %v6993_v62, %v6992_v44 }
 0x9fc   :  { %v7074_v37 = vrot.slane %v7073_v40, 4  ;;  %v6913_v57 = vadd.f32 %v6912_v10, %v13447_v49  ;;  %v6977_v39 = vrot.slane %v6976_v11, 2  ;;  %v7057_v0 = vadd.f32 %v7056_v19, %v7055_v23 }
 0x9fd   :  { %v7003_v9 = vadd.f32 %v7002_v34, %v7001_v38  ;;  %v7049_v36 = vrot.slane %v7048_v56, 2  ;;  %v6859_v28 = vadd.f32 %v6858_v59, %v6857_v18  ;;  %v7066_v17 = vadd.f32 %v7065_v58, %v7064_v47 }
 0x9fe   :  { %v13524_v25 = vsel %vm2036_vm6, %v13470_v13, %v13282_v1  ;;  %v7042_v2 = vrot.slane %v7041_v8, 1  ;;  %v6922_v48 = vadd.f32 %v6921_v63, %v6920_v55  ;;  %v6986_v30 = vrot.slane %v6985_v5, 2 }
 0x9ff   :  { %v7075_v44 = vadd.f32 %v7074_v37, %v7073_v40  ;;  %v6843_v27 = vadd.f32 %v6842_v21, %v13475_v15  ;;  %v6851_v52 = vrot.slane %v6850_v61, 2  ;;  %v6931_v29 = vadd.f32 %v6930_v7, %v6929_v6 }
 0xa00   :  { %v6995_v49 = vrot.slane %v6994_v33, 2  ;;  %v6914_v10 = vrot.slane %v6913_v57, 2  ;;  %v6978_v23 = vadd.f32 %v6977_v39, %v6976_v11  ;;  %v7058_v43 = vrot.slane %v7057_v0, 2 }
 0xa01   :  { %v7004_v35 = vrot.slane %v7003_v9, 2  ;;  %v13527_v18 = vpop.f32.mrb[36].mxu1  ;;  %v6971_v1 = vadd.f32 %v6970_v46, %v13441_v3  ;;  %v7050_v13 = vadd.f32 %v7049_v36, %v7048_v56  ;;  %v6860_v47 = vrot.slane %v6859_v28, 2 }
 0xa02   :  { %v7067_v38 = vrot.slane %v7066_v17, 2  ;;  %v13532_v60 = vpop.f32.mrb[37].mxu1  ;;  %v7043_v55 = vadd.f32 %v7042_v2, %v7041_v8  ;;  %v6923_v15 = vrot.slane %v6922_v48, 2  ;;  %v6987_v54 = vadd.f32 %v6986_v30, %v6985_v5 }
 0xa03   :  { %v7076_v24 = vrot.slane %v7075_v44, 2  ;;  %v13534_v32 = vpop.f32.mrb[38].mxu1  ;;  %v6844_v31 = vrot.slane %v6843_v27, 1  ;;  %v6852_v11 = vadd.f32 %v6851_v52, %v6850_v61  ;;  %v6932_v22 = vrot.slane %v6931_v29, 2 }
 0xa04   :  { %v6996_v6 = vadd.f32 %v6995_v49, %v6994_v33  ;;  %v13536_v62 = vpop.f32.mrb[39].mxu1  ;;  %v6915_v19 = vadd.f32 %v6914_v10, %v6913_v57  ;;  %v6979_v51 = vrot.slane %v6978_v23, 1  ;;  %v7059_v3 = vadd.f32 %v7058_v43, %v7057_v0 }
 0xa05   :  { %v7005_v46 = vadd.f32 %v7004_v35, %v7003_v9  ;;  %v7051_v34 = vrot.slane %v7050_v13, 1  ;;  %v6861_v26 = vadd.f32 %v6860_v47, %v6859_v28  ;;  %v7068_v56 = vadd.f32 %v7067_v38, %v7066_v17 }
 0xa06   :  { %v7204_v59 = vsel %vm2034_vm5, %v6971_v1, %v13298_v20  ;;  %v6924_v58 = vadd.f32 %v6923_v15, %v6922_v48  ;;  %v6988_v40 = vrot.slane %v6987_v54, 1  ;;  %v7077_v8 = vadd.f32 %v7076_v24, %v7075_v44 }
 0xa07   :  { %v7211_v21 = vsel %vm2034_vm5, %v7043_v55, %v13315_v45  ;;  %v6845_v63 = vadd.f32 %v6844_v31, %v6843_v27  ;;  %v6853_v5 = vrot.slane %v6852_v11, 1  ;;  %v6933_v61 = vadd.f32 %v6932_v22, %v6931_v29 }
 0xa08   :  { %v6997_v7 = vrot.slane %v6996_v6, 1  ;;  %v6916_v33 = vrot.slane %v6915_v19, 1  ;;  %v6980_v37 = vadd.f32 %v6979_v51, %v6978_v23  ;;  %v7060_v57 = vrot.slane %v7059_v3, 1 }
 0xa09   :  { %v7979_v39 = vpop.f32.mrb[40].mxu1  ;;  %v7006_v0 = vrot.slane %v7005_v46, 1  ;;  %v7052_v9 = vadd.f32 %v7051_v34, %v7050_v13  ;;  %v7069_v36 = vrot.slane %v7068_v56, 1  ;;  %v6862_v17 = vrot.slane %v6861_v26, 1 }
 0xa0a   :  { %v13543_v28 = vadd.f32 %v7979_v39, %v13461_v14  ;;  %v7282_v20 = vpop.f32.mrb[41].mxu1  ;;  %v6925_v2 = vrot.slane %v6924_v58, 1  ;;  %v6989_v48 = vadd.f32 %v6988_v40, %v6987_v54  ;;  %v7078_v44 = vrot.slane %v7077_v8, 1 }
 0xa0b   :  { %v7283_v45 = vadd.f32 %v7282_v20, %v13452_v53  ;;  %v7980_v30 = vpop.f32.mrb[42].mxu1  ;;  %v6998_v29 = vadd.f32 %v6997_v7, %v6996_v6  ;;  %v6854_v49 = vadd.f32 %v6853_v5, %v6852_v11  ;;  %v6934_v10 = vrot.slane %v6933_v61, 1 }
 0xa0c   :  { %v13547_v27 = vadd.f32 %v7980_v30, %v13164_v4  ;;  %v7285_v52 = vpop.f32.mrb[43].mxu1  ;;  %v7061_v23 = vadd.f32 %v7060_v57, %v7059_v3  ;;  %v7007_v35 = vadd.f32 %v7006_v0, %v7005_v46  ;;  %v6917_v1 = vadd.f32 %v6916_v33, %v6915_v19 }
 0xa0d   :  { %v7286_v43 = vadd.f32 %v7285_v52, %v13464_v50  ;;  %v7313_v14 = vsel %vm1377_vm2, %v7283_v45, -inf  ;;  %v7205_v13 = vsel %vm2036_vm6, %v6980_v37, %v7204_v59  ;;  %v6863_v53 = vadd.f32 %v6862_v17, %v6861_v26 }
 0xa0e   :  { %7314 = vmax.xlane.f32.xlu0 %v7313_v14  ;;  %v7070_v47 = vadd.f32 %v7069_v36, %v7068_v56  ;;  %v7206_v4 = vsel %vm2038_vm7, %v6989_v48, %v7205_v13  ;;  %v7079_v55 = vadd.f32 %v7078_v44, %v7077_v8  ;;  %v6926_v15 = vadd.f32 %v6925_v2, %v6924_v58 }
 0xa0f   :  { %v7316_v38 = vsel %vm1377_vm2, %v7286_v43, -inf  ;;  %v7207_v54 = vsel %vm2040_vm8, %v6998_v29, %v7206_v4  ;;  %v7192_v50 = vsel %vm2038_vm7, %v6845_v63, %v13468_v42  ;;  %v7212_v24 = vsel %vm2036_vm6, %v7052_v9, %v7211_v21 }
 0xa10   :  { %7317 = vmax.xlane.f32.xlu1 %v7316_v38  ;;  %v6935_v31 = vadd.f32 %v6934_v10, %v6933_v61  ;;  %v7208_v11 = vsel %vm2042_vm9, %v7007_v35, %v7207_v54  ;;  %v7193_v6 = vsel %vm2040_vm8, %v6854_v49, %v7192_v50  ;;  %v7319_v19 = vsel %vm1377_vm2, %v13543_v28, -inf  ;;  %v15013_v54 = vld [vmem:[#allocation41_spill] sm:$0xff]  ;;  %v15014_v50 = vld [vmem:[#allocation56_spill] sm:$0xff] }
 0xa11   :  { %v7983_v22 = vpop.f32.mrb[44].mxu1  ;;  %v7213_v51 = vsel %vm2038_vm7, %v7061_v23, %v7212_v24  ;;  %v7194_v46 = vsel %vm2042_vm9, %v6863_v53, %v7193_v6  ;;  %v7199_v26 = vsel %vm2038_vm7, %v6917_v1, %v13524_v25  ;;  %v7322_v61 = vsel %vm1377_vm2, %v13547_v27, -inf  ;;  %v15017_v6 = vld [vmem:[#allocation169_spill] sm:$0xff] }
 0xa12   :  { %v7307_v3 = vadd.f32 %v7983_v22, %v7208_v11  ;;  %v7298_v34 = vpop.f32.mrb[45].mxu1  ;;  %7320 = vmax.xlane.f32.xlu0 %v7319_v19  ;;  %v7214_v42 = vsel %vm2040_vm8, %v7070_v47, %v7213_v51  ;;  %v7200_v40 = vsel %vm2040_vm8, %v6926_v15, %v7199_v26  ;;  %v15016_v22 = vld [vmem:[#allocation155_spill] sm:$0xff] }
 0xa13   :  { %v7299_v56 = vadd.f32 %v7298_v34, %v7194_v46  ;;  %v7215_v59 = vsel %vm2042_vm9, %v7079_v55, %v7214_v42  ;;  %v7984_v58 = vpop.f32.mrb[46].mxu1  ;;  %v7201_v21 = vsel %vm2042_vm9, %v6935_v31, %v7200_v40  ;;  %v15015_v31 = vld [vmem:[#allocation37_spill] sm:$0xff]  ;;  %v15018_v19 = vpack.i.bf16 %v15016_v22, %v15017_v6  ;;  %v15020_v46 = vld [vmem:[#allocation162_spill] sm:$0xff] }
 0xa14   :  { %v13569_v8 = vadd.f32 %v7984_v58, %v7215_v59  ;;  %v7301_v63 = vpop.f32.mrb[47].mxu1  ;;  %v7331_v37 = vsel %vm1377_vm2, %v7307_v3, -inf }
 0xa15   :  { %v13572_v5 = vadd.f32 %v7301_v63, %v7201_v21  ;;  %v7325_v7 = vsel %vm1377_vm2, %v7299_v56, -inf  ;;  %v15022_v21 = vld [vmem:[#allocation53_spill] sm:$0xff] }
 0xa16   :  { %7323 = vmax.xlane.f32.xlu0 %v7322_v61  ;;  %v7334_v33 = vsel %vm1377_vm2, %v13569_v8, -inf  ;;  %v15023_v63 = vld [vmem:[#allocation5_spill] sm:$0xff] }
 0xa17   :  { %v7328_v25 = vsel %vm1377_vm2, %v13572_v5, -inf }
 0xa18   :  { %7329 = vmax.xlane.f32.xlu1 %v7328_v25  ;;  %v15026_v25 = vld [vmem:[#allocation13_spill] sm:$0xff] }
 0xa1a   :  { %7326 = vmax.xlane.f32.xlu0 %v7325_v7  ;;  %v15027_v7 = vld [vmem:[#allocation165_spill] sm:$0xff] }
 0xa1c   :  { %7335 = vmax.xlane.f32.xlu1 %v7334_v33  ;;  %v15028_v33 = vpack.i.bf16 %v15026_v25, %v15027_v7 }
 0xa1e   :  { %7332 = vmax.xlane.f32.xlu0 %v7331_v37 }
 0xa9b   :  { %v7315_v57 = vpop.xlane.xlu0 %7314 }
 0xa9c   :  { %v7337_v39 = vsub.f32 %v7283_v45, %v7315_v57 }
 0xa9d   :  { %v7318_v0 = vpop.xlane.xlu1 %7317 }
 0xa9e   :  { %v7345_v20 = vmul.f32 1.442695, %v7337_v39  ;;  %v7338_v17 = vsub.f32 %v7286_v43, %v7318_v0 }
 0xa9f   :  { %v7321_v9 = vpop.xlane.xlu0 %7320 }
 0xaa0   :  { %v7339_v36 = vsub.f32 %v13543_v28, %v7321_v9  ;;  %v7347_v44 = vmul.f32 1.442695, %v7338_v17 }
 0xaa2   :  { %v7349_v2 = vmul.f32 1.442695, %v7339_v36 }
 0xaa3   :  { %v7324_v48 = vpop.xlane.xlu0 %7323 }
 0xaa4   :  { %8218 = vpow2.f32 %v7349_v2  ;;  %v7340_v30 = vsub.f32 %v13547_v27, %v7324_v48 }
 0xaa5   :  { %8220 = vpow2.f32 %v7345_v20  ;;  %v7330_v24 = vpop.xlane.xlu1 %7329 }
 0xaa6   :  { %v7351_v52 = vmul.f32 1.442695, %v7340_v30  ;;  %v7342_v42 = vsub.f32 %v13572_v5, %v7330_v24  ;;  %v15024_v5 = vld [vmem:[#allocation157_spill] sm:$0xff] }
 0xaa7   :  { %v7327_v29 = vpop.xlane.xlu0 %7326  ;;  %v15025_v61 = vpack.i.bf16 %v15023_v63, %v15024_v5  ;;  %v15033_v5 = vld [vmem:[#allocation168_spill] sm:$0xff] }
 0xaa8   :  { %8222 = vpow2.f32 %v7351_v52  ;;  %v7341_v49 = vsub.f32 %v7299_v56, %v7327_v29  ;;  %v7355_v56 = vmul.f32 1.442695, %v7342_v42  ;;  %v8089_v42 = vld [vmem:[%s13811_s3 + $0x8] sm:$0xff]  }
 0xaa9   :  { %8224 = vpow2.f32 %v7347_v44  ;;  %v7336_v11 = vpop.xlane.xlu1 %7335 }
 0xaaa   :  { %v7353_v14 = vmul.f32 1.442695, %v7341_v49  ;;  %v7344_v51 = vsub.f32 %v13569_v8, %v7336_v11 }
 0xaab   :  { %v7333_v10 = vpop.xlane.xlu0 %7332 }
 0xaac   :  { %v7343_v45 = vsub.f32 %v7307_v3, %v7333_v10  ;;  %v15019_v3 = vld [vmem:[#allocation11_spill] sm:$0xff]  ;;  %v7359_v26 = vmul.f32 1.442695, %v7344_v51  ;;  %v8088_v51 = vld [vmem:[%s13811_s3] sm:$0xff]  }
 0xaad   :  { %v15021_v34 = vpack.i.bf16 %v15019_v3, %v15020_v46 }
 0xaae   :  { %v13584_v23 = vpop.eup %8218  ;;  %v7357_v28 = vmul.f32 1.442695, %v7343_v45 }
 0xaaf   :  { %v7367_v43 = vsel %vm1377_vm2, %v13584_v23, 0.0  ;;  %v8221_v35 = vpop.eup %8220 }
 0xab0   :  { %8226 = vpow2.f32 %v7357_v28  ;;  %7368 = vadd.xlane.f32.xlu0 %v7367_v43  ;;  %v7361_v1 = vsel %vm1377_vm2, %v8221_v35, 0.0  ;;  %v15030_v43 = vld [vmem:[#allocation136_spill] sm:$0xff] }
 0xab1   :  { %8228 = vpow2.f32 %v7353_v14  ;;  %v15029_v14 = vld [vmem:[#allocation142_spill] sm:$0xff] }
 0xab2   :  { %v13588_v27 = vpop.eup %8222  ;;  %8230 = vpow2.f32 %v7359_v26 }
 0xab3   :  { %v7370_v13 = vsel %vm1377_vm2, %v13588_v27, 0.0  ;;  %v8225_v53 = vpop.eup %8224  ;;  %8232 = vpow2.f32 %v7355_v56 }
 0xab4   :  { %7362 = vadd.xlane.f32.xlu0 %v7361_v1  ;;  %7371 = vadd.xlane.f32.xlu1 %v7370_v13  ;;  %v7364_v47 = vsel %vm1377_vm2, %v8225_v53, 0.0 }
 0xab8   :  { %7365 = vadd.xlane.f32.xlu1 %v7364_v47 }
 0xaba   :  { %v13594_v38 = vpop.eup %8226 }
 0xabb   :  { %v7379_v4 = vsel %vm1377_vm2, %v13594_v38, 0.0  ;;  %v13598_v55 = vpop.eup %8228 }
 0xabc   :  { %7380 = vadd.xlane.f32.xlu0 %v7379_v4  ;;  %v7373_v15 = vsel %vm1377_vm2, %v13598_v55, 0.0  ;;  %v13618_v59 = vpop.eup %8230  ;;  %v15031_v4 = vld [vmem:[#allocation123_spill] sm:$0xff] }
 0xabd   :  { %v7382_v58 = vsel %vm1377_vm2, %v13618_v59, 0.0  ;;  %v13622_v40 = vpop.eup %8232 }
 0xabe   :  { %v7376_v8 = vsel %vm1377_vm2, %v13622_v40, 0.0 }
 0xac0   :  { %7374 = vadd.xlane.f32.xlu0 %v7373_v15 }
 0xac9   :  { %7407 = vrot.lane.b32.xlu1 %v15013_v54, %s8568_s20  ;;  %v15032_v54 = vld [vmem:[#allocation120_spill] sm:$0xff] }
 0xacd   :  { %7409 = vrot.lane.b32.xlu1 %v15014_v50, %s8568_s20 }
 0xad6   :  { %7405 = vrot.lane.b32.xlu0 %v15015_v31, %s8568_s20 }
 0xada   :  { %8047 = vrot.lane.b32.xlu0 %v15018_v19, %s8569_s21 }
 0xade   :  { %8057 = vrot.lane.b32.xlu0 %v15021_v34, %s8569_s21 }
 0xaf1   :  { %7383 = vadd.xlane.f32.xlu1 %v7382_v58 }
 0xaf5   :  { %7377 = vadd.xlane.f32.xlu1 %v7376_v8 }
 0xb06   :  { %7411 = vrot.lane.b32.xlu1 %v15022_v21, %s8568_s20 }
 0xb0a   :  { %8052 = vrot.lane.b32.xlu1 %v15025_v61, %s8569_s21  ;;  %v15034_v61 = vld [vmem:[#allocation25_spill] sm:$0xff] }
 0xb0e   :  { %8062 = vrot.lane.b32.xlu1 %v15028_v33, %s8569_s21 }
 0xb3d   :  { %v7369_v37 = vpop.xlane.xlu0 %7368 }
 0xb41   :  { %v7372_v57 = vpop.xlane.xlu1 %7371  ;;  %v7363_v39 = vpop.xlane.xlu0 %7362 }
 0xb42   :  { %8234 = vrcp.f32 %v7363_v39 }
 0xb45   :  { %v7366_v0 = vpop.xlane.xlu1 %7365 }
 0xb46   :  { %8236 = vrcp.f32 %v7366_v0 }
 0xb47   :  { %8238 = vrcp.f32 %v7372_v57 }
 0xb48   :  { %8240 = vrcp.f32 %v7369_v37 }
 0xb49   :  { %v7381_v9 = vpop.xlane.xlu0 %7380  ;;  %v7408_v2 = vpop.permute.xlu1 %7407 }
 0xb4c   :  { %v8235_v20 = vpop.eup %8234 }
 0xb4d   :  { %v7375_v36 = vpop.xlane.xlu0 %7374  ;;  %v7393_v30 = vmul.f32 %v8235_v20, %v8221_v35  ;;  %v7410_v45 = vpop.permute.xlu1 %7409 }
 0xb50   :  { %v8237_v17 = vpop.eup %8236 }
 0xb51   :  { %v7406_v48 = vpop.permute.xlu0 %7405  ;;  %v7394_v44 = vmul.f32 %v8237_v17, %v8225_v53  ;;  %v8239_v11 = vpop.eup %8238  ;;  %v15035_v17 = vld [vmem:[#allocation152_spill] sm:$0xff] }
 0xb52   :  { %7985 = vmatprep.subr.bf16.mxu0 %v7406_v48  ;;  %v8241_v6 = vpop.eup %8240  ;;  %v7396_v19 = vmul.f32 %v8239_v11, %v13588_v27  ;;  %v8524_v11 = vld [vmem:[%s13808_s0 + $0x8] sm:$0xff] }
 0xb53   :  { %7986 = vmatpush3.bf16.msra.mxu0 %v7406_v48  ;;  %v7401_v52 = vpack.c.bf16 %v7394_v44, %v7393_v30  ;;  %v7395_v46 = vmul.f32 %v8241_v6, %v13584_v23  ;;  %v15036_v48 = vld [vmem:[#allocation124_spill] sm:$0xff] }
 0xb54   :  { %7987 = vmatprep.subr.bf16.mxu0 %v7408_v2 }
 0xb55   :  { %7993 = vmatprep.mubr.msk.bf16.mxu0 %vm1377_vm2, %v7401_v52  ;;  %v8048_v29 = vpop.permute.xlu0 %8047  ;;  %v7402_v34 = vpack.c.bf16 %v7396_v19, %v7395_v46  ;;  %v8525_v19 = vld [vmem:[%s13808_s0 + $0x30] sm:$0xff]  ;;  %v8526_v46 = vld [vmem:[%s13808_s0 + $0x20] sm:$0xff] }
 0xb56   :  { %v8050_v49 = vunpack.i.h.bf16 %v8048_v29  ;;  %v8049_v10 = vunpack.i.l.bf16 %v8048_v29 }
 0xb57   :  { %7988 = vmatpush3.bf16.msra.mxu0 %v7408_v2 }
 0xb58   :  { %v4035_v28 = vsel %vm2101_vm1, %v15029_v14, %v8050_v49  ;;  %v4034_v1 = vsel %vm2101_vm1, %v15030_v43, %v8049_v10  ;;  %7989 = vmatprep.subr.bf16.mxu0 %v7410_v45 }
 0xb59   :  { %v7534_v35 = vpack.c.bf16 %v4035_v28, %v4034_v1  ;;  %v8058_v13 = vpop.permute.xlu0 %8057 }
 0xb5a   :  { %v8060_v53 = vunpack.i.h.bf16 %v8058_v13  ;;  %v8059_v47 = vunpack.i.l.bf16 %v8058_v13  ;;  %v8521_v13 = vld [vmem:[%s13808_s0 + $0x10] sm:$0xff] }
 0xb5b   :  { %7990 = vmatpush3.bf16.msra.mxu0 %v7410_v45 }
 0xb5c   :  { %v4039_v15 = vsel %vm2101_vm1, %v15031_v4, %v8060_v53  ;;  %v4038_v50 = vsel %vm2101_vm1, %v15032_v54, %v8059_v47  ;;  %v8522_v4 = vld [vmem:[%s13808_s0] sm:$0xff] }
 0xb5d   :  { %v7536_v24 = vpack.c.bf16 %v4039_v15, %v4038_v50  ;;  %v8523_v50 = vld [vmem:[%s13808_s0 + $0x18] sm:$0xff] }
 0xb7e   :  { %v7384_v31 = vpop.xlane.xlu1 %7383 }
 0xb7f   :  { %8242 = vrcp.f32 %v7384_v31 }
 0xb80   :  { %8244 = vrcp.f32 %v7375_v36 }
 0xb81   :  { %8246 = vrcp.f32 %v7381_v9 }
 0xb82   :  { %v7378_v22 = vpop.xlane.xlu1 %7377 }
 0xb83   :  { %8248 = vrcp.f32 %v7378_v22 }
 0xb86   :  { %v7412_v3 = vpop.permute.xlu1 %7411 }
 0xb87   :  { %7991 = vmatprep.subr.bf16.mxu0 %v7412_v3 }
 0xb88   :  { %7992 = vmatpush3.bf16.msra.mxu0 %v7412_v3 }
 0xb89   :  { %8001 = vmatprep.subr.bf16.mxu0 %v8088_v51  ;;  %v8243_v26 = vpop.eup %8242 }
 0xb8a   :  { %v8053_v56 = vpop.permute.xlu1 %8052  ;;  %v8245_v58 = vpop.eup %8244  ;;  %v7400_v7 = vmul.f32 %v8243_v26, %v13618_v59  ;;  %v8527_v26 = vld [vmem:[%s13808_s0 + $0x38] sm:$0xff] }
 0xb8b   :  { %v8055_v8 = vunpack.i.h.bf16 %v8053_v56  ;;  %v8054_v27 = vunpack.i.l.bf16 %v8053_v56  ;;  %7994 = vmatmul.mubr.msk.bf16.vlgmr.msra.gmra.mrb[24].mxu0 %vm1377_vm2, %v7402_v34  ;;  %v8247_v21 = vpop.eup %8246  ;;  %v7397_v57 = vmul.f32 %v8245_v58, %v13598_v55 }
 0xb8c   :  { %8002 = vmatpush3.bf16.msra.mxu0 %v8088_v51  ;;  %v7399_v36 = vmul.f32 %v8247_v21, %v13594_v38 }
 0xb8d   :  { %v8249_v63 = vpop.eup %8248  ;;  %v4037_v23 = vsel %vm2101_vm1, %v15033_v5, %v8055_v8  ;;  %v4036_v25 = vsel %vm2101_vm1, %v15034_v61, %v8054_v27  ;;  %8003 = vmatprep.subr.bf16.mxu0 %v8089_v42  ;;  %v8528_v8 = vld [vmem:[%s13808_s0 + $0x28] sm:$0xff] }
 0xb8e   :  { %v7535_v33 = vpack.c.bf16 %v4037_v23, %v4036_v25  ;;  %v8063_v37 = vpop.permute.xlu1 %8062  ;;  %v7398_v39 = vmul.f32 %v8249_v63, %v13622_v40  ;;  %v7404_v59 = vpack.c.bf16 %v7400_v7, %v7399_v36 }
 0xb8f   :  { %v8065_v0 = vunpack.i.h.bf16 %v8063_v37  ;;  %v8064_v9 = vunpack.i.l.bf16 %v8063_v37 }
 0xb90   :  { %v7403_v20 = vpack.c.bf16 %v7398_v39, %v7397_v57  ;;  %8004 = vmatpush3.bf16.msra.mxu0 %v8089_v42  ;;  %v15037_v39 = vld [vmem:[#allocation121_spill] sm:$0xff] }
 0xb91   :  { %v4041_v2 = vsel %vm2101_vm1, %v15035_v17, %v8065_v0  ;;  %v4040_v30 = vsel %vm2101_vm1, %v15036_v48, %v8064_v9 }
 0xb92   :  { %v7537_v44 = vpack.c.bf16 %v4041_v2, %v4040_v30  ;;  %7997 = vmatprep.mubr.msk.bf16.mxu0 %vm1377_vm2, %v7403_v20 }
 0xb93   :  { %7998 = vmatmul.mubr.msk.bf16.gmra.mrb[28].mxu0 %vm1377_vm2, %v7404_v59 }
 0xb94   :  { %8005 = vmatprep.mubr.msk.bf16.mxu0 %vm51_vm0, %v7534_v35 }
 0xb9b   :  { %8006 = vmatmul.mubr.msk.bf16.vlgmr.msra.gmra.mrb[32].mxu0 %vm51_vm0, %v7535_v33 }
 0xb9c   :  { %8009 = vmatprep.mubr.msk.bf16.mxu0 %vm51_vm0, %v7536_v24 }
 0xba3   :  { %8010 = vmatmul.mubr.msk.bf16.gmra.mrb[36].mxu0 %vm51_vm0, %v7537_v44 }
 0xc5e   :  { %v7995_v38 = vpop.f32.mrb[24].mxu0 }
 0xc5f   :  { %v7463_v55 = vpop.f32.mrb[25].mxu0 }
 0xc60   :  { %v7996_v40 = vpop.f32.mrb[26].mxu0 }
 0xc61   :  { %v8071_v52 = vpack.i.bf16 %v7996_v40, %v7995_v38  ;;  %v7466_v29 = vpop.f32.mrb[27].mxu0 }
 0xc62   :  { %v8066_v49 = vpack.i.bf16 %v7466_v29, %v7463_v55 }
 0xc63   :  { %8072 = vrot.lane.b32.xlu1 %v8071_v52, %s8569_s21 }
 0xc64   :  { %8067 = vrot.lane.b32.xlu0 %v8066_v49, %s8569_s21 }
 0xc66   :  { %v7999_v10 = vpop.f32.mrb[28].mxu0 }
 0xc67   :  { %v7479_v45 = vpop.f32.mrb[29].mxu0 }
 0xc68   :  { %v8000_v14 = vpop.f32.mrb[30].mxu0 }
 0xc69   :  { %v8081_v28 = vpack.i.bf16 %v8000_v14, %v7999_v10  ;;  %v7482_v43 = vpop.f32.mrb[31].mxu0 }
 0xc6a   :  { %v8076_v1 = vpack.i.bf16 %v7482_v43, %v7479_v45  ;;  %v8532_v45 = vld [vmem:[%s13808_s0 + $0x48] sm:$0xff]  ;;  %v8533_v43 = vld [vmem:[%s13808_s0 + $0x70] sm:$0xff] }
 0xc6b   :  { %8082 = vrot.lane.b32.xlu1 %v8081_v28, %s8569_s21 }
 0xc6c   :  { %8077 = vrot.lane.b32.xlu0 %v8076_v1, %s8569_s21 }
 0xc6e   :  { %v8007_v35 = vpop.f32.mrb[32].mxu0 }
 0xc6f   :  { %v7681_v53 = vadd.f32 %v8521_v13, %v8007_v35  ;;  %v7616_v47 = vpop.f32.mrb[33].mxu0  ;;  %v8534_v13 = vld [vmem:[%s13808_s0 + $0x60] sm:$0xff] }
 0xc70   :  { %v7679_v15 = vadd.f32 %v8522_v4, %v7616_v47  ;;  %v8008_v54 = vpop.f32.mrb[34].mxu0  ;;  %v8535_v4 = vld [vmem:[%s13808_s0 + $0x78] sm:$0xff] }
 0xc71   :  { %7697 = vst.msk [vmem:[%s13813_s5 + $0x10] sm:$0xff] %vm51_vm0, %v7681_v53  ;;  %v7682_v24 = vadd.f32 %v8523_v50, %v8008_v54  ;;  %v7619_v31 = vpop.f32.mrb[35].mxu0  ;;  %v8536_v50 = vld [vmem:[%s13808_s0 + $0x68] sm:$0xff] }
 0xc72   :  { %7695 = vst.msk [vmem:[%s13813_s5] sm:$0xff] %vm51_vm0, %v7679_v15  ;;  %v7680_v22 = vadd.f32 %v8524_v11, %v7619_v31 }
 0xc73   :  { %7698 = vst.msk [vmem:[%s13813_s5 + $0x18] sm:$0xff] %vm51_vm0, %v7682_v24 }
 0xc74   :  { %7696 = vst.msk [vmem:[%s13813_s5 + $0x8] sm:$0xff] %vm51_vm0, %v7680_v22 }
 0xc76   :  { %v8011_v6 = vpop.f32.mrb[36].mxu0 }
 0xc77   :  { %v7685_v51 = vadd.f32 %v8525_v19, %v8011_v6  ;;  %v7632_v3 = vpop.f32.mrb[37].mxu0 }
 0xc78   :  { %v7683_v34 = vadd.f32 %v8526_v46, %v7632_v3  ;;  %v8012_v42 = vpop.f32.mrb[38].mxu0 }
 0xc79   :  { %7701 = vst.msk [vmem:[%s13813_s5 + $0x30] sm:$0xff] %vm51_vm0, %v7685_v51  ;;  %v7686_v56 = vadd.f32 %v8527_v26, %v8012_v42  ;;  %v7635_v58 = vpop.f32.mrb[39].mxu0 }
 0xc7a   :  { %7699 = vst.msk [vmem:[%s13813_s5 + $0x20] sm:$0xff] %vm51_vm0, %v7683_v34  ;;  %v7684_v27 = vadd.f32 %v8528_v8, %v7635_v58 }
 0xc7b   :  { %7702 = vst.msk [vmem:[%s13813_s5 + $0x38] sm:$0xff] %vm51_vm0, %v7686_v56 }
 0xc7c   :  { %7700 = vst.msk [vmem:[%s13813_s5 + $0x28] sm:$0xff] %vm51_vm0, %v7684_v27 }
 0xcd5   :  { %v8073_v21 = vpop.permute.xlu1 %8072 }
 0xcd6   :  { %v8075_v63 = vunpack.i.h.bf16 %v8073_v21  ;;  %v8074_v5 = vunpack.i.l.bf16 %v8073_v21  ;;  %v8068_v23 = vpop.permute.xlu0 %8067 }
 0xcd7   :  { %v8070_v61 = vunpack.i.h.bf16 %v8068_v23  ;;  %v8069_v25 = vunpack.i.l.bf16 %v8068_v23 }
 0xcd8   :  { %v7529_v7 = vsel %vm2101_vm1, %v13380_v16, %v8075_v63  ;;  %v7528_v33 = vsel %vm2101_vm1, %v13366_v12, %v8074_v5 }
 0xcd9   :  { %v7539_v37 = vpack.c.bf16 %v7529_v7, %v7528_v33  ;;  %v7527_v57 = vsel %vm2101_vm1, %v13383_v41, %v8070_v61  ;;  %v7526_v0 = vsel %vm2101_vm1, %v15037_v39, %v8069_v25 }
 0xcda   :  { %v7538_v9 = vpack.c.bf16 %v7527_v57, %v7526_v0 }
 0xcdc   :  { %8013 = vmatprep.mubr.msk.bf16.mxu0 %vm51_vm0, %v7538_v9 }
 0xcdd   :  { %v8083_v36 = vpop.permute.xlu1 %8082  ;;  %8014 = vmatmul.mubr.msk.bf16.gmra.mrb[40].mxu0 %vm51_vm0, %v7539_v37 }
 0xcde   :  { %v8085_v20 = vunpack.i.h.bf16 %v8083_v36  ;;  %v8084_v17 = vunpack.i.l.bf16 %v8083_v36  ;;  %v8078_v2 = vpop.permute.xlu0 %8077 }
 0xcdf   :  { %v8080_v16 = vunpack.i.h.bf16 %v8078_v2  ;;  %v8079_v48 = vunpack.i.l.bf16 %v8078_v2 }
 0xce0   :  { %v7533_v12 = vsel %vm2101_vm1, %v13534_v32, %v8085_v20  ;;  %v7532_v41 = vsel %vm2101_vm1, %v13527_v18, %v8084_v17  ;;  %v8529_v32 = vld [vmem:[%s13808_s0 + $0x50] sm:$0xff]  ;;  %v8530_v18 = vld [vmem:[%s13808_s0 + $0x40] sm:$0xff] }
 0xce1   :  { %v7541_v30 = vpack.c.bf16 %v7533_v12, %v7532_v41  ;;  %v7531_v59 = vsel %vm2101_vm1, %v13536_v62, %v8080_v16  ;;  %v7530_v44 = vsel %vm2101_vm1, %v13532_v60, %v8079_v48  ;;  %v8531_v60 = vld [vmem:[%s13808_s0 + $0x58] sm:$0xff] }
 0xce2   :  { %v7540_v38 = vpack.c.bf16 %v7531_v59, %v7530_v44 }
 0xce4   :  { %8017 = vmatprep.mubr.msk.bf16.mxu0 %vm51_vm0, %v7540_v38 }
 0xce5   :  { %8018 = vmatmul.mubr.msk.bf16.gmra.mrb[44].mxu0 %vm51_vm0, %v7541_v30 }
 0xdb0   :  { %v8015_v55 = vpop.f32.mrb[40].mxu0 }
 0xdb1   :  { %v7689_v40 = vadd.f32 %v8529_v32, %v8015_v55  ;;  %v7648_v52 = vpop.f32.mrb[41].mxu0 }
 0xdb2   :  { %v7687_v62 = vadd.f32 %v8530_v18, %v7648_v52  ;;  %v8016_v29 = vpop.f32.mrb[42].mxu0 }
 0xdb3   :  { %7705 = vst.msk [vmem:[%s13813_s5 + $0x50] sm:$0xff] %vm51_vm0, %v7689_v40  ;;  %v7690_v49 = vadd.f32 %v8531_v60, %v8016_v29  ;;  %v7651_v10 = vpop.f32.mrb[43].mxu0 }
 0xdb4   :  { %7703 = vst.msk [vmem:[%s13813_s5 + $0x40] sm:$0xff] %vm51_vm0, %v7687_v62  ;;  %v7688_v14 = vadd.f32 %v8532_v45, %v7651_v10 }
 0xdb5   :  { %7706 = vst.msk [vmem:[%s13813_s5 + $0x58] sm:$0xff] %vm51_vm0, %v7690_v49 }
 0xdb6   :  { %7704 = vst.msk [vmem:[%s13813_s5 + $0x48] sm:$0xff] %vm51_vm0, %v7688_v14 }
 0xdb8   :  { %v8019_v28 = vpop.f32.mrb[44].mxu0 }
 0xdb9   :  { %v7693_v1 = vadd.f32 %v8533_v43, %v8019_v28  ;;  %v7664_v35 = vpop.f32.mrb[45].mxu0 }
 0xdba   :  { %v7691_v53 = vadd.f32 %v8534_v13, %v7664_v35  ;;  %v8020_v47 = vpop.f32.mrb[46].mxu0 }
 0xdbb   :  { %7709 = vst.msk [vmem:[%s13813_s5 + $0x70] sm:$0xff] %vm51_vm0, %v7693_v1  ;;  %v7694_v15 = vadd.f32 %v8535_v4, %v8020_v47  ;;  %v7667_v54 = vpop.f32.mrb[47].mxu0 }
 0xdbc   :  { %7707 = vst.msk [vmem:[%s13813_s5 + $0x60] sm:$0xff] %vm51_vm0, %v7691_v53  ;;  %v7692_v24 = vadd.f32 %v8536_v50, %v7667_v54 }
 0xdbd   :  { %7710 = vst.msk [vmem:[%s13813_s5 + $0x78] sm:$0xff] %vm51_vm0, %v7694_v15 }
 0xdbe   :  { %7708 = vst.msk [vmem:[%s13813_s5 + $0x68] sm:$0xff] %vm51_vm0, %v7692_v24 }
 0xdbf   :  { %7715 = vsyncpa [#allocation3], 1 }

</bundles_post_ra>
